<compile_context>
chip_gen: v6e
topology: v6e:2x2x1
jax: 0.10.0
libtpu: 0.0.40
codegen_flags: <defaults>
</compile_context>

<pallas_src>
import jax
import jax.numpy as jnp
from jax import lax
from jax.experimental import pallas as pl
from jax.experimental.pallas import tpu as pltpu

# ---------------- configuration (mirrors the PyTorch __init__) ----------------
NUM_EVAL_FRAME = 4                      # cfg.num_eval_frame (synthetic)
EMB_FREQS = 10                          # NeRF xyz positional encoding: 3 + 3*2*10 = 63
C_XYZ = 3 + 3 * 2 * EMB_FREQS           # 63
C_XYZ_P = 128                           # xyz channels padded to one lane tile
C_LAT = 128                             # bw_latent embedding dim
C_IN = C_XYZ + C_LAT                    # 191  (input_ch)
HID = 256                               # W
C_OUT = 24
D = 8
SKIPS = (4,)


# ---------------- glue: NeRF xyz positional encoding ----------------
def xyz_embedder(pts):
    # pts: (B, N, 3) -> (B, N, 63)
    freqs = 2.0 ** jnp.arange(EMB_FREQS, dtype=jnp.float32)          # (10,)
    scaled = pts[..., None, :] * freqs[:, None]                      # (B, N, 10, 3)
    enc = jnp.stack([jnp.sin(scaled), jnp.cos(scaled)], axis=-2)     # (B, N, 10, 2, 3)
    enc = enc.reshape(*pts.shape[:-1], 2 * EMB_FREQS * 3)
    return jnp.concatenate([pts, enc], axis=-1)


# ---------------- Pallas kernel ----------------
def bw_mlp_kernel(feat_ref, logbw_ref, latb0_ref, latb5_ref,
                  w0, b0, w1, b1, w2, b2, w3, b3, w4, b4,
                  w5x, w5n, b5, w6, b6, w7, b7, wft, bfc,
                  out_ref):
    feat = feat_ref[0]                                     # (tm, 128) bf16 (xyz emb, zero-padded)

    def dense_relu(x, w_r, b_r, extra=None):
        y = jnp.dot(x, w_r[...], preferred_element_type=jnp.float32) + b_r[...]
        if extra is not None:
            y = y + extra
        return jnp.maximum(y, 0.0).astype(jnp.bfloat16)

    net = dense_relu(feat, w0, b0, latb0_ref[0])           # latent folded into per-batch bias
    net = dense_relu(net, w1, b1)
    net = dense_relu(net, w2, b2)
    net = dense_relu(net, w3, b3)
    net = dense_relu(net, w4, b4)
    # skip (i == 4): cat(features, net) @ W5 == xyz @ W5_xyz + lat @ W5_lat + net @ W5_net
    y = (jnp.dot(feat, w5x[...], preferred_element_type=jnp.float32)
         + jnp.dot(net, w5n[...], preferred_element_type=jnp.float32)
         + b5[...] + latb5_ref[0])
    net = jnp.maximum(y, 0.0).astype(jnp.bfloat16)
    net = dense_relu(net, w6, b6)
    net = dense_relu(net, w7, b7)

    # final 1x1 conv computed transposed -> lane-dense (24, tm) logits
    logits = lax.dot_general(wft[...], net,
                             dimension_numbers=(((1,), (1,)), ((), ())),
                             preferred_element_type=jnp.float32)      # (24, tm)
    logits = logits + bfc[...] + logbw_ref[0]

    m = jnp.max(logits, axis=0, keepdims=True)             # softmax over the 24 channels
    e = jnp.exp(logits - m)
    s = jnp.sum(e, axis=0, keepdims=True)
    inv = 1.0 / s                                          # exact f32 reciprocal (one (1,tm) divide)
    out_ref[0] = e * inv


# ---------------- wrapper ----------------
def backward_blend_weight(ppts, smpl_bw, latent_index, params, *, tm=512):
    """ppts: (B, N, 3)  smpl_bw: (B, 24, N)  latent_index: (B,) int32 -> (B, 24, N)."""
    B, N, _ = ppts.shape
    layers = params["layers"]

    # ---- weights: split (xyz / latent / hidden rows), cast matmul operands to bf16 ----
    w0, b0 = layers[0]
    w5, b5 = layers[5]
    wf, bf = layers[D]

    def pad_xyz_rows(w):                                   # (63, 256) -> (128, 256), zero pad
        return jnp.zeros((C_XYZ_P, HID), jnp.float32).at[:C_XYZ].set(w)

    w0_xyz = pad_xyz_rows(w0[:C_XYZ]).astype(jnp.bfloat16)
    w5_xyz = pad_xyz_rows(w5[:C_XYZ]).astype(jnp.bfloat16)
    w5_net = w5[C_IN:].astype(jnp.bfloat16)                # (256, 256)
    wft = wf.T.astype(jnp.bfloat16)                        # (24, 256)
    bfc = bf.reshape(C_OUT, 1)                             # (24, 1) f32

    # latent contribution folded into per-batch biases (exact, done in f32)
    lat = params["latent_table"][latent_index]             # (B, 128)
    latb0 = (lat @ w0[C_XYZ:]).reshape(B, 1, HID)          # (B, 1, 256) f32
    latb5 = (lat @ w5[C_XYZ:C_IN]).reshape(B, 1, HID)      # (B, 1, 256) f32

    weight_args = [w0_xyz, b0]
    for li in (1, 2, 3, 4):
        w, b = layers[li]
        weight_args += [w.astype(jnp.bfloat16), b]
    weight_args += [w5_xyz, w5_net, b5]
    for li in (6, 7):
        w, b = layers[li]
        weight_args += [w.astype(jnp.bfloat16), b]
    weight_args += [wft, bfc]

    # ---- activations: xyz embedding only, bf16, lane-padded; pad N to the row tile ----
    emb = xyz_embedder(ppts)                               # (B, N, 63)
    N_pad = pl.cdiv(N, tm) * tm
    feat = jnp.zeros((B, N_pad, C_XYZ_P), jnp.float32).at[:, :N, :C_XYZ].set(emb)
    feat = feat.astype(jnp.bfloat16)

    logbw = jnp.log(smpl_bw + 1e-9)                        # (B, 24, N) f32
    if N_pad != N:
        logbw = jnp.pad(logbw, ((0, 0), (0, 0), (0, N_pad - N)))

    def const2d(shape):
        return pl.BlockSpec(shape, lambda b, i: (0, 0))

    in_specs = [
        pl.BlockSpec((1, tm, C_XYZ_P), lambda b, i: (b, i, 0)),   # feat
        pl.BlockSpec((1, C_OUT, tm), lambda b, i: (b, 0, i)),     # log(smpl_bw), lane-dense
        pl.BlockSpec((1, 1, HID), lambda b, i: (b, 0, 0)),        # latb0 (per-batch)
        pl.BlockSpec((1, 1, HID), lambda b, i: (b, 0, 0)),        # latb5 (per-batch)
    ] + [const2d(a.shape) for a in weight_args]

    out = pl.pallas_call(
        bw_mlp_kernel,
        out_shape=jax.ShapeDtypeStruct((B, C_OUT, N_pad), jnp.float32),
        grid=(B, N_pad // tm),
        in_specs=in_specs,
        out_specs=pl.BlockSpec((1, C_OUT, tm), lambda b, i: (b, 0, i)),
        compiler_params=pltpu.CompilerParams(
            dimension_semantics=("parallel", "parallel"),
            vmem_limit_bytes=32 * 1024 * 1024),
    )(feat, logbw, latb0, latb5, *weight_args)

    return out[:, :, :N]                                   # (B, 24, N) — PyTorch layout


# ---------------- deterministic parameter init (PyTorch-Conv1d-style uniform) ----------
def init_params(key):
    keys = jax.random.split(key, 2 * (D + 1) + 1)
    latent_table = 0.1 * jax.random.normal(keys[0], (NUM_EVAL_FRAME, C_LAT), jnp.float32)

    def uinit(k, shape, fan_in):
        bound = 1.0 / float(fan_in) ** 0.5
        return jax.random.uniform(k, shape, jnp.float32, -bound, bound)

    c_skip = C_IN + HID
    real_in = [C_IN] + [HID if i not in SKIPS else c_skip for i in range(D - 1)] + [HID]
    real_out = [HID] * D + [C_OUT]
    layers = []
    for li, (ci, co) in enumerate(zip(real_in, real_out)):
        wk, bk = keys[1 + 2 * li], keys[2 + 2 * li]
        layers.append((uinit(wk, (ci, co), ci), uinit(bk, (1, co), ci)))
    return {"latent_table": latent_table, "layers": layers}


# ---------------- pure-JAX f32 reference (unfolded, unpadded) for a sanity check -------
def reference_forward(ppts, smpl_bw, latent_index, params):
    B, N, _ = ppts.shape
    emb = xyz_embedder(ppts)
    lat = jnp.broadcast_to(params["latent_table"][latent_index][:, None, :], (B, N, C_LAT))
    feat = jnp.concatenate([emb, lat], axis=-1).reshape(B * N, C_IN)
    net = feat
    for i in range(D):
        w, b = params["layers"][i]
        net = jnp.maximum(net @ w + b, 0.0)
        if i in SKIPS:
            net = jnp.concatenate([feat, net], axis=-1)
    wf, bf = params["layers"][D]
    logits = net @ wf + bf
    bwl = jnp.transpose(smpl_bw, (0, 2, 1)).reshape(B * N, C_OUT)
    out = jax.nn.softmax(logits + jnp.log(bwl + 1e-9), axis=-1)
    return jnp.transpose(out.reshape(B, N, C_OUT), (0, 2, 1))


if __name__ == "__main__":
    key = jax.random.PRNGKey(0)
    kp, k1, k2 = jax.random.split(key, 3)
    params = init_params(kp)

    B, N = 2, 256
    ppts = jax.random.normal(k1, (B, N, 3), jnp.float32)
    smpl_bw = jax.nn.softmax(jax.random.normal(k2, (B, C_OUT, N), jnp.float32), axis=1)
    latent_index = jnp.array([0, 1], dtype=jnp.int32)

    out = backward_blend_weight(ppts, smpl_bw, latent_index, params)
    out = jax.block_until_ready(out)

    ref = reference_forward(ppts, smpl_bw, latent_index, params)
    assert out.shape == (B, C_OUT, N)
    assert bool(jnp.all(jnp.isfinite(out)))
    assert float(jnp.max(jnp.abs(jnp.sum(out, axis=1) - 1.0))) < 1e-4   # exact-division softmax
    assert float(jnp.max(jnp.abs(out - ref))) < 2e-2                    # bf16 matmul slack

    print("KERNEL_OK")
</pallas_src>

<mosaic_0001>
module attributes {stable_mosaic.version = 11 : i64} {
  func.func @bw_mlp_kernel(%arg0: i32, %arg1: i32, %arg2: memref<1x512x128xbf16, #tpu.memory_space<vmem>>, %arg3: memref<1x24x512xf32, #tpu.memory_space<vmem>>, %arg4: memref<1x1x256xf32, #tpu.memory_space<vmem>>, %arg5: memref<1x1x256xf32, #tpu.memory_space<vmem>>, %arg6: memref<128x256xbf16, #tpu.memory_space<vmem>>, %arg7: memref<1x256xf32, #tpu.memory_space<vmem>>, %arg8: memref<256x256xbf16, #tpu.memory_space<vmem>>, %arg9: memref<1x256xf32, #tpu.memory_space<vmem>>, %arg10: memref<256x256xbf16, #tpu.memory_space<vmem>>, %arg11: memref<1x256xf32, #tpu.memory_space<vmem>>, %arg12: memref<256x256xbf16, #tpu.memory_space<vmem>>, %arg13: memref<1x256xf32, #tpu.memory_space<vmem>>, %arg14: memref<256x256xbf16, #tpu.memory_space<vmem>>, %arg15: memref<1x256xf32, #tpu.memory_space<vmem>>, %arg16: memref<128x256xbf16, #tpu.memory_space<vmem>>, %arg17: memref<256x256xbf16, #tpu.memory_space<vmem>>, %arg18: memref<1x256xf32, #tpu.memory_space<vmem>>, %arg19: memref<256x256xbf16, #tpu.memory_space<vmem>>, %arg20: memref<1x256xf32, #tpu.memory_space<vmem>>, %arg21: memref<256x256xbf16, #tpu.memory_space<vmem>>, %arg22: memref<1x256xf32, #tpu.memory_space<vmem>>, %arg23: memref<24x256xbf16, #tpu.memory_space<vmem>>, %arg24: memref<24x1xf32, #tpu.memory_space<vmem>>, %arg25: memref<1x24x512xf32, #tpu.memory_space<vmem>>) attributes {dimension_semantics = [#tpu.dimension_semantics<parallel>, #tpu.dimension_semantics<parallel>], iteration_bounds = array<i64: 2, 1>, scalar_prefetch = 0 : i64, scratch_operands = 0 : i64, tpu.core_type = #tpu.core_type<tc>, window_params = [{transform_indices = @transform_0, window_bounds = array<i64: 1, 512, 128>}, {transform_indices = @transform_1, window_bounds = array<i64: 1, 24, 512>}, {transform_indices = @transform_2, window_bounds = array<i64: 1, 1, 256>}, {transform_indices = @transform_3, window_bounds = array<i64: 1, 1, 256>}, {pipeline_mode = #tpu.pipeline_mode<synchronous>, transform_indices = @transform_4, window_bounds = array<i64: 128, 256>}, {pipeline_mode = #tpu.pipeline_mode<synchronous>, transform_indices = @transform_5, window_bounds = array<i64: 1, 256>}, {pipeline_mode = #tpu.pipeline_mode<synchronous>, transform_indices = @transform_6, window_bounds = array<i64: 256, 256>}, {pipeline_mode = #tpu.pipeline_mode<synchronous>, transform_indices = @transform_7, window_bounds = array<i64: 1, 256>}, {pipeline_mode = #tpu.pipeline_mode<synchronous>, transform_indices = @transform_8, window_bounds = array<i64: 256, 256>}, {pipeline_mode = #tpu.pipeline_mode<synchronous>, transform_indices = @transform_9, window_bounds = array<i64: 1, 256>}, {pipeline_mode = #tpu.pipeline_mode<synchronous>, transform_indices = @transform_10, window_bounds = array<i64: 256, 256>}, {pipeline_mode = #tpu.pipeline_mode<synchronous>, transform_indices = @transform_11, window_bounds = array<i64: 1, 256>}, {pipeline_mode = #tpu.pipeline_mode<synchronous>, transform_indices = @transform_12, window_bounds = array<i64: 256, 256>}, {pipeline_mode = #tpu.pipeline_mode<synchronous>, transform_indices = @transform_13, window_bounds = array<i64: 1, 256>}, {pipeline_mode = #tpu.pipeline_mode<synchronous>, transform_indices = @transform_14, window_bounds = array<i64: 128, 256>}, {pipeline_mode = #tpu.pipeline_mode<synchronous>, transform_indices = @transform_15, window_bounds = array<i64: 256, 256>}, {pipeline_mode = #tpu.pipeline_mode<synchronous>, transform_indices = @transform_16, window_bounds = array<i64: 1, 256>}, {pipeline_mode = #tpu.pipeline_mode<synchronous>, transform_indices = @transform_17, window_bounds = array<i64: 256, 256>}, {pipeline_mode = #tpu.pipeline_mode<synchronous>, transform_indices = @transform_18, window_bounds = array<i64: 1, 256>}, {pipeline_mode = #tpu.pipeline_mode<synchronous>, transform_indices = @transform_19, window_bounds = array<i64: 256, 256>}, {pipeline_mode = #tpu.pipeline_mode<synchronous>, transform_indices = @transform_20, window_bounds = array<i64: 1, 256>}, {pipeline_mode = #tpu.pipeline_mode<synchronous>, transform_indices = @transform_21, window_bounds = array<i64: 24, 256>}, {pipeline_mode = #tpu.pipeline_mode<synchronous>, transform_indices = @transform_22, window_bounds = array<i64: 24, 1>}, {transform_indices = @transform_23, window_bounds = array<i64: 1, 24, 512>}]} {
    %c0 = arith.constant 0 : index
    %c0_0 = arith.constant 0 : index
    %c0_1 = arith.constant 0 : index
    %0 = vector.load %arg2[%c0, %c0_0, %c0_1] : memref<1x512x128xbf16, #tpu.memory_space<vmem>>, vector<1x512x128xbf16>
    %1 = vector.shape_cast %0 : vector<1x512x128xbf16> to vector<512x128xbf16>
    %c0_2 = arith.constant 0 : index
    %c0_3 = arith.constant 0 : index
    %c0_4 = arith.constant 0 : index
    %2 = vector.load %arg4[%c0_2, %c0_3, %c0_4] : memref<1x1x256xf32, #tpu.memory_space<vmem>>, vector<1x1x256xf32>
    %3 = vector.shape_cast %2 : vector<1x1x256xf32> to vector<1x256xf32>
    %c0_5 = arith.constant 0 : index
    %c0_6 = arith.constant 0 : index
    %4 = vector.load %arg6[%c0_5, %c0_6] : memref<128x256xbf16, #tpu.memory_space<vmem>>, vector<128x256xbf16>
    %cst = arith.constant dense<0.000000e+00> : vector<512x256xf32>
    %5 = tpu.matmul %1, %4, %cst {dimension_numbers = #tpu.dot_dimension_numbers<[1], [0], [0], [1], [0, 0, 1, 1], [], []>} : vector<512x128xbf16>, vector<128x256xbf16>, vector<512x256xf32> -> vector<512x256xf32>
    %c0_7 = arith.constant 0 : index
    %c0_8 = arith.constant 0 : index
    %6 = vector.load %arg7[%c0_7, %c0_8] : memref<1x256xf32, #tpu.memory_space<vmem>>, vector<1x256xf32>
    %7 = vector.broadcast %6 : vector<1x256xf32> to vector<512x256xf32>
    %8 = arith.addf %5, %7 : vector<512x256xf32>
    %9 = vector.broadcast %3 : vector<1x256xf32> to vector<512x256xf32>
    %10 = arith.addf %8, %9 : vector<512x256xf32>
    %cst_9 = arith.constant 0.000000e+00 : f32
    %11 = vector.broadcast %cst_9 : f32 to vector<512x256xf32>
    %12 = arith.maximumf %10, %11 : vector<512x256xf32>
    %13 = arith.truncf %12 : vector<512x256xf32> to vector<512x256xbf16>
    %c0_10 = arith.constant 0 : index
    %c0_11 = arith.constant 0 : index
    %14 = vector.load %arg8[%c0_10, %c0_11] : memref<256x256xbf16, #tpu.memory_space<vmem>>, vector<256x256xbf16>
    %cst_12 = arith.constant dense<0.000000e+00> : vector<512x256xf32>
    %15 = tpu.matmul %13, %14, %cst_12 {dimension_numbers = #tpu.dot_dimension_numbers<[1], [0], [0], [1], [0, 0, 1, 1], [], []>} : vector<512x256xbf16>, vector<256x256xbf16>, vector<512x256xf32> -> vector<512x256xf32>
    %c0_13 = arith.constant 0 : index
    %c0_14 = arith.constant 0 : index
    %16 = vector.load %arg9[%c0_13, %c0_14] : memref<1x256xf32, #tpu.memory_space<vmem>>, vector<1x256xf32>
    %17 = vector.broadcast %16 : vector<1x256xf32> to vector<512x256xf32>
    %18 = arith.addf %15, %17 : vector<512x256xf32>
    %cst_15 = arith.constant 0.000000e+00 : f32
    %19 = vector.broadcast %cst_15 : f32 to vector<512x256xf32>
    %20 = arith.maximumf %18, %19 : vector<512x256xf32>
    %21 = arith.truncf %20 : vector<512x256xf32> to vector<512x256xbf16>
    %c0_16 = arith.constant 0 : index
    %c0_17 = arith.constant 0 : index
    %22 = vector.load %arg10[%c0_16, %c0_17] : memref<256x256xbf16, #tpu.memory_space<vmem>>, vector<256x256xbf16>
    %cst_18 = arith.constant dense<0.000000e+00> : vector<512x256xf32>
    %23 = tpu.matmul %21, %22, %cst_18 {dimension_numbers = #tpu.dot_dimension_numbers<[1], [0], [0], [1], [0, 0, 1, 1], [], []>} : vector<512x256xbf16>, vector<256x256xbf16>, vector<512x256xf32> -> vector<512x256xf32>
    %c0_19 = arith.constant 0 : index
    %c0_20 = arith.constant 0 : index
    %24 = vector.load %arg11[%c0_19, %c0_20] : memref<1x256xf32, #tpu.memory_space<vmem>>, vector<1x256xf32>
    %25 = vector.broadcast %24 : vector<1x256xf32> to vector<512x256xf32>
    %26 = arith.addf %23, %25 : vector<512x256xf32>
    %cst_21 = arith.constant 0.000000e+00 : f32
    %27 = vector.broadcast %cst_21 : f32 to vector<512x256xf32>
    %28 = arith.maximumf %26, %27 : vector<512x256xf32>
    %29 = arith.truncf %28 : vector<512x256xf32> to vector<512x256xbf16>
    %c0_22 = arith.constant 0 : index
    %c0_23 = arith.constant 0 : index
    %30 = vector.load %arg12[%c0_22, %c0_23] : memref<256x256xbf16, #tpu.memory_space<vmem>>, vector<256x256xbf16>
    %cst_24 = arith.constant dense<0.000000e+00> : vector<512x256xf32>
    %31 = tpu.matmul %29, %30, %cst_24 {dimension_numbers = #tpu.dot_dimension_numbers<[1], [0], [0], [1], [0, 0, 1, 1], [], []>} : vector<512x256xbf16>, vector<256x256xbf16>, vector<512x256xf32> -> vector<512x256xf32>
    %c0_25 = arith.constant 0 : index
    %c0_26 = arith.constant 0 : index
    %32 = vector.load %arg13[%c0_25, %c0_26] : memref<1x256xf32, #tpu.memory_space<vmem>>, vector<1x256xf32>
    %33 = vector.broadcast %32 : vector<1x256xf32> to vector<512x256xf32>
    %34 = arith.addf %31, %33 : vector<512x256xf32>
    %cst_27 = arith.constant 0.000000e+00 : f32
    %35 = vector.broadcast %cst_27 : f32 to vector<512x256xf32>
    %36 = arith.maximumf %34, %35 : vector<512x256xf32>
    %37 = arith.truncf %36 : vector<512x256xf32> to vector<512x256xbf16>
    %c0_28 = arith.constant 0 : index
    %c0_29 = arith.constant 0 : index
    %38 = vector.load %arg14[%c0_28, %c0_29] : memref<256x256xbf16, #tpu.memory_space<vmem>>, vector<256x256xbf16>
    %cst_30 = arith.constant dense<0.000000e+00> : vector<512x256xf32>
    %39 = tpu.matmul %37, %38, %cst_30 {dimension_numbers = #tpu.dot_dimension_numbers<[1], [0], [0], [1], [0, 0, 1, 1], [], []>} : vector<512x256xbf16>, vector<256x256xbf16>, vector<512x256xf32> -> vector<512x256xf32>
    %c0_31 = arith.constant 0 : index
    %c0_32 = arith.constant 0 : index
    %40 = vector.load %arg15[%c0_31, %c0_32] : memref<1x256xf32, #tpu.memory_space<vmem>>, vector<1x256xf32>
    %41 = vector.broadcast %40 : vector<1x256xf32> to vector<512x256xf32>
    %42 = arith.addf %39, %41 : vector<512x256xf32>
    %cst_33 = arith.constant 0.000000e+00 : f32
    %43 = vector.broadcast %cst_33 : f32 to vector<512x256xf32>
    %44 = arith.maximumf %42, %43 : vector<512x256xf32>
    %45 = arith.truncf %44 : vector<512x256xf32> to vector<512x256xbf16>
    %c0_34 = arith.constant 0 : index
    %c0_35 = arith.constant 0 : index
    %46 = vector.load %arg16[%c0_34, %c0_35] : memref<128x256xbf16, #tpu.memory_space<vmem>>, vector<128x256xbf16>
    %cst_36 = arith.constant dense<0.000000e+00> : vector<512x256xf32>
    %47 = tpu.matmul %1, %46, %cst_36 {dimension_numbers = #tpu.dot_dimension_numbers<[1], [0], [0], [1], [0, 0, 1, 1], [], []>} : vector<512x128xbf16>, vector<128x256xbf16>, vector<512x256xf32> -> vector<512x256xf32>
    %c0_37 = arith.constant 0 : index
    %c0_38 = arith.constant 0 : index
    %48 = vector.load %arg17[%c0_37, %c0_38] : memref<256x256xbf16, #tpu.memory_space<vmem>>, vector<256x256xbf16>
    %cst_39 = arith.constant dense<0.000000e+00> : vector<512x256xf32>
    %49 = tpu.matmul %45, %48, %cst_39 {dimension_numbers = #tpu.dot_dimension_numbers<[1], [0], [0], [1], [0, 0, 1, 1], [], []>} : vector<512x256xbf16>, vector<256x256xbf16>, vector<512x256xf32> -> vector<512x256xf32>
    %50 = arith.addf %47, %49 : vector<512x256xf32>
    %c0_40 = arith.constant 0 : index
    %c0_41 = arith.constant 0 : index
    %51 = vector.load %arg18[%c0_40, %c0_41] : memref<1x256xf32, #tpu.memory_space<vmem>>, vector<1x256xf32>
    %52 = vector.broadcast %51 : vector<1x256xf32> to vector<512x256xf32>
    %53 = arith.addf %50, %52 : vector<512x256xf32>
    %c0_42 = arith.constant 0 : index
    %c0_43 = arith.constant 0 : index
    %c0_44 = arith.constant 0 : index
    %54 = vector.load %arg5[%c0_42, %c0_43, %c0_44] : memref<1x1x256xf32, #tpu.memory_space<vmem>>, vector<1x1x256xf32>
    %55 = vector.shape_cast %54 : vector<1x1x256xf32> to vector<1x256xf32>
    %56 = vector.broadcast %55 : vector<1x256xf32> to vector<512x256xf32>
    %57 = arith.addf %53, %56 : vector<512x256xf32>
    %cst_45 = arith.constant 0.000000e+00 : f32
    %58 = vector.broadcast %cst_45 : f32 to vector<512x256xf32>
    %59 = arith.maximumf %57, %58 : vector<512x256xf32>
    %60 = arith.truncf %59 : vector<512x256xf32> to vector<512x256xbf16>
    %c0_46 = arith.constant 0 : index
    %c0_47 = arith.constant 0 : index
    %61 = vector.load %arg19[%c0_46, %c0_47] : memref<256x256xbf16, #tpu.memory_space<vmem>>, vector<256x256xbf16>
    %cst_48 = arith.constant dense<0.000000e+00> : vector<512x256xf32>
    %62 = tpu.matmul %60, %61, %cst_48 {dimension_numbers = #tpu.dot_dimension_numbers<[1], [0], [0], [1], [0, 0, 1, 1], [], []>} : vector<512x256xbf16>, vector<256x256xbf16>, vector<512x256xf32> -> vector<512x256xf32>
    %c0_49 = arith.constant 0 : index
    %c0_50 = arith.constant 0 : index
    %63 = vector.load %arg20[%c0_49, %c0_50] : memref<1x256xf32, #tpu.memory_space<vmem>>, vector<1x256xf32>
    %64 = vector.broadcast %63 : vector<1x256xf32> to vector<512x256xf32>
    %65 = arith.addf %62, %64 : vector<512x256xf32>
    %cst_51 = arith.constant 0.000000e+00 : f32
    %66 = vector.broadcast %cst_51 : f32 to vector<512x256xf32>
    %67 = arith.maximumf %65, %66 : vector<512x256xf32>
    %68 = arith.truncf %67 : vector<512x256xf32> to vector<512x256xbf16>
    %c0_52 = arith.constant 0 : index
    %c0_53 = arith.constant 0 : index
    %69 = vector.load %arg21[%c0_52, %c0_53] : memref<256x256xbf16, #tpu.memory_space<vmem>>, vector<256x256xbf16>
    %cst_54 = arith.constant dense<0.000000e+00> : vector<512x256xf32>
    %70 = tpu.matmul %68, %69, %cst_54 {dimension_numbers = #tpu.dot_dimension_numbers<[1], [0], [0], [1], [0, 0, 1, 1], [], []>} : vector<512x256xbf16>, vector<256x256xbf16>, vector<512x256xf32> -> vector<512x256xf32>
    %c0_55 = arith.constant 0 : index
    %c0_56 = arith.constant 0 : index
    %71 = vector.load %arg22[%c0_55, %c0_56] : memref<1x256xf32, #tpu.memory_space<vmem>>, vector<1x256xf32>
    %72 = vector.broadcast %71 : vector<1x256xf32> to vector<512x256xf32>
    %73 = arith.addf %70, %72 : vector<512x256xf32>
    %cst_57 = arith.constant 0.000000e+00 : f32
    %74 = vector.broadcast %cst_57 : f32 to vector<512x256xf32>
    %75 = arith.maximumf %73, %74 : vector<512x256xf32>
    %76 = arith.truncf %75 : vector<512x256xf32> to vector<512x256xbf16>
    %c0_58 = arith.constant 0 : index
    %c0_59 = arith.constant 0 : index
    %77 = vector.load %arg23[%c0_58, %c0_59] : memref<24x256xbf16, #tpu.memory_space<vmem>>, vector<24x256xbf16>
    %cst_60 = arith.constant dense<0.000000e+00> : vector<24x512xf32>
    %78 = tpu.matmul %77, %76, %cst_60 {dimension_numbers = #tpu.dot_dimension_numbers<[1], [1], [0], [0], [0, 0, 1, 0], [], []>} : vector<24x256xbf16>, vector<512x256xbf16>, vector<24x512xf32> -> vector<24x512xf32>
    %c0_61 = arith.constant 0 : index
    %c0_62 = arith.constant 0 : index
    %79 = vector.load %arg24[%c0_61, %c0_62] : memref<24x1xf32, #tpu.memory_space<vmem>>, vector<24x1xf32>
    %80 = vector.broadcast %79 : vector<24x1xf32> to vector<24x512xf32>
    %81 = arith.addf %78, %80 : vector<24x512xf32>
    %c0_63 = arith.constant 0 : index
    %c0_64 = arith.constant 0 : index
    %c0_65 = arith.constant 0 : index
    %82 = vector.load %arg3[%c0_63, %c0_64, %c0_65] : memref<1x24x512xf32, #tpu.memory_space<vmem>>, vector<1x24x512xf32>
    %83 = vector.shape_cast %82 : vector<1x24x512xf32> to vector<24x512xf32>
    %84 = arith.addf %81, %83 : vector<24x512xf32>
    %cst_66 = arith.constant dense<0xFF800000> : vector<512xf32>
    %85 = vector.multi_reduction <maximumf>, %84, %cst_66 [0] : vector<24x512xf32> to vector<512xf32>
    %86 = vector.shape_cast %85 : vector<512xf32> to vector<1x512xf32>
    %87 = vector.broadcast %86 : vector<1x512xf32> to vector<24x512xf32>
    %88 = arith.subf %84, %87 : vector<24x512xf32>
    %89 = math.exp %88 : vector<24x512xf32>
    %cst_67 = arith.constant dense<0.000000e+00> : vector<512xf32>
    %90 = vector.multi_reduction <add>, %89, %cst_67 [0] : vector<24x512xf32> to vector<512xf32>
    %91 = vector.shape_cast %90 : vector<512xf32> to vector<1x512xf32>
    %cst_68 = arith.constant 1.000000e+00 : f32
    %92 = vector.broadcast %cst_68 : f32 to vector<1x512xf32>
    %93 = arith.divf %92, %91 : vector<1x512xf32>
    %94 = vector.broadcast %93 : vector<1x512xf32> to vector<24x512xf32>
    %95 = arith.mulf %89, %94 : vector<24x512xf32>
    %c0_69 = arith.constant 0 : index
    %c0_70 = arith.constant 0 : index
    %c0_71 = arith.constant 0 : index
    %96 = vector.load %arg25[%c0_69, %c0_70, %c0_71] : memref<1x24x512xf32, #tpu.memory_space<vmem>>, vector<1x24x512xf32>
    %97 = vector.shape_cast %96 : vector<1x24x512xf32> to vector<24x512xf32>
    %98 = vector.shape_cast %95 : vector<24x512xf32> to vector<1x24x512xf32>
    tpu.vector_store %arg25[%c0_69, %c0_70, %c0_71], %98 {strides = array<i32>} : memref<1x24x512xf32, #tpu.memory_space<vmem>>, vector<1x24x512xf32>,
    return
  }
  func.func @transform_0(%arg0: i32, %arg1: i32) -> (i32, i32, i32) {
    %c0_i32 = arith.constant 0 : i32
    %c0_i32_0 = arith.constant 0 : i32
    return %arg0, %arg1, %c0_i32 : i32, i32, i32
  }
  func.func @transform_1(%arg0: i32, %arg1: i32) -> (i32, i32, i32) {
    %c0_i32 = arith.constant 0 : i32
    %c0_i32_0 = arith.constant 0 : i32
    return %arg0, %c0_i32, %arg1 : i32, i32, i32
  }
  func.func @transform_2(%arg0: i32, %arg1: i32) -> (i32, i32, i32) {
    %c0_i32 = arith.constant 0 : i32
    %c0_i32_0 = arith.constant 0 : i32
    %c0_i32_1 = arith.constant 0 : i32
    return %arg0, %c0_i32, %c0_i32_0 : i32, i32, i32
  }
  func.func @transform_3(%arg0: i32, %arg1: i32) -> (i32, i32, i32) {
    %c0_i32 = arith.constant 0 : i32
    %c0_i32_0 = arith.constant 0 : i32
    %c0_i32_1 = arith.constant 0 : i32
    return %arg0, %c0_i32, %c0_i32_0 : i32, i32, i32
  }
  func.func @transform_4(%arg0: i32, %arg1: i32) -> (i32, i32) {
    %c0_i32 = arith.constant 0 : i32
    %c0_i32_0 = arith.constant 0 : i32
    %c0_i32_1 = arith.constant 0 : i32
    return %c0_i32, %c0_i32_0 : i32, i32
  }
  func.func @transform_5(%arg0: i32, %arg1: i32) -> (i32, i32) {
    %c0_i32 = arith.constant 0 : i32
    %c0_i32_0 = arith.constant 0 : i32
    %c0_i32_1 = arith.constant 0 : i32
    return %c0_i32, %c0_i32_0 : i32, i32
  }
  func.func @transform_6(%arg0: i32, %arg1: i32) -> (i32, i32) {
    %c0_i32 = arith.constant 0 : i32
    %c0_i32_0 = arith.constant 0 : i32
    %c0_i32_1 = arith.constant 0 : i32
    return %c0_i32, %c0_i32_0 : i32, i32
  }
  func.func @transform_7(%arg0: i32, %arg1: i32) -> (i32, i32) {
    %c0_i32 = arith.constant 0 : i32
    %c0_i32_0 = arith.constant 0 : i32
    %c0_i32_1 = arith.constant 0 : i32
    return %c0_i32, %c0_i32_0 : i32, i32
  }
  func.func @transform_8(%arg0: i32, %arg1: i32) -> (i32, i32) {
    %c0_i32 = arith.constant 0 : i32
    %c0_i32_0 = arith.constant 0 : i32
    %c0_i32_1 = arith.constant 0 : i32
    return %c0_i32, %c0_i32_0 : i32, i32
  }
  func.func @transform_9(%arg0: i32, %arg1: i32) -> (i32, i32) {
    %c0_i32 = arith.constant 0 : i32
    %c0_i32_0 = arith.constant 0 : i32
    %c0_i32_1 = arith.constant 0 : i32
    return %c0_i32, %c0_i32_0 : i32, i32
  }
  func.func @transform_10(%arg0: i32, %arg1: i32) -> (i32, i32) {
    %c0_i32 = arith.constant 0 : i32
    %c0_i32_0 = arith.constant 0 : i32
    %c0_i32_1 = arith.constant 0 : i32
    return %c0_i32, %c0_i32_0 : i32, i32
  }
  func.func @transform_11(%arg0: i32, %arg1: i32) -> (i32, i32) {
    %c0_i32 = arith.constant 0 : i32
    %c0_i32_0 = arith.constant 0 : i32
    %c0_i32_1 = arith.constant 0 : i32
    return %c0_i32, %c0_i32_0 : i32, i32
  }
  func.func @transform_12(%arg0: i32, %arg1: i32) -> (i32, i32) {
    %c0_i32 = arith.constant 0 : i32
    %c0_i32_0 = arith.constant 0 : i32
    %c0_i32_1 = arith.constant 0 : i32
    return %c0_i32, %c0_i32_0 : i32, i32
  }
  func.func @transform_13(%arg0: i32, %arg1: i32) -> (i32, i32) {
    %c0_i32 = arith.constant 0 : i32
    %c0_i32_0 = arith.constant 0 : i32
    %c0_i32_1 = arith.constant 0 : i32
    return %c0_i32, %c0_i32_0 : i32, i32
  }
  func.func @transform_14(%arg0: i32, %arg1: i32) -> (i32, i32) {
    %c0_i32 = arith.constant 0 : i32
    %c0_i32_0 = arith.constant 0 : i32
    %c0_i32_1 = arith.constant 0 : i32
    return %c0_i32, %c0_i32_0 : i32, i32
  }
  func.func @transform_15(%arg0: i32, %arg1: i32) -> (i32, i32) {
    %c0_i32 = arith.constant 0 : i32
    %c0_i32_0 = arith.constant 0 : i32
    %c0_i32_1 = arith.constant 0 : i32
    return %c0_i32, %c0_i32_0 : i32, i32
  }
  func.func @transform_16(%arg0: i32, %arg1: i32) -> (i32, i32) {
    %c0_i32 = arith.constant 0 : i32
    %c0_i32_0 = arith.constant 0 : i32
    %c0_i32_1 = arith.constant 0 : i32
    return %c0_i32, %c0_i32_0 : i32, i32
  }
  func.func @transform_17(%arg0: i32, %arg1: i32) -> (i32, i32) {
    %c0_i32 = arith.constant 0 : i32
    %c0_i32_0 = arith.constant 0 : i32
    %c0_i32_1 = arith.constant 0 : i32
    return %c0_i32, %c0_i32_0 : i32, i32
  }
  func.func @transform_18(%arg0: i32, %arg1: i32) -> (i32, i32) {
    %c0_i32 = arith.constant 0 : i32
    %c0_i32_0 = arith.constant 0 : i32
    %c0_i32_1 = arith.constant 0 : i32
    return %c0_i32, %c0_i32_0 : i32, i32
  }
  func.func @transform_19(%arg0: i32, %arg1: i32) -> (i32, i32) {
    %c0_i32 = arith.constant 0 : i32
    %c0_i32_0 = arith.constant 0 : i32
    %c0_i32_1 = arith.constant 0 : i32
    return %c0_i32, %c0_i32_0 : i32, i32
  }
  func.func @transform_20(%arg0: i32, %arg1: i32) -> (i32, i32) {
    %c0_i32 = arith.constant 0 : i32
    %c0_i32_0 = arith.constant 0 : i32
    %c0_i32_1 = arith.constant 0 : i32
    return %c0_i32, %c0_i32_0 : i32, i32
  }
  func.func @transform_21(%arg0: i32, %arg1: i32) -> (i32, i32) {
    %c0_i32 = arith.constant 0 : i32
    %c0_i32_0 = arith.constant 0 : i32
    %c0_i32_1 = arith.constant 0 : i32
    return %c0_i32, %c0_i32_0 : i32, i32
  }
  func.func @transform_22(%arg0: i32, %arg1: i32) -> (i32, i32) {
    %c0_i32 = arith.constant 0 : i32
    %c0_i32_0 = arith.constant 0 : i32
    %c0_i32_1 = arith.constant 0 : i32
    return %c0_i32, %c0_i32_0 : i32, i32
  }
  func.func @transform_23(%arg0: i32, %arg1: i32) -> (i32, i32, i32) {
    %c0_i32 = arith.constant 0 : i32
    %c0_i32_0 = arith.constant 0 : i32
    return %arg0, %c0_i32, %arg1 : i32, i32, i32
  }
}

</mosaic_0001>

<bundles_post_ra>
// kernel: tpu_custom_call.1
= control target key start
LH: loop header
LB: loop body
LE: loop exit
PB: predicated region body
PF: predicated region fallthrough
CT: control target
= control target key end

     0   :  { %s12473_s0 = inlined_call_operand.hbm [shape: bf16[2,512,128], index: 0, kind: input, shape index: {}]   ;;  %s12474_s1 = inlined_call_operand.hbm [shape: f32[2,24,512], index: 1, kind: input, shape index: {}]   ;;  %s12475_s2 = inlined_call_operand.vmem [shape: f32[2,1,256], index: 2, kind: input, shape index: {}]   ;;  %s12476_s3 = inlined_call_operand.vmem [shape: f32[2,1,256], index: 3, kind: input, shape index: {}]   ;;  %s12477_s4 = inlined_call_operand.hbm [shape: bf16[128,256], index: 4, kind: input, shape index: {}]   ;;  %s12478_s5 = inlined_call_operand.vmem [shape: f32[1,256], index: 5, kind: input, shape index: {}]   ;;  %s12479_s6 = inlined_call_operand.hbm [shape: bf16[256,256], index: 6, kind: input, shape index: {}]   ;;  %s12480_s7 = inlined_call_operand.vmem [shape: f32[1,256], index: 7, kind: input, shape index: {}]   ;;  %s12481_s8 = inlined_call_operand.hbm [shape: bf16[256,256], index: 8, kind: input, shape index: {}]   ;;  %s12482_s9 = inlined_call_operand.vmem [shape: f32[1,256], index: 9, kind: input, shape index: {}]   ;;  %s12483_s10 = inlined_call_operand.hbm [shape: bf16[256,256], index: 10, kind: input, shape index: {}]   ;;  %s12484_s11 = inlined_call_operand.vmem [shape: f32[1,256], index: 11, kind: input, shape index: {}]   ;;  %s12485_s12 = inlined_call_operand.hbm [shape: bf16[256,256], index: 12, kind: input, shape index: {}]   ;;  %s12486_s13 = inlined_call_operand.vmem [shape: f32[1,256], index: 13, kind: input, shape index: {}]   ;;  %s12487_s14 = inlined_call_operand.hbm [shape: bf16[128,256], index: 14, kind: input, shape index: {}]   ;;  %s12488_s15 = inlined_call_operand.hbm [shape: bf16[256,256], index: 15, kind: input, shape index: {}]   ;;  %s12489_s16 = inlined_call_operand.vmem [shape: f32[1,256], index: 16, kind: input, shape index: {}]   ;;  %s12490_s17 = inlined_call_operand.hbm [shape: bf16[256,256], index: 17, kind: input, shape index: {}]   ;;  %s12491_s18 = inlined_call_operand.vmem [shape: f32[1,256], index: 18, kind: input, shape index: {}]   ;;  %s12492_s19 = inlined_call_operand.hbm [shape: bf16[256,256], index: 19, kind: input, shape index: {}]   ;;  %s12493_s20 = inlined_call_operand.vmem [shape: f32[1,256], index: 20, kind: input, shape index: {}]   ;;  %s12494_s21 = inlined_call_operand.vmem [shape: bf16[24,256], index: 21, kind: input, shape index: {}]   ;;  %s12495_s22 = inlined_call_operand.vmem [shape: f32[24,1], index: 22, kind: input, shape index: {}]   ;;  %s12496_s23 = inlined_call_operand.hbm [shape: f32[2,24,512], index: 23, kind: output, shape index: {}]  }
   0x1   :  { %12504 = sst [smem:[#allocation33_spill]] %s12473_s0 }
   0x2   :  { %12505 = sst [smem:[#allocation34_spill]] %s12474_s1 }
   0x3   :  { %12506 = sst [smem:[#allocation35_spill]] %s12475_s2 }
   0x4   :  { %12507 = sst [smem:[#allocation36_spill]] %s12476_s3 }
   0x5   :  { %12508 = sst [smem:[#allocation37_spill]] %s12477_s4 }
   0x6   :  { %12509 = sst [smem:[#allocation38_spill]] %s12478_s5 }
   0x7   :  { %12510 = sst [smem:[#allocation39_spill]] %s12479_s6 }
   0x8   :  { %12511 = sst [smem:[#allocation40_spill]] %s12480_s7 }
   0x9   :  { %12512 = sst [smem:[#allocation41_spill]] %s12481_s8 }
   0xa   :  { %12513 = sst [smem:[#allocation42_spill]] %s12483_s10 }
   0xb   :  { %12514 = sst [smem:[#allocation43_spill]] %s12485_s12 }
   0xc   :  { %12515 = sst [smem:[#allocation44_spill]] %s12486_s13 }
   0xd   :  { %12516 = sst [smem:[#allocation45_spill]] %s12487_s14 }
   0xe   :  { %12517 = sst [smem:[#allocation46_spill]] %s12488_s15 }
   0xf   :  { %12518 = sst [smem:[#allocation47_spill]] %s12489_s16 }
  0x10   :  { %12519 = sst [smem:[#allocation48_spill]] %s12490_s17 }
  0x11   :  { %12520 = sst [smem:[#allocation49_spill]] %s12491_s18 }
  0x12   :  { %12521 = sst [smem:[#allocation50_spill]] %s12492_s19 }
  0x13   :  { %12522 = sst [smem:[#allocation51_spill]] %s12493_s20 }
  0x14   :  { %12523 = sst [smem:[#allocation52_spill]] %s12494_s21 }
  0x15   :  { %12524 = sst [smem:[#allocation53_spill]] %s12495_s22 }
  0x16   :  { %12525 = sst [smem:[#allocation54_spill]] %s12496_s23 }
  0x17   :  { %28 = vsyncpa [#allocation3], 0 }
  0x18   :  { %30 = vsyncpa [#allocation3 + $0x1], 0 }
  0x19   :  { %31 = vsyncpa [#allocation6], 0 }
  0x1a   :  { %33 = vsyncpa [#allocation6 + $0x1], 0 }
  0x1b   :  { %34 = vsyncpa [#allocation9], 0 }
  0x1c   :  { %35 = vsyncpa [#allocation12], 0 }
  0x1d   :  { %36 = vsyncpa [#allocation15], 0 }
  0x1e   :  { %37 = vsyncpa [#allocation18], 0 }
  0x1f   :  { %38 = vsyncpa [#allocation4], 0 }
  0x20   :  { %40 = vsyncpa [#allocation4 + $0x1], 0  ;;  %s10023_s4 = smov 0   ;;  %s10025_s30 = smov 0  }
  0x21   :  { %s10027_s24 = smov 0   ;;  %s10029_s25 = smov 0  }
  0x22   :  { %s10031_s5 = smov 0   ;;  %s10033_s1 = smov 0  }
  0x23 LB: > { %12526 = sst [smem:[#allocation29_spill]] %s9868_s24  ;;  %s10054_s26 = sadd.s32 4294967295, %s9880_s1   ;;  %s9880_s1 = sphi %s10033_s1, %s46_s1   ;;  %s9876_s5 = sphi %s10031_s5, %s12568_s5   ;;  %s9872_s25 = sphi %s10029_s25, %s12567_s25   ;;  %s9868_s24 = sphi %s10027_s24, %s12563_s24   ;;  %s9864_s30 = sphi %s10025_s30, %s12566_s30   ;;  %s9860_s4 = sphi %s10023_s4, %s12565_s4  }
  0x24   : > { %12527 = sst [smem:[#allocation30_spill]] %s9880_s1  ;;  %p8504_p0 = scmp.ge.s32.totalorder %s9880_s1, 1 }
  0x25   : > { %p81_p1 = scmp.eq.s32.totalorder %s10054_s26, 0  ;;  %p598_p2 = scmp.lt.s32.totalorder %s9880_s1, 3 }
  0x26   : > { %s9882_s6 = smov [#allocation7]   ;;  %s9883_s28 = smov [#allocation8]  }
  0x27   : > { %p10059_p3 = pnand %p8504_p0, %p598_p2  ;;  %s610_s27 = sshll.u32 %s9882_s6, 4  ;;  %s611_s27 = int_to_ptr.vmem [resolvable:$true] %s610_s27 }
  0x28   : > { %s626_s29 = sshll.u32 %s9883_s28, 4  ;;  %s9884_s3 = smov [#allocation11]   ;;  %s627_s29 = int_to_ptr.vmem [resolvable:$true] %s626_s29 }
  0x29   : > { %p8874_p4 = pneg %p10059_p3  ;;  %s658_s0 = sshll.u32 %s9884_s3, 4  ;;  %s659_s0 = int_to_ptr.vmem [resolvable:$true] %s658_s0 }
  0x2a   : > { %s9497_s6 = scalar_lea.vmem %s611_s27, 2048  ;;  %p9505_p11 = scmp.lt.s32.totalorder %s611_s27, %s611_s27 }
  0x2b   : > { %p10068_p6 = pnand %p8874_p4, %p81_p1  ;;  %p9498_p8 = scmp.ne.s32.totalorder %s611_s27, %s9497_s6 }
  0x2c   : > { %p9506_p12 = scmp.lt.s32.totalorder %s9497_s6, %s9497_s6 }
  0x2d   : > { %p10074_p7 = pneg %p10068_p6 }
  0x2e   : > { %p9507_p13 = por %p9506_p12, %p9505_p11 }
  0x2f   : > { %p9500_p9 = pnand %p9498_p8, %p10074_p7 }
  0x31   : > { %p9501_p10 = pneg %p9500_p9 }
  0x33   : > { %p9508_p0 = pnand %p9507_p13, %p9501_p10 }
  0x35   : > { %9511 = shalt.err (!%p9508_p0)
}
  0x36   : > { %s9885_s28 = smov 128   ;;  %s9886_s3 = smov 8  }
  0x37   : > { %s12531_s20 = sld [smem:[#allocation37_spill]]  ;;  %s9523_s18 = scalar_lea.vmem %s627_s29, 4096 }
  0x38   : > { %p9524_p2 = scmp.ne.s32.totalorder %s627_s29, %s9523_s18  ;;  %p9531_p9 = scmp.lt.s32.totalorder %s627_s29, %s627_s29 }
  0x39   : > { %p9532_p10 = scmp.lt.s32.totalorder %s9523_s18, %s9523_s18 }
  0x3a   : > { %p9526_p4 = pnand %p9524_p2, %p10074_p7 }
  0x3b   : > { %p9533_p11 = por %p9532_p10, %p9531_p9 }
  0x3c   : > { %p9527_p8 = pneg %p9526_p4 }
  0x3d   : > { %8877 = dma.hbm_to_vmem [thread:$0]  (!%p10068_p6), %s12531_s20, 2048, %s611_s27, [#allocation6], %s9885_s28, %s9885_s28, %s9886_s3  }
  0x3e   : > { %p9534_p12 = pnand %p9533_p11, %p9527_p8 }
  0x40   : > { %9537 = shalt.err (!%p9534_p12)
}
  0x41   : > { %s12532_s13 = sld [smem:[#allocation39_spill]]  ;;  %s9549_s20 = scalar_lea.vmem %s659_s0, 4096 }
  0x42   : > { %p9550_p13 = scmp.ne.s32.totalorder %s659_s0, %s9549_s20  ;;  %p9557_p4 = scmp.lt.s32.totalorder %s659_s0, %s659_s0 }
  0x43   : > { %p9558_p9 = scmp.lt.s32.totalorder %s9549_s20, %s9549_s20 }
  0x44   : > { %p9552_p0 = pnand %p9550_p13, %p10074_p7 }
  0x45   : > { %p9559_p8 = por %p9558_p9, %p9557_p4 }
  0x46   : > { %p9553_p2 = pneg %p9552_p0 }
  0x47   : > { %8880 = dma.hbm_to_vmem [thread:$0]  (!%p10068_p6), %s12532_s13, 4096, %s627_s29, [#allocation9], %s9885_s28, %s9885_s28, %s9886_s3  }
  0x48   : > { %p9560_p10 = pnand %p9559_p8, %p9553_p2 }
  0x4a   : > { %9563 = shalt.err (!%p9560_p10)
}
  0x4b   : > { %s12533_s10 = sld [smem:[#allocation42_spill]]  ;;  %s9887_s13 = smov [#allocation14]  }
  0x4c   : > { %s690_s21 = sshll.u32 %s9887_s13, 4  ;;  %s9888_s22 = smov [#allocation17]   ;;  %s691_s21 = int_to_ptr.vmem [resolvable:$true] %s690_s21 }
  0x4d   : > { %s719_s27 = sshll.u32 %s9888_s22, 4  ;;  %s9575_s29 = scalar_lea.vmem %s691_s21, 2048  ;;  %s720_s27 = int_to_ptr.vmem [resolvable:$true] %s719_s27 }
  0x4e   : > { %p9576_p11 = scmp.ne.s32.totalorder %s691_s21, %s9575_s29  ;;  %p9583_p0 = scmp.lt.s32.totalorder %s691_s21, %s691_s21 }
  0x4f   : > { %p9584_p2 = scmp.lt.s32.totalorder %s9575_s29, %s9575_s29 }
  0x50   : > { %p9578_p12 = pnand %p9576_p11, %p10074_p7 }
  0x51   : > { %8886 = dma.hbm_to_vmem [thread:$0]  (!%p10068_p6), %s12533_s10, 4096, %s659_s0, [#allocation12], %s9885_s28, %s9885_s28, %s9886_s3  }
  0x52   : > { %p9579_p13 = pneg %p9578_p12  ;;  %p9585_p4 = por %p9584_p2, %p9583_p0 }
  0x54   : > { %p9586_p9 = pnand %p9585_p4, %p9579_p13 }
  0x56   : > { %9589 = shalt.err (!%p9586_p9)
}
  0x57   : > { %s12534_s14 = sld [smem:[#allocation45_spill]]  ;;  %s9601_s20 = scalar_lea.vmem %s720_s27, 4096 }
  0x58   : > { %p9602_p8 = scmp.ne.s32.totalorder %s720_s27, %s9601_s20  ;;  %p9609_p12 = scmp.lt.s32.totalorder %s720_s27, %s720_s27 }
  0x59   : > { %p9610_p0 = scmp.lt.s32.totalorder %s9601_s20, %s9601_s20 }
  0x5a   : > { %p9604_p10 = pnand %p9602_p8, %p10074_p7 }
  0x5b   : > { %p9611_p13 = por %p9610_p0, %p9609_p12 }
  0x5c   : > { %p9605_p11 = pneg %p9604_p10 }
  0x5d   : > { %8892 = dma.hbm_to_vmem [thread:$0]  (!%p10068_p6), %s12534_s14, 2048, %s691_s21, [#allocation15], %s9885_s28, %s9885_s28, %s9886_s3  }
  0x5e   : > { %p9612_p2 = pnand %p9611_p13, %p9605_p11 }
  0x60   : > { %9615 = shalt.err (!%p9612_p2)
}
  0x61   : > { %s12535_s17 = sld [smem:[#allocation48_spill]]  ;;  %s9889_s13 = smov [#allocation10]  }
  0x62   : > { %s642_s21 = sshll.u32 %s9889_s13, 4  ;;  %s9890_s22 = smov [#allocation13]   ;;  %s643_s21 = int_to_ptr.vmem [resolvable:$true] %s642_s21 }
  0x63   : > { %s674_s29 = sshll.u32 %s9890_s22, 4  ;;  %s9627_s0 = scalar_lea.vmem %s643_s21, 4096  ;;  %s675_s29 = int_to_ptr.vmem [resolvable:$true] %s674_s29 }
  0x64   : > { %p9628_p4 = scmp.ne.s32.totalorder %s643_s21, %s9627_s0  ;;  %p9635_p10 = scmp.lt.s32.totalorder %s643_s21, %s643_s21 }
  0x65   : > { %p9636_p11 = scmp.lt.s32.totalorder %s9627_s0, %s9627_s0 }
  0x66   : > { %p9630_p9 = pnand %p9628_p4, %p10074_p7 }
  0x67   : > { %8898 = dma.hbm_to_vmem [thread:$0]  (!%p10068_p6), %s12535_s17, 4096, %s720_s27, [#allocation18], %s9885_s28, %s9885_s28, %s9886_s3  }
  0x68   : > { %p9631_p8 = pneg %p9630_p9  ;;  %p9637_p12 = por %p9636_p11, %p9635_p10 }
  0x6a   : > { %p9638_p0 = pnand %p9637_p12, %p9631_p8 }
  0x6c   : > { %9641 = shalt.err (!%p9638_p0)
}
  0x6d   : > { %s12536_s8 = sld [smem:[#allocation41_spill]]  ;;  %s9653_s20 = scalar_lea.vmem %s675_s29, 4096 }
  0x6e   : > { %p9654_p13 = scmp.ne.s32.totalorder %s675_s29, %s9653_s20  ;;  %p9661_p9 = scmp.lt.s32.totalorder %s675_s29, %s675_s29 }
  0x6f   : > { %p9662_p10 = scmp.lt.s32.totalorder %s9653_s20, %s9653_s20 }
  0x70   : > { %p9656_p2 = pnand %p9654_p13, %p10074_p7 }
  0x71   : > { %p9663_p8 = por %p9662_p10, %p9661_p9 }
  0x72   : > { %p9657_p4 = pneg %p9656_p2 }
  0x73   : > { %8883 = dma.hbm_to_vmem [thread:$0]  (!%p10068_p6), %s12536_s8, 4096, %s643_s21, [#allocation9], %s9885_s28, %s9885_s28, %s9886_s3  }
  0x74   : > { %p9664_p11 = pnand %p9663_p8, %p9657_p4 }
  0x76   : > { %9667 = shalt.err (!%p9664_p11)
}
  0x77   : > { %s12537_s12 = sld [smem:[#allocation43_spill]]  ;;  %s9891_s13 = smov [#allocation16]  }
  0x78   : > { %s703_s21 = sshll.u32 %s9891_s13, 4  ;;  %s9892_s22 = smov [#allocation19]   ;;  %s704_s21 = int_to_ptr.vmem [resolvable:$true] %s703_s21 }
  0x79   : > { %s735_s0 = sshll.u32 %s9892_s22, 4  ;;  %s9679_s27 = scalar_lea.vmem %s704_s21, 4096  ;;  %s736_s0 = int_to_ptr.vmem [resolvable:$true] %s735_s0 }
  0x7a   : > { %p9680_p12 = scmp.ne.s32.totalorder %s704_s21, %s9679_s27  ;;  %p9687_p2 = scmp.lt.s32.totalorder %s704_s21, %s704_s21 }
  0x7b   : > { %p9688_p4 = scmp.lt.s32.totalorder %s9679_s27, %s9679_s27 }
  0x7c   : > { %p9682_p0 = pnand %p9680_p12, %p10074_p7 }
  0x7d   : > { %8889 = dma.hbm_to_vmem [thread:$0]  (!%p10068_p6), %s12537_s12, 4096, %s675_s29, [#allocation12], %s9885_s28, %s9885_s28, %s9886_s3  }
  0x7e   : > { %p9683_p13 = pneg %p9682_p0  ;;  %p9689_p9 = por %p9688_p4, %p9687_p2 }
  0x80   : > { %p9690_p10 = pnand %p9689_p9, %p9683_p13 }
  0x82   : > { %9693 = shalt.err (!%p9690_p10)
}
  0x83   : > { %s12538_s15 = sld [smem:[#allocation46_spill]]  ;;  %s9705_s20 = scalar_lea.vmem %s736_s0, 4096 }
  0x84   : > { %p9706_p8 = scmp.ne.s32.totalorder %s736_s0, %s9705_s20  ;;  %p9713_p0 = scmp.lt.s32.totalorder %s736_s0, %s736_s0 }
  0x85   : > { %p9714_p2 = scmp.lt.s32.totalorder %s9705_s20, %s9705_s20 }
  0x86   : > { %p9708_p11 = pnand %p9706_p8, %p10074_p7 }
  0x87   : > { %p9715_p13 = por %p9714_p2, %p9713_p0 }
  0x88   : > { %p9709_p12 = pneg %p9708_p11 }
  0x89   : > { %8895 = dma.hbm_to_vmem [thread:$0]  (!%p10068_p6), %s12538_s15, 4096, %s704_s21, [#allocation15], %s9885_s28, %s9885_s28, %s9886_s3  }
  0x8a   : > { %p9716_p4 = pnand %p9715_p13, %p9709_p12 }
  0x8c   : > { %9719 = shalt.err (!%p9716_p4)
}
  0x8d   : > { %s12539_s19 = sld [smem:[#allocation50_spill]]  ;;  %s8503_s23 = sadd.s32 4294967294, %s9880_s1  }
  0x8e   : > { %s58_s7 = sadd.s32 1, %s9876_s5  ;;  %s67_s13 = sadd.s32 1, %s9868_s24 }
  0x8f   : > { %p60_p7 = scmp.ge.s32.totalorder %s58_s7, 2  ;;  %p74_p9 = scmp.ne.s32.totalorder %s9868_s24, %s9864_s30 }
  0x90   : > { %p75_p10 = scmp.eq.s32.totalorder %s9880_s1, 0  ;;  %p80_p8 = scmp.ne.s32.totalorder %s9864_s30, %s9860_s4 }
  0x91   : > { %s12570_s7 = smov (%p60_p7, %s58_s7), 0  ;;  %p585_p12 = scmp.eq.s32.totalorder %s10054_s26, 1 }
  0x92   : > { %12540 = sst [smem:[#allocation31_spill]] %s12570_s7  ;;  %p10178_p11 = por %p75_p10, %p74_p9 }
  0x93   : > { %8901 = dma.hbm_to_vmem [thread:$0]  (!%p10068_p6), %s12539_s19, 4096, %s736_s0, [#allocation18], %s9885_s28, %s9885_s28, %s9886_s3  }
  0x94   : > { %p10184_p6 = por %p81_p1, %p80_p8  ;;  %s62_s3 = ssub.s32 %s9876_s5, %s12570_s7 }
  0x95   : > { %p65_p0 = scmp.eq.s32.totalorder %s62_s3, 0  ;;  %p591_p2 = scmp.eq.s32.totalorder %s8503_s23, 1 }
  0x96   : > { %p10191_p13 = por %p585_p12, %p74_p9  ;;  %p8922_p4 = scmp.lt.s32.totalorder %s9880_s1, 2 }
  0x97   : > { %s10197_s0 = scalar_select %p65_p0, %s9868_s24, %s67_s13  }
  0x98   : > { %p10199_p7 = por %p591_p2, %p80_p8  ;;  %s10204_s29 = sand.u32 1, %s9868_s24  }
  0x99   : > { %12544 = sst [smem:[#allocation32_spill]] %s10197_s0  ;;  %s8515_s6 = sshll.u32 %s10204_s29, 8 }
  0x9a   : > { %s8827_s20 = sshll.u32 %s9876_s5, 12  ;;  %s12546_s23 = sld [smem:[#allocation33_spill]] }
  0x9b   : > { %s762_s8 = scalar_lea.vmem [#allocation2], %s8515_s6  ;;  %p10213_p9 = pnand %p8922_p4, %p10178_p11 }
  0x9c   : > { %s771_s10 = sshll.u32 %s762_s8, 4  ;;  %s781_s12 = sand.u32 1, %s9880_s1   ;;  %s772_s10 = int_to_ptr.vmem [resolvable:$true] %s771_s10 }
  0x9d   : > { %s759_s14 = scalar_lea.sflag [#allocation3], %s10204_s29  ;;  %p9722_p10 = pneg %p10213_p9 }
  0x9e   : > { %s9733_s15 = scalar_lea.vmem %s772_s10, 4096  ;;  %s9893_s6 = smov [#allocation2]  }
  0x9f   : > { %p9734_p8 = scmp.ne.s32.totalorder %s772_s10, %s9733_s15  ;;  %s9738_s8 = sshll.u32 %s9893_s6, 4  ;;  %s9739_s8 = int_to_ptr.vmem [resolvable:$false] %s9738_s8 }
  0xa0   : > { %s770_s3 = scalar_lea.hbm %s12546_s23, %s8827_s20  ;;  %s9740_s21 = scalar_lea.vmem %s9739_s8, 8192 }
  0xa1   : > { %p9736_p12 = pnand %p9734_p8, %p9722_p10  ;;  %p9741_p11 = scmp.lt.s32.totalorder %s772_s10, %s9739_s8 }
  0xa2   : > { %p9742_p2 = scmp.lt.s32.totalorder %s9740_s21, %s9733_s15 }
  0xa3   : > { %p9737_p0 = pneg %p9736_p12 }
  0xa4   : > { %p9743_p4 = por %p9742_p2, %p9741_p11 }
  0xa6   : > { %p9744_p5 = pnand %p9743_p4, %p9737_p0 }
  0xa8   : > { %9747 = shalt.err (!%p9744_p5)
}
  0xa9   : > { %s9894_s20 = smov 64   ;;  %s9895_s18 = smov 4  }
  0xaa   : > { %8905 = dma.hbm_to_vmem [thread:$0]  (!%p10213_p9), %s770_s3, 4096, %s772_s10, %s759_s14, %s9894_s20, %s9894_s20, %s9895_s18  }
  0xab   : > { %s8828_s16 = smul.u32 96, %s10204_s29  ;;  %s12548_s6 = sld [smem:[#allocation34_spill]] }
  0xac   : > { %s8829_s23 = smul.u32 1536, %s9876_s5  ;;  %s782_s15 = scalar_lea.sflag [#allocation6], %s781_s12 }
  0xad   : > { %s785_s0 = scalar_lea.vmem [#allocation5], %s8828_s16  ;;  %s9896_s24 = smov [#allocation5]  }
  0xae   : > { %s794_s8 = sshll.u32 %s785_s0, 4  ;;  %s9766_s1 = sshll.u32 %s9896_s24, 4  ;;  %s795_s8 = int_to_ptr.vmem [resolvable:$true] %s794_s8  ;;  %s9767_s1 = int_to_ptr.vmem [resolvable:$false] %s9766_s1 }
  0xaf   : > { %s9761_s21 = scalar_lea.vmem %s795_s8, 1536  ;;  %s9768_s10 = scalar_lea.vmem %s9767_s1, 3072 }
  0xb0   : > { %p9762_p5 = scmp.ne.s32.totalorder %s795_s8, %s9761_s21  ;;  %p9769_p0 = scmp.lt.s32.totalorder %s795_s8, %s9767_s1 }
  0xb1   : > { %s793_s7 = scalar_lea.hbm %s12548_s6, %s8829_s23  ;;  %p9770_p11 = scmp.lt.s32.totalorder %s9768_s10, %s9761_s21 }
  0xb2   : > { %p9764_p8 = pnand %p9762_p5, %p9722_p10 }
  0xb3   : > { %p9771_p2 = por %p9770_p11, %p9769_p0 }
  0xb4   : > { %p9765_p12 = pneg %p9764_p8 }
  0xb6   : > { %p9772_p4 = pnand %p9771_p2, %p9765_p12 }
  0xb8   : > { %9775 = shalt.err (!%p9772_p4)
}
  0xb9   : > { %s9897_s14 = smov 512   ;;  %s9898_s17 = smov 32  }
  0xba   : > { %8908 = dma.hbm_to_vmem [thread:$0]  (!%p10213_p9), %s793_s7, 1536, %s795_s8, %s782_s15, %s9897_s14, %s9897_s14, %s9898_s17  }
  0xbb   : > { %820 = sbr.rel (%p10059_p3) target bundleno = 2544 (0x9f0), region = 112  ;;  %s10239_s12 = sand.u32 (!%p10059_p3), 1, %s9864_s30  }
  0xbc   : > { %s8520_s19 = sshll.u32 (!%p10059_p3), %s10239_s12, 8  ;;  %s823_s24 = scalar_lea.sflag (!%p10059_p3), [#allocation3], %s10239_s12 }
  0xbd   : > { %s10243_s1 = scalar_lea.vmem (!%p10059_p3), [#allocation2], %s8520_s19 }
  0xc0   : > { %9827 = dma.done.wait (%p10184_p6), %s823_s24, 4096  }
  0xc1   : > { %9829 = vsyncadd (%p10184_p6), %s823_s24, 4294963200  ;;  %s831_s2 = sand.u32 1, %s10054_s26   ;;  %s8830_s7 = smul.u32 96, %s10239_s12 }
  0xc2   : > { %s832_s0 = scalar_lea.sflag [#allocation6], %s831_s2 }
  0xc3   : > { %s10253_s29 = scalar_lea.vmem [#allocation5], %s8830_s7 }
  0xc4   : > { %9831 = dma.done.wait (%p10184_p6), %s832_s0, 1536  }
  0xc5   : > { %9833 = vsyncadd (%p10184_p6), %s832_s0, 4294965760 }
  0xc6   : > { %9835 = dma.done.wait (%p81_p1), [#allocation6], 2048  }
  0xc7   : > { %9837 = vsyncadd (%p81_p1), [#allocation6], 4294965248 }
  0xc8   : > { %9839 = dma.done.wait (%p81_p1), [#allocation9], 8192  }
  0xc9   : > { %9841 = vsyncadd (%p81_p1), [#allocation9], 4294959104 }
  0xca   : > { %9843 = dma.done.wait (%p81_p1), [#allocation12], 8192  }
  0xcb   : > { %9845 = vsyncadd (%p81_p1), [#allocation12], 4294959104 }
  0xcc   : > { %9847 = dma.done.wait (%p81_p1), [#allocation15], 6144  }
  0xcd   : > { %9849 = vsyncadd (%p81_p1), [#allocation15], 4294961152 }
  0xce   : > { %9851 = dma.done.wait (%p81_p1), [#allocation18], 8192  }
  0xcf   : > { %9853 = vsyncadd (%p81_p1), [#allocation18], 4294959104  ;;  %v9899_v0 = vmov 0   ;;  %v9001_v1 = vld [vmem:[#allocation7 + $0x74] ss:$8 sps:$4 sm:$0xff]   ;;  %v9025_v17 = vld [vmem:[%s10243_s1] sm:$0xff]  }
  0xd0   : > { %1356 = vmatprep.mubr.bf16.mxu0 %v9899_v0  ;;  %8999 = vset.pattern.permute.xlu0 %v9899_v0  ;;  %v9003_v2 = vld [vmem:[#allocation7 + $0x70] ss:$8 sps:$4 sm:$0xff]   ;;  %v9004_v3 = vld [vmem:[#allocation7 + $0x64] ss:$8 sps:$4 sm:$0xff]   ;;  %v9006_v4 = vld [vmem:[#allocation7 + $0x60] ss:$8 sps:$4 sm:$0xff]  }
  0xd1   : > { %9000 = vset.pattern.permute.xlu1 %v9899_v0  ;;  %1324 = vmatprep.subr.bf16.mxu0 %v9001_v1  ;;  %v9007_v5 = vld [vmem:[#allocation7 + $0x54] ss:$8 sps:$4 sm:$0xff]   ;;  %v9009_v6 = vld [vmem:[#allocation7 + $0x50] ss:$8 sps:$4 sm:$0xff]   ;;  %v9010_v7 = vld [vmem:[#allocation7 + $0x44] ss:$8 sps:$4 sm:$0xff]  }
  0xd2   : > { %1325 = vmatpush1.bf16.msra.mxu0 %v9003_v2  ;;  %v9012_v8 = vld [vmem:[#allocation7 + $0x40] ss:$8 sps:$4 sm:$0xff]   ;;  %v9013_v9 = vld [vmem:[#allocation7 + $0x34] ss:$8 sps:$4 sm:$0xff]   ;;  %v9015_v10 = vld [vmem:[#allocation7 + $0x30] ss:$8 sps:$4 sm:$0xff]  }
  0xd3   : > { %1326 = vmatprep.subr.bf16.mxu0 %v9004_v3  ;;  %v9016_v11 = vld [vmem:[#allocation7 + $0x24] ss:$8 sps:$4 sm:$0xff]   ;;  %v9018_v12 = vld [vmem:[#allocation7 + $0x20] ss:$8 sps:$4 sm:$0xff]   ;;  %v9019_v13 = vld [vmem:[#allocation7 + $0x14] ss:$8 sps:$4 sm:$0xff]  }
  0xd4   : > { %v9021_v14 = vld [vmem:[#allocation7 + $0x10] ss:$8 sps:$4 sm:$0xff]   ;;  %v9022_v15 = vld [vmem:[#allocation7 + $0x4] ss:$8 sps:$4 sm:$0xff]   ;;  %v9024_v16 = vld [vmem:[#allocation7] ss:$8 sps:$4 sm:$0xff]  }
  0xd5   : > { %v9026_v18 = vld [vmem:[%s10243_s1 + $0x8] sm:$0xff]   ;;  %v9027_v19 = vld [vmem:[%s10243_s1 + $0x10] sm:$0xff]   ;;  %v9028_v24 = vld [vmem:[%s10243_s1 + $0x18] sm:$0xff]   ;;  %p949_p1 = scmp.lt.s32.totalorder %s9872_s25, 1  ;;  %s12549_s20 = sld [smem:[#allocation38_spill]] }
  0xd6   : > { %1327 = vmatpush1.bf16.msra.mxu0 %v9006_v4  ;;  %v9044_v20 = vld [vmem:[#allocation8 + $0x74] ss:$8 sps:$4 sm:$0xff]   ;;  %v9046_v21 = vld [vmem:[#allocation8 + $0x70] ss:$8 sps:$4 sm:$0xff]   ;;  %v9047_v22 = vld [vmem:[#allocation8 + $0x64] ss:$8 sps:$4 sm:$0xff]  }
  0xd7   : > { %1328 = vmatprep.subr.bf16.mxu0 %v9007_v5  ;;  %2212 = vmatprep.subr.bf16.mxu1 %v9044_v20  ;;  %v9049_v23 = vld [vmem:[#allocation8 + $0x60] ss:$8 sps:$4 sm:$0xff]   ;;  %v9051_v25 = vld [vmem:[#allocation8 + $0x54] ss:$8 sps:$4 sm:$0xff]   ;;  %v9053_v26 = vld [vmem:[#allocation8 + $0x50] ss:$8 sps:$4 sm:$0xff]  }
  0xd8   : > { %2213 = vmatpush1.bf16.msra.mxu1 %v9046_v21  ;;  %v9054_v27 = vld [vmem:[#allocation8 + $0x44] ss:$8 sps:$4 sm:$0xff]   ;;  %v9056_v28 = vld [vmem:[#allocation8 + $0x40] ss:$8 sps:$4 sm:$0xff]   ;;  %v9058_v30 = vld [vmem:[#allocation8 + $0x34] ss:$8 sps:$4 sm:$0xff]  }
  0xd9   : > { %2214 = vmatprep.subr.bf16.mxu1 %v9047_v22  ;;  %v9029_v29 = vld [vmem:[%s10243_s1 + $0x20] sm:$0xff]   ;;  %v9060_v31 = vld [vmem:[#allocation8 + $0x30] ss:$8 sps:$4 sm:$0xff]   ;;  %v9030_v34 = vld [vmem:[%s10243_s1 + $0x28] sm:$0xff]   ;;  %s10331_s26 = scalar_select %p949_p1, %s9872_s25, 1 }
  0xda   : > { %1329 = vmatpush1.bf16.msra.mxu0 %v9009_v6  ;;  %v9061_v32 = vld [vmem:[#allocation8 + $0x24] ss:$8 sps:$4 sm:$0xff]   ;;  %v9063_v33 = vld [vmem:[#allocation8 + $0x20] ss:$8 sps:$4 sm:$0xff]   ;;  %v9065_v35 = vld [vmem:[#allocation8 + $0x14] ss:$8 sps:$4 sm:$0xff]  }
  0xdb   : > { %1330 = vmatprep.subr.bf16.mxu0 %v9010_v7  ;;  %v9067_v36 = vld [vmem:[#allocation8 + $0x10] ss:$8 sps:$4 sm:$0xff]   ;;  %v9068_v37 = vld [vmem:[#allocation8 + $0x4] ss:$8 sps:$4 sm:$0xff]   ;;  %v9070_v38 = vld [vmem:[#allocation8] ss:$8 sps:$4 sm:$0xff]  }
  0xdc   : > { %2215 = vmatpush1.bf16.msra.mxu1 %v9049_v23  ;;  %v9031_v39 = vld [vmem:[%s10243_s1 + $0x30] sm:$0xff]   ;;  %v9075_v42 = vld [vmem:[#allocation8 + $0xe4] ss:$8 sps:$4 sm:$0xff]   ;;  %v9077_v43 = vld [vmem:[#allocation8 + $0xe0] ss:$8 sps:$4 sm:$0xff]   ;;  %s8530_s28 = sshll.u32 %s10331_s26, 1 }
  0xdd   : > { %2216 = vmatprep.subr.bf16.mxu1 %v9051_v25  ;;  %v9072_v40 = vld [vmem:[#allocation8 + $0xf4] ss:$8 sps:$4 sm:$0xff]   ;;  %v9074_v41 = vld [vmem:[#allocation8 + $0xf0] ss:$8 sps:$4 sm:$0xff]   ;;  %v9082_v47 = vld [vmem:[#allocation8 + $0xc4] ss:$8 sps:$4 sm:$0xff]  }
  0xde   : > { %1331 = vmatpush1.bf16.msra.mxu0 %v9012_v8  ;;  %v9032_v44 = vld [vmem:[%s10243_s1 + $0x38] sm:$0xff]   ;;  %v9084_v48 = vld [vmem:[#allocation8 + $0xc0] ss:$8 sps:$4 sm:$0xff]   ;;  %v9089_v53 = vld [vmem:[#allocation8 + $0xa4] ss:$8 sps:$4 sm:$0xff]   ;;  %s12550_s23 = sld [smem:[#allocation35_spill]] }
  0xdf   : > { %1332 = vmatprep.subr.bf16.mxu0 %v9013_v9  ;;  %v9079_v45 = vld [vmem:[#allocation8 + $0xd4] ss:$8 sps:$4 sm:$0xff]   ;;  %v9081_v46 = vld [vmem:[#allocation8 + $0xd0] ss:$8 sps:$4 sm:$0xff]   ;;  %v9033_v49 = vld [vmem:[%s10243_s1 + $0x40] sm:$0xff]   ;;  %s12551_s21 = sld [smem:[#allocation40_spill]] }
  0xe0   : > { %2217 = vmatpush1.bf16.msra.mxu1 %v9053_v26  ;;  %v9086_v50 = vld [vmem:[#allocation8 + $0xb4] ss:$8 sps:$4 sm:$0xff]   ;;  %v9088_v51 = vld [vmem:[#allocation8 + $0xb0] ss:$8 sps:$4 sm:$0xff]   ;;  %v9034_v52 = vld [vmem:[%s10243_s1 + $0x48] sm:$0xff]   ;;  %s12552_s0 = sld [smem:[#allocation44_spill]] }
  0xe1   : > { %2218 = vmatprep.subr.bf16.mxu1 %v9054_v27  ;;  %v9091_v54 = vld [vmem:[#allocation8 + $0xa0] ss:$8 sps:$4 sm:$0xff]   ;;  %v9093_v55 = vld [vmem:[#allocation8 + $0x94] ss:$8 sps:$4 sm:$0xff]   ;;  %v9095_v56 = vld [vmem:[#allocation8 + $0x90] ss:$8 sps:$4 sm:$0xff]  }
  0xe2   : > { %1333 = vmatpush1.bf16.msra.mxu0 %v9015_v10  ;;  %v9035_v57 = vld [vmem:[%s10243_s1 + $0x50] sm:$0xff]   ;;  %v9096_v58 = vld [vmem:[#allocation8 + $0x84] ss:$8 sps:$4 sm:$0xff]   ;;  %v9098_v59 = vld [vmem:[#allocation8 + $0x80] ss:$8 sps:$4 sm:$0xff]   ;;  %s12557_s17 = sld [smem:[#allocation52_spill]] }
  0xe3   : > { %1334 = vmatprep.subr.bf16.mxu0 %v9016_v11  ;;  %v9036_v60 = vld [vmem:[%s10243_s1 + $0x58] sm:$0xff]   ;;  %v9037_v61 = vld [vmem:[%s10243_s1 + $0x60] sm:$0xff]   ;;  %v9038_v62 = vld [vmem:[%s10243_s1 + $0x68] sm:$0xff]   ;;  %s12558_s2 = sld [smem:[#allocation53_spill]]  ;;  %s9900_s10 = smov [#allocation20]  }
  0xe4   : > { %2219 = vmatpush1.bf16.msra.mxu1 %v9056_v28  ;;  %v9039_v63 = vld [vmem:[%s10243_s1 + $0x70] sm:$0xff]   ;;  %v9040_v1 = vld [vmem:[%s10243_s1 + $0x78] sm:$0xff]   ;;  %v9041_v2 = vld [vmem:[%s10243_s1 + $0x80] sm:$0xff]   ;;  %s952_s6 = scalar_lea.vmem %s12550_s23, %s8530_s28  ;;  %s12554_s23 = sld [smem:[#allocation36_spill]] }
  0xe5   : > { %2220 = vmatprep.subr.bf16.mxu1 %v9058_v30  ;;  %v9042_v3 = vld [vmem:[%s10243_s1 + $0x88] sm:$0xff]   ;;  %v9043_v4 = vld [vmem:[%s10243_s1 + $0x90] sm:$0xff]   ;;  %v9050_v5 = vld [vmem:[%s10243_s1 + $0x98] sm:$0xff]   ;;  %s12559_s8 = sld [smem:[#allocation54_spill]]  ;;  %s9780_s14 = sshll.u32 %s9900_s10, 4  ;;  %s9781_s14 = int_to_ptr.vmem [resolvable:$false] %s9780_s14 }
  0xe6   : > { %1335 = vmatpush1.bf16.msra.mxu0 %v9018_v12  ;;  %v9057_v6 = vld [vmem:[%s10243_s1 + $0xa0] sm:$0xff]   ;;  %v9105_v7 = vld [vmem:[#allocation10 + $0x70] ss:$8 sps:$4 sm:$0xff]   ;;  %v9107_v8 = vld [vmem:[#allocation10 + $0x74] ss:$8 sps:$4 sm:$0xff]   ;;  %s9782_s19 = scalar_lea.vmem %s9781_s14, 3072 }
  0xe7   : > { %1336 = vmatprep.subr.bf16.mxu0 %v9019_v13  ;;  %v9064_v9 = vld [vmem:[%s10243_s1 + $0xa8] sm:$0xff]   ;;  %v9071_v10 = vld [vmem:[%s10243_s1 + $0xb0] sm:$0xff]   ;;  %v9078_v13 = vld [vmem:[%s10243_s1 + $0xb8] sm:$0xff]  }
  0xe8   : > { %2221 = vmatpush1.bf16.msra.mxu1 %v9060_v31  ;;  %v9108_v11 = vld [vmem:[#allocation10 + $0x60] ss:$8 sps:$4 sm:$0xff]   ;;  %v9110_v12 = vld [vmem:[#allocation10 + $0x64] ss:$8 sps:$4 sm:$0xff]   ;;  %v9113_v25 = vld [vmem:[#allocation10 + $0x54] ss:$8 sps:$4 sm:$0xff]  }
  0xe9   : > { %2222 = vmatprep.subr.bf16.mxu1 %v9061_v32  ;;  %v1023_v23 = vld [vmem:[%s952_s6] sm:$0x3]  ;;  %v9092_v32 = vld [vmem:[%s10243_s1 + $0xc8] sm:$0xff]  }
  0xea   : > { %1337 = vmatpush1.bf16.msra.mxu0 %v9021_v14  ;;  %v1042_v14 = vlaneseq  ;;  %s956_s6 = scalar_lea.vmem %s12554_s23, %s8530_s28  ;;  %s12555_s28 = sld [smem:[#allocation49_spill]] }
  0xeb   : > { %1338 = vmatprep.subr.bf16.mxu0 %v9022_v15 }
  0xec   : > { %2223 = vmatpush1.bf16.msra.mxu1 %v9063_v33  ;;  %v1043_v15 = vshrl.u32 %v1042_v14, 7 }
  0xed   : > { %2224 = vmatprep.subr.bf16.mxu1 %v9065_v35 }
  0xee   : > { %1339 = vmatpush1.bf16.msra.mxu0 %v9024_v16  ;;  %v10335_v16 = vsub.s32 1, %v1043_v15 }
  0xef   : > { %2961 = vmatprep.subr.bf16.mxu0 %v9107_v8 }
  0xf0   : > { %2225 = vmatpush1.bf16.msra.mxu1 %v9067_v36  ;;  %v10357_v28 = vrot.slane %v1023_v23, %v10335_v16 }
  0xf1   : > { %1357 = vmatmul.mubr.bf16.vlgmr.msra.gmra.mxu0 %v9025_v17  ;;  %2226 = vmatprep.subr.bf16.mxu1 %v9068_v37  ;;  %v10337_v17 = vsub.s32 0, %v1043_v15 }
  0xf2   : > { %1366 = vmatprep.mubr.bf16.mxu0 %v9899_v0  ;;  %2962 = vmatpush1.bf16.msra.mxu0 %v9105_v7  ;;  %v9100_v7 = vld [vmem:[%s10243_s1 + $0xd8] sm:$0xff]  }
  0xf3   : > { %2963 = vmatprep.subr.bf16.mxu0 %v9110_v12  ;;  %v10361_v30 = vrot.slane %v1023_v23, %v10337_v17 }
  0xf4   : > { %2227 = vmatpush1.bf16.msra.mxu1 %v9070_v38 }
  0xf5   : > { %2228 = vmatprep.subr.bf16.mxu1 %v9072_v40 }
  0xf6   : > { %2964 = vmatpush1.bf16.msra.mxu0 %v9108_v11 }
  0xf7   : > { %2965 = vmatprep.subr.bf16.mxu0 %v9113_v25 }
  0xf8   : > { %2229 = vmatpush2.bf16.msra.mxu1 %v9074_v41 }
  0xf9   : > { %1367 = vmatmul.mubr.bf16.gmra.mxu0 %v9026_v18  ;;  %2230 = vmatprep.subr.bf16.mxu1 %v9075_v42  ;;  %v9085_v18 = vld [vmem:[%s10243_s1 + $0xc0] sm:$0xff]  }
  0xfa   : > { %1376 = vmatprep.mubr.bf16.mxu0 %v9899_v0 }
  0xfc   : > { %2231 = vmatpush2.bf16.msra.mxu1 %v9077_v43 }
  0xfd   : > { %2232 = vmatprep.subr.bf16.mxu1 %v9079_v45 }
 0x100   : > { %2233 = vmatpush2.bf16.msra.mxu1 %v9081_v46 }
 0x101   : > { %1377 = vmatmul.mubr.bf16.gmra.mxu0 %v9027_v19  ;;  %2234 = vmatprep.subr.bf16.mxu1 %v9082_v47  ;;  %v1040_v19 = vld [vmem:[%s12549_s20] sm:$0x3]  ;;  %s12553_s20 = sld [smem:[#allocation47_spill]] }
 0x102   : > { %1386 = vmatprep.mubr.bf16.mxu0 %v9899_v0  ;;  %v10349_v20 = vrot.slane %v1040_v19, %v10335_v16  ;;  %v10352_v21 = vrot.slane %v1040_v19, %v10337_v17 }
 0x104   : > { %2235 = vmatpush2.bf16.msra.mxu1 %v9084_v48 }
 0x105   : > { %2236 = vmatprep.subr.bf16.mxu1 %v9086_v50 }
 0x108   : > { %2237 = vmatpush2.bf16.msra.mxu1 %v9088_v51 }
 0x109   : > { %1387 = vmatmul.mubr.bf16.gmra.mxu0 %v9028_v24  ;;  %2238 = vmatprep.subr.bf16.mxu1 %v9089_v53  ;;  %v9111_v24 = vld [vmem:[#allocation10 + $0x50] ss:$8 sps:$4 sm:$0xff]  }
 0x10a   : > { %1396 = vmatprep.mubr.bf16.mxu0 %v9899_v0  ;;  %2966 = vmatpush1.bf16.msra.mxu0 %v9111_v24 }
 0x10c   : > { %2239 = vmatpush2.bf16.msra.mxu1 %v9091_v54 }
 0x10d   : > { %2240 = vmatprep.subr.bf16.mxu1 %v9093_v55 }
 0x110   : > { %2241 = vmatpush2.bf16.msra.mxu1 %v9095_v56 }
 0x111   : > { %1397 = vmatmul.mubr.bf16.gmra.mxu0 %v9029_v29  ;;  %2242 = vmatprep.subr.bf16.mxu1 %v9096_v58 }
 0x112   : > { %1406 = vmatprep.mubr.bf16.mxu0 %v9899_v0 }
 0x114   : > { %2243 = vmatpush2.bf16.msra.mxu1 %v9098_v59 }
 0x119   : > { %1407 = vmatmul.mubr.bf16.gmra.mxu0 %v9030_v34 }
 0x11a   : > { %1416 = vmatprep.mubr.bf16.mxu0 %v9899_v0 }
 0x121   : > { %1417 = vmatmul.mubr.bf16.gmra.mxu0 %v9031_v39 }
 0x122   : > { %1426 = vmatprep.mubr.bf16.mxu0 %v9899_v0 }
 0x129   : > { %1427 = vmatmul.mubr.bf16.gmra.mxu0 %v9032_v44 }
 0x12a   : > { %1436 = vmatprep.mubr.bf16.mxu0 %v9899_v0 }
 0x131   : > { %1437 = vmatmul.mubr.bf16.gmra.mxu0 %v9033_v49  ;;  %v9099_v49 = vld [vmem:[%s10243_s1 + $0xd0] sm:$0xff]  }
 0x132   : > { %1446 = vmatprep.mubr.bf16.mxu0 %v9899_v0 }
 0x139   : > { %1447 = vmatmul.mubr.bf16.gmra.mxu0 %v9034_v52 }
 0x13a   : > { %1456 = vmatprep.mubr.bf16.mxu0 %v9899_v0 }
 0x141   : > { %1457 = vmatmul.mubr.bf16.gmra.mxu0 %v9035_v57 }
 0x142   : > { %1466 = vmatprep.mubr.bf16.mxu0 %v9899_v0 }
 0x149   : > { %1467 = vmatmul.mubr.bf16.gmra.mxu0 %v9036_v60  ;;  %v9114_v60 = vld [vmem:[#allocation10 + $0x40] ss:$8 sps:$4 sm:$0xff]  }
 0x14a   : > { %1476 = vmatprep.mubr.bf16.mxu0 %v9899_v0 }
 0x151   : > { %1477 = vmatmul.mubr.bf16.gmra.mxu0 %v9037_v61  ;;  %v9116_v61 = vld [vmem:[#allocation10 + $0x44] ss:$8 sps:$4 sm:$0xff]  }
 0x152   : > { %1486 = vmatprep.mubr.bf16.mxu0 %v9899_v0  ;;  %2967 = vmatprep.subr.bf16.mxu0 %v9116_v61 }
 0x153   : > { %2968 = vmatpush1.bf16.msra.mxu0 %v9114_v60 }
 0x159   : > { %1487 = vmatmul.mubr.bf16.gmra.mxu0 %v9038_v62 }
 0x15a   : > { %1496 = vmatprep.mubr.bf16.mxu0 %v9899_v0 }
 0x161   : > { %1497 = vmatmul.mubr.bf16.gmra.mxu0 %v9039_v63 }
 0x162   : > { %1506 = vmatprep.mubr.bf16.mxu0 %v9899_v0 }
 0x169   : > { %1507 = vmatmul.mubr.bf16.gmra.mxu0 %v9040_v1 }
 0x16a   : > { %1516 = vmatprep.mubr.bf16.mxu0 %v9899_v0 }
 0x171   : > { %1517 = vmatmul.mubr.bf16.gmra.mxu0 %v9041_v2 }
 0x172   : > { %1526 = vmatprep.mubr.bf16.mxu0 %v9899_v0 }
 0x179   : > { %1527 = vmatmul.mubr.bf16.gmra.mxu0 %v9042_v3 }
 0x17a   : > { %1536 = vmatprep.mubr.bf16.mxu0 %v9899_v0 }
 0x181   : > { %1537 = vmatmul.mubr.bf16.gmra.mxu0 %v9043_v4 }
 0x182   : > { %1546 = vmatprep.mubr.bf16.mxu0 %v9899_v0 }
 0x189   : > { %1547 = vmatmul.mubr.bf16.gmra.mxu0 %v9050_v5 }
 0x18a   : > { %1556 = vmatprep.mubr.bf16.mxu0 %v9899_v0 }
 0x191   : > { %1557 = vmatmul.mubr.bf16.gmra.mxu0 %v9057_v6 }
 0x192   : > { %1566 = vmatprep.mubr.bf16.mxu0 %v9899_v0 }
 0x199   : > { %1567 = vmatmul.mubr.bf16.gmra.mxu0 %v9064_v9 }
 0x19a   : > { %1576 = vmatprep.mubr.bf16.mxu0 %v9899_v0 }
 0x1a1   : > { %1577 = vmatmul.mubr.bf16.gmra.mxu0 %v9071_v10 }
 0x1a2   : > { %1586 = vmatprep.mubr.bf16.mxu0 %v9899_v0 }
 0x1a9   : > { %1587 = vmatmul.mubr.bf16.gmra.mxu0 %v9078_v13 }
 0x1aa   : > { %1596 = vmatprep.mubr.bf16.mxu0 %v9899_v0 }
 0x1b1   : > { %v1358_v22 = vpop.f32.mrf.mxu0  ;;  %1597 = vmatmul.mubr.bf16.gmra.mxu0 %v9085_v18 }
 0x1b2   : > { %1606 = vmatprep.mubr.bf16.mxu0 %v9899_v0  ;;  %v1359_v29 = vadd.f32 %v1358_v22, %v10352_v21 }
 0x1b3   : > { %v1360_v26 = vpop.f32.mrf.mxu0 }
 0x1b4   : > { %v1361_v27 = vadd.f32 %v1360_v26, %v10349_v20  ;;  %v1688_v38 = vadd.f32 %v10361_v30, %v1359_v29 }
 0x1b5   : > { %v1362_v31 = vpop.f32.mrf.mxu0 }
 0x1b6   : > { %v1363_v33 = vadd.f32 %v1362_v31, %v10352_v21  ;;  %v1689_v37 = vadd.f32 %v10357_v28, %v1361_v27  ;;  %v1816_v46 = vmax.f32 %v1688_v38, 0.0 }
 0x1b7   : > { %v1364_v34 = vpop.f32.mrf.mxu0 }
 0x1b8   : > { %v1690_v35 = vadd.f32 %v10361_v30, %v1363_v33  ;;  %v1365_v36 = vadd.f32 %v1364_v34, %v10349_v20  ;;  %v1817_v44 = vmax.f32 %v1689_v37, 0.0 }
 0x1b9   : > { %v1368_v39 = vpop.f32.mrf.mxu0  ;;  %1607 = vmatmul.mubr.bf16.gmra.mxu0 %v9092_v32  ;;  %v9101_v32 = vld [vmem:[%s10243_s1 + $0xe0] sm:$0xff]  }
 0x1ba   : > { %1616 = vmatprep.mubr.bf16.mxu0 %v9899_v0  ;;  %v1691_v40 = vadd.f32 %v10357_v28, %v1365_v36  ;;  %v1818_v41 = vmax.f32 %v1690_v35, 0.0  ;;  %v1369_v47 = vadd.f32 %v1368_v39, %v10352_v21 }
 0x1bb   : > { %v1370_v42 = vpop.f32.mrf.mxu0 }
 0x1bc   : > { %v1371_v43 = vadd.f32 %v1370_v42, %v10349_v20  ;;  %v1819_v45 = vmax.f32 %v1691_v40, 0.0  ;;  %v1944_v53 = vpack.c.bf16 %v1818_v41, %v1816_v46  ;;  %v1692_v57 = vadd.f32 %v10361_v30, %v1369_v47 }
 0x1bd   : > { %v1372_v48 = vpop.f32.mrf.mxu0 }
 0x1be   : > { %v1373_v50 = vadd.f32 %v1372_v48, %v10352_v21  ;;  %v1945_v51 = vpack.c.bf16 %v1819_v45, %v1817_v44  ;;  %v1693_v54 = vadd.f32 %v10357_v28, %v1371_v43  ;;  %v1820_v4 = vmax.f32 %v1692_v57, 0.0  ;;  %v9117_v43 = vld [vmem:[#allocation10 + $0x30] ss:$8 sps:$4 sm:$0xff]   ;;  %v9119_v44 = vld [vmem:[#allocation10 + $0x34] ss:$8 sps:$4 sm:$0xff]  }
 0x1bf   : > { %v1374_v52 = vpop.f32.mrf.mxu0  ;;  %2969 = vmatprep.subr.bf16.mxu0 %v9119_v44 }
 0x1c0   : > { %v1694_v55 = vadd.f32 %v10361_v30, %v1373_v50  ;;  %v1375_v56 = vadd.f32 %v1374_v52, %v10349_v20  ;;  %2244 = vmatprep.mubr.bf16.mxu1 %v1945_v51  ;;  %v1821_v1 = vmax.f32 %v1693_v54, 0.0  ;;  %2970 = vmatpush1.bf16.msra.mxu0 %v9117_v43 }
 0x1c1   : > { %v1378_v58 = vpop.f32.mrf.mxu0  ;;  %1617 = vmatmul.mubr.bf16.gmra.mxu0 %v9099_v49  ;;  %2245 = vmatmul.mubr.bf16.vlgmr.msra.gmra.mxu1 %v1944_v53  ;;  %v9102_v53 = vld [vmem:[%s10243_s1 + $0xe8] sm:$0xff]  }
 0x1c2   : > { %v1695_v59 = vadd.f32 %v10357_v28, %v1375_v56  ;;  %1626 = vmatprep.mubr.bf16.mxu0 %v9899_v0  ;;  %v1822_v62 = vmax.f32 %v1694_v55, 0.0  ;;  %v1379_v5 = vadd.f32 %v1378_v58, %v10352_v21 }
 0x1c3   : > { %v1380_v63 = vpop.f32.mrf.mxu0 }
 0x1c4   : > { %v1823_v2 = vmax.f32 %v1695_v59, 0.0  ;;  %v1381_v3 = vadd.f32 %v1380_v63, %v10349_v20  ;;  %v1946_v11 = vpack.c.bf16 %v1822_v62, %v1820_v4  ;;  %v1696_v15 = vadd.f32 %v10361_v30, %v1379_v5 }
 0x1c5   : > { %v1382_v6 = vpop.f32.mrf.mxu0 }
 0x1c6   : > { %v1383_v8 = vadd.f32 %v1382_v6, %v10352_v21  ;;  %v1947_v9 = vpack.c.bf16 %v1823_v2, %v1821_v1  ;;  %v1697_v12 = vadd.f32 %v10357_v28, %v1381_v3  ;;  %v1824_v27 = vmax.f32 %v1696_v15, 0.0 }
 0x1c7   : > { %v1384_v10 = vpop.f32.mrf.mxu0 }
 0x1c8   : > { %v1698_v13 = vadd.f32 %v10361_v30, %v1383_v8  ;;  %v1385_v14 = vadd.f32 %v1384_v10, %v10349_v20  ;;  %2254 = vmatprep.mubr.bf16.mxu1 %v1947_v9  ;;  %v1825_v24 = vmax.f32 %v1697_v12, 0.0  ;;  %v9103_v9 = vld [vmem:[%s10243_s1 + $0xf0] sm:$0xff]  }
 0x1c9   : > { %v1388_v18 = vpop.f32.mrf.mxu0  ;;  %1627 = vmatmul.mubr.bf16.gmra.mxu0 %v9100_v7  ;;  %2255 = vmatmul.mubr.bf16.gmra.mxu1 %v1946_v11 }
 0x1ca   : > { %v1699_v19 = vadd.f32 %v10357_v28, %v1385_v14  ;;  %1636 = vmatprep.mubr.bf16.mxu0 %v9899_v0  ;;  %v1826_v22 = vmax.f32 %v1698_v13, 0.0  ;;  %v1389_v29 = vadd.f32 %v1388_v18, %v10352_v21 }
 0x1cb   : > { %v1390_v23 = vpop.f32.mrf.mxu0 }
 0x1cc   : > { %v1827_v25 = vmax.f32 %v1699_v19, 0.0  ;;  %v1391_v26 = vadd.f32 %v1390_v23, %v10349_v20  ;;  %v1948_v36 = vpack.c.bf16 %v1826_v22, %v1824_v27  ;;  %v1700_v40 = vadd.f32 %v10361_v30, %v1389_v29  ;;  %v9122_v23 = vld [vmem:[#allocation10 + $0x24] ss:$8 sps:$4 sm:$0xff]  }
 0x1cd   : > { %v1392_v31 = vpop.f32.mrf.mxu0  ;;  %2971 = vmatprep.subr.bf16.mxu0 %v9122_v23 }
 0x1ce   : > { %v1393_v33 = vadd.f32 %v1392_v31, %v10352_v21  ;;  %v1949_v34 = vpack.c.bf16 %v1827_v25, %v1825_v24  ;;  %v1701_v37 = vadd.f32 %v10357_v28, %v1391_v26  ;;  %v1828_v50 = vmax.f32 %v1700_v40, 0.0  ;;  %v9120_v25 = vld [vmem:[#allocation10 + $0x20] ss:$8 sps:$4 sm:$0xff]   ;;  %v9123_v40 = vld [vmem:[#allocation10 + $0x10] ss:$8 sps:$4 sm:$0xff]  }
 0x1cf   : > { %v1394_v35 = vpop.f32.mrf.mxu0  ;;  %2972 = vmatpush1.bf16.msra.mxu0 %v9120_v25  ;;  %v9135_v25 = vld [vmem:[#allocation10 + $0xd0] ss:$8 sps:$4 sm:$0xff]  }
 0x1d0   : > { %v1702_v38 = vadd.f32 %v10361_v30, %v1393_v33  ;;  %v1395_v39 = vadd.f32 %v1394_v35, %v10349_v20  ;;  %2264 = vmatprep.mubr.bf16.mxu1 %v1949_v34  ;;  %v1829_v47 = vmax.f32 %v1701_v37, 0.0  ;;  %v9125_v37 = vld [vmem:[#allocation10 + $0x14] ss:$8 sps:$4 sm:$0xff]  }
 0x1d1   : > { %v1398_v41 = vpop.f32.mrf.mxu0  ;;  %1637 = vmatmul.mubr.bf16.gmra.mxu0 %v9101_v32  ;;  %2265 = vmatmul.mubr.bf16.gmra.mxu1 %v1948_v36  ;;  %v9104_v36 = vld [vmem:[%s10243_s1 + $0xf8] sm:$0xff]  }
 0x1d2   : > { %v1703_v42 = vadd.f32 %v10357_v28, %v1395_v39  ;;  %1646 = vmatprep.mubr.bf16.mxu0 %v9899_v0  ;;  %v1830_v45 = vmax.f32 %v1702_v38, 0.0  ;;  %v1399_v51 = vadd.f32 %v1398_v41, %v10352_v21  ;;  %2973 = vmatprep.subr.bf16.mxu0 %v9125_v37  ;;  %v9138_v37 = vld [vmem:[#allocation10 + $0xc0] ss:$8 sps:$4 sm:$0xff]  }
 0x1d3   : > { %v1400_v46 = vpop.f32.mrf.mxu0  ;;  %2974 = vmatpush1.bf16.msra.mxu0 %v9123_v40 }
 0x1d4   : > { %v1831_v48 = vmax.f32 %v1703_v42, 0.0  ;;  %v1401_v49 = vadd.f32 %v1400_v46, %v10349_v20  ;;  %v1950_v57 = vpack.c.bf16 %v1830_v45, %v1828_v50  ;;  %v1704_v61 = vadd.f32 %v10361_v30, %v1399_v51  ;;  %v9126_v50 = vld [vmem:[#allocation10] ss:$8 sps:$4 sm:$0xff]  }
 0x1d5   : > { %v1402_v52 = vpop.f32.mrf.mxu0 }
 0x1d6   : > { %v1403_v54 = vadd.f32 %v1402_v52, %v10352_v21  ;;  %v1951_v55 = vpack.c.bf16 %v1831_v48, %v1829_v47  ;;  %v1705_v58 = vadd.f32 %v10357_v28, %v1401_v49  ;;  %v1832_v6 = vmax.f32 %v1704_v61, 0.0  ;;  %v9128_v48 = vld [vmem:[#allocation10 + $0x4] ss:$8 sps:$4 sm:$0xff]  }
 0x1d7   : > { %v1404_v56 = vpop.f32.mrf.mxu0  ;;  %2975 = vmatprep.subr.bf16.mxu0 %v9128_v48 }
 0x1d8   : > { %v1706_v59 = vadd.f32 %v10361_v30, %v1403_v54  ;;  %v1405_v60 = vadd.f32 %v1404_v56, %v10349_v20  ;;  %2274 = vmatprep.mubr.bf16.mxu1 %v1951_v55  ;;  %v1833_v3 = vmax.f32 %v1705_v58, 0.0  ;;  %2976 = vmatpush1.bf16.msra.mxu0 %v9126_v50 }
 0x1d9   : > { %v1408_v62 = vpop.f32.mrf.mxu0  ;;  %1647 = vmatmul.mubr.bf16.gmra.mxu0 %v9102_v53  ;;  %2275 = vmatmul.mubr.bf16.gmra.mxu1 %v1950_v57 }
 0x1da   : > { %v1707_v63 = vadd.f32 %v10357_v28, %v1405_v60  ;;  %1656 = vmatprep.mubr.bf16.mxu0 %v9899_v0  ;;  %v1834_v1 = vmax.f32 %v1706_v59, 0.0  ;;  %v1409_v7 = vadd.f32 %v1408_v62, %v10352_v21  ;;  %v9131_v59 = vld [vmem:[#allocation10 + $0xf4] ss:$8 sps:$4 sm:$0xff]   ;;  %v9129_v62 = vld [vmem:[#allocation10 + $0xf0] ss:$8 sps:$4 sm:$0xff]  }
 0x1db   : > { %v1410_v2 = vpop.f32.mrf.mxu0  ;;  %2977 = vmatprep.subr.bf16.mxu0 %v9131_v59 }
 0x1dc   : > { %v1835_v4 = vmax.f32 %v1707_v63, 0.0  ;;  %v1411_v5 = vadd.f32 %v1410_v2, %v10349_v20  ;;  %v1952_v13 = vpack.c.bf16 %v1834_v1, %v1832_v6  ;;  %v1708_v19 = vadd.f32 %v10361_v30, %v1409_v7  ;;  %2978 = vmatpush2.bf16.msra.mxu0 %v9129_v62  ;;  %v9134_v7 = vld [vmem:[#allocation10 + $0xe4] ss:$8 sps:$4 sm:$0xff]  }
 0x1dd   : > { %v1412_v8 = vpop.f32.mrf.mxu0  ;;  %2979 = vmatprep.subr.bf16.mxu0 %v9134_v7  ;;  %v9149_v7 = vld [vmem:[#allocation10 + $0x94] ss:$8 sps:$4 sm:$0xff]  }
 0x1de   : > { %v1413_v10 = vadd.f32 %v1412_v8, %v10352_v21  ;;  %v1953_v11 = vpack.c.bf16 %v1835_v4, %v1833_v3  ;;  %v1709_v14 = vadd.f32 %v10357_v28, %v1411_v5  ;;  %v1836_v33 = vmax.f32 %v1708_v19, 0.0 }
 0x1df   : > { %v1414_v12 = vpop.f32.mrf.mxu0 }
 0x1e0   : > { %v1710_v15 = vadd.f32 %v10361_v30, %v1413_v10  ;;  %v1415_v18 = vadd.f32 %v1414_v12, %v10349_v20  ;;  %2284 = vmatprep.mubr.bf16.mxu1 %v1953_v11  ;;  %v1837_v29 = vmax.f32 %v1709_v14, 0.0 }
 0x1e1   : > { %v1418_v22 = vpop.f32.mrf.mxu0  ;;  %1657 = vmatmul.mubr.bf16.gmra.mxu0 %v9103_v9  ;;  %2285 = vmatmul.mubr.bf16.gmra.mxu1 %v1952_v13  ;;  %v9132_v9 = vld [vmem:[#allocation10 + $0xe0] ss:$8 sps:$4 sm:$0xff]  }
 0x1e2   : > { %v1711_v24 = vadd.f32 %v10357_v28, %v1415_v18  ;;  %1666 = vmatprep.mubr.bf16.mxu0 %v9899_v0  ;;  %v1838_v26 = vmax.f32 %v1710_v15, 0.0  ;;  %v1419_v34 = vadd.f32 %v1418_v22, %v10352_v21  ;;  %2980 = vmatpush2.bf16.msra.mxu0 %v9132_v9  ;;  %v9137_v22 = vld [vmem:[#allocation10 + $0xd4] ss:$8 sps:$4 sm:$0xff]  }
 0x1e3   : > { %v1420_v27 = vpop.f32.mrf.mxu0  ;;  %2981 = vmatprep.subr.bf16.mxu0 %v9137_v22 }
 0x1e4   : > { %v1839_v31 = vmax.f32 %v1711_v24, 0.0  ;;  %v1421_v32 = vadd.f32 %v1420_v27, %v10349_v20  ;;  %v1954_v42 = vpack.c.bf16 %v1838_v26, %v1836_v33  ;;  %v1712_v46 = vadd.f32 %v10361_v30, %v1419_v34 }
 0x1e5   : > { %v1422_v35 = vpop.f32.mrf.mxu0 }
 0x1e6   : > { %v1423_v38 = vadd.f32 %v1422_v35, %v10352_v21  ;;  %v1955_v39 = vpack.c.bf16 %v1839_v31, %v1837_v29  ;;  %v1713_v43 = vadd.f32 %v10357_v28, %v1421_v32  ;;  %v1840_v56 = vmax.f32 %v1712_v46, 0.0  ;;  %2982 = vmatpush2.bf16.msra.mxu0 %v9135_v25  ;;  %v9140_v35 = vld [vmem:[#allocation10 + $0xc4] ss:$8 sps:$4 sm:$0xff]   ;;  %v9143_v46 = vld [vmem:[#allocation10 + $0xb4] ss:$8 sps:$4 sm:$0xff]  }
 0x1e7   : > { %v1424_v41 = vpop.f32.mrf.mxu0  ;;  %2983 = vmatprep.subr.bf16.mxu0 %v9140_v35 }
 0x1e8   : > { %v1714_v44 = vadd.f32 %v10361_v30, %v1423_v38  ;;  %v1425_v45 = vadd.f32 %v1424_v41, %v10349_v20  ;;  %2294 = vmatprep.mubr.bf16.mxu1 %v1955_v39  ;;  %v1841_v53 = vmax.f32 %v1713_v43, 0.0 }
 0x1e9   : > { %v1428_v47 = vpop.f32.mrf.mxu0  ;;  %1667 = vmatmul.mubr.bf16.gmra.mxu0 %v9104_v36  ;;  %2295 = vmatmul.mubr.bf16.gmra.mxu1 %v1954_v42 }
 0x1ea   : > { %v1715_v49 = vadd.f32 %v10357_v28, %v1425_v45  ;;  %v1842_v51 = vmax.f32 %v1714_v44, 0.0  ;;  %v1429_v57 = vadd.f32 %v1428_v47, %v10352_v21  ;;  %2984 = vmatpush2.bf16.msra.mxu0 %v9138_v37 }
 0x1eb   : > { %v1430_v52 = vpop.f32.mrf.mxu0  ;;  %2985 = vmatprep.subr.bf16.mxu0 %v9143_v46 }
 0x1ec   : > { %v1843_v54 = vmax.f32 %v1715_v49, 0.0  ;;  %v1431_v55 = vadd.f32 %v1430_v52, %v10349_v20  ;;  %v1956_v1 = vpack.c.bf16 %v1842_v51, %v1840_v56  ;;  %v1716_v5 = vadd.f32 %v10361_v30, %v1429_v57  ;;  %v9141_v49 = vld [vmem:[#allocation10 + $0xb0] ss:$8 sps:$4 sm:$0xff]  }
 0x1ed   : > { %v1432_v58 = vpop.f32.mrf.mxu0 }
 0x1ee   : > { %v1433_v60 = vadd.f32 %v1432_v58, %v10352_v21  ;;  %v1957_v61 = vpack.c.bf16 %v1843_v54, %v1841_v53  ;;  %v1717_v2 = vadd.f32 %v10357_v28, %v1431_v55  ;;  %v1844_v15 = vmax.f32 %v1716_v5, 0.0  ;;  %2986 = vmatpush2.bf16.msra.mxu0 %v9141_v49  ;;  %v9146_v58 = vld [vmem:[#allocation10 + $0xa4] ss:$8 sps:$4 sm:$0xff]  }
 0x1ef   : > { %v1434_v63 = vpop.f32.mrf.mxu0  ;;  %2987 = vmatprep.subr.bf16.mxu0 %v9146_v58 }
 0x1f0   : > { %v1718_v3 = vadd.f32 %v10361_v30, %v1433_v60  ;;  %v1435_v4 = vadd.f32 %v1434_v63, %v10349_v20  ;;  %2304 = vmatprep.mubr.bf16.mxu1 %v1957_v61  ;;  %v1845_v12 = vmax.f32 %v1717_v2, 0.0  ;;  %v9144_v61 = vld [vmem:[#allocation10 + $0xa0] ss:$8 sps:$4 sm:$0xff]  }
 0x1f1   : > { %v1438_v6 = vpop.f32.mrf.mxu0  ;;  %2305 = vmatmul.mubr.bf16.gmra.mxu1 %v1956_v1 }
 0x1f2   : > { %v1719_v8 = vadd.f32 %v10357_v28, %v1435_v4  ;;  %v1846_v10 = vmax.f32 %v1718_v3, 0.0  ;;  %v1439_v18 = vadd.f32 %v1438_v6, %v10352_v21  ;;  %2988 = vmatpush2.bf16.msra.mxu0 %v9144_v61 }
 0x1f3   : > { %v1440_v11 = vpop.f32.mrf.mxu0  ;;  %2989 = vmatprep.subr.bf16.mxu0 %v9149_v7 }
 0x1f4   : > { %v1847_v13 = vmax.f32 %v1719_v8, 0.0  ;;  %v1441_v14 = vadd.f32 %v1440_v11, %v10349_v20  ;;  %v1958_v27 = vpack.c.bf16 %v1846_v10, %v1844_v15  ;;  %v1720_v33 = vadd.f32 %v10361_v30, %v1439_v18  ;;  %v9147_v10 = vld [vmem:[#allocation10 + $0x90] ss:$8 sps:$4 sm:$0xff]  }
 0x1f5   : > { %v1442_v19 = vpop.f32.mrf.mxu0 }
 0x1f6   : > { %v1443_v23 = vadd.f32 %v1442_v19, %v10352_v21  ;;  %v1959_v24 = vpack.c.bf16 %v1847_v13, %v1845_v12  ;;  %v1721_v29 = vadd.f32 %v10357_v28, %v1441_v14  ;;  %v1848_v43 = vmax.f32 %v1720_v33, 0.0  ;;  %2990 = vmatpush2.bf16.msra.mxu0 %v9147_v10  ;;  %v9152_v19 = vld [vmem:[#allocation10 + $0x84] ss:$8 sps:$4 sm:$0xff]  }
 0x1f7   : > { %v1444_v26 = vpop.f32.mrf.mxu0  ;;  %2991 = vmatprep.subr.bf16.mxu0 %v9152_v19 }
 0x1f8   : > { %v1722_v31 = vadd.f32 %v10361_v30, %v1443_v23  ;;  %v1445_v32 = vadd.f32 %v1444_v26, %v10349_v20  ;;  %2314 = vmatprep.mubr.bf16.mxu1 %v1959_v24  ;;  %v1849_v40 = vmax.f32 %v1721_v29, 0.0  ;;  %v9150_v24 = vld [vmem:[#allocation10 + $0x80] ss:$8 sps:$4 sm:$0xff]  }
 0x1f9   : > { %v1448_v34 = vpop.f32.mrf.mxu0  ;;  %2315 = vmatmul.mubr.bf16.gmra.mxu1 %v1958_v27 }
 0x1fa   : > { %v1723_v36 = vadd.f32 %v10357_v28, %v1445_v32  ;;  %v1850_v38 = vmax.f32 %v1722_v31, 0.0  ;;  %v1449_v44 = vadd.f32 %v1448_v34, %v10352_v21  ;;  %2992 = vmatpush2.bf16.msra.mxu0 %v9150_v24 }
 0x1fb   : > { %v1450_v39 = vpop.f32.mrf.mxu0 }
 0x1fc   : > { %v1851_v41 = vmax.f32 %v1723_v36, 0.0  ;;  %v1451_v42 = vadd.f32 %v1450_v39, %v10349_v20  ;;  %v1960_v51 = vpack.c.bf16 %v1850_v38, %v1848_v43  ;;  %v1724_v55 = vadd.f32 %v10361_v30, %v1449_v44 }
 0x1fd   : > { %v1452_v45 = vpop.f32.mrf.mxu0 }
 0x1fe   : > { %v1453_v47 = vadd.f32 %v1452_v45, %v10352_v21  ;;  %v1961_v48 = vpack.c.bf16 %v1851_v41, %v1849_v40  ;;  %v1725_v52 = vadd.f32 %v10357_v28, %v1451_v42  ;;  %v1852_v2 = vmax.f32 %v1724_v55, 0.0 }
 0x1ff   : > { %v1454_v50 = vpop.f32.mrf.mxu0 }
 0x200   : > { %v1726_v53 = vadd.f32 %v10361_v30, %v1453_v47  ;;  %v1455_v54 = vadd.f32 %v1454_v50, %v10349_v20  ;;  %2324 = vmatprep.mubr.bf16.mxu1 %v1961_v48  ;;  %v1853_v62 = vmax.f32 %v1725_v52, 0.0 }
 0x201   : > { %v1458_v56 = vpop.f32.mrf.mxu0  ;;  %2325 = vmatmul.mubr.bf16.gmra.mxu1 %v1960_v51 }
 0x202   : > { %v1727_v57 = vadd.f32 %v10357_v28, %v1455_v54  ;;  %v1854_v59 = vmax.f32 %v1726_v53, 0.0  ;;  %v1459_v3 = vadd.f32 %v1458_v56, %v10352_v21 }
 0x203   : > { %v1460_v60 = vpop.f32.mrf.mxu0 }
 0x204   : > { %v1855_v63 = vmax.f32 %v1727_v57, 0.0  ;;  %v1461_v1 = vadd.f32 %v1460_v60, %v10349_v20  ;;  %v1962_v9 = vpack.c.bf16 %v1854_v59, %v1852_v2  ;;  %v1728_v14 = vadd.f32 %v10361_v30, %v1459_v3 }
 0x205   : > { %v1462_v4 = vpop.f32.mrf.mxu0 }
 0x206   : > { %v1463_v5 = vadd.f32 %v1462_v4, %v10352_v21  ;;  %v1963_v6 = vpack.c.bf16 %v1855_v63, %v1853_v62  ;;  %v1729_v11 = vadd.f32 %v10357_v28, %v1461_v1  ;;  %v1856_v29 = vmax.f32 %v1728_v14, 0.0 }
 0x207   : > { %v1464_v8 = vpop.f32.mrf.mxu0 }
 0x208   : > { %v1730_v12 = vadd.f32 %v10361_v30, %v1463_v5  ;;  %v1465_v13 = vadd.f32 %v1464_v8, %v10349_v20  ;;  %2334 = vmatprep.mubr.bf16.mxu1 %v1963_v6  ;;  %v1857_v25 = vmax.f32 %v1729_v11, 0.0 }
 0x209   : > { %v1468_v15 = vpop.f32.mrf.mxu0  ;;  %2335 = vmatmul.mubr.bf16.gmra.mxu1 %v1962_v9 }
 0x20a   : > { %v1731_v18 = vadd.f32 %v10357_v28, %v1465_v13  ;;  %v1858_v22 = vmax.f32 %v1730_v12, 0.0  ;;  %v1469_v31 = vadd.f32 %v1468_v15, %v10352_v21 }
 0x20b   : > { %v1470_v23 = vpop.f32.mrf.mxu0 }
 0x20c   : > { %v1859_v26 = vmax.f32 %v1731_v18, 0.0  ;;  %v1471_v27 = vadd.f32 %v1470_v23, %v10349_v20  ;;  %v1964_v36 = vpack.c.bf16 %v1858_v22, %v1856_v29  ;;  %v1732_v40 = vadd.f32 %v10361_v30, %v1469_v31 }
 0x20d   : > { %v1472_v32 = vpop.f32.mrf.mxu0 }
 0x20e   : > { %v1473_v33 = vadd.f32 %v1472_v32, %v10352_v21  ;;  %v1965_v34 = vpack.c.bf16 %v1859_v26, %v1857_v25  ;;  %v1733_v37 = vadd.f32 %v10357_v28, %v1471_v27  ;;  %v1860_v48 = vmax.f32 %v1732_v40, 0.0 }
 0x20f   : > { %v1474_v35 = vpop.f32.mrf.mxu0 }
 0x210   : > { %v1734_v38 = vadd.f32 %v10361_v30, %v1473_v33  ;;  %v1475_v39 = vadd.f32 %v1474_v35, %v10349_v20  ;;  %2344 = vmatprep.mubr.bf16.mxu1 %v1965_v34  ;;  %v1861_v45 = vmax.f32 %v1733_v37, 0.0 }
 0x211   : > { %v1478_v41 = vpop.f32.mrf.mxu0  ;;  %2345 = vmatmul.mubr.bf16.gmra.mxu1 %v1964_v36 }
 0x212   : > { %v1735_v42 = vadd.f32 %v10357_v28, %v1475_v39  ;;  %v1862_v43 = vmax.f32 %v1734_v38, 0.0  ;;  %v1479_v49 = vadd.f32 %v1478_v41, %v10352_v21 }
 0x213   : > { %v1480_v44 = vpop.f32.mrf.mxu0 }
 0x214   : > { %v1863_v46 = vmax.f32 %v1735_v42, 0.0  ;;  %v1481_v47 = vadd.f32 %v1480_v44, %v10349_v20  ;;  %v1966_v54 = vpack.c.bf16 %v1862_v43, %v1860_v48  ;;  %v1736_v58 = vadd.f32 %v10361_v30, %v1479_v49 }
 0x215   : > { %v1482_v50 = vpop.f32.mrf.mxu0 }
 0x216   : > { %v1483_v51 = vadd.f32 %v1482_v50, %v10352_v21  ;;  %v1967_v52 = vpack.c.bf16 %v1863_v46, %v1861_v45  ;;  %v1737_v55 = vadd.f32 %v10357_v28, %v1481_v47  ;;  %v1864_v3 = vmax.f32 %v1736_v58, 0.0 }
 0x217   : > { %v1484_v53 = vpop.f32.mrf.mxu0 }
 0x218   : > { %v1738_v56 = vadd.f32 %v10361_v30, %v1483_v51  ;;  %v1485_v57 = vadd.f32 %v1484_v53, %v10349_v20  ;;  %2354 = vmatprep.mubr.bf16.mxu1 %v1967_v52  ;;  %v1865_v63 = vmax.f32 %v1737_v55, 0.0 }
 0x219   : > { %v1488_v59 = vpop.f32.mrf.mxu0  ;;  %2355 = vmatmul.mubr.bf16.gmra.mxu1 %v1966_v54 }
 0x21a   : > { %v1739_v60 = vadd.f32 %v10357_v28, %v1485_v57  ;;  %v1866_v61 = vmax.f32 %v1738_v56, 0.0  ;;  %v1489_v4 = vadd.f32 %v1488_v59, %v10352_v21 }
 0x21b   : > { %v1490_v62 = vpop.f32.mrf.mxu0 }
 0x21c   : > { %v1867_v1 = vmax.f32 %v1739_v60, 0.0  ;;  %v1491_v2 = vadd.f32 %v1490_v62, %v10349_v20  ;;  %v1968_v9 = vpack.c.bf16 %v1866_v61, %v1864_v3  ;;  %v1740_v13 = vadd.f32 %v10361_v30, %v1489_v4 }
 0x21d   : > { %v1492_v5 = vpop.f32.mrf.mxu0 }
 0x21e   : > { %v1493_v6 = vadd.f32 %v1492_v5, %v10352_v21  ;;  %v1969_v7 = vpack.c.bf16 %v1867_v1, %v1865_v63  ;;  %v1741_v10 = vadd.f32 %v10357_v28, %v1491_v2  ;;  %v1868_v25 = vmax.f32 %v1740_v13, 0.0 }
 0x21f   : > { %v1494_v8 = vpop.f32.mrf.mxu0 }
 0x220   : > { %v1742_v11 = vadd.f32 %v10361_v30, %v1493_v6  ;;  %v1495_v12 = vadd.f32 %v1494_v8, %v10349_v20  ;;  %2364 = vmatprep.mubr.bf16.mxu1 %v1969_v7  ;;  %v1869_v22 = vmax.f32 %v1741_v10, 0.0 }
 0x221   : > { %v1498_v14 = vpop.f32.mrf.mxu0  ;;  %2365 = vmatmul.mubr.bf16.gmra.mxu1 %v1968_v9 }
 0x222   : > { %v1743_v15 = vadd.f32 %v10357_v28, %v1495_v12  ;;  %v1870_v18 = vmax.f32 %v1742_v11, 0.0  ;;  %v1499_v26 = vadd.f32 %v1498_v14, %v10352_v21 }
 0x223   : > { %v1500_v19 = vpop.f32.mrf.mxu0 }
 0x224   : > { %v1871_v23 = vmax.f32 %v1743_v15, 0.0  ;;  %v1501_v24 = vadd.f32 %v1500_v19, %v10349_v20  ;;  %v1970_v33 = vpack.c.bf16 %v1870_v18, %v1868_v25  ;;  %v1744_v37 = vadd.f32 %v10361_v30, %v1499_v26 }
 0x225   : > { %v1502_v27 = vpop.f32.mrf.mxu0 }
 0x226   : > { %v1503_v29 = vadd.f32 %v1502_v27, %v10352_v21  ;;  %v1971_v31 = vpack.c.bf16 %v1871_v23, %v1869_v22  ;;  %v1745_v34 = vadd.f32 %v10357_v28, %v1501_v24  ;;  %v1872_v45 = vmax.f32 %v1744_v37, 0.0 }
 0x227   : > { %v1504_v32 = vpop.f32.mrf.mxu0 }
 0x228   : > { %v1746_v35 = vadd.f32 %v10361_v30, %v1503_v29  ;;  %v1505_v36 = vadd.f32 %v1504_v32, %v10349_v20  ;;  %2374 = vmatprep.mubr.bf16.mxu1 %v1971_v31  ;;  %v1873_v42 = vmax.f32 %v1745_v34, 0.0 }
 0x229   : > { %v1508_v38 = vpop.f32.mrf.mxu0  ;;  %2375 = vmatmul.mubr.bf16.gmra.mxu1 %v1970_v33 }
 0x22a   : > { %v1747_v39 = vadd.f32 %v10357_v28, %v1505_v36  ;;  %v1874_v40 = vmax.f32 %v1746_v35, 0.0  ;;  %v1509_v46 = vadd.f32 %v1508_v38, %v10352_v21 }
 0x22b   : > { %v1510_v41 = vpop.f32.mrf.mxu0 }
 0x22c   : > { %v1875_v43 = vmax.f32 %v1747_v39, 0.0  ;;  %v1511_v44 = vadd.f32 %v1510_v41, %v10349_v20  ;;  %v1972_v51 = vpack.c.bf16 %v1874_v40, %v1872_v45  ;;  %v1748_v55 = vadd.f32 %v10361_v30, %v1509_v46 }
 0x22d   : > { %v1512_v47 = vpop.f32.mrf.mxu0 }
 0x22e   : > { %v1513_v48 = vadd.f32 %v1512_v47, %v10352_v21  ;;  %v1973_v49 = vpack.c.bf16 %v1875_v43, %v1873_v42  ;;  %v1749_v52 = vadd.f32 %v10357_v28, %v1511_v44  ;;  %v1876_v63 = vmax.f32 %v1748_v55, 0.0 }
 0x22f   : > { %v1514_v50 = vpop.f32.mrf.mxu0 }
 0x230   : > { %v1750_v53 = vadd.f32 %v10361_v30, %v1513_v48  ;;  %v1515_v54 = vadd.f32 %v1514_v50, %v10349_v20  ;;  %2384 = vmatprep.mubr.bf16.mxu1 %v1973_v49  ;;  %v1877_v60 = vmax.f32 %v1749_v52, 0.0 }
 0x231   : > { %v1518_v56 = vpop.f32.mrf.mxu0  ;;  %2385 = vmatmul.mubr.bf16.gmra.mxu1 %v1972_v51 }
 0x232   : > { %v1751_v57 = vadd.f32 %v10357_v28, %v1515_v54  ;;  %v1878_v58 = vmax.f32 %v1750_v53, 0.0  ;;  %v1519_v1 = vadd.f32 %v1518_v56, %v10352_v21 }
 0x233   : > { %v1520_v59 = vpop.f32.mrf.mxu0 }
 0x234   : > { %v1879_v61 = vmax.f32 %v1751_v57, 0.0  ;;  %v1521_v62 = vadd.f32 %v1520_v59, %v10349_v20  ;;  %v1974_v6 = vpack.c.bf16 %v1878_v58, %v1876_v63  ;;  %v1752_v10 = vadd.f32 %v10361_v30, %v1519_v1 }
 0x235   : > { %v1522_v2 = vpop.f32.mrf.mxu0 }
 0x236   : > { %v1523_v3 = vadd.f32 %v1522_v2, %v10352_v21  ;;  %v1975_v4 = vpack.c.bf16 %v1879_v61, %v1877_v60  ;;  %v1753_v7 = vadd.f32 %v10357_v28, %v1521_v62  ;;  %v1880_v22 = vmax.f32 %v1752_v10, 0.0 }
 0x237   : > { %v1524_v5 = vpop.f32.mrf.mxu0 }
 0x238   : > { %v1754_v8 = vadd.f32 %v10361_v30, %v1523_v3  ;;  %v1525_v9 = vadd.f32 %v1524_v5, %v10349_v20  ;;  %2394 = vmatprep.mubr.bf16.mxu1 %v1975_v4  ;;  %v1881_v15 = vmax.f32 %v1753_v7, 0.0 }
 0x239   : > { %v1528_v11 = vpop.f32.mrf.mxu0  ;;  %2395 = vmatmul.mubr.bf16.gmra.mxu1 %v1974_v6 }
 0x23a   : > { %v1755_v12 = vadd.f32 %v10357_v28, %v1525_v9  ;;  %v1882_v13 = vmax.f32 %v1754_v8, 0.0  ;;  %v1529_v23 = vadd.f32 %v1528_v11, %v10352_v21 }
 0x23b   : > { %v1530_v14 = vpop.f32.mrf.mxu0 }
 0x23c   : > { %v1883_v18 = vmax.f32 %v1755_v12, 0.0  ;;  %v1531_v19 = vadd.f32 %v1530_v14, %v10349_v20  ;;  %v1976_v29 = vpack.c.bf16 %v1882_v13, %v1880_v22  ;;  %v1756_v34 = vadd.f32 %v10361_v30, %v1529_v23 }
 0x23d   : > { %v1532_v24 = vpop.f32.mrf.mxu0 }
 0x23e   : > { %v1533_v25 = vadd.f32 %v1532_v24, %v10352_v21  ;;  %v1977_v26 = vpack.c.bf16 %v1883_v18, %v1881_v15  ;;  %v1757_v31 = vadd.f32 %v10357_v28, %v1531_v19  ;;  %v1884_v42 = vmax.f32 %v1756_v34, 0.0 }
 0x23f   : > { %v1534_v27 = vpop.f32.mrf.mxu0 }
 0x240   : > { %v1758_v32 = vadd.f32 %v10361_v30, %v1533_v25  ;;  %v1535_v33 = vadd.f32 %v1534_v27, %v10349_v20  ;;  %2404 = vmatprep.mubr.bf16.mxu1 %v1977_v26  ;;  %v1885_v39 = vmax.f32 %v1757_v31, 0.0 }
 0x241   : > { %v1538_v35 = vpop.f32.mrf.mxu0  ;;  %2405 = vmatmul.mubr.bf16.gmra.mxu1 %v1976_v29 }
 0x242   : > { %v1759_v36 = vadd.f32 %v10357_v28, %v1535_v33  ;;  %v1886_v37 = vmax.f32 %v1758_v32, 0.0  ;;  %v1539_v43 = vadd.f32 %v1538_v35, %v10352_v21 }
 0x243   : > { %v1540_v38 = vpop.f32.mrf.mxu0 }
 0x244   : > { %v1887_v40 = vmax.f32 %v1759_v36, 0.0  ;;  %v1541_v41 = vadd.f32 %v1540_v38, %v10349_v20  ;;  %v1978_v48 = vpack.c.bf16 %v1886_v37, %v1884_v42  ;;  %v1760_v52 = vadd.f32 %v10361_v30, %v1539_v43 }
 0x245   : > { %v1542_v44 = vpop.f32.mrf.mxu0 }
 0x246   : > { %v1543_v45 = vadd.f32 %v1542_v44, %v10352_v21  ;;  %v1979_v46 = vpack.c.bf16 %v1887_v40, %v1885_v39  ;;  %v1761_v49 = vadd.f32 %v10357_v28, %v1541_v41  ;;  %v1888_v60 = vmax.f32 %v1760_v52, 0.0  ;;  %v9153_v44 = vld [vmem:[#allocation11 + $0x70] ss:$8 sps:$4 sm:$0xff]  }
 0x247   : > { %v1544_v47 = vpop.f32.mrf.mxu0 }
 0x248   : > { %v1762_v50 = vadd.f32 %v10361_v30, %v1543_v45  ;;  %v1545_v51 = vadd.f32 %v1544_v47, %v10349_v20  ;;  %2414 = vmatprep.mubr.bf16.mxu1 %v1979_v46  ;;  %v1889_v57 = vmax.f32 %v1761_v49, 0.0  ;;  %v9155_v45 = vld [vmem:[#allocation11 + $0x74] ss:$8 sps:$4 sm:$0xff]  }
 0x249   : > { %v1548_v53 = vpop.f32.mrf.mxu0  ;;  %2415 = vmatmul.mubr.bf16.gmra.mxu1 %v1978_v48  ;;  %3710 = vmatprep.subr.bf16.mxu1 %v9155_v45 }
 0x24a   : > { %v1763_v54 = vadd.f32 %v10357_v28, %v1545_v51  ;;  %v1890_v55 = vmax.f32 %v1762_v50, 0.0  ;;  %v1549_v61 = vadd.f32 %v1548_v53, %v10352_v21  ;;  %3711 = vmatpush1.bf16.msra.mxu1 %v9153_v44 }
 0x24b   : > { %v1550_v56 = vpop.f32.mrf.mxu0 }
 0x24c   : > { %v1891_v58 = vmax.f32 %v1763_v54, 0.0  ;;  %v1551_v59 = vadd.f32 %v1550_v56, %v10349_v20  ;;  %v1980_v3 = vpack.c.bf16 %v1890_v55, %v1888_v60  ;;  %v1764_v7 = vadd.f32 %v10361_v30, %v1549_v61 }
 0x24d   : > { %v1552_v62 = vpop.f32.mrf.mxu0 }
 0x24e   : > { %v1553_v63 = vadd.f32 %v1552_v62, %v10352_v21  ;;  %v1981_v1 = vpack.c.bf16 %v1891_v58, %v1889_v57  ;;  %v1765_v4 = vadd.f32 %v10357_v28, %v1551_v59  ;;  %v1892_v15 = vmax.f32 %v1764_v7, 0.0 }
 0x24f   : > { %v1554_v2 = vpop.f32.mrf.mxu0 }
 0x250   : > { %v1766_v5 = vadd.f32 %v10361_v30, %v1553_v63  ;;  %v1555_v6 = vadd.f32 %v1554_v2, %v10349_v20  ;;  %2424 = vmatprep.mubr.bf16.mxu1 %v1981_v1  ;;  %v1893_v12 = vmax.f32 %v1765_v4, 0.0 }
 0x251   : > { %v1558_v8 = vpop.f32.mrf.mxu0  ;;  %2425 = vmatmul.mubr.bf16.gmra.mxu1 %v1980_v3 }
 0x252   : > { %v1767_v9 = vadd.f32 %v10357_v28, %v1555_v6  ;;  %v1894_v10 = vmax.f32 %v1766_v5, 0.0  ;;  %v1559_v18 = vadd.f32 %v1558_v8, %v10352_v21 }
 0x253   : > { %v1560_v11 = vpop.f32.mrf.mxu0 }
 0x254   : > { %v1895_v13 = vmax.f32 %v1767_v9, 0.0  ;;  %v1561_v14 = vadd.f32 %v1560_v11, %v10349_v20  ;;  %v1982_v25 = vpack.c.bf16 %v1894_v10, %v1892_v15  ;;  %v1768_v31 = vadd.f32 %v10361_v30, %v1559_v18 }
 0x255   : > { %v1562_v19 = vpop.f32.mrf.mxu0 }
 0x256   : > { %v1563_v22 = vadd.f32 %v1562_v19, %v10352_v21  ;;  %v1983_v23 = vpack.c.bf16 %v1895_v13, %v1893_v12  ;;  %v1769_v26 = vadd.f32 %v10357_v28, %v1561_v14  ;;  %v1896_v39 = vmax.f32 %v1768_v31, 0.0 }
 0x257   : > { %v1564_v24 = vpop.f32.mrf.mxu0 }
 0x258   : > { %v1770_v27 = vadd.f32 %v10361_v30, %v1563_v22  ;;  %v1565_v29 = vadd.f32 %v1564_v24, %v10349_v20  ;;  %2434 = vmatprep.mubr.bf16.mxu1 %v1983_v23  ;;  %v1897_v36 = vmax.f32 %v1769_v26, 0.0  ;;  %v9156_v23 = vld [vmem:[#allocation11 + $0x60] ss:$8 sps:$4 sm:$0xff]   ;;  %v9158_v24 = vld [vmem:[#allocation11 + $0x64] ss:$8 sps:$4 sm:$0xff]  }
 0x259   : > { %v1568_v32 = vpop.f32.mrf.mxu0  ;;  %2435 = vmatmul.mubr.bf16.gmra.mxu1 %v1982_v25  ;;  %3712 = vmatprep.subr.bf16.mxu1 %v9158_v24 }
 0x25a   : > { %v1771_v33 = vadd.f32 %v10357_v28, %v1565_v29  ;;  %v1898_v34 = vmax.f32 %v1770_v27, 0.0  ;;  %v1569_v40 = vadd.f32 %v1568_v32, %v10352_v21  ;;  %3713 = vmatpush1.bf16.msra.mxu1 %v9156_v23 }
 0x25b   : > { %v1570_v35 = vpop.f32.mrf.mxu0 }
 0x25c   : > { %v1899_v37 = vmax.f32 %v1771_v33, 0.0  ;;  %v1571_v38 = vadd.f32 %v1570_v35, %v10349_v20  ;;  %v1984_v47 = vpack.c.bf16 %v1898_v34, %v1896_v39  ;;  %v1772_v51 = vadd.f32 %v10361_v30, %v1569_v40 }
 0x25d   : > { %v1572_v41 = vpop.f32.mrf.mxu0 }
 0x25e   : > { %v1573_v42 = vadd.f32 %v1572_v41, %v10352_v21  ;;  %v1985_v43 = vpack.c.bf16 %v1899_v37, %v1897_v36  ;;  %v1773_v48 = vadd.f32 %v10357_v28, %v1571_v38  ;;  %v1900_v59 = vmax.f32 %v1772_v51, 0.0 }
 0x25f   : > { %v1574_v46 = vpop.f32.mrf.mxu0 }
 0x260   : > { %v1774_v49 = vadd.f32 %v10361_v30, %v1573_v42  ;;  %v1575_v50 = vadd.f32 %v1574_v46, %v10349_v20  ;;  %2444 = vmatprep.mubr.bf16.mxu1 %v1985_v43  ;;  %v1901_v56 = vmax.f32 %v1773_v48, 0.0 }
 0x261   : > { %v1578_v52 = vpop.f32.mrf.mxu0  ;;  %2445 = vmatmul.mubr.bf16.gmra.mxu1 %v1984_v47 }
 0x262   : > { %v1775_v53 = vadd.f32 %v10357_v28, %v1575_v50  ;;  %v1902_v54 = vmax.f32 %v1774_v49, 0.0  ;;  %v1579_v60 = vadd.f32 %v1578_v52, %v10352_v21 }
 0x263   : > { %v1580_v55 = vpop.f32.mrf.mxu0 }
 0x264   : > { %v1903_v57 = vmax.f32 %v1775_v53, 0.0  ;;  %v1581_v58 = vadd.f32 %v1580_v55, %v10349_v20  ;;  %v1986_v2 = vpack.c.bf16 %v1902_v54, %v1900_v59  ;;  %v1776_v6 = vadd.f32 %v10361_v30, %v1579_v60 }
 0x265   : > { %v1582_v61 = vpop.f32.mrf.mxu0 }
 0x266   : > { %v1583_v62 = vadd.f32 %v1582_v61, %v10352_v21  ;;  %v1987_v63 = vpack.c.bf16 %v1903_v57, %v1901_v56  ;;  %v1777_v3 = vadd.f32 %v10357_v28, %v1581_v58  ;;  %v1904_v14 = vmax.f32 %v1776_v6, 0.0 }
 0x267   : > { %v1584_v1 = vpop.f32.mrf.mxu0 }
 0x268   : > { %v1778_v4 = vadd.f32 %v10361_v30, %v1583_v62  ;;  %v1585_v5 = vadd.f32 %v1584_v1, %v10349_v20  ;;  %2454 = vmatprep.mubr.bf16.mxu1 %v1987_v63  ;;  %v1905_v11 = vmax.f32 %v1777_v3, 0.0  ;;  %v9159_v63 = vld [vmem:[#allocation11 + $0x50] ss:$8 sps:$4 sm:$0xff]   ;;  %v9161_v1 = vld [vmem:[#allocation11 + $0x54] ss:$8 sps:$4 sm:$0xff]  }
 0x269   : > { %v1588_v7 = vpop.f32.mrf.mxu0  ;;  %2455 = vmatmul.mubr.bf16.gmra.mxu1 %v1986_v2  ;;  %3714 = vmatprep.subr.bf16.mxu1 %v9161_v1  ;;  %v9162_v1 = vld [vmem:[#allocation11 + $0x40] ss:$8 sps:$4 sm:$0xff]  }
 0x26a   : > { %v1779_v8 = vadd.f32 %v10357_v28, %v1585_v5  ;;  %v1906_v9 = vmax.f32 %v1778_v4, 0.0  ;;  %v1589_v15 = vadd.f32 %v1588_v7, %v10352_v21  ;;  %3715 = vmatpush1.bf16.msra.mxu1 %v9159_v63 }
 0x26b   : > { %v1590_v10 = vpop.f32.mrf.mxu0 }
 0x26c   : > { %v1907_v12 = vmax.f32 %v1779_v8, 0.0  ;;  %v1591_v13 = vadd.f32 %v1590_v10, %v10349_v20  ;;  %v1988_v26 = vpack.c.bf16 %v1906_v9, %v1904_v14  ;;  %v1780_v32 = vadd.f32 %v10361_v30, %v1589_v15  ;;  %v2040_v8 = vld [vmem:[%s12551_s21] sm:$0x3]  ;;  %s12556_s21 = sld [smem:[#allocation51_spill]] }
 0x26d   : > { %v1592_v18 = vpop.f32.mrf.mxu0 }
 0x26e   : > { %v1593_v19 = vadd.f32 %v1592_v18, %v10352_v21  ;;  %v1989_v22 = vpack.c.bf16 %v1907_v12, %v1905_v11  ;;  %v1781_v27 = vadd.f32 %v10357_v28, %v1591_v13  ;;  %v1908_v40 = vmax.f32 %v1780_v32, 0.0 }
 0x26f   : > { %v1594_v25 = vpop.f32.mrf.mxu0  ;;  %v10586_v13 = vrot.slane %v2040_v8, %v10335_v16 }
 0x270   : > { %v1782_v29 = vadd.f32 %v10361_v30, %v1593_v19  ;;  %v1595_v31 = vadd.f32 %v1594_v25, %v10349_v20  ;;  %2464 = vmatprep.mubr.bf16.mxu1 %v1989_v22  ;;  %v1909_v37 = vmax.f32 %v1781_v27, 0.0  ;;  %v10589_v19 = vrot.slane %v2040_v8, %v10337_v17 }
 0x271   : > { %v1598_v33 = vpop.f32.mrf.mxu0  ;;  %2465 = vmatmul.mubr.bf16.gmra.mxu1 %v1988_v26 }
 0x272   : > { %v1783_v34 = vadd.f32 %v10357_v28, %v1595_v31  ;;  %v1910_v35 = vmax.f32 %v1782_v29, 0.0  ;;  %v1599_v41 = vadd.f32 %v1598_v33, %v10352_v21 }
 0x273   : > { %v1600_v36 = vpop.f32.mrf.mxu0 }
 0x274   : > { %v1911_v38 = vmax.f32 %v1783_v34, 0.0  ;;  %v1601_v39 = vadd.f32 %v1600_v36, %v10349_v20  ;;  %v1990_v46 = vpack.c.bf16 %v1910_v35, %v1908_v40  ;;  %v1784_v50 = vadd.f32 %v10361_v30, %v1599_v41 }
 0x275   : > { %v1602_v42 = vpop.f32.mrf.mxu0 }
 0x276   : > { %v1603_v43 = vadd.f32 %v1602_v42, %v10352_v21  ;;  %v1991_v44 = vpack.c.bf16 %v1911_v38, %v1909_v37  ;;  %v1785_v47 = vadd.f32 %v10357_v28, %v1601_v39  ;;  %v1912_v57 = vmax.f32 %v1784_v50, 0.0 }
 0x277   : > { %v1604_v45 = vpop.f32.mrf.mxu0 }
 0x278   : > { %v1786_v48 = vadd.f32 %v10361_v30, %v1603_v43  ;;  %v1605_v49 = vadd.f32 %v1604_v45, %v10349_v20  ;;  %2474 = vmatprep.mubr.bf16.mxu1 %v1991_v44  ;;  %v1913_v55 = vmax.f32 %v1785_v47, 0.0 }
 0x279   : > { %v1608_v51 = vpop.f32.mrf.mxu0  ;;  %2475 = vmatmul.mubr.bf16.gmra.mxu1 %v1990_v46 }
 0x27a   : > { %v1787_v52 = vadd.f32 %v10357_v28, %v1605_v49  ;;  %v1914_v53 = vmax.f32 %v1786_v48, 0.0  ;;  %v1609_v60 = vadd.f32 %v1608_v51, %v10352_v21 }
 0x27b   : > { %v1610_v54 = vpop.f32.mrf.mxu0 }
 0x27c   : > { %v1915_v56 = vmax.f32 %v1787_v52, 0.0  ;;  %v1611_v58 = vadd.f32 %v1610_v54, %v10349_v20  ;;  %v1992_v3 = vpack.c.bf16 %v1914_v53, %v1912_v57  ;;  %v1788_v10 = vadd.f32 %v10361_v30, %v1609_v60 }
 0x27d   : > { %v1612_v59 = vpop.f32.mrf.mxu0 }
 0x27e   : > { %v1613_v61 = vadd.f32 %v1612_v59, %v10352_v21  ;;  %v1993_v62 = vpack.c.bf16 %v1915_v56, %v1913_v55  ;;  %v1789_v6 = vadd.f32 %v10357_v28, %v1611_v58  ;;  %v1916_v27 = vmax.f32 %v1788_v10, 0.0 }
 0x27f   : > { %v1614_v2 = vpop.f32.mrf.mxu0 }
 0x280   : > { %v1790_v4 = vadd.f32 %v10361_v30, %v1613_v61  ;;  %v1615_v5 = vadd.f32 %v1614_v2, %v10349_v20  ;;  %2484 = vmatprep.mubr.bf16.mxu1 %v1993_v62  ;;  %v1917_v22 = vmax.f32 %v1789_v6, 0.0  ;;  %v9164_v2 = vld [vmem:[#allocation11 + $0x44] ss:$8 sps:$4 sm:$0xff]  }
 0x281   : > { %v1618_v7 = vpop.f32.mrf.mxu0  ;;  %v2246_v9 = vpop.f32.mrf.mxu1  ;;  %2485 = vmatmul.mubr.bf16.gmra.mxu1 %v1992_v3  ;;  %3716 = vmatprep.subr.bf16.mxu1 %v9164_v2 }
 0x282   : > { %v1791_v11 = vadd.f32 %v10357_v28, %v1615_v5  ;;  %v1918_v15 = vmax.f32 %v1790_v4, 0.0  ;;  %v1619_v23 = vadd.f32 %v1618_v7, %v10352_v21  ;;  %v2247_v36 = vadd.f32 %v2246_v9, %v10589_v19  ;;  %3717 = vmatpush1.bf16.msra.mxu1 %v9162_v1 }
 0x283   : > { %v1620_v12 = vpop.f32.mrf.mxu0  ;;  %v2248_v14 = vpop.f32.mrf.mxu1 }
 0x284   : > { %v1919_v18 = vmax.f32 %v1791_v11, 0.0  ;;  %v1621_v24 = vadd.f32 %v1620_v12, %v10349_v20  ;;  %v2249_v32 = vadd.f32 %v2248_v14, %v10586_v13  ;;  %v1994_v39 = vpack.c.bf16 %v1918_v15, %v1916_v27 }
 0x285   : > { %v1622_v25 = vpop.f32.mrf.mxu0  ;;  %v2250_v26 = vpop.f32.mrf.mxu1  ;;  %v1792_v40 = vadd.f32 %v10361_v30, %v1619_v23  ;;  %v2565_v52 = vmax.f32 %v2247_v36, 0.0 }
 0x286   : > { %v1623_v29 = vadd.f32 %v1622_v25, %v10352_v21  ;;  %v2251_v31 = vadd.f32 %v2250_v26, %v10589_v19  ;;  %v1995_v35 = vpack.c.bf16 %v1919_v18, %v1917_v22  ;;  %v1793_v41 = vadd.f32 %v10357_v28, %v1621_v24 }
 0x287   : > { %v1624_v33 = vpop.f32.mrf.mxu0  ;;  %v2252_v34 = vpop.f32.mrf.mxu1  ;;  %v2566_v47 = vmax.f32 %v2249_v32, 0.0  ;;  %v1920_v54 = vmax.f32 %v1792_v40, 0.0 }
 0x288   : > { %v1794_v37 = vadd.f32 %v10361_v30, %v1623_v29  ;;  %v1625_v38 = vadd.f32 %v1624_v33, %v10349_v20  ;;  %v2253_v42 = vadd.f32 %v2252_v34, %v10586_v13  ;;  %2494 = vmatprep.mubr.bf16.mxu1 %v1995_v35  ;;  %v2567_v45 = vmax.f32 %v2251_v31, 0.0 }
 0x289   : > { %v1628_v43 = vpop.f32.mrf.mxu0  ;;  %v2256_v44 = vpop.f32.mrf.mxu1  ;;  %2495 = vmatmul.mubr.bf16.gmra.mxu1 %v1994_v39  ;;  %v1921_v55 = vmax.f32 %v1793_v41, 0.0 }
 0x28a   : > { %v1795_v46 = vadd.f32 %v10357_v28, %v1625_v38  ;;  %v1922_v48 = vmax.f32 %v1794_v37, 0.0  ;;  %v2568_v49 = vmax.f32 %v2253_v42, 0.0  ;;  %v2693_v60 = vpack.c.bf16 %v2567_v45, %v2565_v52 }
 0x28b   : > { %v1630_v50 = vpop.f32.mrf.mxu0  ;;  %v2258_v51 = vpop.f32.mrf.mxu1  ;;  %v1629_v61 = vadd.f32 %v1628_v43, %v10352_v21  ;;  %v2257_v62 = vadd.f32 %v2256_v44, %v10589_v19 }
 0x28c   : > { %v1923_v53 = vmax.f32 %v1795_v46, 0.0  ;;  %v1631_v56 = vadd.f32 %v1630_v50, %v10349_v20  ;;  %v2694_v59 = vpack.c.bf16 %v2568_v49, %v2566_v47  ;;  %v2259_v3 = vadd.f32 %v2258_v51, %v10586_v13 }
 0x28d   : > { %v1632_v57 = vpop.f32.mrf.mxu0  ;;  %v2260_v58 = vpop.f32.mrf.mxu1  ;;  %v1996_v8 = vpack.c.bf16 %v1922_v48, %v1920_v54  ;;  %v1796_v18 = vadd.f32 %v10361_v30, %v1629_v61  ;;  %v2569_v29 = vmax.f32 %v2257_v62, 0.0 }
 0x28e   : > { %v1633_v63 = vadd.f32 %v1632_v57, %v10352_v21  ;;  %v2261_v4 = vadd.f32 %v2260_v58, %v10589_v19  ;;  %2993 = vmatprep.mubr.bf16.mxu0 %v2694_v59  ;;  %v1997_v7 = vpack.c.bf16 %v1923_v53, %v1921_v55  ;;  %v1797_v12 = vadd.f32 %v10357_v28, %v1631_v56 }
 0x28f   : > { %v1634_v5 = vpop.f32.mrf.mxu0  ;;  %v2262_v6 = vpop.f32.mrf.mxu1  ;;  %2994 = vmatmul.mubr.bf16.vlgmr.msra.gmra.mxu0 %v2693_v60  ;;  %v2570_v25 = vmax.f32 %v2259_v3, 0.0  ;;  %v1924_v39 = vmax.f32 %v1796_v18, 0.0 }
 0x290   : > { %v1798_v9 = vadd.f32 %v10361_v30, %v1633_v63  ;;  %v1635_v10 = vadd.f32 %v1634_v5, %v10349_v20  ;;  %v2263_v11 = vadd.f32 %v2262_v6, %v10586_v13  ;;  %2504 = vmatprep.mubr.bf16.mxu1 %v1997_v7  ;;  %v2571_v22 = vmax.f32 %v2261_v4, 0.0 }
 0x291   : > { %v1638_v14 = vpop.f32.mrf.mxu0  ;;  %v2266_v15 = vpop.f32.mrf.mxu1  ;;  %2505 = vmatmul.mubr.bf16.gmra.mxu1 %v1996_v8  ;;  %v1925_v33 = vmax.f32 %v1797_v12, 0.0  ;;  %v9165_v12 = vld [vmem:[#allocation11 + $0x30] ss:$8 sps:$4 sm:$0xff]  }
 0x292   : > { %v1799_v23 = vadd.f32 %v10357_v28, %v1635_v10  ;;  %v2572_v24 = vmax.f32 %v2263_v11, 0.0  ;;  %v1926_v31 = vmax.f32 %v1798_v9, 0.0  ;;  %v1639_v34 = vadd.f32 %v1638_v14, %v10352_v21  ;;  %v9167_v14 = vld [vmem:[#allocation11 + $0x34] ss:$8 sps:$4 sm:$0xff]  }
 0x293   : > { %v1640_v26 = vpop.f32.mrf.mxu0  ;;  %v2268_v27 = vpop.f32.mrf.mxu1  ;;  %v2695_v40 = vpack.c.bf16 %v2571_v22, %v2569_v29  ;;  %v2267_v42 = vadd.f32 %v2266_v15, %v10589_v19  ;;  %3718 = vmatprep.subr.bf16.mxu1 %v9167_v14 }
 0x294   : > { %v1927_v32 = vmax.f32 %v1799_v23, 0.0  ;;  %v1641_v35 = vadd.f32 %v1640_v26, %v10349_v20  ;;  %v2696_v38 = vpack.c.bf16 %v2572_v24, %v2570_v25  ;;  %v2269_v43 = vadd.f32 %v2268_v27, %v10586_v13  ;;  %3719 = vmatpush1.bf16.msra.mxu1 %v9165_v12 }
 0x295   : > { %v1642_v36 = vpop.f32.mrf.mxu0  ;;  %v2270_v37 = vpop.f32.mrf.mxu1  ;;  %v1998_v51 = vpack.c.bf16 %v1926_v31, %v1924_v39  ;;  %v1800_v52 = vadd.f32 %v10361_v30, %v1639_v34  ;;  %v2573_v62 = vmax.f32 %v2267_v42, 0.0 }
 0x296   : > { %v1643_v41 = vadd.f32 %v1642_v36, %v10352_v21  ;;  %v2271_v44 = vadd.f32 %v2270_v37, %v10589_v19  ;;  %3003 = vmatprep.mubr.bf16.mxu0 %v2696_v38  ;;  %v1999_v47 = vpack.c.bf16 %v1927_v32, %v1925_v33  ;;  %v1801_v53 = vadd.f32 %v10357_v28, %v1641_v35 }
 0x297   : > { %v1644_v45 = vpop.f32.mrf.mxu0  ;;  %v2272_v46 = vpop.f32.mrf.mxu1  ;;  %3004 = vmatmul.mubr.bf16.gmra.mxu0 %v2695_v40  ;;  %v2574_v59 = vmax.f32 %v2269_v43, 0.0  ;;  %v1928_v2 = vmax.f32 %v1800_v52, 0.0 }
 0x298   : > { %v1802_v48 = vadd.f32 %v10361_v30, %v1643_v41  ;;  %v1645_v49 = vadd.f32 %v1644_v45, %v10349_v20  ;;  %v2273_v50 = vadd.f32 %v2272_v46, %v10586_v13  ;;  %2514 = vmatprep.mubr.bf16.mxu1 %v1999_v47  ;;  %v2575_v56 = vmax.f32 %v2271_v44, 0.0 }
 0x299   : > { %v1648_v54 = vpop.f32.mrf.mxu0  ;;  %v2276_v55 = vpop.f32.mrf.mxu1  ;;  %2515 = vmatmul.mubr.bf16.gmra.mxu1 %v1998_v51  ;;  %v1929_v3 = vmax.f32 %v1801_v53, 0.0 }
 0x29a   : > { %v1803_v57 = vadd.f32 %v10357_v28, %v1645_v49  ;;  %v2576_v58 = vmax.f32 %v2273_v50, 0.0  ;;  %v1930_v63 = vmax.f32 %v1802_v48, 0.0  ;;  %v2697_v8 = vpack.c.bf16 %v2575_v56, %v2573_v62 }
 0x29b   : > { %v1650_v60 = vpop.f32.mrf.mxu0  ;;  %v2278_v61 = vpop.f32.mrf.mxu1  ;;  %v1649_v9 = vadd.f32 %v1648_v54, %v10352_v21  ;;  %v2277_v15 = vadd.f32 %v2276_v55, %v10589_v19 }
 0x29c   : > { %v1931_v1 = vmax.f32 %v1803_v57, 0.0  ;;  %v1651_v4 = vadd.f32 %v1650_v60, %v10349_v20  ;;  %v2698_v7 = vpack.c.bf16 %v2576_v58, %v2574_v59  ;;  %v2279_v18 = vadd.f32 %v2278_v61, %v10586_v13 }
 0x29d   : > { %v1652_v5 = vpop.f32.mrf.mxu0  ;;  %v2280_v6 = vpop.f32.mrf.mxu1  ;;  %v2000_v25 = vpack.c.bf16 %v1930_v63, %v1928_v2  ;;  %v1804_v34 = vadd.f32 %v10361_v30, %v1649_v9  ;;  %v2577_v41 = vmax.f32 %v2277_v15, 0.0 }
 0x29e   : > { %v1653_v10 = vadd.f32 %v1652_v5, %v10352_v21  ;;  %v2281_v11 = vadd.f32 %v2280_v6, %v10589_v19  ;;  %3013 = vmatprep.mubr.bf16.mxu0 %v2698_v7  ;;  %v2001_v24 = vpack.c.bf16 %v1931_v1, %v1929_v3  ;;  %v1805_v29 = vadd.f32 %v10357_v28, %v1651_v4 }
 0x29f   : > { %v1654_v22 = vpop.f32.mrf.mxu0  ;;  %v2282_v23 = vpop.f32.mrf.mxu1  ;;  %3014 = vmatmul.mubr.bf16.gmra.mxu0 %v2697_v8  ;;  %v2578_v37 = vmax.f32 %v2279_v18, 0.0  ;;  %v1932_v50 = vmax.f32 %v1804_v34, 0.0 }
 0x2a0   : > { %v1806_v26 = vadd.f32 %v10361_v30, %v1653_v10  ;;  %v1655_v27 = vadd.f32 %v1654_v22, %v10349_v20  ;;  %v2283_v31 = vadd.f32 %v2282_v23, %v10586_v13  ;;  %2524 = vmatprep.mubr.bf16.mxu1 %v2001_v24  ;;  %v2579_v35 = vmax.f32 %v2281_v11, 0.0 }
 0x2a1   : > { %v1658_v32 = vpop.f32.mrf.mxu0  ;;  %v2286_v33 = vpop.f32.mrf.mxu1  ;;  %2525 = vmatmul.mubr.bf16.gmra.mxu1 %v2000_v25  ;;  %v1933_v44 = vmax.f32 %v1805_v29, 0.0 }
 0x2a2   : > { %v1807_v36 = vadd.f32 %v10357_v28, %v1655_v27  ;;  %v2580_v38 = vmax.f32 %v2283_v31, 0.0  ;;  %v1934_v42 = vmax.f32 %v1806_v26, 0.0  ;;  %v1659_v45 = vadd.f32 %v1658_v32, %v10352_v21  ;;  %v9168_v31 = vld [vmem:[#allocation11 + $0x20] ss:$8 sps:$4 sm:$0xff]   ;;  %v9170_v32 = vld [vmem:[#allocation11 + $0x24] ss:$8 sps:$4 sm:$0xff]  }
 0x2a3   : > { %v1660_v39 = vpop.f32.mrf.mxu0  ;;  %v2288_v40 = vpop.f32.mrf.mxu1  ;;  %v2699_v51 = vpack.c.bf16 %v2579_v35, %v2577_v41  ;;  %v2287_v59 = vadd.f32 %v2286_v33, %v10589_v19  ;;  %3720 = vmatprep.subr.bf16.mxu1 %v9170_v32 }
 0x2a4   : > { %v1935_v43 = vmax.f32 %v1807_v36, 0.0  ;;  %v1661_v46 = vadd.f32 %v1660_v39, %v10349_v20  ;;  %v2700_v49 = vpack.c.bf16 %v2580_v38, %v2578_v37  ;;  %v2289_v54 = vadd.f32 %v2288_v40, %v10586_v13  ;;  %3721 = vmatpush1.bf16.msra.mxu1 %v9168_v31 }
 0x2a5   : > { %v1662_v47 = vpop.f32.mrf.mxu0  ;;  %v2290_v48 = vpop.f32.mrf.mxu1  ;;  %v2002_v58 = vpack.c.bf16 %v1934_v42, %v1932_v50  ;;  %v1808_v62 = vadd.f32 %v10361_v30, %v1659_v45  ;;  %v2581_v11 = vmax.f32 %v2287_v59, 0.0 }
 0x2a6   : > { %v1663_v52 = vadd.f32 %v1662_v47, %v10352_v21  ;;  %v2291_v53 = vadd.f32 %v2290_v48, %v10589_v19  ;;  %3023 = vmatprep.mubr.bf16.mxu0 %v2700_v49  ;;  %v2003_v57 = vpack.c.bf16 %v1935_v43, %v1933_v44  ;;  %v1809_v63 = vadd.f32 %v10357_v28, %v1661_v46 }
 0x2a7   : > { %v1664_v55 = vpop.f32.mrf.mxu0  ;;  %v2292_v56 = vpop.f32.mrf.mxu1  ;;  %3024 = vmatmul.mubr.bf16.gmra.mxu0 %v2699_v51  ;;  %v2582_v6 = vmax.f32 %v2289_v54, 0.0  ;;  %v1936_v15 = vmax.f32 %v1808_v62, 0.0 }
 0x2a8   : > { %v1810_v60 = vadd.f32 %v10361_v30, %v1663_v52  ;;  %v1665_v61 = vadd.f32 %v1664_v55, %v10349_v20  ;;  %v2293_v1 = vadd.f32 %v2292_v56, %v10586_v13  ;;  %2534 = vmatprep.mubr.bf16.mxu1 %v2003_v57  ;;  %v2583_v4 = vmax.f32 %v2291_v53, 0.0  ;;  %v9173_v52 = vld [vmem:[#allocation11 + $0x14] ss:$8 sps:$4 sm:$0xff]   ;;  %v9171_v55 = vld [vmem:[#allocation11 + $0x10] ss:$8 sps:$4 sm:$0xff]  }
 0x2a9   : > { %v1668_v2 = vpop.f32.mrf.mxu0  ;;  %v2296_v3 = vpop.f32.mrf.mxu1  ;;  %2535 = vmatmul.mubr.bf16.gmra.mxu1 %v2002_v58  ;;  %v1937_v18 = vmax.f32 %v1809_v63, 0.0  ;;  %3722 = vmatprep.subr.bf16.mxu1 %v9173_v52  ;;  %v9176_v63 = vld [vmem:[#allocation11 + $0x4] ss:$8 sps:$4 sm:$0xff]  }
 0x2aa   : > { %v1811_v5 = vadd.f32 %v10357_v28, %v1665_v61  ;;  %v1938_v7 = vmax.f32 %v1810_v60, 0.0  ;;  %v2584_v8 = vmax.f32 %v2293_v1, 0.0  ;;  %v1669_v22 = vadd.f32 %v1668_v2, %v10352_v21  ;;  %3723 = vmatpush1.bf16.msra.mxu1 %v9171_v55  ;;  %v9174_v2 = vld [vmem:[#allocation11] ss:$8 sps:$4 sm:$0xff]  }
 0x2ab   : > { %v1670_v9 = vpop.f32.mrf.mxu0  ;;  %v2298_v10 = vpop.f32.mrf.mxu1  ;;  %v2701_v26 = vpack.c.bf16 %v2583_v4, %v2581_v11  ;;  %v2297_v34 = vadd.f32 %v2296_v3, %v10589_v19  ;;  %3724 = vmatprep.subr.bf16.mxu1 %v9176_v63  ;;  %v9177_v11 = vld [vmem:[#allocation11 + $0xf0] ss:$8 sps:$4 sm:$0xff]   ;;  %v9192_v63 = vld [vmem:[#allocation11 + $0xa0] ss:$8 sps:$4 sm:$0xff]  }
 0x2ac   : > { %v1939_v12 = vmax.f32 %v1811_v5, 0.0  ;;  %v1671_v14 = vadd.f32 %v1670_v9, %v10349_v20  ;;  %v2702_v25 = vpack.c.bf16 %v2584_v8, %v2582_v6  ;;  %v2004_v33 = vpack.c.bf16 %v1938_v7, %v1936_v15  ;;  %v9179_v9 = vld [vmem:[#allocation11 + $0xf4] ss:$8 sps:$4 sm:$0xff]  }
 0x2ad   : > { %v1672_v23 = vpop.f32.mrf.mxu0  ;;  %v2300_v24 = vpop.f32.mrf.mxu1  ;;  %v2299_v35 = vadd.f32 %v2298_v10, %v10586_v13  ;;  %v2585_v49 = vmax.f32 %v2297_v34, 0.0 }
 0x2ae   : > { %v1673_v27 = vadd.f32 %v1672_v23, %v10352_v21  ;;  %v2301_v29 = vadd.f32 %v2300_v24, %v10589_v19  ;;  %3033 = vmatprep.mubr.bf16.mxu0 %v2702_v25  ;;  %v2005_v38 = vpack.c.bf16 %v1939_v12, %v1937_v18  ;;  %v1813_v39 = vadd.f32 %v10357_v28, %v1671_v14  ;;  %v9182_v24 = vld [vmem:[#allocation11 + $0xe4] ss:$8 sps:$4 sm:$0xff]  }
 0x2af   : > { %v1674_v36 = vpop.f32.mrf.mxu0  ;;  %v2302_v37 = vpop.f32.mrf.mxu1  ;;  %3034 = vmatmul.mubr.bf16.gmra.mxu0 %v2701_v26  ;;  %v1812_v21 = vadd.f32 %v10361_v30, %v1669_v22  ;;  %v2586_v46 = vmax.f32 %v2299_v35, 0.0  ;;  %3725 = vmatpush1.bf16.msra.mxu1 %v9174_v2  ;;  %v9180_v26 = vld [vmem:[#allocation11 + $0xe0] ss:$8 sps:$4 sm:$0xff]   ;;  %v9185_v35 = vld [vmem:[#allocation11 + $0xd4] ss:$8 sps:$4 sm:$0xff]  }
 0x2b0   : > { %v1814_v40 = vadd.f32 %v10361_v30, %v1673_v27  ;;  %v1675_v41 = vadd.f32 %v1674_v36, %v10349_v20  ;;  %v2303_v42 = vadd.f32 %v2302_v37, %v10586_v13  ;;  %2544 = vmatprep.mubr.bf16.mxu1 %v2005_v38  ;;  %v2587_v44 = vmax.f32 %v2301_v29, 0.0  ;;  %3726 = vmatprep.subr.bf16.mxu1 %v9179_v9  ;;  %v9183_v37 = vld [vmem:[#allocation11 + $0xd0] ss:$8 sps:$4 sm:$0xff]  }
 0x2b1   : > { %v2306_v43 = vpop.f32.mrf.mxu1  ;;  %2545 = vmatmul.mubr.bf16.gmra.mxu1 %v2004_v33  ;;  %v1941_v50 = vmax.f32 %v1813_v39, 0.0  ;;  %v1940_v53 = vmax.f32 %v1812_v21, 0.0  ;;  %v9195_v9 = vld [vmem:[#allocation11 + $0x90] ss:$8 sps:$4 sm:$0xff]  }
 0x2b2   : > { %v1815_v45 = vadd.f32 %v10357_v28, %v1675_v41  ;;  %v2588_v47 = vmax.f32 %v2303_v42, 0.0  ;;  %v1942_v51 = vmax.f32 %v1814_v40, 0.0  ;;  %v2703_v56 = vpack.c.bf16 %v2587_v44, %v2585_v49 }
 0x2b3   : > { %v2308_v48 = vpop.f32.mrf.mxu1  ;;  %v2307_v61 = vadd.f32 %v2306_v43, %v10589_v19  ;;  %3727 = vmatpush2.bf16.msra.mxu1 %v9177_v11  ;;  %v9188_v43 = vld [vmem:[#allocation11 + $0xc4] ss:$8 sps:$4 sm:$0xff]  }
 0x2b4   : > { %v1943_v20 = vmax.f32 %v1815_v45, 0.0  ;;  %v2704_v30 = vpack.c.bf16 %v2588_v47, %v2586_v46  ;;  %v2309_v57 = vadd.f32 %v2308_v48, %v10586_v13  ;;  %v2006_v60 = vpack.c.bf16 %v1942_v51, %v1940_v53  ;;  %3728 = vmatprep.subr.bf16.mxu1 %v9182_v24  ;;  %v9186_v45 = vld [vmem:[#allocation11 + $0xc0] ss:$8 sps:$4 sm:$0xff]   ;;  %v9189_v53 = vld [vmem:[#allocation11 + $0xb0] ss:$8 sps:$4 sm:$0xff]  }
 0x2b5   : > { %v2310_v54 = vpop.f32.mrf.mxu1  ;;  %v2589_v7 = vmax.f32 %v2307_v61, 0.0  ;;  %v9198_v24 = vld [vmem:[#allocation11 + $0x80] ss:$8 sps:$4 sm:$0xff]  }
 0x2b6   : > { %v2311_v58 = vadd.f32 %v2310_v54, %v10589_v19  ;;  %v2007_v59 = vpack.c.bf16 %v1943_v20, %v1941_v50  ;;  %3043 = vmatprep.mubr.bf16.mxu0 %v2704_v30  ;;  %v2590_v3 = vmax.f32 %v2309_v57, 0.0  ;;  %v9191_v20 = vld [vmem:[#allocation11 + $0xb4] ss:$8 sps:$4 sm:$0xff]  }
 0x2b7   : > { %v2312_v28 = vpop.f32.mrf.mxu1  ;;  %3044 = vmatmul.mubr.bf16.gmra.mxu0 %v2703_v56  ;;  %3729 = vmatpush2.bf16.msra.mxu1 %v9180_v26 }
 0x2b8   : > { %v2313_v62 = vadd.f32 %v2312_v28, %v10586_v13  ;;  %2554 = vmatprep.mubr.bf16.mxu1 %v2007_v59  ;;  %v2591_v4 = vmax.f32 %v2311_v58, 0.0  ;;  %3730 = vmatprep.subr.bf16.mxu1 %v9185_v35  ;;  %v9194_v28 = vld [vmem:[#allocation11 + $0xa4] ss:$8 sps:$4 sm:$0xff]  }
 0x2b9   : > { %v2316_v1 = vpop.f32.mrf.mxu1  ;;  %2555 = vmatmul.mubr.bf16.gmra.mxu1 %v2006_v60 }
 0x2ba   : > { %v2592_v5 = vmax.f32 %v2313_v62, 0.0  ;;  %v2705_v12 = vpack.c.bf16 %v2591_v4, %v2589_v7  ;;  %v2317_v22 = vadd.f32 %v2316_v1, %v10589_v19 }
 0x2bb   : > { %v2318_v6 = vpop.f32.mrf.mxu1  ;;  %3731 = vmatpush2.bf16.msra.mxu1 %v9183_v37 }
 0x2bc   : > { %v2706_v8 = vpack.c.bf16 %v2592_v5, %v2590_v3  ;;  %v2319_v14 = vadd.f32 %v2318_v6, %v10586_v13  ;;  %v2593_v33 = vmax.f32 %v2317_v22, 0.0  ;;  %3732 = vmatprep.subr.bf16.mxu1 %v9188_v43  ;;  %v9197_v5 = vld [vmem:[#allocation11 + $0x94] ss:$8 sps:$4 sm:$0xff]  }
 0x2bd   : > { %v2320_v10 = vpop.f32.mrf.mxu1 }
 0x2be   : > { %v2321_v15 = vadd.f32 %v2320_v10, %v10589_v19  ;;  %3053 = vmatprep.mubr.bf16.mxu0 %v2706_v8  ;;  %v2594_v27 = vmax.f32 %v2319_v14, 0.0 }
 0x2bf   : > { %v2322_v18 = vpop.f32.mrf.mxu1  ;;  %3054 = vmatmul.mubr.bf16.gmra.mxu0 %v2705_v12  ;;  %3733 = vmatpush2.bf16.msra.mxu1 %v9186_v45 }
 0x2c0   : > { %v2323_v23 = vadd.f32 %v2322_v18, %v10586_v13  ;;  %v2595_v29 = vmax.f32 %v2321_v15, 0.0  ;;  %3734 = vmatprep.subr.bf16.mxu1 %v9191_v20  ;;  %v9200_v15 = vld [vmem:[#allocation11 + $0x84] ss:$8 sps:$4 sm:$0xff]  }
 0x2c1   : > { %v2326_v25 = vpop.f32.mrf.mxu1 }
 0x2c2   : > { %v2596_v31 = vmax.f32 %v2323_v23, 0.0  ;;  %v2707_v38 = vpack.c.bf16 %v2595_v29, %v2593_v33  ;;  %v2327_v21 = vadd.f32 %v2326_v25, %v10589_v19 }
 0x2c3   : > { %v2328_v32 = vpop.f32.mrf.mxu1  ;;  %3735 = vmatpush2.bf16.msra.mxu1 %v9189_v53 }
 0x2c4   : > { %v2708_v34 = vpack.c.bf16 %v2596_v31, %v2594_v27  ;;  %v2329_v39 = vadd.f32 %v2328_v32, %v10586_v13  ;;  %v2597_v50 = vmax.f32 %v2327_v21, 0.0  ;;  %3736 = vmatprep.subr.bf16.mxu1 %v9194_v28 }
 0x2c5   : > { %v2330_v36 = vpop.f32.mrf.mxu1 }
 0x2c6   : > { %v2331_v40 = vadd.f32 %v2330_v36, %v10589_v19  ;;  %3063 = vmatprep.mubr.bf16.mxu0 %v2708_v34  ;;  %v2598_v46 = vmax.f32 %v2329_v39, 0.0 }
 0x2c7   : > { %v2332_v41 = vpop.f32.mrf.mxu1  ;;  %3064 = vmatmul.mubr.bf16.gmra.mxu0 %v2707_v38  ;;  %3737 = vmatpush2.bf16.msra.mxu1 %v9192_v63 }
 0x2c8   : > { %v2333_v42 = vadd.f32 %v2332_v41, %v10586_v13  ;;  %v2599_v47 = vmax.f32 %v2331_v40, 0.0  ;;  %3738 = vmatprep.subr.bf16.mxu1 %v9197_v5 }
 0x2c9   : > { %v2336_v44 = vpop.f32.mrf.mxu1 }
 0x2ca   : > { %v2600_v48 = vmax.f32 %v2333_v42, 0.0  ;;  %v2709_v54 = vpack.c.bf16 %v2599_v47, %v2597_v50  ;;  %v2337_v57 = vadd.f32 %v2336_v44, %v10589_v19 }
 0x2cb   : > { %v2338_v49 = vpop.f32.mrf.mxu1  ;;  %3739 = vmatpush2.bf16.msra.mxu1 %v9195_v9 }
 0x2cc   : > { %v2710_v51 = vpack.c.bf16 %v2600_v48, %v2598_v46  ;;  %v2339_v30 = vadd.f32 %v2338_v49, %v10586_v13  ;;  %v2601_v2 = vmax.f32 %v2337_v57, 0.0  ;;  %3740 = vmatprep.subr.bf16.mxu1 %v9200_v15 }
 0x2cd   : > { %v2340_v52 = vpop.f32.mrf.mxu1 }
 0x2ce   : > { %v2341_v55 = vadd.f32 %v2340_v52, %v10589_v19  ;;  %3073 = vmatprep.mubr.bf16.mxu0 %v2710_v51  ;;  %v2602_v60 = vmax.f32 %v2339_v30, 0.0 }
 0x2cf   : > { %v2342_v56 = vpop.f32.mrf.mxu1  ;;  %3074 = vmatmul.mubr.bf16.gmra.mxu0 %v2709_v54  ;;  %3741 = vmatpush2.bf16.msra.mxu1 %v9198_v24 }
 0x2d0   : > { %v2343_v58 = vadd.f32 %v2342_v56, %v10586_v13  ;;  %v2603_v61 = vmax.f32 %v2341_v55, 0.0 }
 0x2d1   : > { %v2346_v59 = vpop.f32.mrf.mxu1 }
 0x2d2   : > { %v2604_v62 = vmax.f32 %v2343_v58, 0.0  ;;  %v2711_v6 = vpack.c.bf16 %v2603_v61, %v2601_v2  ;;  %v2347_v11 = vadd.f32 %v2346_v59, %v10589_v19 }
 0x2d3   : > { %v2348_v1 = vpop.f32.mrf.mxu1 }
 0x2d4   : > { %v2712_v3 = vpack.c.bf16 %v2604_v62, %v2602_v60  ;;  %v2349_v7 = vadd.f32 %v2348_v1, %v10586_v13  ;;  %v2605_v26 = vmax.f32 %v2347_v11, 0.0 }
 0x2d5   : > { %v2350_v4 = vpop.f32.mrf.mxu1 }
 0x2d6   : > { %v2351_v8 = vadd.f32 %v2350_v4, %v10589_v19  ;;  %3083 = vmatprep.mubr.bf16.mxu0 %v2712_v3  ;;  %v2606_v18 = vmax.f32 %v2349_v7, 0.0 }
 0x2d7   : > { %v2352_v10 = vpop.f32.mrf.mxu1  ;;  %3084 = vmatmul.mubr.bf16.gmra.mxu0 %v2711_v6 }
 0x2d8   : > { %v2353_v12 = vadd.f32 %v2352_v10, %v10586_v13  ;;  %v2607_v22 = vmax.f32 %v2351_v8, 0.0 }
 0x2d9   : > { %v2356_v14 = vpop.f32.mrf.mxu1 }
 0x2da   : > { %v2608_v23 = vmax.f32 %v2353_v12, 0.0  ;;  %v2713_v31 = vpack.c.bf16 %v2607_v22, %v2605_v26  ;;  %v2357_v35 = vadd.f32 %v2356_v14, %v10589_v19 }
 0x2db   : > { %v2358_v25 = vpop.f32.mrf.mxu1 }
 0x2dc   : > { %v2714_v27 = vpack.c.bf16 %v2608_v23, %v2606_v18  ;;  %v2359_v32 = vadd.f32 %v2358_v25, %v10586_v13  ;;  %v2609_v21 = vmax.f32 %v2357_v35, 0.0 }
 0x2dd   : > { %v2360_v29 = vpop.f32.mrf.mxu1 }
 0x2de   : > { %v2361_v33 = vadd.f32 %v2360_v29, %v10589_v19  ;;  %3093 = vmatprep.mubr.bf16.mxu0 %v2714_v27  ;;  %v2610_v38 = vmax.f32 %v2359_v32, 0.0 }
 0x2df   : > { %v2362_v34 = vpop.f32.mrf.mxu1  ;;  %3094 = vmatmul.mubr.bf16.gmra.mxu0 %v2713_v31 }
 0x2e0   : > { %v2363_v36 = vadd.f32 %v2362_v34, %v10586_v13  ;;  %v2611_v39 = vmax.f32 %v2361_v33, 0.0 }
 0x2e1   : > { %v2366_v37 = vpop.f32.mrf.mxu1 }
 0x2e2   : > { %v2612_v40 = vmax.f32 %v2363_v36, 0.0  ;;  %v2715_v44 = vpack.c.bf16 %v2611_v39, %v2609_v21  ;;  %v2367_v48 = vadd.f32 %v2366_v37, %v10589_v19 }
 0x2e3   : > { %v2368_v41 = vpop.f32.mrf.mxu1 }
 0x2e4   : > { %v2716_v42 = vpack.c.bf16 %v2612_v40, %v2610_v38  ;;  %v2369_v45 = vadd.f32 %v2368_v41, %v10586_v13  ;;  %v2613_v54 = vmax.f32 %v2367_v48, 0.0 }
 0x2e5   : > { %v2370_v43 = vpop.f32.mrf.mxu1 }
 0x2e6   : > { %v2371_v46 = vadd.f32 %v2370_v43, %v10589_v19  ;;  %3103 = vmatprep.mubr.bf16.mxu0 %v2716_v42  ;;  %v2614_v51 = vmax.f32 %v2369_v45, 0.0 }
 0x2e7   : > { %v2372_v47 = vpop.f32.mrf.mxu1  ;;  %3104 = vmatmul.mubr.bf16.gmra.mxu0 %v2715_v44 }
 0x2e8   : > { %v2373_v49 = vadd.f32 %v2372_v47, %v10586_v13  ;;  %v2615_v20 = vmax.f32 %v2371_v46, 0.0 }
 0x2e9   : > { %v2376_v50 = vpop.f32.mrf.mxu1 }
 0x2ea   : > { %v2616_v52 = vmax.f32 %v2373_v49, 0.0  ;;  %v2717_v56 = vpack.c.bf16 %v2615_v20, %v2613_v54  ;;  %v2377_v28 = vadd.f32 %v2376_v50, %v10589_v19 }
 0x2eb   : > { %v2378_v53 = vpop.f32.mrf.mxu1 }
 0x2ec   : > { %v2718_v30 = vpack.c.bf16 %v2616_v52, %v2614_v51  ;;  %v2379_v57 = vadd.f32 %v2378_v53, %v10586_v13  ;;  %v2617_v3 = vmax.f32 %v2377_v28, 0.0 }
 0x2ed   : > { %v2380_v55 = vpop.f32.mrf.mxu1 }
 0x2ee   : > { %v2381_v58 = vadd.f32 %v2380_v55, %v10589_v19  ;;  %3113 = vmatprep.mubr.bf16.mxu0 %v2718_v30  ;;  %v2618_v62 = vmax.f32 %v2379_v57, 0.0 }
 0x2ef   : > { %v2382_v59 = vpop.f32.mrf.mxu1  ;;  %3114 = vmatmul.mubr.bf16.gmra.mxu0 %v2717_v56 }
 0x2f0   : > { %v2383_v60 = vadd.f32 %v2382_v59, %v10586_v13  ;;  %v2619_v63 = vmax.f32 %v2381_v58, 0.0 }
 0x2f1   : > { %v2386_v61 = vpop.f32.mrf.mxu1 }
 0x2f2   : > { %v2620_v1 = vmax.f32 %v2383_v60, 0.0  ;;  %v2719_v6 = vpack.c.bf16 %v2619_v63, %v2617_v3  ;;  %v2387_v10 = vadd.f32 %v2386_v61, %v10589_v19 }
 0x2f3   : > { %v2388_v2 = vpop.f32.mrf.mxu1 }
 0x2f4   : > { %v2720_v4 = vpack.c.bf16 %v2620_v1, %v2618_v62  ;;  %v2389_v7 = vadd.f32 %v2388_v2, %v10586_v13  ;;  %v2621_v23 = vmax.f32 %v2387_v10, 0.0 }
 0x2f5   : > { %v2390_v5 = vpop.f32.mrf.mxu1 }
 0x2f6   : > { %v2391_v8 = vadd.f32 %v2390_v5, %v10589_v19  ;;  %3123 = vmatprep.mubr.bf16.mxu0 %v2720_v4  ;;  %v2622_v14 = vmax.f32 %v2389_v7, 0.0 }
 0x2f7   : > { %v2392_v9 = vpop.f32.mrf.mxu1  ;;  %3124 = vmatmul.mubr.bf16.gmra.mxu0 %v2719_v6 }
 0x2f8   : > { %v2393_v11 = vadd.f32 %v2392_v9, %v10586_v13  ;;  %v2623_v15 = vmax.f32 %v2391_v8, 0.0 }
 0x2f9   : > { %v2396_v12 = vpop.f32.mrf.mxu1 }
 0x2fa   : > { %v2624_v18 = vmax.f32 %v2393_v11, 0.0  ;;  %v2721_v26 = vpack.c.bf16 %v2623_v15, %v2621_v23  ;;  %v2397_v32 = vadd.f32 %v2396_v12, %v10589_v19 }
 0x2fb   : > { %v2398_v22 = vpop.f32.mrf.mxu1 }
 0x2fc   : > { %v2722_v24 = vpack.c.bf16 %v2624_v18, %v2622_v14  ;;  %v2399_v27 = vadd.f32 %v2398_v22, %v10586_v13  ;;  %v2625_v39 = vmax.f32 %v2397_v32, 0.0 }
 0x2fd   : > { %v2400_v25 = vpop.f32.mrf.mxu1 }
 0x2fe   : > { %v2401_v29 = vadd.f32 %v2400_v25, %v10589_v19  ;;  %3133 = vmatprep.mubr.bf16.mxu0 %v2722_v24  ;;  %v2626_v35 = vmax.f32 %v2399_v27, 0.0 }
 0x2ff   : > { %v2402_v31 = vpop.f32.mrf.mxu1  ;;  %3134 = vmatmul.mubr.bf16.gmra.mxu0 %v2721_v26 }
 0x300   : > { %v2403_v33 = vadd.f32 %v2402_v31, %v10586_v13  ;;  %v2627_v36 = vmax.f32 %v2401_v29, 0.0 }
 0x301   : > { %v2406_v34 = vpop.f32.mrf.mxu1 }
 0x302   : > { %v2628_v37 = vmax.f32 %v2403_v33, 0.0  ;;  %v2723_v21 = vpack.c.bf16 %v2627_v36, %v2625_v39  ;;  %v2407_v45 = vadd.f32 %v2406_v34, %v10589_v19 }
 0x303   : > { %v2408_v38 = vpop.f32.mrf.mxu1 }
 0x304   : > { %v2724_v40 = vpack.c.bf16 %v2628_v37, %v2626_v35  ;;  %v2409_v42 = vadd.f32 %v2408_v38, %v10586_v13  ;;  %v2629_v20 = vmax.f32 %v2407_v45, 0.0 }
 0x305   : > { %v2410_v41 = vpop.f32.mrf.mxu1 }
 0x306   : > { %v2411_v43 = vadd.f32 %v2410_v41, %v10589_v19  ;;  %3143 = vmatprep.mubr.bf16.mxu0 %v2724_v40  ;;  %v2630_v48 = vmax.f32 %v2409_v42, 0.0 }
 0x307   : > { %v2412_v44 = vpop.f32.mrf.mxu1  ;;  %3144 = vmatmul.mubr.bf16.gmra.mxu0 %v2723_v21 }
 0x308   : > { %v2413_v46 = vadd.f32 %v2412_v44, %v10586_v13  ;;  %v2631_v49 = vmax.f32 %v2411_v43, 0.0 }
 0x309   : > { %v2416_v47 = vpop.f32.mrf.mxu1 }
 0x30a   : > { %v2632_v50 = vmax.f32 %v2413_v46, 0.0  ;;  %v2725_v54 = vpack.c.bf16 %v2631_v49, %v2629_v20  ;;  %v2417_v57 = vadd.f32 %v2416_v47, %v10589_v19  ;;  %v9201_v20 = vld [vmem:[#allocation13 + $0x70] ss:$8 sps:$4 sm:$0xff]  }
 0x30b   : > { %v2418_v51 = vpop.f32.mrf.mxu1 }
 0x30c   : > { %v2726_v52 = vpack.c.bf16 %v2632_v50, %v2630_v48  ;;  %v2419_v30 = vadd.f32 %v2418_v51, %v10586_v13  ;;  %v2633_v63 = vmax.f32 %v2417_v57, 0.0 }
 0x30d   : > { %v2420_v53 = vpop.f32.mrf.mxu1 }
 0x30e   : > { %v2421_v55 = vadd.f32 %v2420_v53, %v10589_v19  ;;  %3153 = vmatprep.mubr.bf16.mxu0 %v2726_v52  ;;  %v2634_v28 = vmax.f32 %v2419_v30, 0.0  ;;  %v9203_v52 = vld [vmem:[#allocation13 + $0x74] ss:$8 sps:$4 sm:$0xff]  }
 0x30f   : > { %v2422_v56 = vpop.f32.mrf.mxu1  ;;  %3154 = vmatmul.mubr.bf16.gmra.mxu0 %v2725_v54  ;;  %4459 = vmatprep.subr.bf16.mxu0 %v9203_v52  ;;  %v9209_v52 = vld [vmem:[#allocation13 + $0x54] ss:$8 sps:$4 sm:$0xff]  }
 0x310   : > { %v2423_v58 = vadd.f32 %v2422_v56, %v10586_v13  ;;  %v2635_v60 = vmax.f32 %v2421_v55, 0.0  ;;  %4460 = vmatpush1.bf16.msra.mxu0 %v9201_v20  ;;  %v9207_v20 = vld [vmem:[#allocation13 + $0x50] ss:$8 sps:$4 sm:$0xff]  }
 0x311   : > { %v2426_v59 = vpop.f32.mrf.mxu1 }
 0x312   : > { %v2636_v61 = vmax.f32 %v2423_v58, 0.0  ;;  %v2727_v3 = vpack.c.bf16 %v2635_v60, %v2633_v63  ;;  %v2427_v7 = vadd.f32 %v2426_v59, %v10589_v19 }
 0x313   : > { %v2428_v62 = vpop.f32.mrf.mxu1 }
 0x314   : > { %v2728_v1 = vpack.c.bf16 %v2636_v61, %v2634_v28  ;;  %v2429_v4 = vadd.f32 %v2428_v62, %v10586_v13  ;;  %v2637_v15 = vmax.f32 %v2427_v7, 0.0 }
 0x315   : > { %v2430_v2 = vpop.f32.mrf.mxu1 }
 0x316   : > { %v2431_v5 = vadd.f32 %v2430_v2, %v10589_v19  ;;  %3163 = vmatprep.mubr.bf16.mxu0 %v2728_v1  ;;  %v2638_v10 = vmax.f32 %v2429_v4, 0.0 }
 0x317   : > { %v2432_v6 = vpop.f32.mrf.mxu1  ;;  %3164 = vmatmul.mubr.bf16.gmra.mxu0 %v2727_v3 }
 0x318   : > { %v2433_v8 = vadd.f32 %v2432_v6, %v10586_v13  ;;  %v2639_v11 = vmax.f32 %v2431_v5, 0.0 }
 0x319   : > { %v2436_v9 = vpop.f32.mrf.mxu1 }
 0x31a   : > { %v2640_v12 = vmax.f32 %v2433_v8, 0.0  ;;  %v2729_v23 = vpack.c.bf16 %v2639_v11, %v2637_v15  ;;  %v2437_v27 = vadd.f32 %v2436_v9, %v10589_v19 }
 0x31b   : > { %v2438_v14 = vpop.f32.mrf.mxu1 }
 0x31c   : > { %v2730_v18 = vpack.c.bf16 %v2640_v12, %v2638_v10  ;;  %v2439_v24 = vadd.f32 %v2438_v14, %v10586_v13  ;;  %v2641_v36 = vmax.f32 %v2437_v27, 0.0 }
 0x31d   : > { %v2440_v22 = vpop.f32.mrf.mxu1 }
 0x31e   : > { %v2441_v25 = vadd.f32 %v2440_v22, %v10589_v19  ;;  %3173 = vmatprep.mubr.bf16.mxu0 %v2730_v18  ;;  %v2642_v32 = vmax.f32 %v2439_v24, 0.0  ;;  %v9204_v22 = vld [vmem:[#allocation13 + $0x60] ss:$8 sps:$4 sm:$0xff]  }
 0x31f   : > { %v2442_v26 = vpop.f32.mrf.mxu1  ;;  %3174 = vmatmul.mubr.bf16.gmra.mxu0 %v2729_v23  ;;  %v9206_v23 = vld [vmem:[#allocation13 + $0x64] ss:$8 sps:$4 sm:$0xff]  }
 0x320   : > { %v2443_v29 = vadd.f32 %v2442_v26, %v10586_v13  ;;  %v2643_v33 = vmax.f32 %v2441_v25, 0.0  ;;  %4461 = vmatprep.subr.bf16.mxu0 %v9206_v23 }
 0x321   : > { %v2446_v31 = vpop.f32.mrf.mxu1  ;;  %4462 = vmatpush1.bf16.msra.mxu0 %v9204_v22 }
 0x322   : > { %v2644_v34 = vmax.f32 %v2443_v29, 0.0  ;;  %v2731_v39 = vpack.c.bf16 %v2643_v33, %v2641_v36  ;;  %v2447_v42 = vadd.f32 %v2446_v31, %v10589_v19  ;;  %4463 = vmatprep.subr.bf16.mxu0 %v9209_v52 }
 0x323   : > { %v2448_v35 = vpop.f32.mrf.mxu1 }
 0x324   : > { %v2732_v37 = vpack.c.bf16 %v2644_v34, %v2642_v32  ;;  %v2449_v40 = vadd.f32 %v2448_v35, %v10586_v13  ;;  %v2645_v49 = vmax.f32 %v2447_v42, 0.0 }
 0x325   : > { %v2450_v38 = vpop.f32.mrf.mxu1  ;;  %4464 = vmatpush1.bf16.msra.mxu0 %v9207_v20 }
 0x326   : > { %v2451_v41 = vadd.f32 %v2450_v38, %v10589_v19  ;;  %3183 = vmatprep.mubr.bf16.mxu0 %v2732_v37  ;;  %v2646_v45 = vmax.f32 %v2449_v40, 0.0 }
 0x327   : > { %v2452_v21 = vpop.f32.mrf.mxu1  ;;  %3184 = vmatmul.mubr.bf16.gmra.mxu0 %v2731_v39 }
 0x328   : > { %v2453_v43 = vadd.f32 %v2452_v21, %v10586_v13  ;;  %v2647_v46 = vmax.f32 %v2451_v41, 0.0 }
 0x329   : > { %v2456_v44 = vpop.f32.mrf.mxu1 }
 0x32a   : > { %v2648_v47 = vmax.f32 %v2453_v43, 0.0  ;;  %v2733_v53 = vpack.c.bf16 %v2647_v46, %v2645_v49  ;;  %v2457_v56 = vadd.f32 %v2456_v44, %v10589_v19 }
 0x32b   : > { %v2458_v48 = vpop.f32.mrf.mxu1 }
 0x32c   : > { %v2734_v50 = vpack.c.bf16 %v2648_v47, %v2646_v45  ;;  %v2459_v54 = vadd.f32 %v2458_v48, %v10586_v13  ;;  %v2649_v62 = vmax.f32 %v2457_v56, 0.0 }
 0x32d   : > { %v2460_v51 = vpop.f32.mrf.mxu1 }
 0x32e   : > { %v2461_v30 = vadd.f32 %v2460_v51, %v10589_v19  ;;  %3193 = vmatprep.mubr.bf16.mxu0 %v2734_v50  ;;  %v2650_v59 = vmax.f32 %v2459_v54, 0.0 }
 0x32f   : > { %v2462_v55 = vpop.f32.mrf.mxu1  ;;  %3194 = vmatmul.mubr.bf16.gmra.mxu0 %v2733_v53 }
 0x330   : > { %v2463_v57 = vadd.f32 %v2462_v55, %v10586_v13  ;;  %v2651_v28 = vmax.f32 %v2461_v30, 0.0 }
 0x331   : > { %v2466_v58 = vpop.f32.mrf.mxu1 }
 0x332   : > { %v2652_v60 = vmax.f32 %v2463_v57, 0.0  ;;  %v2735_v2 = vpack.c.bf16 %v2651_v28, %v2649_v62  ;;  %v2467_v6 = vadd.f32 %v2466_v58, %v10589_v19  ;;  %v2789_v58 = vld [vmem:[%s12482_s9] sm:$0x3] }
 0x333   : > { %v2468_v61 = vpop.f32.mrf.mxu1  ;;  %v10747_v62 = vrot.slane %v2789_v58, %v10335_v16 }
 0x334   : > { %v2736_v63 = vpack.c.bf16 %v2652_v60, %v2650_v59  ;;  %v2469_v3 = vadd.f32 %v2468_v61, %v10586_v13  ;;  %v2653_v14 = vmax.f32 %v2467_v6, 0.0 }
 0x335   : > { %v2470_v1 = vpop.f32.mrf.mxu1 }
 0x336   : > { %v2471_v4 = vadd.f32 %v2470_v1, %v10589_v19  ;;  %3203 = vmatprep.mubr.bf16.mxu0 %v2736_v63  ;;  %v2654_v9 = vmax.f32 %v2469_v3, 0.0  ;;  %v10750_v3 = vrot.slane %v2789_v58, %v10337_v17 }
 0x337   : > { %v2472_v5 = vpop.f32.mrf.mxu1  ;;  %3204 = vmatmul.mubr.bf16.gmra.mxu0 %v2735_v2 }
 0x338   : > { %v2473_v7 = vadd.f32 %v2472_v5, %v10586_v13  ;;  %v2655_v10 = vmax.f32 %v2471_v4, 0.0 }
 0x339   : > { %v2476_v8 = vpop.f32.mrf.mxu1 }
 0x33a   : > { %v2656_v11 = vmax.f32 %v2473_v7, 0.0  ;;  %v2737_v24 = vpack.c.bf16 %v2655_v10, %v2653_v14  ;;  %v2477_v29 = vadd.f32 %v2476_v8, %v10589_v19 }
 0x33b   : > { %v2478_v12 = vpop.f32.mrf.mxu1 }
 0x33c   : > { %v2738_v15 = vpack.c.bf16 %v2656_v11, %v2654_v9  ;;  %v2479_v25 = vadd.f32 %v2478_v12, %v10586_v13  ;;  %v2657_v37 = vmax.f32 %v2477_v29, 0.0 }
 0x33d   : > { %v2480_v18 = vpop.f32.mrf.mxu1 }
 0x33e   : > { %v2481_v26 = vadd.f32 %v2480_v18, %v10589_v19  ;;  %3213 = vmatprep.mubr.bf16.mxu0 %v2738_v15  ;;  %v2658_v33 = vmax.f32 %v2479_v25, 0.0 }
 0x33f   : > { %v2482_v27 = vpop.f32.mrf.mxu1  ;;  %3214 = vmatmul.mubr.bf16.gmra.mxu0 %v2737_v24 }
 0x340   : > { %v2483_v31 = vadd.f32 %v2482_v27, %v10586_v13  ;;  %v2659_v34 = vmax.f32 %v2481_v26, 0.0 }
 0x341   : > { %v2486_v32 = vpop.f32.mrf.mxu1 }
 0x342   : > { %v2660_v35 = vmax.f32 %v2483_v31, 0.0  ;;  %v2739_v40 = vpack.c.bf16 %v2659_v34, %v2657_v37  ;;  %v2487_v43 = vadd.f32 %v2486_v32, %v10589_v19 }
 0x343   : > { %v2488_v36 = vpop.f32.mrf.mxu1 }
 0x344   : > { %v2740_v38 = vpack.c.bf16 %v2660_v35, %v2658_v33  ;;  %v2489_v41 = vadd.f32 %v2488_v36, %v10586_v13  ;;  %v2661_v49 = vmax.f32 %v2487_v43, 0.0  ;;  %v9210_v43 = vld [vmem:[#allocation13 + $0x40] ss:$8 sps:$4 sm:$0xff]  }
 0x345   : > { %v2490_v39 = vpop.f32.mrf.mxu1 }
 0x346   : > { %v2491_v21 = vadd.f32 %v2490_v39, %v10589_v19  ;;  %3223 = vmatprep.mubr.bf16.mxu0 %v2740_v38  ;;  %v2662_v45 = vmax.f32 %v2489_v41, 0.0 }
 0x347   : > { %v2492_v42 = vpop.f32.mrf.mxu1  ;;  %3224 = vmatmul.mubr.bf16.gmra.mxu0 %v2739_v40 }
 0x348   : > { %v2493_v44 = vadd.f32 %v2492_v42, %v10586_v13  ;;  %v2663_v46 = vmax.f32 %v2491_v21, 0.0 }
 0x349   : > { %v2496_v48 = vpop.f32.mrf.mxu1 }
 0x34a   : > { %v2664_v47 = vmax.f32 %v2493_v44, 0.0  ;;  %v2741_v53 = vpack.c.bf16 %v2663_v46, %v2661_v49  ;;  %v2497_v56 = vadd.f32 %v2496_v48, %v10589_v19  ;;  %v9212_v44 = vld [vmem:[#allocation13 + $0x44] ss:$8 sps:$4 sm:$0xff]  }
 0x34b   : > { %v2498_v50 = vpop.f32.mrf.mxu1  ;;  %4465 = vmatprep.subr.bf16.mxu0 %v9212_v44  ;;  %v9213_v44 = vld [vmem:[#allocation13 + $0x30] ss:$8 sps:$4 sm:$0xff]  }
 0x34c   : > { %v2742_v51 = vpack.c.bf16 %v2664_v47, %v2662_v45  ;;  %v2499_v30 = vadd.f32 %v2498_v50, %v10586_v13  ;;  %v2665_v4 = vmax.f32 %v2497_v56, 0.0  ;;  %4466 = vmatpush1.bf16.msra.mxu0 %v9210_v43 }
 0x34d   : > { %v2500_v54 = vpop.f32.mrf.mxu1 }
 0x34e   : > { %3233 = vmatprep.mubr.bf16.mxu0 %v2742_v51  ;;  %v2501_v55 = vadd.f32 %v2500_v54, %v10589_v19  ;;  %v2666_v1 = vmax.f32 %v2499_v30, 0.0 }
 0x34f   : > { %v2502_v57 = vpop.f32.mrf.mxu1  ;;  %v2995_v59 = vpop.f32.mrf.mxu0  ;;  %3234 = vmatmul.mubr.bf16.gmra.mxu0 %v2741_v53 }
 0x350   : > { %v2503_v28 = vadd.f32 %v2502_v57, %v10586_v13  ;;  %v2667_v60 = vmax.f32 %v2501_v55, 0.0  ;;  %v2996_v14 = vadd.f32 %v2995_v59, %v10750_v3 }
 0x351   : > { %v2506_v61 = vpop.f32.mrf.mxu1  ;;  %v2997_v63 = vpop.f32.mrf.mxu0 }
 0x352   : > { %v2668_v2 = vmax.f32 %v2503_v28, 0.0  ;;  %v2743_v9 = vpack.c.bf16 %v2667_v60, %v2665_v4  ;;  %v2998_v10 = vadd.f32 %v2997_v63, %v10747_v62  ;;  %v2507_v25 = vadd.f32 %v2506_v61, %v10589_v19 }
 0x353   : > { %v2508_v5 = vpop.f32.mrf.mxu1  ;;  %v2999_v6 = vpop.f32.mrf.mxu0  ;;  %v3314_v34 = vmax.f32 %v2996_v14, 0.0 }
 0x354   : > { %v3000_v7 = vadd.f32 %v2999_v6, %v10750_v3  ;;  %v2744_v8 = vpack.c.bf16 %v2668_v2, %v2666_v1  ;;  %v2509_v22 = vadd.f32 %v2508_v5, %v10586_v13  ;;  %v3315_v31 = vmax.f32 %v2998_v10, 0.0 }
 0x355   : > { %v2510_v11 = vpop.f32.mrf.mxu1  ;;  %v3001_v12 = vpop.f32.mrf.mxu0  ;;  %v2669_v41 = vmax.f32 %v2507_v25, 0.0 }
 0x356   : > { %v2511_v15 = vadd.f32 %v2510_v11, %v10589_v19  ;;  %v3002_v18 = vadd.f32 %v3001_v12, %v10747_v62  ;;  %3243 = vmatprep.mubr.bf16.mxu0 %v2744_v8  ;;  %v3316_v26 = vmax.f32 %v3000_v7, 0.0  ;;  %v2670_v37 = vmax.f32 %v2509_v22, 0.0 }
 0x357   : > { %v2512_v23 = vpop.f32.mrf.mxu1  ;;  %v3005_v24 = vpop.f32.mrf.mxu0  ;;  %3244 = vmatmul.mubr.bf16.gmra.mxu0 %v2743_v9 }
 0x358   : > { %v3317_v27 = vmax.f32 %v3002_v18, 0.0  ;;  %v2513_v29 = vadd.f32 %v2512_v23, %v10586_v13  ;;  %v2671_v35 = vmax.f32 %v2511_v15, 0.0  ;;  %v3442_v21 = vpack.c.bf16 %v3316_v26, %v3314_v34 }
 0x359   : > { %v2516_v32 = vpop.f32.mrf.mxu1  ;;  %v3007_v33 = vpop.f32.mrf.mxu0  ;;  %v3006_v45 = vadd.f32 %v3005_v24, %v10750_v3 }
 0x35a   : > { %v2672_v36 = vmax.f32 %v2513_v29, 0.0  ;;  %v3443_v40 = vpack.c.bf16 %v3317_v27, %v3315_v31  ;;  %v3008_v46 = vadd.f32 %v3007_v33, %v10747_v62  ;;  %v2745_v50 = vpack.c.bf16 %v2671_v35, %v2669_v41 }
 0x35b   : > { %v2518_v38 = vpop.f32.mrf.mxu1  ;;  %v3009_v39 = vpop.f32.mrf.mxu0  ;;  %v2517_v30 = vadd.f32 %v2516_v32, %v10589_v19  ;;  %v3318_v60 = vmax.f32 %v3006_v45, 0.0  ;;  %v9215_v45 = vld [vmem:[#allocation13 + $0x34] ss:$8 sps:$4 sm:$0xff]  }
 0x35c   : > { %v3010_v42 = vadd.f32 %v3009_v39, %v10750_v3  ;;  %3742 = vmatprep.mubr.bf16.mxu1 %v3443_v40  ;;  %v2746_v49 = vpack.c.bf16 %v2672_v36, %v2670_v37  ;;  %v2519_v52 = vadd.f32 %v2518_v38, %v10586_v13  ;;  %v3319_v58 = vmax.f32 %v3008_v46, 0.0  ;;  %4467 = vmatprep.subr.bf16.mxu0 %v9215_v45 }
 0x35d   : > { %v2520_v47 = vpop.f32.mrf.mxu1  ;;  %v3011_v48 = vpop.f32.mrf.mxu0  ;;  %3743 = vmatmul.mubr.bf16.vlgmr.msra.gmra.mxu1 %v3442_v21  ;;  %v2673_v6 = vmax.f32 %v2517_v30, 0.0  ;;  %4468 = vmatpush1.bf16.msra.mxu0 %v9213_v44 }
 0x35e   : > { %v2521_v51 = vadd.f32 %v2520_v47, %v10589_v19  ;;  %v3012_v20 = vadd.f32 %v3011_v48, %v10747_v62  ;;  %3253 = vmatprep.mubr.bf16.mxu0 %v2746_v49  ;;  %v3320_v55 = vmax.f32 %v3010_v42, 0.0  ;;  %v2674_v1 = vmax.f32 %v2519_v52, 0.0 }
 0x35f   : > { %v2522_v53 = vpop.f32.mrf.mxu1  ;;  %v3015_v54 = vpop.f32.mrf.mxu0  ;;  %3254 = vmatmul.mubr.bf16.gmra.mxu0 %v2745_v50 }
 0x360   : > { %v3321_v56 = vmax.f32 %v3012_v20, 0.0  ;;  %v2523_v57 = vadd.f32 %v2522_v53, %v10586_v13  ;;  %v2675_v61 = vmax.f32 %v2521_v51, 0.0  ;;  %v3444_v7 = vpack.c.bf16 %v3320_v55, %v3318_v60 }
 0x361   : > { %v2526_v59 = vpop.f32.mrf.mxu1  ;;  %v3017_v28 = vpop.f32.mrf.mxu0  ;;  %v3016_v15 = vadd.f32 %v3015_v54, %v10750_v3 }
 0x362   : > { %v2676_v63 = vmax.f32 %v2523_v57, 0.0  ;;  %v3445_v5 = vpack.c.bf16 %v3321_v56, %v3319_v58  ;;  %v3018_v9 = vadd.f32 %v3017_v28, %v10747_v62  ;;  %v2747_v14 = vpack.c.bf16 %v2675_v61, %v2673_v6 }
 0x363   : > { %v2528_v2 = vpop.f32.mrf.mxu1  ;;  %v3019_v4 = vpop.f32.mrf.mxu0  ;;  %v2527_v26 = vadd.f32 %v2526_v59, %v10589_v19  ;;  %v3322_v35 = vmax.f32 %v3016_v15, 0.0 }
 0x364   : > { %v3020_v8 = vadd.f32 %v3019_v4, %v10750_v3  ;;  %3752 = vmatprep.mubr.bf16.mxu1 %v3445_v5  ;;  %v2748_v12 = vpack.c.bf16 %v2676_v63, %v2674_v1  ;;  %v2529_v23 = vadd.f32 %v2528_v2, %v10586_v13  ;;  %v3323_v32 = vmax.f32 %v3018_v9, 0.0 }
 0x365   : > { %v2530_v10 = vpop.f32.mrf.mxu1  ;;  %v3021_v11 = vpop.f32.mrf.mxu0  ;;  %3753 = vmatmul.mubr.bf16.gmra.mxu1 %v3444_v7  ;;  %v2677_v21 = vmax.f32 %v2527_v26, 0.0 }
 0x366   : > { %v2531_v18 = vadd.f32 %v2530_v10, %v10589_v19  ;;  %v3022_v22 = vadd.f32 %v3021_v11, %v10747_v62  ;;  %3263 = vmatprep.mubr.bf16.mxu0 %v2748_v12  ;;  %v3324_v27 = vmax.f32 %v3020_v8, 0.0  ;;  %v2678_v38 = vmax.f32 %v2529_v23, 0.0 }
 0x367   : > { %v2532_v24 = vpop.f32.mrf.mxu1  ;;  %v3025_v25 = vpop.f32.mrf.mxu0  ;;  %3264 = vmatmul.mubr.bf16.gmra.mxu0 %v2747_v14 }
 0x368   : > { %v3325_v29 = vmax.f32 %v3022_v22, 0.0  ;;  %v2533_v31 = vadd.f32 %v2532_v24, %v10586_v13  ;;  %v2679_v36 = vmax.f32 %v2531_v18, 0.0  ;;  %v3446_v42 = vpack.c.bf16 %v3324_v27, %v3322_v35 }
 0x369   : > { %v2536_v33 = vpop.f32.mrf.mxu1  ;;  %v3027_v34 = vpop.f32.mrf.mxu0  ;;  %v3026_v46 = vadd.f32 %v3025_v25, %v10750_v3 }
 0x36a   : > { %v2680_v37 = vmax.f32 %v2533_v31, 0.0  ;;  %v3447_v41 = vpack.c.bf16 %v3325_v29, %v3323_v32  ;;  %v3028_v47 = vadd.f32 %v3027_v34, %v10747_v62  ;;  %v2749_v51 = vpack.c.bf16 %v2679_v36, %v2677_v21 }
 0x36b   : > { %v2538_v39 = vpop.f32.mrf.mxu1  ;;  %v3029_v40 = vpop.f32.mrf.mxu0  ;;  %v2537_v55 = vadd.f32 %v2536_v33, %v10589_v19  ;;  %v3326_v61 = vmax.f32 %v3026_v46, 0.0  ;;  %v9216_v46 = vld [vmem:[#allocation13 + $0x20] ss:$8 sps:$4 sm:$0xff]  }
 0x36c   : > { %v3030_v43 = vadd.f32 %v3029_v40, %v10750_v3  ;;  %3762 = vmatprep.mubr.bf16.mxu1 %v3447_v41  ;;  %v2750_v50 = vpack.c.bf16 %v2680_v37, %v2678_v38  ;;  %v2539_v53 = vadd.f32 %v2538_v39, %v10586_v13  ;;  %v3327_v59 = vmax.f32 %v3028_v47, 0.0  ;;  %v9218_v47 = vld [vmem:[#allocation13 + $0x24] ss:$8 sps:$4 sm:$0xff]  }
 0x36d   : > { %v2540_v48 = vpop.f32.mrf.mxu1  ;;  %v3031_v49 = vpop.f32.mrf.mxu0  ;;  %3763 = vmatmul.mubr.bf16.gmra.mxu1 %v3446_v42  ;;  %v2681_v7 = vmax.f32 %v2537_v55, 0.0  ;;  %4469 = vmatprep.subr.bf16.mxu0 %v9218_v47 }
 0x36e   : > { %v2541_v20 = vadd.f32 %v2540_v48, %v10589_v19  ;;  %v3032_v52 = vadd.f32 %v3031_v49, %v10747_v62  ;;  %3273 = vmatprep.mubr.bf16.mxu0 %v2750_v50  ;;  %v3328_v56 = vmax.f32 %v3030_v43, 0.0  ;;  %v2682_v2 = vmax.f32 %v2539_v53, 0.0  ;;  %4470 = vmatpush1.bf16.msra.mxu0 %v9216_v46 }
 0x36f   : > { %v2542_v54 = vpop.f32.mrf.mxu1  ;;  %v3035_v30 = vpop.f32.mrf.mxu0  ;;  %3274 = vmatmul.mubr.bf16.gmra.mxu0 %v2749_v51 }
 0x370   : > { %v3329_v57 = vmax.f32 %v3032_v52, 0.0  ;;  %v2543_v58 = vadd.f32 %v2542_v54, %v10586_v13  ;;  %v2683_v63 = vmax.f32 %v2541_v20, 0.0  ;;  %v3448_v8 = vpack.c.bf16 %v3328_v56, %v3326_v61 }
 0x371   : > { %v2546_v28 = vpop.f32.mrf.mxu1  ;;  %v3037_v60 = vpop.f32.mrf.mxu0  ;;  %v3036_v18 = vadd.f32 %v3035_v30, %v10750_v3 }
 0x372   : > { %v2684_v1 = vmax.f32 %v2543_v58, 0.0  ;;  %v3449_v6 = vpack.c.bf16 %v3329_v57, %v3327_v59  ;;  %v3038_v10 = vadd.f32 %v3037_v60, %v10747_v62  ;;  %v2751_v15 = vpack.c.bf16 %v2683_v63, %v2681_v7 }
 0x373   : > { %v2548_v4 = vpop.f32.mrf.mxu1  ;;  %v3039_v5 = vpop.f32.mrf.mxu0  ;;  %v2547_v24 = vadd.f32 %v2546_v28, %v10589_v19  ;;  %v3330_v37 = vmax.f32 %v3036_v18, 0.0  ;;  %v9224_v18 = vld [vmem:[#allocation13 + $0x4] ss:$8 sps:$4 sm:$0xff]  }
 0x374   : > { %v3040_v9 = vadd.f32 %v3039_v5, %v10750_v3  ;;  %3772 = vmatprep.mubr.bf16.mxu1 %v3449_v6  ;;  %v2752_v14 = vpack.c.bf16 %v2684_v1, %v2682_v2  ;;  %v2549_v25 = vadd.f32 %v2548_v4, %v10586_v13  ;;  %v3331_v33 = vmax.f32 %v3038_v10, 0.0  ;;  %v9221_v5 = vld [vmem:[#allocation13 + $0x14] ss:$8 sps:$4 sm:$0xff]  }
 0x375   : > { %v2550_v11 = vpop.f32.mrf.mxu1  ;;  %v3041_v12 = vpop.f32.mrf.mxu0  ;;  %3773 = vmatmul.mubr.bf16.gmra.mxu1 %v3448_v8  ;;  %v2685_v39 = vmax.f32 %v2547_v24, 0.0  ;;  %v9219_v8 = vld [vmem:[#allocation13 + $0x10] ss:$8 sps:$4 sm:$0xff]   ;;  %4471 = vmatprep.subr.bf16.mxu0 %v9221_v5 }
 0x376   : > { %v2551_v22 = vadd.f32 %v2550_v11, %v10589_v19  ;;  %v3042_v23 = vadd.f32 %v3041_v12, %v10747_v62  ;;  %3283 = vmatprep.mubr.bf16.mxu0 %v2752_v14  ;;  %v3332_v29 = vmax.f32 %v3040_v9, 0.0  ;;  %v2686_v40 = vmax.f32 %v2549_v25, 0.0  ;;  %4472 = vmatpush1.bf16.msra.mxu0 %v9219_v8  ;;  %v9237_v5 = vld [vmem:[#allocation13 + $0xb0] ss:$8 sps:$4 sm:$0xff]  }
 0x377   : > { %v2552_v26 = vpop.f32.mrf.mxu1  ;;  %v3045_v27 = vpop.f32.mrf.mxu0  ;;  %3284 = vmatmul.mubr.bf16.gmra.mxu0 %v2751_v15  ;;  %4473 = vmatprep.subr.bf16.mxu0 %v9224_v18 }
 0x378   : > { %v3333_v31 = vmax.f32 %v3042_v23, 0.0  ;;  %v2553_v32 = vadd.f32 %v2552_v26, %v10586_v13  ;;  %v2687_v34 = vmax.f32 %v2551_v22, 0.0  ;;  %v3450_v43 = vpack.c.bf16 %v3332_v29, %v3330_v37  ;;  %v9222_v23 = vld [vmem:[#allocation13] ss:$8 sps:$4 sm:$0xff]  }
 0x379   : > { %v2556_v35 = vpop.f32.mrf.mxu1  ;;  %v3047_v36 = vpop.f32.mrf.mxu0  ;;  %v3046_v49 = vadd.f32 %v3045_v27, %v10750_v3 }
 0x37a   : > { %v2688_v38 = vmax.f32 %v2553_v32, 0.0  ;;  %v3451_v42 = vpack.c.bf16 %v3333_v31, %v3331_v33  ;;  %v3048_v44 = vadd.f32 %v3047_v36, %v10747_v62  ;;  %v2753_v48 = vpack.c.bf16 %v2687_v34, %v2685_v39  ;;  %4474 = vmatpush1.bf16.msra.mxu0 %v9222_v23  ;;  %v9227_v32 = vld [vmem:[#allocation13 + $0xf4] ss:$8 sps:$4 sm:$0xff]   ;;  %v9225_v34 = vld [vmem:[#allocation13 + $0xf0] ss:$8 sps:$4 sm:$0xff]  }
 0x37b   : > { %v2558_v41 = vpop.f32.mrf.mxu1  ;;  %v3049_v21 = vpop.f32.mrf.mxu0  ;;  %v2557_v57 = vadd.f32 %v2556_v35, %v10589_v19  ;;  %v3334_v60 = vmax.f32 %v3046_v49, 0.0  ;;  %4475 = vmatprep.subr.bf16.mxu0 %v9227_v32  ;;  %v9233_v49 = vld [vmem:[#allocation13 + $0xd4] ss:$8 sps:$4 sm:$0xff]  }
 0x37c   : > { %v3050_v45 = vadd.f32 %v3049_v21, %v10750_v3  ;;  %3782 = vmatprep.mubr.bf16.mxu1 %v3451_v42  ;;  %v2754_v20 = vpack.c.bf16 %v2688_v38, %v2686_v40  ;;  %v2559_v52 = vadd.f32 %v2558_v41, %v10586_v13  ;;  %v3335_v58 = vmax.f32 %v3048_v44, 0.0  ;;  %v9230_v41 = vld [vmem:[#allocation13 + $0xe4] ss:$8 sps:$4 sm:$0xff]   ;;  %v9228_v42 = vld [vmem:[#allocation13 + $0xe0] ss:$8 sps:$4 sm:$0xff]  }
 0x37d   : > { %v2560_v50 = vpop.f32.mrf.mxu1  ;;  %v3051_v51 = vpop.f32.mrf.mxu0  ;;  %3783 = vmatmul.mubr.bf16.gmra.mxu1 %v3450_v43  ;;  %v2689_v9 = vmax.f32 %v2557_v57, 0.0 }
 0x37e   : > { %v2561_v53 = vadd.f32 %v2560_v50, %v10589_v19  ;;  %v3052_v54 = vadd.f32 %v3051_v51, %v10747_v62  ;;  %v3336_v30 = vmax.f32 %v3050_v45, 0.0  ;;  %3293 = vmatprep.mubr.bf16.mxu0 %v2754_v20  ;;  %v2690_v63 = vmax.f32 %v2559_v52, 0.0  ;;  %4476 = vmatpush2.bf16.msra.mxu0 %v9225_v34  ;;  %v9231_v51 = vld [vmem:[#allocation13 + $0xd0] ss:$8 sps:$4 sm:$0xff]  }
 0x37f   : > { %v2562_v55 = vpop.f32.mrf.mxu1  ;;  %v3055_v56 = vpop.f32.mrf.mxu0  ;;  %3294 = vmatmul.mubr.bf16.gmra.mxu0 %v2753_v48  ;;  %4477 = vmatprep.subr.bf16.mxu0 %v9230_v41  ;;  %v9246_v41 = vld [vmem:[#allocation13 + $0x80] ss:$8 sps:$4 sm:$0xff]  }
 0x380   : > { %v3337_v59 = vmax.f32 %v3052_v54, 0.0  ;;  %v2563_v28 = vadd.f32 %v2562_v55, %v10586_v13  ;;  %v2691_v1 = vmax.f32 %v2561_v53, 0.0  ;;  %v3452_v6 = vpack.c.bf16 %v3336_v30, %v3334_v60 }
 0x381   : > { %v3057_v61 = vpop.f32.mrf.mxu0  ;;  %v3056_v14 = vadd.f32 %v3055_v56, %v10750_v3  ;;  %v9236_v56 = vld [vmem:[#allocation13 + $0xc4] ss:$8 sps:$4 sm:$0xff]  }
 0x382   : > { %v2692_v2 = vmax.f32 %v2563_v28, 0.0  ;;  %v3453_v4 = vpack.c.bf16 %v3337_v59, %v3335_v58  ;;  %v3058_v10 = vadd.f32 %v3057_v61, %v10747_v62  ;;  %v2755_v12 = vpack.c.bf16 %v2691_v1, %v2689_v9  ;;  %4478 = vmatpush2.bf16.msra.mxu0 %v9228_v42  ;;  %v9234_v58 = vld [vmem:[#allocation13 + $0xc0] ss:$8 sps:$4 sm:$0xff]  }
 0x383   : > { %v3059_v7 = vpop.f32.mrf.mxu0  ;;  %v3338_v29 = vmax.f32 %v3056_v14, 0.0  ;;  %4479 = vmatprep.subr.bf16.mxu0 %v9233_v49 }
 0x384   : > { %v3060_v19 = vadd.f32 %v3059_v7, %v10750_v3  ;;  %3792 = vmatprep.mubr.bf16.mxu1 %v3453_v4  ;;  %v2756_v11 = vpack.c.bf16 %v2692_v2, %v2690_v63  ;;  %v3339_v24 = vmax.f32 %v3058_v10, 0.0  ;;  %v9239_v2 = vld [vmem:[#allocation13 + $0xb4] ss:$8 sps:$4 sm:$0xff]  }
 0x385   : > { %v3061_v13 = vpop.f32.mrf.mxu0  ;;  %3793 = vmatmul.mubr.bf16.gmra.mxu1 %v3452_v6 }
 0x386   : > { %v3062_v15 = vadd.f32 %v3061_v13, %v10747_v62  ;;  %3303 = vmatprep.mubr.bf16.mxu0 %v2756_v11  ;;  %v3340_v25 = vmax.f32 %v3060_v19, 0.0  ;;  %4480 = vmatpush2.bf16.msra.mxu0 %v9231_v51  ;;  %v9242_v11 = vld [vmem:[#allocation13 + $0xa4] ss:$8 sps:$4 sm:$0xff]  }
 0x387   : > { %v3065_v22 = vpop.f32.mrf.mxu0  ;;  %3304 = vmatmul.mubr.bf16.gmra.mxu0 %v2755_v12  ;;  %4481 = vmatprep.subr.bf16.mxu0 %v9236_v56  ;;  %v9240_v12 = vld [vmem:[#allocation13 + $0xa0] ss:$8 sps:$4 sm:$0xff]  }
 0x388   : > { %v3341_v26 = vmax.f32 %v3062_v15, 0.0  ;;  %v3454_v35 = vpack.c.bf16 %v3340_v25, %v3338_v29  ;;  %v3066_v39 = vadd.f32 %v3065_v22, %v10750_v3  ;;  %v9245_v25 = vld [vmem:[#allocation13 + $0x94] ss:$8 sps:$4 sm:$0xff]  }
 0x389   : > { %v3067_v27 = vpop.f32.mrf.mxu0 }
 0x38a   : > { %v3455_v31 = vpack.c.bf16 %v3341_v26, %v3339_v24  ;;  %v3068_v36 = vadd.f32 %v3067_v27, %v10747_v62  ;;  %v3342_v47 = vmax.f32 %v3066_v39, 0.0  ;;  %4482 = vmatpush2.bf16.msra.mxu0 %v9234_v58  ;;  %v9243_v27 = vld [vmem:[#allocation13 + $0x90] ss:$8 sps:$4 sm:$0xff]  }
 0x38b   : > { %v3069_v33 = vpop.f32.mrf.mxu0  ;;  %4483 = vmatprep.subr.bf16.mxu0 %v9239_v2 }
 0x38c   : > { %v3070_v37 = vadd.f32 %v3069_v33, %v10750_v3  ;;  %3802 = vmatprep.mubr.bf16.mxu1 %v3455_v31  ;;  %v3343_v43 = vmax.f32 %v3068_v36, 0.0 }
 0x38d   : > { %v3071_v38 = vpop.f32.mrf.mxu0  ;;  %3803 = vmatmul.mubr.bf16.gmra.mxu1 %v3454_v35 }
 0x38e   : > { %v3072_v40 = vadd.f32 %v3071_v38, %v10747_v62  ;;  %v3344_v44 = vmax.f32 %v3070_v37, 0.0  ;;  %4484 = vmatpush2.bf16.msra.mxu0 %v9237_v5  ;;  %v9248_v37 = vld [vmem:[#allocation13 + $0x84] ss:$8 sps:$4 sm:$0xff]  }
 0x38f   : > { %v3075_v21 = vpop.f32.mrf.mxu0  ;;  %4485 = vmatprep.subr.bf16.mxu0 %v9242_v11 }
 0x390   : > { %v3345_v45 = vmax.f32 %v3072_v40, 0.0  ;;  %v3456_v20 = vpack.c.bf16 %v3344_v44, %v3342_v47  ;;  %v3076_v30 = vadd.f32 %v3075_v21, %v10750_v3 }
 0x391   : > { %v3077_v46 = vpop.f32.mrf.mxu0 }
 0x392   : > { %v3457_v48 = vpack.c.bf16 %v3345_v45, %v3343_v43  ;;  %v3078_v52 = vadd.f32 %v3077_v46, %v10747_v62  ;;  %v3346_v63 = vmax.f32 %v3076_v30, 0.0  ;;  %4486 = vmatpush2.bf16.msra.mxu0 %v9240_v12 }
 0x393   : > { %v3079_v50 = vpop.f32.mrf.mxu0  ;;  %4487 = vmatprep.subr.bf16.mxu0 %v9245_v25 }
 0x394   : > { %v3080_v53 = vadd.f32 %v3079_v50, %v10750_v3  ;;  %3812 = vmatprep.mubr.bf16.mxu1 %v3457_v48  ;;  %v3347_v59 = vmax.f32 %v3078_v52, 0.0 }
 0x395   : > { %v3081_v54 = vpop.f32.mrf.mxu0  ;;  %3813 = vmatmul.mubr.bf16.gmra.mxu1 %v3456_v20 }
 0x396   : > { %v3082_v55 = vadd.f32 %v3081_v54, %v10747_v62  ;;  %v3348_v28 = vmax.f32 %v3080_v53, 0.0  ;;  %4488 = vmatpush2.bf16.msra.mxu0 %v9243_v27 }
 0x397   : > { %v3085_v57 = vpop.f32.mrf.mxu0  ;;  %4489 = vmatprep.subr.bf16.mxu0 %v9248_v37 }
 0x398   : > { %v3349_v60 = vmax.f32 %v3082_v55, 0.0  ;;  %v3458_v6 = vpack.c.bf16 %v3348_v28, %v3346_v63  ;;  %v3086_v10 = vadd.f32 %v3085_v57, %v10750_v3 }
 0x399   : > { %v3087_v61 = vpop.f32.mrf.mxu0 }
 0x39a   : > { %v3459_v1 = vpack.c.bf16 %v3349_v60, %v3347_v59  ;;  %v3088_v7 = vadd.f32 %v3087_v61, %v10747_v62  ;;  %v3350_v23 = vmax.f32 %v3086_v10, 0.0  ;;  %4490 = vmatpush2.bf16.msra.mxu0 %v9246_v41 }
 0x39b   : > { %v3089_v4 = vpop.f32.mrf.mxu0 }
 0x39c   : > { %v3090_v8 = vadd.f32 %v3089_v4, %v10750_v3  ;;  %3822 = vmatprep.mubr.bf16.mxu1 %v3459_v1  ;;  %v3351_v14 = vmax.f32 %v3088_v7, 0.0 }
 0x39d   : > { %v3091_v9 = vpop.f32.mrf.mxu0  ;;  %3823 = vmatmul.mubr.bf16.gmra.mxu1 %v3458_v6 }
 0x39e   : > { %v3092_v19 = vadd.f32 %v3091_v9, %v10747_v62  ;;  %v3352_v15 = vmax.f32 %v3090_v8, 0.0 }
 0x39f   : > { %v3095_v13 = vpop.f32.mrf.mxu0 }
 0x3a0   : > { %v3353_v18 = vmax.f32 %v3092_v19, 0.0  ;;  %v3460_v29 = vpack.c.bf16 %v3352_v15, %v3350_v23  ;;  %v3096_v34 = vadd.f32 %v3095_v13, %v10750_v3 }
 0x3a1   : > { %v3097_v22 = vpop.f32.mrf.mxu0 }
 0x3a2   : > { %v3461_v24 = vpack.c.bf16 %v3353_v18, %v3351_v14  ;;  %v3098_v31 = vadd.f32 %v3097_v22, %v10747_v62  ;;  %v3354_v42 = vmax.f32 %v3096_v34, 0.0 }
 0x3a3   : > { %v3099_v26 = vpop.f32.mrf.mxu0 }
 0x3a4   : > { %v3100_v32 = vadd.f32 %v3099_v26, %v10750_v3  ;;  %3832 = vmatprep.mubr.bf16.mxu1 %v3461_v24  ;;  %v3355_v38 = vmax.f32 %v3098_v31, 0.0 }
 0x3a5   : > { %v3101_v33 = vpop.f32.mrf.mxu0  ;;  %3833 = vmatmul.mubr.bf16.gmra.mxu1 %v3460_v29 }
 0x3a6   : > { %v3102_v35 = vadd.f32 %v3101_v33, %v10747_v62  ;;  %v3356_v39 = vmax.f32 %v3100_v32, 0.0 }
 0x3a7   : > { %v3105_v36 = vpop.f32.mrf.mxu0 }
 0x3a8   : > { %v3357_v40 = vmax.f32 %v3102_v35, 0.0  ;;  %v3462_v45 = vpack.c.bf16 %v3356_v39, %v3354_v42  ;;  %v3106_v49 = vadd.f32 %v3105_v36, %v10750_v3 }
 0x3a9   : > { %v3107_v21 = vpop.f32.mrf.mxu0 }
 0x3aa   : > { %v3463_v43 = vpack.c.bf16 %v3357_v40, %v3355_v38  ;;  %v3108_v46 = vadd.f32 %v3107_v21, %v10747_v62  ;;  %v3358_v30 = vmax.f32 %v3106_v49, 0.0 }
 0x3ab   : > { %v3109_v44 = vpop.f32.mrf.mxu0 }
 0x3ac   : > { %v3110_v47 = vadd.f32 %v3109_v44, %v10750_v3  ;;  %3842 = vmatprep.mubr.bf16.mxu1 %v3463_v43  ;;  %v3359_v20 = vmax.f32 %v3108_v46, 0.0 }
 0x3ad   : > { %v3111_v48 = vpop.f32.mrf.mxu0  ;;  %3843 = vmatmul.mubr.bf16.gmra.mxu1 %v3462_v45 }
 0x3ae   : > { %v3112_v50 = vadd.f32 %v3111_v48, %v10747_v62  ;;  %v3360_v52 = vmax.f32 %v3110_v47, 0.0 }
 0x3af   : > { %v3115_v51 = vpop.f32.mrf.mxu0 }
 0x3b0   : > { %v3361_v53 = vmax.f32 %v3112_v50, 0.0  ;;  %v3464_v57 = vpack.c.bf16 %v3360_v52, %v3358_v30  ;;  %v3116_v60 = vadd.f32 %v3115_v51, %v10750_v3 }
 0x3b1   : > { %v3117_v54 = vpop.f32.mrf.mxu0 }
 0x3b2   : > { %v3465_v55 = vpack.c.bf16 %v3361_v53, %v3359_v20  ;;  %v3118_v58 = vadd.f32 %v3117_v54, %v10747_v62  ;;  %v3362_v6 = vmax.f32 %v3116_v60, 0.0 }
 0x3b3   : > { %v3119_v56 = vpop.f32.mrf.mxu0 }
 0x3b4   : > { %v3120_v59 = vadd.f32 %v3119_v56, %v10750_v3  ;;  %3852 = vmatprep.mubr.bf16.mxu1 %v3465_v55  ;;  %v3363_v1 = vmax.f32 %v3118_v58, 0.0 }
 0x3b5   : > { %v3121_v28 = vpop.f32.mrf.mxu0  ;;  %3853 = vmatmul.mubr.bf16.gmra.mxu1 %v3464_v57 }
 0x3b6   : > { %v3122_v61 = vadd.f32 %v3121_v28, %v10747_v62  ;;  %v3364_v2 = vmax.f32 %v3120_v59, 0.0 }
 0x3b7   : > { %v3125_v63 = vpop.f32.mrf.mxu0 }
 0x3b8   : > { %v3365_v4 = vmax.f32 %v3122_v61, 0.0  ;;  %v3466_v9 = vpack.c.bf16 %v3364_v2, %v3362_v6  ;;  %v3126_v13 = vadd.f32 %v3125_v63, %v10750_v3 }
 0x3b9   : > { %v3127_v5 = vpop.f32.mrf.mxu0 }
 0x3ba   : > { %v3467_v7 = vpack.c.bf16 %v3365_v4, %v3363_v1  ;;  %v3128_v10 = vadd.f32 %v3127_v5, %v10747_v62  ;;  %v3366_v24 = vmax.f32 %v3126_v13, 0.0 }
 0x3bb   : > { %v3129_v8 = vpop.f32.mrf.mxu0 }
 0x3bc   : > { %v3130_v19 = vadd.f32 %v3129_v8, %v10750_v3  ;;  %3862 = vmatprep.mubr.bf16.mxu1 %v3467_v7  ;;  %v3367_v15 = vmax.f32 %v3128_v10, 0.0 }
 0x3bd   : > { %v3131_v11 = vpop.f32.mrf.mxu0  ;;  %3863 = vmatmul.mubr.bf16.gmra.mxu1 %v3466_v9 }
 0x3be   : > { %v3132_v12 = vadd.f32 %v3131_v11, %v10747_v62  ;;  %v3368_v18 = vmax.f32 %v3130_v19, 0.0 }
 0x3bf   : > { %v3135_v14 = vpop.f32.mrf.mxu0 }
 0x3c0   : > { %v3369_v22 = vmax.f32 %v3132_v12, 0.0  ;;  %v3468_v27 = vpack.c.bf16 %v3368_v18, %v3366_v24  ;;  %v3136_v33 = vadd.f32 %v3135_v14, %v10750_v3 }
 0x3c1   : > { %v3137_v23 = vpop.f32.mrf.mxu0 }
 0x3c2   : > { %v3469_v25 = vpack.c.bf16 %v3369_v22, %v3367_v15  ;;  %v3138_v29 = vadd.f32 %v3137_v23, %v10747_v62  ;;  %v3370_v40 = vmax.f32 %v3136_v33, 0.0 }
 0x3c3   : > { %v3139_v26 = vpop.f32.mrf.mxu0 }
 0x3c4   : > { %v3140_v31 = vadd.f32 %v3139_v26, %v10750_v3  ;;  %3872 = vmatprep.mubr.bf16.mxu1 %v3469_v25  ;;  %v3371_v36 = vmax.f32 %v3138_v29, 0.0 }
 0x3c5   : > { %v3141_v32 = vpop.f32.mrf.mxu0  ;;  %3873 = vmatmul.mubr.bf16.gmra.mxu1 %v3468_v27 }
 0x3c6   : > { %v3142_v34 = vadd.f32 %v3141_v32, %v10747_v62  ;;  %v3372_v37 = vmax.f32 %v3140_v31, 0.0 }
 0x3c7   : > { %v3145_v35 = vpop.f32.mrf.mxu0 }
 0x3c8   : > { %v3373_v38 = vmax.f32 %v3142_v34, 0.0  ;;  %v3470_v42 = vpack.c.bf16 %v3372_v37, %v3370_v40  ;;  %v3146_v46 = vadd.f32 %v3145_v35, %v10750_v3 }
 0x3c9   : > { %v3147_v39 = vpop.f32.mrf.mxu0 }
 0x3ca   : > { %v3471_v41 = vpack.c.bf16 %v3373_v38, %v3371_v36  ;;  %v3148_v43 = vadd.f32 %v3147_v39, %v10747_v62  ;;  %v3374_v52 = vmax.f32 %v3146_v46, 0.0 }
 0x3cb   : > { %v3149_v21 = vpop.f32.mrf.mxu0 }
 0x3cc   : > { %v3150_v44 = vadd.f32 %v3149_v21, %v10750_v3  ;;  %3882 = vmatprep.mubr.bf16.mxu1 %v3471_v41  ;;  %v3375_v49 = vmax.f32 %v3148_v43, 0.0 }
 0x3cd   : > { %v3151_v45 = vpop.f32.mrf.mxu0  ;;  %3883 = vmatmul.mubr.bf16.gmra.mxu1 %v3470_v42 }
 0x3ce   : > { %v3152_v47 = vadd.f32 %v3151_v45, %v10747_v62  ;;  %v3376_v50 = vmax.f32 %v3150_v44, 0.0 }
 0x3cf   : > { %v3155_v48 = vpop.f32.mrf.mxu0 }
 0x3d0   : > { %v3377_v51 = vmax.f32 %v3152_v47, 0.0  ;;  %v3472_v30 = vpack.c.bf16 %v3376_v50, %v3374_v52  ;;  %v3156_v58 = vadd.f32 %v3155_v48, %v10750_v3 }
 0x3d1   : > { %v3157_v20 = vpop.f32.mrf.mxu0 }
 0x3d2   : > { %v3473_v53 = vpack.c.bf16 %v3377_v51, %v3375_v49  ;;  %v3158_v55 = vadd.f32 %v3157_v20, %v10747_v62  ;;  %v3378_v2 = vmax.f32 %v3156_v58, 0.0 }
 0x3d3   : > { %v3159_v54 = vpop.f32.mrf.mxu0 }
 0x3d4   : > { %v3160_v56 = vadd.f32 %v3159_v54, %v10750_v3  ;;  %3892 = vmatprep.mubr.bf16.mxu1 %v3473_v53  ;;  %v3379_v60 = vmax.f32 %v3158_v55, 0.0 }
 0x3d5   : > { %v3161_v57 = vpop.f32.mrf.mxu0  ;;  %3893 = vmatmul.mubr.bf16.gmra.mxu1 %v3472_v30 }
 0x3d6   : > { %v3162_v59 = vadd.f32 %v3161_v57, %v10747_v62  ;;  %v3380_v61 = vmax.f32 %v3160_v56, 0.0 }
 0x3d7   : > { %v3165_v28 = vpop.f32.mrf.mxu0 }
 0x3d8   : > { %v3381_v63 = vmax.f32 %v3162_v59, 0.0  ;;  %v3474_v6 = vpack.c.bf16 %v3380_v61, %v3378_v2  ;;  %v3166_v10 = vadd.f32 %v3165_v28, %v10750_v3 }
 0x3d9   : > { %v3167_v1 = vpop.f32.mrf.mxu0 }
 0x3da   : > { %v3475_v4 = vpack.c.bf16 %v3381_v63, %v3379_v60  ;;  %v3168_v7 = vadd.f32 %v3167_v1, %v10747_v62  ;;  %v3382_v18 = vmax.f32 %v3166_v10, 0.0  ;;  %v9249_v10 = vld [vmem:[#allocation16 + $0x70] ss:$8 sps:$4 sm:$0xff]  }
 0x3db   : > { %v3169_v5 = vpop.f32.mrf.mxu0 }
 0x3dc   : > { %v3170_v8 = vadd.f32 %v3169_v5, %v10750_v3  ;;  %3902 = vmatprep.mubr.bf16.mxu1 %v3475_v4  ;;  %v3383_v13 = vmax.f32 %v3168_v7, 0.0 }
 0x3dd   : > { %v3171_v9 = vpop.f32.mrf.mxu0  ;;  %3903 = vmatmul.mubr.bf16.gmra.mxu1 %v3474_v6 }
 0x3de   : > { %v3172_v19 = vadd.f32 %v3171_v9, %v10747_v62  ;;  %v3384_v12 = vmax.f32 %v3170_v8, 0.0 }
 0x3df   : > { %v3175_v11 = vpop.f32.mrf.mxu0 }
 0x3e0   : > { %v3385_v14 = vmax.f32 %v3172_v19, 0.0  ;;  %v3476_v24 = vpack.c.bf16 %v3384_v12, %v3382_v18  ;;  %v3176_v29 = vadd.f32 %v3175_v11, %v10750_v3  ;;  %v9251_v19 = vld [vmem:[#allocation16 + $0x74] ss:$8 sps:$4 sm:$0xff]  }
 0x3e1   : > { %v3177_v15 = vpop.f32.mrf.mxu0  ;;  %5212 = vmatprep.subr.bf16.mxu1 %v9251_v19 }
 0x3e2   : > { %v3477_v22 = vpack.c.bf16 %v3385_v14, %v3383_v13  ;;  %v3178_v25 = vadd.f32 %v3177_v15, %v10747_v62  ;;  %v3386_v37 = vmax.f32 %v3176_v29, 0.0  ;;  %5213 = vmatpush1.bf16.msra.mxu1 %v9249_v10  ;;  %v3538_v10 = vld [vmem:[%s12484_s11] sm:$0x3] }
 0x3e3   : > { %v3179_v23 = vpop.f32.mrf.mxu0 }
 0x3e4   : > { %v3180_v26 = vadd.f32 %v3179_v23, %v10750_v3  ;;  %3912 = vmatprep.mubr.bf16.mxu1 %v3477_v22  ;;  %v3387_v33 = vmax.f32 %v3178_v25, 0.0 }
 0x3e5   : > { %v3181_v27 = vpop.f32.mrf.mxu0  ;;  %3913 = vmatmul.mubr.bf16.gmra.mxu1 %v3476_v24 }
 0x3e6   : > { %v3182_v31 = vadd.f32 %v3181_v27, %v10747_v62  ;;  %v3388_v34 = vmax.f32 %v3180_v26, 0.0 }
 0x3e7   : > { %v3185_v32 = vpop.f32.mrf.mxu0 }
 0x3e8   : > { %v3389_v35 = vmax.f32 %v3182_v31, 0.0  ;;  %v3478_v40 = vpack.c.bf16 %v3388_v34, %v3386_v37  ;;  %v3186_v43 = vadd.f32 %v3185_v32, %v10750_v3 }
 0x3e9   : > { %v3187_v36 = vpop.f32.mrf.mxu0 }
 0x3ea   : > { %v3479_v38 = vpack.c.bf16 %v3389_v35, %v3387_v33  ;;  %v3188_v41 = vadd.f32 %v3187_v36, %v10747_v62  ;;  %v3390_v50 = vmax.f32 %v3186_v43, 0.0 }
 0x3eb   : > { %v3189_v39 = vpop.f32.mrf.mxu0 }
 0x3ec   : > { %v3190_v21 = vadd.f32 %v3189_v39, %v10750_v3  ;;  %3922 = vmatprep.mubr.bf16.mxu1 %v3479_v38  ;;  %v3391_v46 = vmax.f32 %v3188_v41, 0.0 }
 0x3ed   : > { %v3191_v42 = vpop.f32.mrf.mxu0  ;;  %3923 = vmatmul.mubr.bf16.gmra.mxu1 %v3478_v40 }
 0x3ee   : > { %v3192_v44 = vadd.f32 %v3191_v42, %v10747_v62  ;;  %v3392_v47 = vmax.f32 %v3190_v21, 0.0 }
 0x3ef   : > { %v3195_v45 = vpop.f32.mrf.mxu0 }
 0x3f0   : > { %v3393_v48 = vmax.f32 %v3192_v44, 0.0  ;;  %v3480_v52 = vpack.c.bf16 %v3392_v47, %v3390_v50  ;;  %v3196_v55 = vadd.f32 %v3195_v45, %v10750_v3  ;;  %v9252_v45 = vld [vmem:[#allocation16 + $0x60] ss:$8 sps:$4 sm:$0xff]  }
 0x3f1   : > { %v3197_v49 = vpop.f32.mrf.mxu0 }
 0x3f2   : > { %v3481_v51 = vpack.c.bf16 %v3393_v48, %v3391_v46  ;;  %v3198_v53 = vadd.f32 %v3197_v49, %v10747_v62  ;;  %v3394_v61 = vmax.f32 %v3196_v55, 0.0  ;;  %v9254_v46 = vld [vmem:[#allocation16 + $0x64] ss:$8 sps:$4 sm:$0xff]  }
 0x3f3   : > { %v3199_v20 = vpop.f32.mrf.mxu0  ;;  %5214 = vmatprep.subr.bf16.mxu1 %v9254_v46 }
 0x3f4   : > { %v3200_v54 = vadd.f32 %v3199_v20, %v10750_v3  ;;  %3932 = vmatprep.mubr.bf16.mxu1 %v3481_v51  ;;  %v3395_v58 = vmax.f32 %v3198_v53, 0.0  ;;  %5215 = vmatpush1.bf16.msra.mxu1 %v9252_v45 }
 0x3f5   : > { %v3201_v30 = vpop.f32.mrf.mxu0  ;;  %3933 = vmatmul.mubr.bf16.gmra.mxu1 %v3480_v52 }
 0x3f6   : > { %v3202_v56 = vadd.f32 %v3201_v30, %v10747_v62  ;;  %v3396_v59 = vmax.f32 %v3200_v54, 0.0 }
 0x3f7   : > { %v3205_v57 = vpop.f32.mrf.mxu0 }
 0x3f8   : > { %v3397_v28 = vmax.f32 %v3202_v56, 0.0  ;;  %v3482_v2 = vpack.c.bf16 %v3396_v59, %v3394_v61  ;;  %v3206_v7 = vadd.f32 %v3205_v57, %v10750_v3 }
 0x3f9   : > { %v3207_v60 = vpop.f32.mrf.mxu0 }
 0x3fa   : > { %v3483_v63 = vpack.c.bf16 %v3397_v28, %v3395_v58  ;;  %v3208_v4 = vadd.f32 %v3207_v60, %v10747_v62  ;;  %v3398_v15 = vmax.f32 %v3206_v7, 0.0 }
 0x3fb   : > { %v3209_v1 = vpop.f32.mrf.mxu0 }
 0x3fc   : > { %v3210_v5 = vadd.f32 %v3209_v1, %v10750_v3  ;;  %3942 = vmatprep.mubr.bf16.mxu1 %v3483_v63  ;;  %v3399_v11 = vmax.f32 %v3208_v4, 0.0 }
 0x3fd   : > { %v3211_v6 = vpop.f32.mrf.mxu0  ;;  %3943 = vmatmul.mubr.bf16.gmra.mxu1 %v3482_v2 }
 0x3fe   : > { %v3212_v8 = vadd.f32 %v3211_v6, %v10747_v62  ;;  %v3400_v13 = vmax.f32 %v3210_v5, 0.0 }
 0x3ff   : > { %v3215_v9 = vpop.f32.mrf.mxu0 }
 0x400   : > { %v3401_v12 = vmax.f32 %v3212_v8, 0.0  ;;  %v3484_v23 = vpack.c.bf16 %v3400_v13, %v3398_v15  ;;  %v3216_v27 = vadd.f32 %v3215_v9, %v10750_v3  ;;  %v9257_v13 = vld [vmem:[#allocation16 + $0x54] ss:$8 sps:$4 sm:$0xff]  }
 0x401   : > { %v3217_v14 = vpop.f32.mrf.mxu0  ;;  %5216 = vmatprep.subr.bf16.mxu1 %v9257_v13 }
 0x402   : > { %v3485_v18 = vpack.c.bf16 %v3401_v12, %v3399_v11  ;;  %v3218_v24 = vadd.f32 %v3217_v14, %v10747_v62  ;;  %v3402_v36 = vmax.f32 %v3216_v27, 0.0  ;;  %v9255_v11 = vld [vmem:[#allocation16 + $0x50] ss:$8 sps:$4 sm:$0xff]  }
 0x403   : > { %v3219_v22 = vpop.f32.mrf.mxu0  ;;  %5217 = vmatpush1.bf16.msra.mxu1 %v9255_v11 }
 0x404   : > { %v3220_v25 = vadd.f32 %v3219_v22, %v10750_v3  ;;  %3952 = vmatprep.mubr.bf16.mxu1 %v3485_v18  ;;  %v3403_v32 = vmax.f32 %v3218_v24, 0.0  ;;  %v10884_v22 = vrot.slane %v3538_v10, %v10335_v16  ;;  %v10887_v24 = vrot.slane %v3538_v10, %v10337_v17  ;;  %v9260_v10 = vld [vmem:[#allocation14 + $0x74] ss:$8 sps:$4 sm:$0xff]  }
 0x405   : > { %v3221_v26 = vpop.f32.mrf.mxu0  ;;  %3953 = vmatmul.mubr.bf16.gmra.mxu1 %v3484_v23  ;;  %5645 = vmatprep.subr.bf16.mxu0 %v9260_v10 }
 0x406   : > { %v3222_v29 = vadd.f32 %v3221_v26, %v10747_v62  ;;  %v3404_v33 = vmax.f32 %v3220_v25, 0.0 }
 0x407   : > { %v3225_v31 = vpop.f32.mrf.mxu0 }
 0x408   : > { %v3405_v34 = vmax.f32 %v3222_v29, 0.0  ;;  %v3486_v39 = vpack.c.bf16 %v3404_v33, %v3402_v36  ;;  %v3226_v42 = vadd.f32 %v3225_v31, %v10750_v3 }
 0x409   : > { %v3227_v35 = vpop.f32.mrf.mxu0 }
 0x40a   : > { %v3487_v37 = vpack.c.bf16 %v3405_v34, %v3403_v32  ;;  %v3228_v40 = vadd.f32 %v3227_v35, %v10747_v62  ;;  %v3406_v51 = vmax.f32 %v3226_v42, 0.0 }
 0x40b   : > { %v3229_v38 = vpop.f32.mrf.mxu0 }
 0x40c   : > { %v3230_v41 = vadd.f32 %v3229_v38, %v10750_v3  ;;  %3962 = vmatprep.mubr.bf16.mxu1 %v3487_v37  ;;  %v3407_v47 = vmax.f32 %v3228_v40, 0.0 }
 0x40d   : > { %v3231_v21 = vpop.f32.mrf.mxu0  ;;  %3963 = vmatmul.mubr.bf16.gmra.mxu1 %v3486_v39 }
 0x40e   : > { %v3232_v43 = vadd.f32 %v3231_v21, %v10747_v62  ;;  %v3408_v48 = vmax.f32 %v3230_v41, 0.0 }
 0x40f   : > { %v3235_v44 = vpop.f32.mrf.mxu0 }
 0x410   : > { %v3409_v49 = vmax.f32 %v3232_v43, 0.0  ;;  %v3488_v53 = vpack.c.bf16 %v3408_v48, %v3406_v51  ;;  %v3236_v56 = vadd.f32 %v3235_v44, %v10750_v3 }
 0x411   : > { %v3237_v50 = vpop.f32.mrf.mxu0 }
 0x412   : > { %v3489_v20 = vpack.c.bf16 %v3409_v49, %v3407_v47  ;;  %v3238_v54 = vadd.f32 %v3237_v50, %v10747_v62  ;;  %v3410_v63 = vmax.f32 %v3236_v56, 0.0 }
 0x413   : > { %v3239_v52 = vpop.f32.mrf.mxu0 }
 0x414   : > { %v3240_v30 = vadd.f32 %v3239_v52, %v10750_v3  ;;  %3972 = vmatprep.mubr.bf16.mxu1 %v3489_v20  ;;  %v3411_v59 = vmax.f32 %v3238_v54, 0.0 }
 0x415   : > { %v3241_v55 = vpop.f32.mrf.mxu0  ;;  %3973 = vmatmul.mubr.bf16.gmra.mxu1 %v3488_v53 }
 0x416   : > { %v3242_v57 = vadd.f32 %v3241_v55, %v10747_v62  ;;  %v3412_v28 = vmax.f32 %v3240_v30, 0.0 }
 0x417   : > { %v3245_v58 = vpop.f32.mrf.mxu0 }
 0x418   : > { %v3413_v60 = vmax.f32 %v3242_v57, 0.0  ;;  %v3490_v4 = vpack.c.bf16 %v3412_v28, %v3410_v63  ;;  %v3246_v8 = vadd.f32 %v3245_v58, %v10750_v3 }
 0x419   : > { %v3247_v61 = vpop.f32.mrf.mxu0 }
 0x41a   : > { %v3491_v1 = vpack.c.bf16 %v3413_v60, %v3411_v59  ;;  %v3248_v5 = vadd.f32 %v3247_v61, %v10747_v62  ;;  %v3414_v25 = vmax.f32 %v3246_v8, 0.0 }
 0x41b   : > { %v3249_v2 = vpop.f32.mrf.mxu0 }
 0x41c   : > { %v3250_v6 = vadd.f32 %v3249_v2, %v10750_v3  ;;  %3982 = vmatprep.mubr.bf16.mxu1 %v3491_v1  ;;  %v3415_v12 = vmax.f32 %v3248_v5, 0.0 }
 0x41d   : > { %v3251_v7 = vpop.f32.mrf.mxu0  ;;  %v3744_v19 = vpop.f32.mrf.mxu1  ;;  %3983 = vmatmul.mubr.bf16.gmra.mxu1 %v3490_v4 }
 0x41e   : > { %v3252_v9 = vadd.f32 %v3251_v7, %v10747_v62  ;;  %v3416_v14 = vmax.f32 %v3250_v6, 0.0  ;;  %v3745_v36 = vadd.f32 %v3744_v19, %v10887_v24 }
 0x41f   : > { %v3255_v18 = vpop.f32.mrf.mxu0  ;;  %v3746_v23 = vpop.f32.mrf.mxu1 }
 0x420   : > { %v3417_v15 = vmax.f32 %v3252_v9, 0.0  ;;  %v3492_v32 = vpack.c.bf16 %v3416_v14, %v3414_v25  ;;  %v3747_v33 = vadd.f32 %v3746_v23, %v10884_v22  ;;  %v3256_v21 = vadd.f32 %v3255_v18, %v10750_v3  ;;  %v9258_v9 = vld [vmem:[#allocation14 + $0x70] ss:$8 sps:$4 sm:$0xff]   ;;  %v9263_v14 = vld [vmem:[#allocation16 + $0x44] ss:$8 sps:$4 sm:$0xff]  }
 0x421   : > { %v3257_v26 = vpop.f32.mrf.mxu0  ;;  %v3748_v27 = vpop.f32.mrf.mxu1  ;;  %v4063_v48 = vmax.f32 %v3745_v36, 0.0  ;;  %5218 = vmatprep.subr.bf16.mxu1 %v9263_v14 }
 0x422   : > { %v3493_v29 = vpack.c.bf16 %v3417_v15, %v3415_v12  ;;  %v3749_v31 = vadd.f32 %v3748_v27, %v10887_v24  ;;  %v3258_v39 = vadd.f32 %v3257_v26, %v10747_v62  ;;  %v4064_v45 = vmax.f32 %v3747_v33, 0.0  ;;  %v9261_v12 = vld [vmem:[#allocation16 + $0x40] ss:$8 sps:$4 sm:$0xff]  }
 0x423   : > { %v3259_v34 = vpop.f32.mrf.mxu0  ;;  %v3750_v35 = vpop.f32.mrf.mxu1  ;;  %v3418_v54 = vmax.f32 %v3256_v21, 0.0  ;;  %5219 = vmatpush1.bf16.msra.mxu1 %v9261_v12 }
 0x424   : > { %3992 = vmatprep.mubr.bf16.mxu1 %v3493_v29  ;;  %v3260_v37 = vadd.f32 %v3259_v34, %v10750_v3  ;;  %v3751_v38 = vadd.f32 %v3750_v35, %v10884_v22  ;;  %v4065_v42 = vmax.f32 %v3749_v31, 0.0  ;;  %v3419_v51 = vmax.f32 %v3258_v39, 0.0 }
 0x425   : > { %v3261_v40 = vpop.f32.mrf.mxu0  ;;  %v3754_v41 = vpop.f32.mrf.mxu1  ;;  %3993 = vmatmul.mubr.bf16.gmra.mxu1 %v3492_v32 }
 0x426   : > { %v4066_v43 = vmax.f32 %v3751_v38, 0.0  ;;  %v3262_v44 = vadd.f32 %v3261_v40, %v10747_v62  ;;  %v3420_v49 = vmax.f32 %v3260_v37, 0.0  ;;  %v4191_v30 = vpack.c.bf16 %v4065_v42, %v4063_v48 }
 0x427   : > { %v3265_v46 = vpop.f32.mrf.mxu0  ;;  %v3756_v47 = vpop.f32.mrf.mxu1  ;;  %v3755_v60 = vadd.f32 %v3754_v41, %v10887_v24 }
 0x428   : > { %v3421_v50 = vmax.f32 %v3262_v44, 0.0  ;;  %v4192_v53 = vpack.c.bf16 %v4066_v43, %v4064_v45  ;;  %v3757_v56 = vadd.f32 %v3756_v47, %v10884_v22  ;;  %v3494_v28 = vpack.c.bf16 %v3420_v49, %v3418_v54 }
 0x429   : > { %v3267_v20 = vpop.f32.mrf.mxu0  ;;  %v3758_v52 = vpop.f32.mrf.mxu1  ;;  %v3266_v5 = vadd.f32 %v3265_v46, %v10750_v3  ;;  %v4067_v15 = vmax.f32 %v3755_v60, 0.0 }
 0x42a   : > { %v3759_v55 = vadd.f32 %v3758_v52, %v10887_v24  ;;  %4491 = vmatprep.mubr.bf16.mxu0 %v4192_v53  ;;  %v3495_v59 = vpack.c.bf16 %v3421_v50, %v3419_v51  ;;  %v3268_v1 = vadd.f32 %v3267_v20, %v10747_v62  ;;  %v4068_v19 = vmax.f32 %v3757_v56, 0.0 }
 0x42b   : > { %v3269_v57 = vpop.f32.mrf.mxu0  ;;  %v3760_v58 = vpop.f32.mrf.mxu1  ;;  %4492 = vmatmul.mubr.bf16.vlgmr.msra.gmra.mxu0 %v4191_v30  ;;  %v3422_v31 = vmax.f32 %v3266_v5, 0.0 }
 0x42c   : > { %v3270_v61 = vadd.f32 %v3269_v57, %v10750_v3  ;;  %v3761_v63 = vadd.f32 %v3760_v58, %v10884_v22  ;;  %4002 = vmatprep.mubr.bf16.mxu1 %v3495_v59  ;;  %v4069_v6 = vmax.f32 %v3759_v55, 0.0  ;;  %v3423_v25 = vmax.f32 %v3268_v1, 0.0  ;;  %5646 = vmatpush1.bf16.msra.mxu0 %v9258_v9 }
 0x42d   : > { %v3271_v2 = vpop.f32.mrf.mxu0  ;;  %v3764_v4 = vpop.f32.mrf.mxu1  ;;  %4003 = vmatmul.mubr.bf16.gmra.mxu1 %v3494_v28 }
 0x42e   : > { %v4070_v7 = vmax.f32 %v3761_v63, 0.0  ;;  %v3272_v8 = vadd.f32 %v3271_v2, %v10747_v62  ;;  %v3424_v18 = vmax.f32 %v3270_v61, 0.0  ;;  %v4193_v32 = vpack.c.bf16 %v4069_v6, %v4067_v15 }
 0x42f   : > { %v3275_v11 = vpop.f32.mrf.mxu0  ;;  %v3766_v13 = vpop.f32.mrf.mxu1  ;;  %v3765_v39 = vadd.f32 %v3764_v4, %v10887_v24 }
 0x430   : > { %v3425_v23 = vmax.f32 %v3272_v8, 0.0  ;;  %v4194_v29 = vpack.c.bf16 %v4070_v7, %v4068_v19  ;;  %v3767_v34 = vadd.f32 %v3766_v13, %v10884_v22  ;;  %v3496_v38 = vpack.c.bf16 %v3424_v18, %v3422_v31  ;;  %v9266_v13 = vld [vmem:[#allocation16 + $0x34] ss:$8 sps:$4 sm:$0xff]  }
 0x431   : > { %v3277_v26 = vpop.f32.mrf.mxu0  ;;  %v3768_v27 = vpop.f32.mrf.mxu1  ;;  %v3276_v44 = vadd.f32 %v3275_v11, %v10750_v3  ;;  %v4071_v51 = vmax.f32 %v3765_v39, 0.0  ;;  %v9264_v11 = vld [vmem:[#allocation16 + $0x30] ss:$8 sps:$4 sm:$0xff]   ;;  %5220 = vmatprep.subr.bf16.mxu1 %v9266_v13 }
 0x432   : > { %v3769_v33 = vadd.f32 %v3768_v27, %v10887_v24  ;;  %4501 = vmatprep.mubr.bf16.mxu0 %v4194_v29  ;;  %v3497_v37 = vpack.c.bf16 %v3425_v23, %v3423_v25  ;;  %v3278_v21 = vadd.f32 %v3277_v26, %v10747_v62  ;;  %v4072_v48 = vmax.f32 %v3767_v34, 0.0  ;;  %5221 = vmatpush1.bf16.msra.mxu1 %v9264_v11 }
 0x433   : > { %v3279_v35 = vpop.f32.mrf.mxu0  ;;  %v3770_v36 = vpop.f32.mrf.mxu1  ;;  %4502 = vmatmul.mubr.bf16.gmra.mxu0 %v4193_v32  ;;  %v3426_v56 = vmax.f32 %v3276_v44, 0.0 }
 0x434   : > { %v3280_v40 = vadd.f32 %v3279_v35, %v10750_v3  ;;  %v3771_v41 = vadd.f32 %v3770_v36, %v10884_v22  ;;  %4012 = vmatprep.mubr.bf16.mxu1 %v3497_v37  ;;  %v4073_v45 = vmax.f32 %v3769_v33, 0.0  ;;  %v3427_v53 = vmax.f32 %v3278_v21, 0.0 }
 0x435   : > { %v3281_v42 = vpop.f32.mrf.mxu0  ;;  %v3774_v43 = vpop.f32.mrf.mxu1  ;;  %4013 = vmatmul.mubr.bf16.gmra.mxu1 %v3496_v38 }
 0x436   : > { %v4074_v46 = vmax.f32 %v3771_v41, 0.0  ;;  %v3282_v47 = vadd.f32 %v3281_v42, %v10747_v62  ;;  %v3428_v20 = vmax.f32 %v3280_v40, 0.0  ;;  %v4195_v57 = vpack.c.bf16 %v4073_v45, %v4071_v51 }
 0x437   : > { %v3285_v49 = vpop.f32.mrf.mxu0  ;;  %v3776_v50 = vpop.f32.mrf.mxu1  ;;  %v3775_v1 = vadd.f32 %v3774_v43, %v10887_v24 }
 0x438   : > { %v3429_v52 = vmax.f32 %v3282_v47, 0.0  ;;  %v4196_v55 = vpack.c.bf16 %v4074_v46, %v4072_v48  ;;  %v3777_v59 = vadd.f32 %v3776_v50, %v10884_v22  ;;  %v3498_v63 = vpack.c.bf16 %v3428_v20, %v3426_v56 }
 0x439   : > { %v3287_v54 = vpop.f32.mrf.mxu0  ;;  %v3778_v30 = vpop.f32.mrf.mxu1  ;;  %v3286_v8 = vadd.f32 %v3285_v49, %v10750_v3  ;;  %v4075_v18 = vmax.f32 %v3775_v1, 0.0 }
 0x43a   : > { %v3779_v58 = vadd.f32 %v3778_v30, %v10887_v24  ;;  %4511 = vmatprep.mubr.bf16.mxu0 %v4196_v55  ;;  %v3499_v61 = vpack.c.bf16 %v3429_v52, %v3427_v53  ;;  %v3288_v5 = vadd.f32 %v3287_v54, %v10747_v62  ;;  %v4076_v12 = vmax.f32 %v3777_v59, 0.0 }
 0x43b   : > { %v3289_v28 = vpop.f32.mrf.mxu0  ;;  %v3780_v60 = vpop.f32.mrf.mxu1  ;;  %4512 = vmatmul.mubr.bf16.gmra.mxu0 %v4195_v57  ;;  %v3430_v32 = vmax.f32 %v3286_v8, 0.0 }
 0x43c   : > { %v3290_v2 = vadd.f32 %v3289_v28, %v10750_v3  ;;  %v3781_v4 = vadd.f32 %v3780_v60, %v10884_v22  ;;  %4022 = vmatprep.mubr.bf16.mxu1 %v3499_v61  ;;  %v4077_v9 = vmax.f32 %v3779_v58, 0.0  ;;  %v3431_v26 = vmax.f32 %v3288_v5, 0.0 }
 0x43d   : > { %v3291_v6 = vpop.f32.mrf.mxu0  ;;  %v3784_v7 = vpop.f32.mrf.mxu1  ;;  %4023 = vmatmul.mubr.bf16.gmra.mxu1 %v3498_v63 }
 0x43e   : > { %v4078_v10 = vmax.f32 %v3781_v4, 0.0  ;;  %v3292_v19 = vadd.f32 %v3291_v6, %v10747_v62  ;;  %v3432_v23 = vmax.f32 %v3290_v2, 0.0  ;;  %v4197_v33 = vpack.c.bf16 %v4077_v9, %v4075_v18  ;;  %v9269_v18 = vld [vmem:[#allocation14 + $0x64] ss:$8 sps:$4 sm:$0xff]  }
 0x43f   : > { %v3295_v14 = vpop.f32.mrf.mxu0  ;;  %v3786_v15 = vpop.f32.mrf.mxu1  ;;  %v3785_v40 = vadd.f32 %v3784_v7, %v10887_v24  ;;  %v9272_v7 = vld [vmem:[#allocation16 + $0x24] ss:$8 sps:$4 sm:$0xff]   ;;  %5647 = vmatprep.subr.bf16.mxu0 %v9269_v18 }
 0x440   : > { %v3433_v25 = vmax.f32 %v3292_v19, 0.0  ;;  %v4198_v31 = vpack.c.bf16 %v4078_v10, %v4076_v12  ;;  %v3787_v35 = vadd.f32 %v3786_v15, %v10884_v22  ;;  %v3500_v39 = vpack.c.bf16 %v3432_v23, %v3430_v32  ;;  %v9270_v19 = vld [vmem:[#allocation16 + $0x20] ss:$8 sps:$4 sm:$0xff]   ;;  %5222 = vmatprep.subr.bf16.mxu1 %v9272_v7  ;;  %v9275_v32 = vld [vmem:[#allocation16 + $0x14] ss:$8 sps:$4 sm:$0xff]  }
 0x441   : > { %v3297_v27 = vpop.f32.mrf.mxu0  ;;  %v3788_v29 = vpop.f32.mrf.mxu1  ;;  %v3296_v45 = vadd.f32 %v3295_v14, %v10750_v3  ;;  %v4079_v20 = vmax.f32 %v3785_v40, 0.0  ;;  %v9267_v15 = vld [vmem:[#allocation14 + $0x60] ss:$8 sps:$4 sm:$0xff]   ;;  %5223 = vmatpush1.bf16.msra.mxu1 %v9270_v19 }
 0x442   : > { %v3789_v34 = vadd.f32 %v3788_v29, %v10887_v24  ;;  %4521 = vmatprep.mubr.bf16.mxu0 %v4198_v31  ;;  %v3501_v38 = vpack.c.bf16 %v3433_v25, %v3431_v26  ;;  %v3298_v42 = vadd.f32 %v3297_v27, %v10747_v62  ;;  %v4080_v49 = vmax.f32 %v3787_v35, 0.0  ;;  %5648 = vmatpush1.bf16.msra.mxu0 %v9267_v15 }
 0x443   : > { %v3299_v36 = vpop.f32.mrf.mxu0  ;;  %v3790_v37 = vpop.f32.mrf.mxu1  ;;  %4522 = vmatmul.mubr.bf16.gmra.mxu0 %v4197_v33  ;;  %v3434_v57 = vmax.f32 %v3296_v45, 0.0  ;;  %5224 = vmatprep.subr.bf16.mxu1 %v9275_v32 }
 0x444   : > { %v3300_v41 = vadd.f32 %v3299_v36, %v10750_v3  ;;  %v3791_v21 = vadd.f32 %v3790_v37, %v10884_v22  ;;  %4032 = vmatprep.mubr.bf16.mxu1 %v3501_v38  ;;  %v4081_v46 = vmax.f32 %v3789_v34, 0.0  ;;  %v3435_v54 = vmax.f32 %v3298_v42, 0.0 }
 0x445   : > { %v3301_v43 = vpop.f32.mrf.mxu0  ;;  %v3794_v44 = vpop.f32.mrf.mxu1  ;;  %4033 = vmatmul.mubr.bf16.gmra.mxu1 %v3500_v39 }
 0x446   : > { %v4082_v47 = vmax.f32 %v3791_v21, 0.0  ;;  %v3302_v48 = vadd.f32 %v3301_v43, %v10747_v62  ;;  %v3436_v52 = vmax.f32 %v3300_v41, 0.0  ;;  %v4199_v58 = vpack.c.bf16 %v4081_v46, %v4079_v20  ;;  %v9278_v21 = vld [vmem:[#allocation16 + $0x4] ss:$8 sps:$4 sm:$0xff]   ;;  %v9276_v43 = vld [vmem:[#allocation16] ss:$8 sps:$4 sm:$0xff]  }
 0x447   : > { %v3305_v50 = vpop.f32.mrf.mxu0  ;;  %v3796_v51 = vpop.f32.mrf.mxu1  ;;  %v3795_v60 = vadd.f32 %v3794_v44, %v10887_v24  ;;  %v9279_v20 = vld [vmem:[#allocation16 + $0xf0] ss:$8 sps:$4 sm:$0xff]  }
 0x448   : > { %v3437_v53 = vmax.f32 %v3302_v48, 0.0  ;;  %v4200_v56 = vpack.c.bf16 %v4082_v47, %v4080_v49  ;;  %v3797_v59 = vadd.f32 %v3796_v51, %v10884_v22  ;;  %v3502_v2 = vpack.c.bf16 %v3436_v52, %v3434_v57  ;;  %v9284_v57 = vld [vmem:[#allocation16 + $0xe4] ss:$8 sps:$4 sm:$0xff]  }
 0x449   : > { %v3307_v30 = vpop.f32.mrf.mxu0  ;;  %v3798_v55 = vpop.f32.mrf.mxu1  ;;  %v3306_v11 = vadd.f32 %v3305_v50, %v10750_v3  ;;  %v4083_v23 = vmax.f32 %v3795_v60, 0.0  ;;  %v9281_v50 = vld [vmem:[#allocation16 + $0xf4] ss:$8 sps:$4 sm:$0xff]  }
 0x44a   : > { %v3799_v28 = vadd.f32 %v3798_v55, %v10887_v24  ;;  %4531 = vmatprep.mubr.bf16.mxu0 %v4200_v56  ;;  %v3503_v1 = vpack.c.bf16 %v3437_v53, %v3435_v54  ;;  %v3308_v4 = vadd.f32 %v3307_v30, %v10747_v62  ;;  %v4084_v13 = vmax.f32 %v3797_v59, 0.0  ;;  %v9282_v59 = vld [vmem:[#allocation16 + $0xe0] ss:$8 sps:$4 sm:$0xff]  }
 0x44b   : > { %v3309_v61 = vpop.f32.mrf.mxu0  ;;  %v3800_v63 = vpop.f32.mrf.mxu1  ;;  %4532 = vmatmul.mubr.bf16.gmra.mxu0 %v4199_v58  ;;  %v3438_v35 = vmax.f32 %v3306_v11, 0.0 }
 0x44c   : > { %v3310_v5 = vadd.f32 %v3309_v61, %v10750_v3  ;;  %v3801_v6 = vadd.f32 %v3800_v63, %v10884_v22  ;;  %v4085_v8 = vmax.f32 %v3799_v28, 0.0  ;;  %4042 = vmatprep.mubr.bf16.mxu1 %v3503_v1  ;;  %v3439_v26 = vmax.f32 %v3308_v4, 0.0  ;;  %v9273_v3 = vld [vmem:[#allocation16 + $0x10] ss:$8 sps:$4 sm:$0xff]   ;;  %v9287_v4 = vld [vmem:[#allocation16 + $0xd4] ss:$8 sps:$4 sm:$0xff]  }
 0x44d   : > { %v3311_v9 = vpop.f32.mrf.mxu0  ;;  %v3804_v10 = vpop.f32.mrf.mxu1  ;;  %4043 = vmatmul.mubr.bf16.gmra.mxu1 %v3502_v2 }
 0x44e   : > { %v4086_v12 = vmax.f32 %v3801_v6, 0.0  ;;  %v3312_v14 = vadd.f32 %v3311_v9, %v10747_v62  ;;  %v3440_v27 = vmax.f32 %v3310_v5, 0.0  ;;  %v4201_v33 = vpack.c.bf16 %v4085_v8, %v4083_v23  ;;  %5225 = vmatpush1.bf16.msra.mxu1 %v9273_v3  ;;  %v9285_v6 = vld [vmem:[#allocation16 + $0xd0] ss:$8 sps:$4 sm:$0xff]  }
 0x44f   : > { %v3806_v25 = vpop.f32.mrf.mxu1  ;;  %v3805_v40 = vadd.f32 %v3804_v10, %v10887_v24  ;;  %5226 = vmatprep.subr.bf16.mxu1 %v9278_v21 }
 0x450   : > { %v3441_v29 = vmax.f32 %v3312_v14, 0.0  ;;  %v4202_v31 = vpack.c.bf16 %v4086_v12, %v4084_v13  ;;  %v3807_v62 = vadd.f32 %v3806_v25, %v10884_v22  ;;  %v3504_v39 = vpack.c.bf16 %v3440_v27, %v3438_v35  ;;  %v9290_v13 = vld [vmem:[#allocation16 + $0xc4] ss:$8 sps:$4 sm:$0xff]   ;;  %v9288_v14 = vld [vmem:[#allocation16 + $0xc0] ss:$8 sps:$4 sm:$0xff]  }
 0x451   : > { %v3808_v34 = vpop.f32.mrf.mxu1  ;;  %v4087_v48 = vmax.f32 %v3805_v40, 0.0  ;;  %v9297_v40 = vld [vmem:[#allocation16 + $0xa0] ss:$8 sps:$4 sm:$0xff]  }
 0x452   : > { %v3809_v36 = vadd.f32 %v3808_v34, %v10887_v24  ;;  %4541 = vmatprep.mubr.bf16.mxu0 %v4202_v31  ;;  %v3505_v37 = vpack.c.bf16 %v3441_v29, %v3439_v26  ;;  %v4088_v44 = vmax.f32 %v3807_v62, 0.0  ;;  %5227 = vmatpush1.bf16.msra.mxu1 %v9276_v43  ;;  %v9293_v29 = vld [vmem:[#allocation16 + $0xb4] ss:$8 sps:$4 sm:$0xff]  }
 0x453   : > { %v3810_v38 = vpop.f32.mrf.mxu1  ;;  %4542 = vmatmul.mubr.bf16.gmra.mxu0 %v4201_v33  ;;  %5228 = vmatprep.subr.bf16.mxu1 %v9281_v50  ;;  %v9291_v33 = vld [vmem:[#allocation16 + $0xb0] ss:$8 sps:$4 sm:$0xff]   ;;  %v9296_v43 = vld [vmem:[#allocation14 + $0x54] ss:$8 sps:$4 sm:$0xff]  }
 0x454   : > { %v3811_v41 = vadd.f32 %v3810_v38, %v10884_v22  ;;  %4052 = vmatprep.mubr.bf16.mxu1 %v3505_v37  ;;  %v4089_v45 = vmax.f32 %v3809_v36, 0.0  ;;  %v9299_v37 = vld [vmem:[#allocation16 + $0xa4] ss:$8 sps:$4 sm:$0xff]   ;;  %5649 = vmatprep.subr.bf16.mxu0 %v9296_v43 }
 0x455   : > { %v3814_v42 = vpop.f32.mrf.mxu1  ;;  %4053 = vmatmul.mubr.bf16.gmra.mxu1 %v3504_v39 }
 0x456   : > { %v4090_v46 = vmax.f32 %v3811_v41, 0.0  ;;  %v4203_v52 = vpack.c.bf16 %v4089_v45, %v4087_v48  ;;  %5229 = vmatpush2.bf16.msra.mxu1 %v9279_v20  ;;  %v3815_v55 = vadd.f32 %v3814_v42, %v10887_v24  ;;  %v9294_v42 = vld [vmem:[#allocation14 + $0x50] ss:$8 sps:$4 sm:$0xff]  }
 0x457   : > { %v3816_v47 = vpop.f32.mrf.mxu1  ;;  %5230 = vmatprep.subr.bf16.mxu1 %v9284_v57  ;;  %5650 = vmatpush1.bf16.msra.mxu0 %v9294_v42 }
 0x458   : > { %v4204_v49 = vpack.c.bf16 %v4090_v46, %v4088_v44  ;;  %v3817_v53 = vadd.f32 %v3816_v47, %v10884_v22  ;;  %v4091_v1 = vmax.f32 %v3815_v55, 0.0  ;;  %v9302_v47 = vld [vmem:[#allocation16 + $0x94] ss:$8 sps:$4 sm:$0xff]   ;;  %v9305_v55 = vld [vmem:[#allocation16 + $0x84] ss:$8 sps:$4 sm:$0xff]  }
 0x459   : > { %v3818_v51 = vpop.f32.mrf.mxu1 }
 0x45a   : > { %v3819_v54 = vadd.f32 %v3818_v51, %v10887_v24  ;;  %4551 = vmatprep.mubr.bf16.mxu0 %v4204_v49  ;;  %v4092_v28 = vmax.f32 %v3817_v53, 0.0  ;;  %5231 = vmatpush2.bf16.msra.mxu1 %v9282_v59  ;;  %v9300_v49 = vld [vmem:[#allocation16 + $0x90] ss:$8 sps:$4 sm:$0xff]   ;;  %v9303_v59 = vld [vmem:[#allocation16 + $0x80] ss:$8 sps:$4 sm:$0xff]  }
 0x45b   : > { %v3820_v30 = vpop.f32.mrf.mxu1  ;;  %4552 = vmatmul.mubr.bf16.gmra.mxu0 %v4203_v52  ;;  %5232 = vmatprep.subr.bf16.mxu1 %v9287_v4 }
 0x45c   : > { %v3821_v56 = vadd.f32 %v3820_v30, %v10884_v22  ;;  %v4093_v60 = vmax.f32 %v3819_v54, 0.0 }
 0x45d   : > { %v3824_v58 = vpop.f32.mrf.mxu1 }
 0x45e   : > { %v4094_v61 = vmax.f32 %v3821_v56, 0.0  ;;  %v4205_v7 = vpack.c.bf16 %v4093_v60, %v4091_v1  ;;  %5233 = vmatpush2.bf16.msra.mxu1 %v9285_v6  ;;  %v3825_v19 = vadd.f32 %v3824_v58, %v10887_v24 }
 0x45f   : > { %v3826_v63 = vpop.f32.mrf.mxu1  ;;  %5234 = vmatprep.subr.bf16.mxu1 %v9290_v13 }
 0x460   : > { %v4206_v2 = vpack.c.bf16 %v4094_v61, %v4092_v28  ;;  %v3827_v8 = vadd.f32 %v3826_v63, %v10884_v22  ;;  %v4095_v26 = vmax.f32 %v3825_v19, 0.0 }
 0x461   : > { %v3828_v5 = vpop.f32.mrf.mxu1 }
 0x462   : > { %v3829_v9 = vadd.f32 %v3828_v5, %v10887_v24  ;;  %4561 = vmatprep.mubr.bf16.mxu0 %v4206_v2  ;;  %v4096_v15 = vmax.f32 %v3827_v8, 0.0  ;;  %5235 = vmatpush2.bf16.msra.mxu1 %v9288_v14 }
 0x463   : > { %v3830_v10 = vpop.f32.mrf.mxu1  ;;  %4562 = vmatmul.mubr.bf16.gmra.mxu0 %v4205_v7  ;;  %5236 = vmatprep.subr.bf16.mxu1 %v9293_v29 }
 0x464   : > { %v3831_v11 = vadd.f32 %v3830_v10, %v10884_v22  ;;  %v4097_v18 = vmax.f32 %v3829_v9, 0.0 }
 0x465   : > { %v3834_v12 = vpop.f32.mrf.mxu1 }
 0x466   : > { %v4098_v23 = vmax.f32 %v3831_v11, 0.0  ;;  %v4207_v34 = vpack.c.bf16 %v4097_v18, %v4095_v26  ;;  %5237 = vmatpush2.bf16.msra.mxu1 %v9291_v33  ;;  %v3835_v62 = vadd.f32 %v3834_v12, %v10887_v24 }
 0x467   : > { %v3836_v25 = vpop.f32.mrf.mxu1  ;;  %5238 = vmatprep.subr.bf16.mxu1 %v9299_v37 }
 0x468   : > { %v4208_v27 = vpack.c.bf16 %v4098_v23, %v4096_v15  ;;  %v3837_v31 = vadd.f32 %v3836_v25, %v10884_v22  ;;  %v4099_v45 = vmax.f32 %v3835_v62, 0.0 }
 0x469   : > { %v3838_v32 = vpop.f32.mrf.mxu1 }
 0x46a   : > { %v3839_v3 = vadd.f32 %v3838_v32, %v10887_v24  ;;  %4571 = vmatprep.mubr.bf16.mxu0 %v4208_v27  ;;  %v4100_v38 = vmax.f32 %v3837_v31, 0.0  ;;  %5239 = vmatpush2.bf16.msra.mxu1 %v9297_v40 }
 0x46b   : > { %v3840_v35 = vpop.f32.mrf.mxu1  ;;  %4572 = vmatmul.mubr.bf16.gmra.mxu0 %v4207_v34  ;;  %5240 = vmatprep.subr.bf16.mxu1 %v9302_v47  ;;  %v9308_v47 = vld [vmem:[#allocation14 + $0x44] ss:$8 sps:$4 sm:$0xff]  }
 0x46c   : > { %v3841_v36 = vadd.f32 %v3840_v35, %v10884_v22  ;;  %v4101_v41 = vmax.f32 %v3839_v3, 0.0  ;;  %5651 = vmatprep.subr.bf16.mxu0 %v9308_v47 }
 0x46d   : > { %v3844_v39 = vpop.f32.mrf.mxu1 }
 0x46e   : > { %v4102_v21 = vmax.f32 %v3841_v36, 0.0  ;;  %v4209_v50 = vpack.c.bf16 %v4101_v41, %v4099_v45  ;;  %5241 = vmatpush2.bf16.msra.mxu1 %v9300_v49  ;;  %v3845_v53 = vadd.f32 %v3844_v39, %v10887_v24 }
 0x46f   : > { %v3846_v44 = vpop.f32.mrf.mxu1  ;;  %5242 = vmatprep.subr.bf16.mxu1 %v9305_v55 }
 0x470   : > { %v4210_v46 = vpack.c.bf16 %v4102_v21, %v4100_v38  ;;  %v3847_v51 = vadd.f32 %v3846_v44, %v10884_v22  ;;  %v4103_v60 = vmax.f32 %v3845_v53, 0.0 }
 0x471   : > { %v3848_v48 = vpop.f32.mrf.mxu1 }
 0x472   : > { %v3849_v20 = vadd.f32 %v3848_v48, %v10887_v24  ;;  %4581 = vmatprep.mubr.bf16.mxu0 %v4210_v46  ;;  %v4104_v56 = vmax.f32 %v3847_v51, 0.0  ;;  %5243 = vmatpush2.bf16.msra.mxu1 %v9303_v59  ;;  %v9306_v46 = vld [vmem:[#allocation14 + $0x40] ss:$8 sps:$4 sm:$0xff]  }
 0x473   : > { %v3850_v52 = vpop.f32.mrf.mxu1  ;;  %4582 = vmatmul.mubr.bf16.gmra.mxu0 %v4209_v50 }
 0x474   : > { %v3851_v54 = vadd.f32 %v3850_v52, %v10884_v22  ;;  %v4105_v57 = vmax.f32 %v3849_v20, 0.0  ;;  %5652 = vmatpush1.bf16.msra.mxu0 %v9306_v46 }
 0x475   : > { %v3854_v30 = vpop.f32.mrf.mxu1 }
 0x476   : > { %v4106_v58 = vmax.f32 %v3851_v54, 0.0  ;;  %v4211_v1 = vpack.c.bf16 %v4105_v57, %v4103_v60  ;;  %v3855_v6 = vadd.f32 %v3854_v30, %v10887_v24 }
 0x477   : > { %v3856_v28 = vpop.f32.mrf.mxu1 }
 0x478   : > { %v4212_v61 = vpack.c.bf16 %v4106_v58, %v4104_v56  ;;  %v3857_v2 = vadd.f32 %v3856_v28, %v10884_v22  ;;  %v4107_v13 = vmax.f32 %v3855_v6, 0.0 }
 0x479   : > { %v3858_v63 = vpop.f32.mrf.mxu1 }
 0x47a   : > { %v3859_v4 = vadd.f32 %v3858_v63, %v10887_v24  ;;  %4591 = vmatprep.mubr.bf16.mxu0 %v4212_v61  ;;  %v4108_v9 = vmax.f32 %v3857_v2, 0.0 }
 0x47b   : > { %v3860_v5 = vpop.f32.mrf.mxu1  ;;  %4592 = vmatmul.mubr.bf16.gmra.mxu0 %v4211_v1 }
 0x47c   : > { %v3861_v7 = vadd.f32 %v3860_v5, %v10884_v22  ;;  %v4109_v10 = vmax.f32 %v3859_v4, 0.0  ;;  %v9311_v5 = vld [vmem:[#allocation14 + $0x34] ss:$8 sps:$4 sm:$0xff]  }
 0x47d   : > { %v3864_v8 = vpop.f32.mrf.mxu1  ;;  %5653 = vmatprep.subr.bf16.mxu0 %v9311_v5 }
 0x47e   : > { %v4110_v19 = vmax.f32 %v3861_v7, 0.0  ;;  %v4213_v15 = vpack.c.bf16 %v4109_v10, %v4107_v13  ;;  %v3865_v26 = vadd.f32 %v3864_v8, %v10887_v24  ;;  %v9309_v8 = vld [vmem:[#allocation14 + $0x30] ss:$8 sps:$4 sm:$0xff]  }
 0x47f   : > { %v3866_v11 = vpop.f32.mrf.mxu1  ;;  %5654 = vmatpush1.bf16.msra.mxu0 %v9309_v8 }
 0x480   : > { %v4214_v12 = vpack.c.bf16 %v4110_v19, %v4108_v9  ;;  %v3867_v18 = vadd.f32 %v3866_v11, %v10884_v22  ;;  %v4111_v3 = vmax.f32 %v3865_v26, 0.0 }
 0x481   : > { %v3868_v14 = vpop.f32.mrf.mxu1 }
 0x482   : > { %v3869_v23 = vadd.f32 %v3868_v14, %v10887_v24  ;;  %4601 = vmatprep.mubr.bf16.mxu0 %v4214_v12  ;;  %v4112_v31 = vmax.f32 %v3867_v18, 0.0  ;;  %v9314_v12 = vld [vmem:[#allocation14 + $0x24] ss:$8 sps:$4 sm:$0xff]   ;;  %v9312_v18 = vld [vmem:[#allocation14 + $0x20] ss:$8 sps:$4 sm:$0xff]  }
 0x483   : > { %v3870_v25 = vpop.f32.mrf.mxu1  ;;  %4602 = vmatmul.mubr.bf16.gmra.mxu0 %v4213_v15  ;;  %5655 = vmatprep.subr.bf16.mxu0 %v9314_v12 }
 0x484   : > { %v3871_v27 = vadd.f32 %v3870_v25, %v10884_v22  ;;  %v4113_v32 = vmax.f32 %v3869_v23, 0.0  ;;  %5656 = vmatpush1.bf16.msra.mxu0 %v9312_v18 }
 0x485   : > { %v3874_v29 = vpop.f32.mrf.mxu1 }
 0x486   : > { %v4114_v33 = vmax.f32 %v3871_v27, 0.0  ;;  %v4215_v36 = vpack.c.bf16 %v4113_v32, %v4111_v3  ;;  %v3875_v40 = vadd.f32 %v3874_v29, %v10887_v24 }
 0x487   : > { %v3876_v34 = vpop.f32.mrf.mxu1 }
 0x488   : > { %v4216_v35 = vpack.c.bf16 %v4114_v33, %v4112_v31  ;;  %v3877_v37 = vadd.f32 %v3876_v34, %v10884_v22  ;;  %v4115_v48 = vmax.f32 %v3875_v40, 0.0  ;;  %v9317_v31 = vld [vmem:[#allocation14 + $0x14] ss:$8 sps:$4 sm:$0xff]   ;;  %v9315_v34 = vld [vmem:[#allocation14 + $0x10] ss:$8 sps:$4 sm:$0xff]  }
 0x489   : > { %v3878_v62 = vpop.f32.mrf.mxu1  ;;  %5657 = vmatprep.subr.bf16.mxu0 %v9317_v31 }
 0x48a   : > { %v3879_v38 = vadd.f32 %v3878_v62, %v10887_v24  ;;  %4611 = vmatprep.mubr.bf16.mxu0 %v4216_v35  ;;  %v4116_v42 = vmax.f32 %v3877_v37, 0.0  ;;  %5658 = vmatpush1.bf16.msra.mxu0 %v9315_v34 }
 0x48b   : > { %v3880_v39 = vpop.f32.mrf.mxu1  ;;  %4612 = vmatmul.mubr.bf16.gmra.mxu0 %v4215_v36 }
 0x48c   : > { %v3881_v41 = vadd.f32 %v3880_v39, %v10884_v22  ;;  %v4117_v43 = vmax.f32 %v3879_v38, 0.0  ;;  %v9320_v38 = vld [vmem:[#allocation14 + $0x4] ss:$8 sps:$4 sm:$0xff]  }
 0x48d   : > { %v3884_v21 = vpop.f32.mrf.mxu1  ;;  %5659 = vmatprep.subr.bf16.mxu0 %v9320_v38 }
 0x48e   : > { %v4118_v44 = vmax.f32 %v3881_v41, 0.0  ;;  %v4217_v51 = vpack.c.bf16 %v4117_v43, %v4115_v48  ;;  %v3885_v54 = vadd.f32 %v3884_v21, %v10887_v24  ;;  %v9318_v41 = vld [vmem:[#allocation14] ss:$8 sps:$4 sm:$0xff]  }
 0x48f   : > { %v3886_v45 = vpop.f32.mrf.mxu1  ;;  %5660 = vmatpush1.bf16.msra.mxu0 %v9318_v41 }
 0x490   : > { %v4218_v49 = vpack.c.bf16 %v4118_v44, %v4116_v42  ;;  %v3887_v20 = vadd.f32 %v3886_v45, %v10884_v22  ;;  %v4119_v28 = vmax.f32 %v3885_v54, 0.0 }
 0x491   : > { %v3888_v50 = vpop.f32.mrf.mxu1 }
 0x492   : > { %v3889_v52 = vadd.f32 %v3888_v50, %v10887_v24  ;;  %4621 = vmatprep.mubr.bf16.mxu0 %v4218_v49  ;;  %v4120_v56 = vmax.f32 %v3887_v20, 0.0 }
 0x493   : > { %v3890_v53 = vpop.f32.mrf.mxu1  ;;  %4622 = vmatmul.mubr.bf16.gmra.mxu0 %v4217_v51 }
 0x494   : > { %v3891_v30 = vadd.f32 %v3890_v53, %v10884_v22  ;;  %v4121_v57 = vmax.f32 %v3889_v52, 0.0 }
 0x495   : > { %v3894_v55 = vpop.f32.mrf.mxu1 }
 0x496   : > { %v4122_v58 = vmax.f32 %v3891_v30, 0.0  ;;  %v4219_v63 = vpack.c.bf16 %v4121_v57, %v4119_v28  ;;  %v3895_v6 = vadd.f32 %v3894_v55, %v10887_v24 }
 0x497   : > { %v3896_v59 = vpop.f32.mrf.mxu1 }
 0x498   : > { %v4220_v60 = vpack.c.bf16 %v4122_v58, %v4120_v56  ;;  %v3897_v1 = vadd.f32 %v3896_v59, %v10884_v22  ;;  %v4123_v14 = vmax.f32 %v3895_v6, 0.0 }
 0x499   : > { %v3898_v61 = vpop.f32.mrf.mxu1 }
 0x49a   : > { %v3899_v2 = vadd.f32 %v3898_v61, %v10887_v24  ;;  %4631 = vmatprep.mubr.bf16.mxu0 %v4220_v60  ;;  %v4124_v10 = vmax.f32 %v3897_v1, 0.0 }
 0x49b   : > { %v3900_v4 = vpop.f32.mrf.mxu1  ;;  %4632 = vmatmul.mubr.bf16.gmra.mxu0 %v4219_v63 }
 0x49c   : > { %v3901_v7 = vadd.f32 %v3900_v4, %v10884_v22  ;;  %v4125_v19 = vmax.f32 %v3899_v2, 0.0 }
 0x49d   : > { %v3904_v9 = vpop.f32.mrf.mxu1 }
 0x49e   : > { %v4126_v11 = vmax.f32 %v3901_v7, 0.0  ;;  %v4221_v25 = vpack.c.bf16 %v4125_v19, %v4123_v14  ;;  %v3905_v32 = vadd.f32 %v3904_v9, %v10887_v24 }
 0x49f   : > { %v3906_v13 = vpop.f32.mrf.mxu1 }
 0x4a0   : > { %v4222_v15 = vpack.c.bf16 %v4126_v11, %v4124_v10  ;;  %v3907_v26 = vadd.f32 %v3906_v13, %v10884_v22  ;;  %v4127_v39 = vmax.f32 %v3905_v32, 0.0 }
 0x4a1   : > { %v3908_v23 = vpop.f32.mrf.mxu1 }
 0x4a2   : > { %v3909_v27 = vadd.f32 %v3908_v23, %v10887_v24  ;;  %4641 = vmatprep.mubr.bf16.mxu0 %v4222_v15  ;;  %v4128_v35 = vmax.f32 %v3907_v26, 0.0 }
 0x4a3   : > { %v3910_v29 = vpop.f32.mrf.mxu1  ;;  %4642 = vmatmul.mubr.bf16.gmra.mxu0 %v4221_v25 }
 0x4a4   : > { %v3911_v33 = vadd.f32 %v3910_v29, %v10884_v22  ;;  %v4129_v62 = vmax.f32 %v3909_v27, 0.0 }
 0x4a5   : > { %v3914_v3 = vpop.f32.mrf.mxu1 }
 0x4a6   : > { %v4130_v36 = vmax.f32 %v3911_v33, 0.0  ;;  %v4223_v42 = vpack.c.bf16 %v4129_v62, %v4127_v39  ;;  %v3915_v46 = vadd.f32 %v3914_v3, %v10887_v24 }
 0x4a7   : > { %v3916_v37 = vpop.f32.mrf.mxu1 }
 0x4a8   : > { %v4224_v40 = vpack.c.bf16 %v4130_v36, %v4128_v35  ;;  %v3917_v43 = vadd.f32 %v3916_v37, %v10884_v22  ;;  %v4131_v52 = vmax.f32 %v3915_v46, 0.0 }
 0x4a9   : > { %v3918_v21 = vpop.f32.mrf.mxu1 }
 0x4aa   : > { %v3919_v44 = vadd.f32 %v3918_v21, %v10887_v24  ;;  %4651 = vmatprep.mubr.bf16.mxu0 %v4224_v40  ;;  %v4132_v49 = vmax.f32 %v3917_v43, 0.0 }
 0x4ab   : > { %v3920_v45 = vpop.f32.mrf.mxu1  ;;  %4652 = vmatmul.mubr.bf16.gmra.mxu0 %v4223_v42 }
 0x4ac   : > { %v3921_v47 = vadd.f32 %v3920_v45, %v10884_v22  ;;  %v4133_v50 = vmax.f32 %v3919_v44, 0.0 }
 0x4ad   : > { %v3924_v48 = vpop.f32.mrf.mxu1 }
 0x4ae   : > { %v4134_v51 = vmax.f32 %v3921_v47, 0.0  ;;  %v4225_v30 = vpack.c.bf16 %v4133_v50, %v4131_v52  ;;  %v3925_v58 = vadd.f32 %v3924_v48, %v10887_v24 }
 0x4af   : > { %v3926_v20 = vpop.f32.mrf.mxu1 }
 0x4b0   : > { %v4226_v53 = vpack.c.bf16 %v4134_v51, %v4132_v49  ;;  %v3927_v55 = vadd.f32 %v3926_v20, %v10884_v22  ;;  %v4135_v2 = vmax.f32 %v3925_v58, 0.0 }
 0x4b1   : > { %v3928_v54 = vpop.f32.mrf.mxu1 }
 0x4b2   : > { %v3929_v56 = vadd.f32 %v3928_v54, %v10887_v24  ;;  %4661 = vmatprep.mubr.bf16.mxu0 %v4226_v53  ;;  %v4136_v60 = vmax.f32 %v3927_v55, 0.0 }
 0x4b3   : > { %v3930_v57 = vpop.f32.mrf.mxu1  ;;  %4662 = vmatmul.mubr.bf16.gmra.mxu0 %v4225_v30 }
 0x4b4   : > { %v3931_v59 = vadd.f32 %v3930_v57, %v10884_v22  ;;  %v4137_v61 = vmax.f32 %v3929_v56, 0.0 }
 0x4b5   : > { %v3934_v28 = vpop.f32.mrf.mxu1 }
 0x4b6   : > { %v4138_v63 = vmax.f32 %v3931_v59, 0.0  ;;  %v4227_v6 = vpack.c.bf16 %v4137_v61, %v4135_v2  ;;  %v3935_v10 = vadd.f32 %v3934_v28, %v10887_v24 }
 0x4b7   : > { %v3936_v1 = vpop.f32.mrf.mxu1 }
 0x4b8   : > { %v4228_v4 = vpack.c.bf16 %v4138_v63, %v4136_v60  ;;  %v3937_v7 = vadd.f32 %v3936_v1, %v10884_v22  ;;  %v4139_v18 = vmax.f32 %v3935_v10, 0.0 }
 0x4b9   : > { %v3938_v5 = vpop.f32.mrf.mxu1 }
 0x4ba   : > { %v3939_v8 = vadd.f32 %v3938_v5, %v10887_v24  ;;  %4671 = vmatprep.mubr.bf16.mxu0 %v4228_v4  ;;  %v4140_v13 = vmax.f32 %v3937_v7, 0.0 }
 0x4bb   : > { %v3940_v9 = vpop.f32.mrf.mxu1  ;;  %4672 = vmatmul.mubr.bf16.gmra.mxu0 %v4227_v6 }
 0x4bc   : > { %v3941_v19 = vadd.f32 %v3940_v9, %v10884_v22  ;;  %v4141_v12 = vmax.f32 %v3939_v8, 0.0 }
 0x4bd   : > { %v3944_v11 = vpop.f32.mrf.mxu1 }
 0x4be   : > { %v4142_v14 = vmax.f32 %v3941_v19, 0.0  ;;  %v4229_v26 = vpack.c.bf16 %v4141_v12, %v4139_v18  ;;  %v3945_v32 = vadd.f32 %v3944_v11, %v10887_v24 }
 0x4bf   : > { %v3946_v15 = vpop.f32.mrf.mxu1 }
 0x4c0   : > { %v4230_v23 = vpack.c.bf16 %v4142_v14, %v4140_v13  ;;  %v3947_v27 = vadd.f32 %v3946_v15, %v10884_v22  ;;  %v4143_v37 = vmax.f32 %v3945_v32, 0.0 }
 0x4c1   : > { %v3948_v25 = vpop.f32.mrf.mxu1 }
 0x4c2   : > { %v3949_v29 = vadd.f32 %v3948_v25, %v10887_v24  ;;  %4681 = vmatprep.mubr.bf16.mxu0 %v4230_v23  ;;  %v4144_v3 = vmax.f32 %v3947_v27, 0.0 }
 0x4c3   : > { %v3950_v31 = vpop.f32.mrf.mxu1  ;;  %4682 = vmatmul.mubr.bf16.gmra.mxu0 %v4229_v26 }
 0x4c4   : > { %v3951_v33 = vadd.f32 %v3950_v31, %v10884_v22  ;;  %v4145_v35 = vmax.f32 %v3949_v29, 0.0 }
 0x4c5   : > { %v3954_v34 = vpop.f32.mrf.mxu1 }
 0x4c6   : > { %v4146_v62 = vmax.f32 %v3951_v33, 0.0  ;;  %v4231_v40 = vpack.c.bf16 %v4145_v35, %v4143_v37  ;;  %v3955_v43 = vadd.f32 %v3954_v34, %v10887_v24 }
 0x4c7   : > { %v3956_v36 = vpop.f32.mrf.mxu1 }
 0x4c8   : > { %v4232_v38 = vpack.c.bf16 %v4146_v62, %v4144_v3  ;;  %v3957_v41 = vadd.f32 %v3956_v36, %v10884_v22  ;;  %v4147_v50 = vmax.f32 %v3955_v43, 0.0 }
 0x4c9   : > { %v3958_v39 = vpop.f32.mrf.mxu1 }
 0x4ca   : > { %v3959_v21 = vadd.f32 %v3958_v39, %v10887_v24  ;;  %4691 = vmatprep.mubr.bf16.mxu0 %v4232_v38  ;;  %v4148_v46 = vmax.f32 %v3957_v41, 0.0 }
 0x4cb   : > { %v3960_v42 = vpop.f32.mrf.mxu1  ;;  %4692 = vmatmul.mubr.bf16.gmra.mxu0 %v4231_v40 }
 0x4cc   : > { %v3961_v44 = vadd.f32 %v3960_v42, %v10884_v22  ;;  %v4149_v47 = vmax.f32 %v3959_v21, 0.0  ;;  %v4287_v42 = vld [vmem:[%s12552_s0] sm:$0x3] }
 0x4cd   : > { %v3964_v45 = vpop.f32.mrf.mxu1 }
 0x4ce   : > { %v4150_v48 = vmax.f32 %v3961_v44, 0.0  ;;  %v4233_v52 = vpack.c.bf16 %v4149_v47, %v4147_v50  ;;  %v3965_v55 = vadd.f32 %v3964_v45, %v10887_v24  ;;  %v11024_v50 = vrot.slane %v4287_v42, %v10337_v17 }
 0x4cf   : > { %v3966_v49 = vpop.f32.mrf.mxu1 }
 0x4d0   : > { %v4234_v51 = vpack.c.bf16 %v4150_v48, %v4148_v46  ;;  %v3967_v53 = vadd.f32 %v3966_v49, %v10884_v22  ;;  %v4151_v61 = vmax.f32 %v3965_v55, 0.0  ;;  %v11021_v48 = vrot.slane %v4287_v42, %v10335_v16 }
 0x4d1   : > { %v3968_v20 = vpop.f32.mrf.mxu1 }
 0x4d2   : > { %v3969_v54 = vadd.f32 %v3968_v20, %v10887_v24  ;;  %4701 = vmatprep.mubr.bf16.mxu0 %v4234_v51  ;;  %v4152_v58 = vmax.f32 %v3967_v53, 0.0 }
 0x4d3   : > { %v3970_v30 = vpop.f32.mrf.mxu1  ;;  %4702 = vmatmul.mubr.bf16.gmra.mxu0 %v4233_v52 }
 0x4d4   : > { %v3971_v56 = vadd.f32 %v3970_v30, %v10884_v22  ;;  %v4153_v59 = vmax.f32 %v3969_v54, 0.0 }
 0x4d5   : > { %v3974_v57 = vpop.f32.mrf.mxu1 }
 0x4d6   : > { %v4154_v28 = vmax.f32 %v3971_v56, 0.0  ;;  %v4235_v2 = vpack.c.bf16 %v4153_v59, %v4151_v61  ;;  %v3975_v7 = vadd.f32 %v3974_v57, %v10887_v24 }
 0x4d7   : > { %v3976_v60 = vpop.f32.mrf.mxu1 }
 0x4d8   : > { %v4236_v63 = vpack.c.bf16 %v4154_v28, %v4152_v58  ;;  %v3977_v4 = vadd.f32 %v3976_v60, %v10884_v22  ;;  %v4155_v12 = vmax.f32 %v3975_v7, 0.0 }
 0x4d9   : > { %v3978_v1 = vpop.f32.mrf.mxu1 }
 0x4da   : > { %v3979_v5 = vadd.f32 %v3978_v1, %v10887_v24  ;;  %4711 = vmatprep.mubr.bf16.mxu0 %v4236_v63  ;;  %v4156_v10 = vmax.f32 %v3977_v4, 0.0 }
 0x4db   : > { %v3980_v6 = vpop.f32.mrf.mxu1  ;;  %4712 = vmatmul.mubr.bf16.gmra.mxu0 %v4235_v2 }
 0x4dc   : > { %v3981_v8 = vadd.f32 %v3980_v6, %v10884_v22  ;;  %v4157_v19 = vmax.f32 %v3979_v5, 0.0 }
 0x4dd   : > { %v3984_v9 = vpop.f32.mrf.mxu1 }
 0x4de   : > { %v4158_v11 = vmax.f32 %v3981_v8, 0.0  ;;  %v4237_v18 = vpack.c.bf16 %v4157_v19, %v4155_v12  ;;  %v3985_v27 = vadd.f32 %v3984_v9, %v10887_v24 }
 0x4df   : > { %v3986_v13 = vpop.f32.mrf.mxu1 }
 0x4e0   : > { %v4238_v14 = vpack.c.bf16 %v4158_v11, %v4156_v10  ;;  %v3987_v23 = vadd.f32 %v3986_v13, %v10884_v22  ;;  %v4159_v35 = vmax.f32 %v3985_v27, 0.0 }
 0x4e1   : > { %v3988_v15 = vpop.f32.mrf.mxu1 }
 0x4e2   : > { %v3989_v25 = vadd.f32 %v3988_v15, %v10887_v24  ;;  %4721 = vmatprep.mubr.bf16.mxu0 %v4238_v14  ;;  %v4160_v32 = vmax.f32 %v3987_v23, 0.0 }
 0x4e3   : > { %v3990_v26 = vpop.f32.mrf.mxu1  ;;  %4722 = vmatmul.mubr.bf16.gmra.mxu0 %v4237_v18 }
 0x4e4   : > { %v3991_v29 = vadd.f32 %v3990_v26, %v10884_v22  ;;  %v4161_v33 = vmax.f32 %v3989_v25, 0.0 }
 0x4e5   : > { %v3994_v31 = vpop.f32.mrf.mxu1 }
 0x4e6   : > { %v4162_v34 = vmax.f32 %v3991_v29, 0.0  ;;  %v4239_v37 = vpack.c.bf16 %v4161_v33, %v4159_v35  ;;  %v3995_v41 = vadd.f32 %v3994_v31, %v10887_v24 }
 0x4e7   : > { %v3996_v3 = vpop.f32.mrf.mxu1 }
 0x4e8   : > { %v4240_v62 = vpack.c.bf16 %v4162_v34, %v4160_v32  ;;  %v3997_v38 = vadd.f32 %v3996_v3, %v10884_v22  ;;  %v4163_v51 = vmax.f32 %v3995_v41, 0.0 }
 0x4e9   : > { %v3998_v36 = vpop.f32.mrf.mxu1 }
 0x4ea   : > { %v3999_v39 = vadd.f32 %v3998_v36, %v10887_v24  ;;  %4731 = vmatprep.mubr.bf16.mxu0 %v4240_v62  ;;  %v4164_v44 = vmax.f32 %v3997_v38, 0.0 }
 0x4eb   : > { %v4000_v40 = vpop.f32.mrf.mxu1  ;;  %v4493_v43 = vpop.f32.mrf.mxu0  ;;  %4732 = vmatmul.mubr.bf16.gmra.mxu0 %v4239_v37 }
 0x4ec   : > { %v4001_v21 = vadd.f32 %v4000_v40, %v10884_v22  ;;  %v4165_v45 = vmax.f32 %v3999_v39, 0.0  ;;  %v4494_v58 = vadd.f32 %v4493_v43, %v11024_v50 }
 0x4ed   : > { %v4004_v47 = vpop.f32.mrf.mxu1  ;;  %v4495_v49 = vpop.f32.mrf.mxu0 }
 0x4ee   : > { %v4166_v46 = vmax.f32 %v4001_v21, 0.0  ;;  %v4241_v30 = vpack.c.bf16 %v4165_v45, %v4163_v51  ;;  %v4496_v55 = vadd.f32 %v4495_v49, %v11021_v48  ;;  %v4005_v1 = vadd.f32 %v4004_v47, %v10887_v24  ;;  %v9321_v45 = vld [vmem:[#allocation17 + $0x70] ss:$8 sps:$4 sm:$0xff]  }
 0x4ef   : > { %v4006_v20 = vpop.f32.mrf.mxu1  ;;  %v4497_v52 = vpop.f32.mrf.mxu0  ;;  %v4812_v9 = vmax.f32 %v4494_v58, 0.0 }
 0x4f0   : > { %v4242_v53 = vpack.c.bf16 %v4166_v46, %v4164_v44  ;;  %v4498_v54 = vadd.f32 %v4497_v52, %v11024_v50  ;;  %v4007_v60 = vadd.f32 %v4006_v20, %v10884_v22  ;;  %v4813_v6 = vmax.f32 %v4496_v55, 0.0  ;;  %v9323_v46 = vld [vmem:[#allocation17 + $0x74] ss:$8 sps:$4 sm:$0xff]  }
 0x4f1   : > { %v4008_v56 = vpop.f32.mrf.mxu1  ;;  %v4499_v57 = vpop.f32.mrf.mxu0  ;;  %v4167_v15 = vmax.f32 %v4005_v1, 0.0  ;;  %6674 = vmatprep.subr.bf16.mxu1 %v9323_v46  ;;  %v9324_v46 = vld [vmem:[#allocation17 + $0x60] ss:$8 sps:$4 sm:$0xff]  }
 0x4f2   : > { %4741 = vmatprep.mubr.bf16.mxu0 %v4242_v53  ;;  %v4009_v59 = vadd.f32 %v4008_v56, %v10887_v24  ;;  %v4500_v28 = vadd.f32 %v4499_v57, %v11021_v48  ;;  %v4814_v2 = vmax.f32 %v4498_v54, 0.0  ;;  %v4168_v11 = vmax.f32 %v4007_v60, 0.0 }
 0x4f3   : > { %v4010_v61 = vpop.f32.mrf.mxu1  ;;  %v4503_v63 = vpop.f32.mrf.mxu0  ;;  %4742 = vmatmul.mubr.bf16.gmra.mxu0 %v4241_v30 }
 0x4f4   : > { %v4815_v4 = vmax.f32 %v4500_v28, 0.0  ;;  %v4011_v5 = vadd.f32 %v4010_v61, %v10884_v22  ;;  %v4169_v10 = vmax.f32 %v4009_v59, 0.0  ;;  %v4940_v18 = vpack.c.bf16 %v4814_v2, %v4812_v9 }
 0x4f5   : > { %v4014_v7 = vpop.f32.mrf.mxu1  ;;  %v4505_v8 = vpop.f32.mrf.mxu0  ;;  %v4504_v25 = vadd.f32 %v4503_v63, %v11024_v50 }
 0x4f6   : > { %v4170_v19 = vmax.f32 %v4011_v5, 0.0  ;;  %v4941_v14 = vpack.c.bf16 %v4815_v4, %v4813_v6  ;;  %v4506_v26 = vadd.f32 %v4505_v8, %v11021_v48  ;;  %v4243_v32 = vpack.c.bf16 %v4169_v10, %v4167_v15 }
 0x4f7   : > { %v4016_v13 = vpop.f32.mrf.mxu1  ;;  %v4507_v12 = vpop.f32.mrf.mxu0  ;;  %v4015_v36 = vadd.f32 %v4014_v7, %v10887_v24  ;;  %v4816_v40 = vmax.f32 %v4504_v25, 0.0 }
 0x4f8   : > { %v4508_v23 = vadd.f32 %v4507_v12, %v11024_v50  ;;  %5244 = vmatprep.mubr.bf16.mxu1 %v4941_v14  ;;  %v4244_v31 = vpack.c.bf16 %v4170_v19, %v4168_v11  ;;  %v4017_v3 = vadd.f32 %v4016_v13, %v10884_v22  ;;  %v4817_v41 = vmax.f32 %v4506_v26, 0.0 }
 0x4f9   : > { %v4018_v27 = vpop.f32.mrf.mxu1  ;;  %v4509_v29 = vpop.f32.mrf.mxu0  ;;  %5245 = vmatmul.mubr.bf16.vlgmr.msra.gmra.mxu1 %v4940_v18  ;;  %v4171_v52 = vmax.f32 %v4015_v36, 0.0 }
 0x4fa   : > { %v4019_v33 = vadd.f32 %v4018_v27, %v10887_v24  ;;  %v4510_v34 = vadd.f32 %v4509_v29, %v11021_v48  ;;  %4751 = vmatprep.mubr.bf16.mxu0 %v4244_v31  ;;  %v4818_v37 = vmax.f32 %v4508_v23, 0.0  ;;  %v4172_v47 = vmax.f32 %v4017_v3, 0.0  ;;  %6675 = vmatpush1.bf16.msra.mxu1 %v9321_v45 }
 0x4fb   : > { %v4020_v35 = vpop.f32.mrf.mxu1  ;;  %v4513_v62 = vpop.f32.mrf.mxu0  ;;  %4752 = vmatmul.mubr.bf16.gmra.mxu0 %v4243_v32 }
 0x4fc   : > { %v4819_v38 = vmax.f32 %v4510_v34, 0.0  ;;  %v4021_v39 = vadd.f32 %v4020_v35, %v10884_v22  ;;  %v4173_v43 = vmax.f32 %v4019_v33, 0.0  ;;  %v4942_v53 = vpack.c.bf16 %v4818_v37, %v4816_v40 }
 0x4fd   : > { %v4024_v21 = vpop.f32.mrf.mxu1  ;;  %v4515_v42 = vpop.f32.mrf.mxu0  ;;  %v4514_v59 = vadd.f32 %v4513_v62, %v11024_v50 }
 0x4fe   : > { %v4174_v44 = vmax.f32 %v4021_v39, 0.0  ;;  %v4943_v20 = vpack.c.bf16 %v4819_v38, %v4817_v41  ;;  %v4516_v30 = vadd.f32 %v4515_v42, %v11021_v48  ;;  %v4245_v58 = vpack.c.bf16 %v4173_v43, %v4171_v52 }
 0x4ff   : > { %v4026_v49 = vpop.f32.mrf.mxu1  ;;  %v4517_v51 = vpop.f32.mrf.mxu0  ;;  %v4025_v2 = vadd.f32 %v4024_v21, %v10887_v24  ;;  %v4820_v10 = vmax.f32 %v4514_v59, 0.0 }
 0x500   : > { %v4518_v54 = vadd.f32 %v4517_v51, %v11024_v50  ;;  %5254 = vmatprep.mubr.bf16.mxu1 %v4943_v20  ;;  %v4246_v57 = vpack.c.bf16 %v4174_v44, %v4172_v47  ;;  %v4027_v61 = vadd.f32 %v4026_v49, %v10884_v22  ;;  %v4821_v7 = vmax.f32 %v4516_v30, 0.0  ;;  %v9326_v47 = vld [vmem:[#allocation17 + $0x64] ss:$8 sps:$4 sm:$0xff]  }
 0x501   : > { %v4028_v55 = vpop.f32.mrf.mxu1  ;;  %v4519_v56 = vpop.f32.mrf.mxu0  ;;  %5255 = vmatmul.mubr.bf16.gmra.mxu1 %v4942_v53  ;;  %v4175_v18 = vmax.f32 %v4025_v2, 0.0  ;;  %6676 = vmatprep.subr.bf16.mxu1 %v9326_v47 }
 0x502   : > { %v4029_v28 = vadd.f32 %v4028_v55, %v10887_v24  ;;  %v4520_v60 = vadd.f32 %v4519_v56, %v11021_v48  ;;  %4761 = vmatprep.mubr.bf16.mxu0 %v4246_v57  ;;  %v4822_v4 = vmax.f32 %v4518_v54, 0.0  ;;  %v4176_v13 = vmax.f32 %v4027_v61, 0.0  ;;  %6677 = vmatpush1.bf16.msra.mxu1 %v9324_v46 }
 0x503   : > { %v4030_v63 = vpop.f32.mrf.mxu1  ;;  %v4523_v1 = vpop.f32.mrf.mxu0  ;;  %4762 = vmatmul.mubr.bf16.gmra.mxu0 %v4245_v58 }
 0x504   : > { %v4823_v5 = vmax.f32 %v4520_v60, 0.0  ;;  %v4031_v6 = vadd.f32 %v4030_v63, %v10884_v22  ;;  %v4177_v19 = vmax.f32 %v4029_v28, 0.0  ;;  %v4944_v23 = vpack.c.bf16 %v4822_v4, %v4820_v10 }
 0x505   : > { %v4034_v8 = vpop.f32.mrf.mxu1  ;;  %v4525_v9 = vpop.f32.mrf.mxu0  ;;  %v4524_v26 = vadd.f32 %v4523_v1, %v11024_v50 }
 0x506   : > { %v4178_v11 = vmax.f32 %v4031_v6, 0.0  ;;  %v4945_v15 = vpack.c.bf16 %v4823_v5, %v4821_v7  ;;  %v4526_v27 = vadd.f32 %v4525_v9, %v11021_v48  ;;  %v4247_v33 = vpack.c.bf16 %v4177_v19, %v4175_v18 }
 0x507   : > { %v4036_v12 = vpop.f32.mrf.mxu1  ;;  %v4527_v14 = vpop.f32.mrf.mxu0  ;;  %v4035_v37 = vadd.f32 %v4034_v8, %v10887_v24  ;;  %v4824_v41 = vmax.f32 %v4524_v26, 0.0 }
 0x508   : > { %v4528_v25 = vadd.f32 %v4527_v14, %v11024_v50  ;;  %5264 = vmatprep.mubr.bf16.mxu1 %v4945_v15  ;;  %v4248_v32 = vpack.c.bf16 %v4178_v11, %v4176_v13  ;;  %v4037_v35 = vadd.f32 %v4036_v12, %v10884_v22  ;;  %v4825_v21 = vmax.f32 %v4526_v27, 0.0 }
 0x509   : > { %v4038_v29 = vpop.f32.mrf.mxu1  ;;  %v4529_v31 = vpop.f32.mrf.mxu0  ;;  %5265 = vmatmul.mubr.bf16.gmra.mxu1 %v4944_v23  ;;  %v4179_v53 = vmax.f32 %v4035_v37, 0.0 }
 0x50a   : > { %v4039_v34 = vadd.f32 %v4038_v29, %v10887_v24  ;;  %v4530_v3 = vadd.f32 %v4529_v31, %v11021_v48  ;;  %4771 = vmatprep.mubr.bf16.mxu0 %v4248_v32  ;;  %v4826_v38 = vmax.f32 %v4528_v25, 0.0  ;;  %v4180_v49 = vmax.f32 %v4037_v35, 0.0 }
 0x50b   : > { %v4040_v62 = vpop.f32.mrf.mxu1  ;;  %v4533_v36 = vpop.f32.mrf.mxu0  ;;  %4772 = vmatmul.mubr.bf16.gmra.mxu0 %v4247_v33 }
 0x50c   : > { %v4827_v39 = vmax.f32 %v4530_v3, 0.0  ;;  %v4041_v40 = vadd.f32 %v4040_v62, %v10884_v22  ;;  %v4181_v44 = vmax.f32 %v4039_v34, 0.0  ;;  %v4946_v54 = vpack.c.bf16 %v4826_v38, %v4824_v41 }
 0x50d   : > { %v4044_v42 = vpop.f32.mrf.mxu1  ;;  %v4535_v43 = vpop.f32.mrf.mxu0  ;;  %v4534_v28 = vadd.f32 %v4533_v36, %v11024_v50 }
 0x50e   : > { %v4182_v45 = vmax.f32 %v4041_v40, 0.0  ;;  %v4947_v52 = vpack.c.bf16 %v4827_v39, %v4825_v21  ;;  %v4536_v55 = vadd.f32 %v4535_v43, %v11021_v48  ;;  %v4249_v59 = vpack.c.bf16 %v4181_v44, %v4179_v53 }
 0x50f   : > { %v4046_v51 = vpop.f32.mrf.mxu1  ;;  %v4537_v20 = vpop.f32.mrf.mxu0  ;;  %v4045_v4 = vadd.f32 %v4044_v42, %v10887_v24  ;;  %v4828_v19 = vmax.f32 %v4534_v28, 0.0 }
 0x510   : > { %v4538_v30 = vadd.f32 %v4537_v20, %v11024_v50  ;;  %5274 = vmatprep.mubr.bf16.mxu1 %v4947_v52  ;;  %v4250_v58 = vpack.c.bf16 %v4182_v45, %v4180_v49  ;;  %v4047_v63 = vadd.f32 %v4046_v51, %v10884_v22  ;;  %v4829_v8 = vmax.f32 %v4536_v55, 0.0  ;;  %v9327_v49 = vld [vmem:[#allocation17 + $0x50] ss:$8 sps:$4 sm:$0xff]   ;;  %v9329_v51 = vld [vmem:[#allocation17 + $0x54] ss:$8 sps:$4 sm:$0xff]  }
 0x511   : > { %v4048_v56 = vpop.f32.mrf.mxu1  ;;  %v4539_v57 = vpop.f32.mrf.mxu0  ;;  %5275 = vmatmul.mubr.bf16.gmra.mxu1 %v4946_v54  ;;  %v4183_v23 = vmax.f32 %v4045_v4, 0.0  ;;  %6678 = vmatprep.subr.bf16.mxu1 %v9329_v51 }
 0x512   : > { %v4049_v60 = vadd.f32 %v4048_v56, %v10887_v24  ;;  %v4540_v61 = vadd.f32 %v4539_v57, %v11021_v48  ;;  %4781 = vmatprep.mubr.bf16.mxu0 %v4250_v58  ;;  %v4830_v5 = vmax.f32 %v4538_v30, 0.0  ;;  %v4184_v12 = vmax.f32 %v4047_v63, 0.0  ;;  %6679 = vmatpush1.bf16.msra.mxu1 %v9327_v49 }
 0x513   : > { %v4050_v1 = vpop.f32.mrf.mxu1  ;;  %v4543_v2 = vpop.f32.mrf.mxu0  ;;  %4782 = vmatmul.mubr.bf16.gmra.mxu0 %v4249_v59 }
 0x514   : > { %v4831_v6 = vmax.f32 %v4540_v61, 0.0  ;;  %v4051_v7 = vadd.f32 %v4050_v1, %v10884_v22  ;;  %v4185_v11 = vmax.f32 %v4049_v60, 0.0  ;;  %v4948_v25 = vpack.c.bf16 %v4830_v5, %v4828_v19 }
 0x515   : > { %v4054_v9 = vpop.f32.mrf.mxu1  ;;  %v4545_v10 = vpop.f32.mrf.mxu0  ;;  %v4544_v29 = vadd.f32 %v4543_v2, %v11024_v50 }
 0x516   : > { %v4186_v13 = vmax.f32 %v4051_v7, 0.0  ;;  %v4949_v18 = vpack.c.bf16 %v4831_v6, %v4829_v8  ;;  %v4546_v26 = vadd.f32 %v4545_v10, %v11021_v48  ;;  %v4251_v3 = vpack.c.bf16 %v4185_v11, %v4183_v23  ;;  %v9330_v23 = vld [vmem:[#allocation17 + $0x40] ss:$8 sps:$4 sm:$0xff]  }
 0x517   : > { %v4056_v14 = vpop.f32.mrf.mxu1  ;;  %v4547_v15 = vpop.f32.mrf.mxu0  ;;  %v4055_v39 = vadd.f32 %v4054_v9, %v10887_v24  ;;  %v4832_v42 = vmax.f32 %v4544_v29, 0.0 }
 0x518   : > { %v4548_v27 = vadd.f32 %v4547_v15, %v11024_v50  ;;  %v4057_v31 = vadd.f32 %v4056_v14, %v10884_v22  ;;  %5284 = vmatprep.mubr.bf16.mxu1 %v4949_v18  ;;  %v4252_v34 = vpack.c.bf16 %v4186_v13, %v4184_v12  ;;  %v4833_v40 = vmax.f32 %v4546_v26, 0.0  ;;  %v9454_v12 = vld [vmem:[%s10243_s1] sm:$0xff]  }
 0x519   : > { %v4058_v32 = vpop.f32.mrf.mxu1  ;;  %v4549_v33 = vpop.f32.mrf.mxu0  ;;  %5285 = vmatmul.mubr.bf16.gmra.mxu1 %v4948_v25  ;;  %v4187_v53 = vmax.f32 %v4055_v39, 0.0  ;;  %v9332_v25 = vld [vmem:[#allocation17 + $0x44] ss:$8 sps:$4 sm:$0xff]  }
 0x51a   : > { %v4059_v35 = vadd.f32 %v4058_v32, %v10887_v24  ;;  %v4550_v62 = vadd.f32 %v4549_v33, %v11021_v48  ;;  %v4834_v36 = vmax.f32 %v4548_v27, 0.0  ;;  %4791 = vmatprep.mubr.bf16.mxu0 %v4252_v34  ;;  %v4188_v43 = vmax.f32 %v4057_v31, 0.0  ;;  %6680 = vmatprep.subr.bf16.mxu1 %v9332_v25  ;;  %v9458_v25 = vld [vmem:[%s10243_s1 + $0x20] sm:$0xff]  }
 0x51b   : > { %v4060_v37 = vpop.f32.mrf.mxu1  ;;  %v4553_v38 = vpop.f32.mrf.mxu0  ;;  %4792 = vmatmul.mubr.bf16.gmra.mxu0 %v4251_v3  ;;  %6681 = vmatpush1.bf16.msra.mxu1 %v9330_v23 }
 0x51c   : > { %v4835_v41 = vmax.f32 %v4550_v62, 0.0  ;;  %v4061_v21 = vadd.f32 %v4060_v37, %v10884_v22  ;;  %v4189_v45 = vmax.f32 %v4059_v35, 0.0  ;;  %v4950_v20 = vpack.c.bf16 %v4834_v36, %v4832_v42  ;;  %v9455_v37 = vld [vmem:[%s10243_s1 + $0x8] sm:$0xff]  }
 0x51d   : > { %v4555_v44 = vpop.f32.mrf.mxu0  ;;  %v4554_v56 = vadd.f32 %v4553_v38, %v11024_v50 }
 0x51e   : > { %v4190_v46 = vmax.f32 %v4061_v21, 0.0  ;;  %v4951_v47 = vpack.c.bf16 %v4835_v41, %v4833_v40  ;;  %v4556_v54 = vadd.f32 %v4555_v44, %v11021_v48  ;;  %v4253_v55 = vpack.c.bf16 %v4189_v45, %v4187_v53 }
 0x51f   : > { %v4557_v52 = vpop.f32.mrf.mxu0  ;;  %v4836_v63 = vmax.f32 %v4554_v56, 0.0 }
 0x520   : > { %v4558_v24 = vadd.f32 %v4557_v52, %v11024_v50  ;;  %5294 = vmatprep.mubr.bf16.mxu1 %v4951_v47  ;;  %v4254_v30 = vpack.c.bf16 %v4190_v46, %v4188_v43  ;;  %v4837_v59 = vmax.f32 %v4556_v54, 0.0  ;;  %v9456_v52 = vld [vmem:[%s10243_s1 + $0x10] sm:$0xff]  }
 0x521   : > { %v4559_v22 = vpop.f32.mrf.mxu0  ;;  %5295 = vmatmul.mubr.bf16.gmra.mxu1 %v4950_v20 }
 0x522   : > { %v4560_v57 = vadd.f32 %v4559_v22, %v11021_v48  ;;  %4801 = vmatprep.mubr.bf16.mxu0 %v4254_v30  ;;  %v4838_v28 = vmax.f32 %v4558_v24, 0.0  ;;  %v9333_v22 = vld [vmem:[#allocation17 + $0x30] ss:$8 sps:$4 sm:$0xff]  }
 0x523   : > { %v4563_v58 = vpop.f32.mrf.mxu0  ;;  %4802 = vmatmul.mubr.bf16.gmra.mxu0 %v4253_v55  ;;  %v9335_v55 = vld [vmem:[#allocation17 + $0x34] ss:$8 sps:$4 sm:$0xff]  }
 0x524   : > { %v4839_v60 = vmax.f32 %v4560_v57, 0.0  ;;  %5677 = vmatprep.mubr.bf16.mxu0 %v9899_v0  ;;  %v4952_v4 = vpack.c.bf16 %v4838_v28, %v4836_v63  ;;  %v4564_v8 = vadd.f32 %v4563_v58, %v11024_v50  ;;  %6682 = vmatprep.subr.bf16.mxu1 %v9335_v55 }
 0x525   : > { %v4565_v61 = vpop.f32.mrf.mxu0  ;;  %6683 = vmatpush1.bf16.msra.mxu1 %v9333_v22 }
 0x526   : > { %v4953_v1 = vpack.c.bf16 %v4839_v60, %v4837_v59  ;;  %v4566_v5 = vadd.f32 %v4565_v61, %v11021_v48  ;;  %v4840_v15 = vmax.f32 %v4564_v8, 0.0 }
 0x527   : > { %v4567_v2 = vpop.f32.mrf.mxu0 }
 0x528   : > { %v4568_v6 = vadd.f32 %v4567_v2, %v11024_v50  ;;  %5304 = vmatprep.mubr.bf16.mxu1 %v4953_v1  ;;  %v4841_v19 = vmax.f32 %v4566_v5, 0.0 }
 0x529   : > { %v4569_v7 = vpop.f32.mrf.mxu0  ;;  %5305 = vmatmul.mubr.bf16.gmra.mxu1 %v4952_v4  ;;  %v9457_v4 = vld [vmem:[%s10243_s1 + $0x18] sm:$0xff]  }
 0x52a   : > { %v4570_v9 = vadd.f32 %v4569_v7, %v11021_v48  ;;  %v4842_v11 = vmax.f32 %v4568_v6, 0.0 }
 0x52b   : > { %v4573_v10 = vpop.f32.mrf.mxu0  ;;  %5678 = vmatmul.mubr.bf16.vlgmr.msra.gmra.mxu0 %v9454_v12 }
 0x52c   : > { %v4843_v13 = vmax.f32 %v4570_v9, 0.0  ;;  %5687 = vmatprep.mubr.bf16.mxu0 %v9899_v0  ;;  %v4954_v27 = vpack.c.bf16 %v4842_v11, %v4840_v15  ;;  %v4574_v33 = vadd.f32 %v4573_v10, %v11024_v50 }
 0x52d   : > { %v4575_v14 = vpop.f32.mrf.mxu0 }
 0x52e   : > { %v4955_v18 = vpack.c.bf16 %v4843_v13, %v4841_v19  ;;  %v4576_v29 = vadd.f32 %v4575_v14, %v11021_v48  ;;  %v4844_v39 = vmax.f32 %v4574_v33, 0.0  ;;  %v9338_v33 = vld [vmem:[#allocation17 + $0x24] ss:$8 sps:$4 sm:$0xff]  }
 0x52f   : > { %v4577_v26 = vpop.f32.mrf.mxu0  ;;  %6684 = vmatprep.subr.bf16.mxu1 %v9338_v33  ;;  %v9356_v33 = vld [vmem:[#allocation17 + $0xc4] ss:$8 sps:$4 sm:$0xff]  }
 0x530   : > { %v4578_v31 = vadd.f32 %v4577_v26, %v11024_v50  ;;  %5314 = vmatprep.mubr.bf16.mxu1 %v4955_v18  ;;  %v4845_v35 = vmax.f32 %v4576_v29, 0.0 }
 0x531   : > { %v4579_v32 = vpop.f32.mrf.mxu0  ;;  %5315 = vmatmul.mubr.bf16.gmra.mxu1 %v4954_v27 }
 0x532   : > { %v4580_v34 = vadd.f32 %v4579_v32, %v11021_v48  ;;  %v4846_v62 = vmax.f32 %v4578_v31, 0.0  ;;  %v9336_v32 = vld [vmem:[#allocation17 + $0x20] ss:$8 sps:$4 sm:$0xff]  }
 0x533   : > { %v4583_v3 = vpop.f32.mrf.mxu0  ;;  %5688 = vmatmul.mubr.bf16.gmra.mxu0 %v9455_v37  ;;  %6685 = vmatpush1.bf16.msra.mxu1 %v9336_v32 }
 0x534   : > { %v4847_v36 = vmax.f32 %v4580_v34, 0.0  ;;  %5697 = vmatprep.mubr.bf16.mxu0 %v9899_v0  ;;  %v4956_v21 = vpack.c.bf16 %v4846_v62, %v4844_v39  ;;  %v4584_v45 = vadd.f32 %v4583_v3, %v11024_v50 }
 0x535   : > { %v4585_v38 = vpop.f32.mrf.mxu0 }
 0x536   : > { %v4957_v40 = vpack.c.bf16 %v4847_v36, %v4845_v35  ;;  %v4586_v42 = vadd.f32 %v4585_v38, %v11021_v48  ;;  %v4848_v54 = vmax.f32 %v4584_v45, 0.0 }
 0x537   : > { %v4587_v41 = vpop.f32.mrf.mxu0 }
 0x538   : > { %v4588_v43 = vadd.f32 %v4587_v41, %v11024_v50  ;;  %5324 = vmatprep.mubr.bf16.mxu1 %v4957_v40  ;;  %v4849_v49 = vmax.f32 %v4586_v42, 0.0  ;;  %v9341_v42 = vld [vmem:[#allocation17 + $0x14] ss:$8 sps:$4 sm:$0xff]  }
 0x539   : > { %v4589_v44 = vpop.f32.mrf.mxu0  ;;  %5325 = vmatmul.mubr.bf16.gmra.mxu1 %v4956_v21  ;;  %v9459_v21 = vld [vmem:[%s10243_s1 + $0x28] sm:$0xff]   ;;  %6686 = vmatprep.subr.bf16.mxu1 %v9341_v42  ;;  %v9357_v42 = vld [vmem:[#allocation17 + $0xb0] ss:$8 sps:$4 sm:$0xff]  }
 0x53a   : > { %v4590_v46 = vadd.f32 %v4589_v44, %v11021_v48  ;;  %v4850_v51 = vmax.f32 %v4588_v43, 0.0  ;;  %v9339_v44 = vld [vmem:[#allocation17 + $0x10] ss:$8 sps:$4 sm:$0xff]  }
 0x53b   : > { %v4593_v47 = vpop.f32.mrf.mxu0  ;;  %5698 = vmatmul.mubr.bf16.gmra.mxu0 %v9456_v52  ;;  %6687 = vmatpush1.bf16.msra.mxu1 %v9339_v44  ;;  %v9344_v52 = vld [vmem:[#allocation17 + $0x4] ss:$8 sps:$4 sm:$0xff]  }
 0x53c   : > { %v4851_v20 = vmax.f32 %v4590_v46, 0.0  ;;  %5707 = vmatprep.mubr.bf16.mxu0 %v9899_v0  ;;  %v4958_v56 = vpack.c.bf16 %v4850_v51, %v4848_v54  ;;  %v4594_v28 = vadd.f32 %v4593_v47, %v11024_v50  ;;  %v9342_v54 = vld [vmem:[#allocation17] ss:$8 sps:$4 sm:$0xff]   ;;  %6688 = vmatprep.subr.bf16.mxu1 %v9344_v52 }
 0x53d   : > { %v4595_v53 = vpop.f32.mrf.mxu0  ;;  %v9360_v52 = vld [vmem:[#allocation17 + $0xa0] ss:$8 sps:$4 sm:$0xff]  }
 0x53e   : > { %v4959_v24 = vpack.c.bf16 %v4851_v20, %v4849_v49  ;;  %v4596_v57 = vadd.f32 %v4595_v53, %v11021_v48  ;;  %v4852_v6 = vmax.f32 %v4594_v28, 0.0 }
 0x53f   : > { %v4597_v30 = vpop.f32.mrf.mxu0  ;;  %6689 = vmatpush1.bf16.msra.mxu1 %v9342_v54 }
 0x540   : > { %v4598_v58 = vadd.f32 %v4597_v30, %v11024_v50  ;;  %5334 = vmatprep.mubr.bf16.mxu1 %v4959_v24  ;;  %v4853_v63 = vmax.f32 %v4596_v57, 0.0 }
 0x541   : > { %v4599_v59 = vpop.f32.mrf.mxu0  ;;  %5335 = vmatmul.mubr.bf16.gmra.mxu1 %v4958_v56 }
 0x542   : > { %v4600_v60 = vadd.f32 %v4599_v59, %v11021_v48  ;;  %v4854_v1 = vmax.f32 %v4598_v58, 0.0  ;;  %v9460_v58 = vld [vmem:[%s10243_s1 + $0x30] sm:$0xff]  }
 0x543   : > { %v4603_v61 = vpop.f32.mrf.mxu0  ;;  %5708 = vmatmul.mubr.bf16.gmra.mxu0 %v9457_v4  ;;  %v9347_v59 = vld [vmem:[#allocation17 + $0xf4] ss:$8 sps:$4 sm:$0xff]  }
 0x544   : > { %v4855_v2 = vmax.f32 %v4600_v60, 0.0  ;;  %5717 = vmatprep.mubr.bf16.mxu0 %v9899_v0  ;;  %v4960_v9 = vpack.c.bf16 %v4854_v1, %v4852_v6  ;;  %v4604_v13 = vadd.f32 %v4603_v61, %v11024_v50  ;;  %v9345_v60 = vld [vmem:[#allocation17 + $0xf0] ss:$8 sps:$4 sm:$0xff]   ;;  %6690 = vmatprep.subr.bf16.mxu1 %v9347_v59  ;;  %v9350_v6 = vld [vmem:[#allocation17 + $0xe4] ss:$8 sps:$4 sm:$0xff]  }
 0x545   : > { %v4605_v5 = vpop.f32.mrf.mxu0  ;;  %6691 = vmatpush2.bf16.msra.mxu1 %v9345_v60  ;;  %v9363_v59 = vld [vmem:[#allocation17 + $0x90] ss:$8 sps:$4 sm:$0xff]  }
 0x546   : > { %v4961_v7 = vpack.c.bf16 %v4855_v2, %v4853_v63  ;;  %v4606_v10 = vadd.f32 %v4605_v5, %v11021_v48  ;;  %v4856_v27 = vmax.f32 %v4604_v13, 0.0  ;;  %6692 = vmatprep.subr.bf16.mxu1 %v9350_v6  ;;  %v9366_v6 = vld [vmem:[#allocation17 + $0x80] ss:$8 sps:$4 sm:$0xff]  }
 0x547   : > { %v4607_v8 = vpop.f32.mrf.mxu0 }
 0x548   : > { %v4608_v19 = vadd.f32 %v4607_v8, %v11024_v50  ;;  %5344 = vmatprep.mubr.bf16.mxu1 %v4961_v7  ;;  %v4857_v15 = vmax.f32 %v4606_v10, 0.0  ;;  %v9348_v8 = vld [vmem:[#allocation17 + $0xe0] ss:$8 sps:$4 sm:$0xff]  }
 0x549   : > { %v4609_v11 = vpop.f32.mrf.mxu0  ;;  %5345 = vmatmul.mubr.bf16.gmra.mxu1 %v4960_v9 }
 0x54a   : > { %v4610_v12 = vadd.f32 %v4609_v11, %v11021_v48  ;;  %v4858_v18 = vmax.f32 %v4608_v19, 0.0  ;;  %6693 = vmatpush2.bf16.msra.mxu1 %v9348_v8 }
 0x54b   : > { %v4613_v14 = vpop.f32.mrf.mxu0  ;;  %5718 = vmatmul.mubr.bf16.gmra.mxu0 %v9458_v25 }
 0x54c   : > { %v4859_v23 = vmax.f32 %v4610_v12, 0.0  ;;  %5727 = vmatprep.mubr.bf16.mxu0 %v9899_v0  ;;  %v4962_v34 = vpack.c.bf16 %v4858_v18, %v4856_v27  ;;  %v4614_v36 = vadd.f32 %v4613_v14, %v11024_v50  ;;  %v9461_v14 = vld [vmem:[%s10243_s1 + $0x38] sm:$0xff]  }
 0x54d   : > { %v4615_v26 = vpop.f32.mrf.mxu0 }
 0x54e   : > { %v4963_v29 = vpack.c.bf16 %v4859_v23, %v4857_v15  ;;  %v4616_v3 = vadd.f32 %v4615_v26, %v11021_v48  ;;  %v4860_v45 = vmax.f32 %v4614_v36, 0.0  ;;  %v9353_v15 = vld [vmem:[#allocation17 + $0xd4] ss:$8 sps:$4 sm:$0xff]   ;;  %v9351_v23 = vld [vmem:[#allocation17 + $0xd0] ss:$8 sps:$4 sm:$0xff]  }
 0x54f   : > { %v4617_v31 = vpop.f32.mrf.mxu0  ;;  %6694 = vmatprep.subr.bf16.mxu1 %v9353_v15 }
 0x550   : > { %v4618_v35 = vadd.f32 %v4617_v31, %v11024_v50  ;;  %5354 = vmatprep.mubr.bf16.mxu1 %v4963_v29  ;;  %v4861_v39 = vmax.f32 %v4616_v3, 0.0  ;;  %6695 = vmatpush2.bf16.msra.mxu1 %v9351_v23  ;;  %v9354_v3 = vld [vmem:[#allocation17 + $0xc0] ss:$8 sps:$4 sm:$0xff]  }
 0x551   : > { %v4619_v62 = vpop.f32.mrf.mxu0  ;;  %5355 = vmatmul.mubr.bf16.gmra.mxu1 %v4962_v34  ;;  %6696 = vmatprep.subr.bf16.mxu1 %v9356_v33 }
 0x552   : > { %v4620_v37 = vadd.f32 %v4619_v62, %v11021_v48  ;;  %v4862_v40 = vmax.f32 %v4618_v35, 0.0 }
 0x553   : > { %v4623_v38 = vpop.f32.mrf.mxu0  ;;  %5728 = vmatmul.mubr.bf16.gmra.mxu0 %v9459_v21 }
 0x554   : > { %v4863_v41 = vmax.f32 %v4620_v37, 0.0  ;;  %5737 = vmatprep.mubr.bf16.mxu0 %v9899_v0  ;;  %v4964_v49 = vpack.c.bf16 %v4862_v40, %v4860_v45  ;;  %v4624_v24 = vadd.f32 %v4623_v38, %v11024_v50  ;;  %6697 = vmatpush2.bf16.msra.mxu1 %v9354_v3  ;;  %v9462_v40 = vld [vmem:[%s10243_s1 + $0x40] sm:$0xff]  }
 0x555   : > { %v4625_v43 = vpop.f32.mrf.mxu0 }
 0x556   : > { %v4965_v46 = vpack.c.bf16 %v4863_v41, %v4861_v39  ;;  %v4626_v51 = vadd.f32 %v4625_v43, %v11021_v48  ;;  %v4864_v61 = vmax.f32 %v4624_v24, 0.0  ;;  %v9359_v41 = vld [vmem:[#allocation17 + $0xb4] ss:$8 sps:$4 sm:$0xff]  }
 0x557   : > { %v4627_v47 = vpop.f32.mrf.mxu0  ;;  %6698 = vmatprep.subr.bf16.mxu1 %v9359_v41 }
 0x558   : > { %v4628_v20 = vadd.f32 %v4627_v47, %v11024_v50  ;;  %5364 = vmatprep.mubr.bf16.mxu1 %v4965_v46  ;;  %v4865_v55 = vmax.f32 %v4626_v51, 0.0  ;;  %6699 = vmatpush2.bf16.msra.mxu1 %v9357_v42  ;;  %v9362_v51 = vld [vmem:[#allocation17 + $0xa4] ss:$8 sps:$4 sm:$0xff]  }
 0x559   : > { %v4629_v53 = vpop.f32.mrf.mxu0  ;;  %5365 = vmatmul.mubr.bf16.gmra.mxu1 %v4964_v49  ;;  %6700 = vmatprep.subr.bf16.mxu1 %v9362_v51 }
 0x55a   : > { %v4630_v30 = vadd.f32 %v4629_v53, %v11021_v48  ;;  %v4866_v56 = vmax.f32 %v4628_v20, 0.0 }
 0x55b   : > { %v4633_v22 = vpop.f32.mrf.mxu0  ;;  %5738 = vmatmul.mubr.bf16.gmra.mxu0 %v9460_v58 }
 0x55c   : > { %v4867_v57 = vmax.f32 %v4630_v30, 0.0  ;;  %5747 = vmatprep.mubr.bf16.mxu0 %v9899_v0  ;;  %v4966_v2 = vpack.c.bf16 %v4866_v56, %v4864_v61  ;;  %v4634_v9 = vadd.f32 %v4633_v22, %v11024_v50  ;;  %6701 = vmatpush2.bf16.msra.mxu1 %v9360_v52  ;;  %v9463_v56 = vld [vmem:[%s10243_s1 + $0x48] sm:$0xff]  }
 0x55d   : > { %v4635_v28 = vpop.f32.mrf.mxu0 }
 0x55e   : > { %v4967_v63 = vpack.c.bf16 %v4867_v57, %v4865_v55  ;;  %v4636_v4 = vadd.f32 %v4635_v28, %v11021_v48  ;;  %v4868_v25 = vmax.f32 %v4634_v9, 0.0  ;;  %v9365_v57 = vld [vmem:[#allocation17 + $0x94] ss:$8 sps:$4 sm:$0xff]  }
 0x55f   : > { %v4637_v1 = vpop.f32.mrf.mxu0  ;;  %6702 = vmatprep.subr.bf16.mxu1 %v9365_v57 }
 0x560   : > { %v4638_v5 = vadd.f32 %v4637_v1, %v11024_v50  ;;  %5374 = vmatprep.mubr.bf16.mxu1 %v4967_v63  ;;  %v4869_v11 = vmax.f32 %v4636_v4, 0.0  ;;  %6703 = vmatpush2.bf16.msra.mxu1 %v9363_v59  ;;  %v9368_v4 = vld [vmem:[#allocation17 + $0x84] ss:$8 sps:$4 sm:$0xff]  }
 0x561   : > { %v4639_v7 = vpop.f32.mrf.mxu0  ;;  %5375 = vmatmul.mubr.bf16.gmra.mxu1 %v4966_v2  ;;  %6704 = vmatprep.subr.bf16.mxu1 %v9368_v4 }
 0x562   : > { %v4640_v10 = vadd.f32 %v4639_v7, %v11021_v48  ;;  %v4870_v13 = vmax.f32 %v4638_v5, 0.0 }
 0x563   : > { %v4643_v19 = vpop.f32.mrf.mxu0  ;;  %5748 = vmatmul.mubr.bf16.gmra.mxu0 %v9461_v14 }
 0x564   : > { %v4871_v12 = vmax.f32 %v4640_v10, 0.0  ;;  %5757 = vmatprep.mubr.bf16.mxu0 %v9899_v0  ;;  %v4968_v29 = vpack.c.bf16 %v4870_v13, %v4868_v25  ;;  %v4644_v35 = vadd.f32 %v4643_v19, %v11024_v50  ;;  %6705 = vmatpush2.bf16.msra.mxu1 %v9366_v6  ;;  %v9464_v13 = vld [vmem:[%s10243_s1 + $0x50] sm:$0xff]  }
 0x565   : > { %v4645_v18 = vpop.f32.mrf.mxu0 }
 0x566   : > { %v4969_v26 = vpack.c.bf16 %v4871_v12, %v4869_v11  ;;  %v4646_v31 = vadd.f32 %v4645_v18, %v11021_v48  ;;  %v4872_v43 = vmax.f32 %v4644_v35, 0.0  ;;  %v9465_v35 = vld [vmem:[%s10243_s1 + $0x58] sm:$0xff]  }
 0x567   : > { %v4647_v27 = vpop.f32.mrf.mxu0 }
 0x568   : > { %v4648_v32 = vadd.f32 %v4647_v27, %v11024_v50  ;;  %5384 = vmatprep.mubr.bf16.mxu1 %v4969_v26  ;;  %v4873_v37 = vmax.f32 %v4646_v31, 0.0 }
 0x569   : > { %v4649_v34 = vpop.f32.mrf.mxu0  ;;  %5385 = vmatmul.mubr.bf16.gmra.mxu1 %v4968_v29 }
 0x56a   : > { %v4650_v62 = vadd.f32 %v4649_v34, %v11021_v48  ;;  %v4874_v38 = vmax.f32 %v4648_v32, 0.0 }
 0x56b   : > { %v4653_v36 = vpop.f32.mrf.mxu0  ;;  %5758 = vmatmul.mubr.bf16.gmra.mxu0 %v9462_v40 }
 0x56c   : > { %v4875_v39 = vmax.f32 %v4650_v62, 0.0  ;;  %5767 = vmatprep.mubr.bf16.mxu0 %v9899_v0  ;;  %v4970_v46 = vpack.c.bf16 %v4874_v38, %v4872_v43  ;;  %v4654_v53 = vadd.f32 %v4653_v36, %v11024_v50 }
 0x56d   : > { %v4655_v21 = vpop.f32.mrf.mxu0 }
 0x56e   : > { %v4971_v44 = vpack.c.bf16 %v4875_v39, %v4873_v37  ;;  %v4656_v47 = vadd.f32 %v4655_v21, %v11021_v48  ;;  %v4876_v28 = vmax.f32 %v4654_v53, 0.0 }
 0x56f   : > { %v4657_v45 = vpop.f32.mrf.mxu0 }
 0x570   : > { %v4658_v49 = vadd.f32 %v4657_v45, %v11024_v50  ;;  %5394 = vmatprep.mubr.bf16.mxu1 %v4971_v44  ;;  %v4877_v30 = vmax.f32 %v4656_v47, 0.0 }
 0x571   : > { %v4659_v20 = vpop.f32.mrf.mxu0  ;;  %5395 = vmatmul.mubr.bf16.gmra.mxu1 %v4970_v46 }
 0x572   : > { %v4660_v54 = vadd.f32 %v4659_v20, %v11021_v48  ;;  %v4878_v22 = vmax.f32 %v4658_v49, 0.0  ;;  %v9466_v49 = vld [vmem:[%s10243_s1 + $0x60] sm:$0xff]  }
 0x573   : > { %v4663_v24 = vpop.f32.mrf.mxu0  ;;  %5768 = vmatmul.mubr.bf16.gmra.mxu0 %v9463_v56 }
 0x574   : > { %v4879_v55 = vmax.f32 %v4660_v54, 0.0  ;;  %5777 = vmatprep.mubr.bf16.mxu0 %v9899_v0  ;;  %v4972_v63 = vpack.c.bf16 %v4878_v22, %v4876_v28  ;;  %v4664_v7 = vadd.f32 %v4663_v24, %v11024_v50 }
 0x575   : > { %v4665_v58 = vpop.f32.mrf.mxu0 }
 0x576   : > { %v4973_v60 = vpack.c.bf16 %v4879_v55, %v4877_v30  ;;  %v4666_v1 = vadd.f32 %v4665_v58, %v11021_v48  ;;  %v4880_v14 = vmax.f32 %v4664_v7, 0.0 }
 0x577   : > { %v4667_v61 = vpop.f32.mrf.mxu0 }
 0x578   : > { %v4668_v2 = vadd.f32 %v4667_v61, %v11024_v50  ;;  %5404 = vmatprep.mubr.bf16.mxu1 %v4973_v60  ;;  %v4881_v10 = vmax.f32 %v4666_v1, 0.0  ;;  %v9467_v60 = vld [vmem:[%s10243_s1 + $0x68] sm:$0xff]  }
 0x579   : > { %v4669_v5 = vpop.f32.mrf.mxu0  ;;  %5405 = vmatmul.mubr.bf16.gmra.mxu1 %v4972_v63 }
 0x57a   : > { %v4670_v8 = vadd.f32 %v4669_v5, %v11021_v48  ;;  %v4882_v19 = vmax.f32 %v4668_v2, 0.0 }
 0x57b   : > { %v4673_v9 = vpop.f32.mrf.mxu0  ;;  %5778 = vmatmul.mubr.bf16.gmra.mxu0 %v9464_v13 }
 0x57c   : > { %v4883_v11 = vmax.f32 %v4670_v8, 0.0  ;;  %5787 = vmatprep.mubr.bf16.mxu0 %v9899_v0  ;;  %v4974_v23 = vpack.c.bf16 %v4882_v19, %v4880_v14  ;;  %v4674_v29 = vadd.f32 %v4673_v9, %v11024_v50 }
 0x57d   : > { %v4675_v12 = vpop.f32.mrf.mxu0 }
 0x57e   : > { %v4975_v15 = vpack.c.bf16 %v4883_v11, %v4881_v10  ;;  %v4676_v25 = vadd.f32 %v4675_v12, %v11021_v48  ;;  %v4884_v36 = vmax.f32 %v4674_v29, 0.0  ;;  %v9468_v12 = vld [vmem:[%s10243_s1 + $0x70] sm:$0xff]  }
 0x57f   : > { %v4677_v18 = vpop.f32.mrf.mxu0 }
 0x580   : > { %v4678_v26 = vadd.f32 %v4677_v18, %v11024_v50  ;;  %5414 = vmatprep.mubr.bf16.mxu1 %v4975_v15  ;;  %v4885_v33 = vmax.f32 %v4676_v25, 0.0 }
 0x581   : > { %v4679_v27 = vpop.f32.mrf.mxu0  ;;  %5415 = vmatmul.mubr.bf16.gmra.mxu1 %v4974_v23 }
 0x582   : > { %v4680_v31 = vadd.f32 %v4679_v27, %v11021_v48  ;;  %v4886_v34 = vmax.f32 %v4678_v26, 0.0 }
 0x583   : > { %v4683_v32 = vpop.f32.mrf.mxu0  ;;  %5788 = vmatmul.mubr.bf16.gmra.mxu0 %v9465_v35 }
 0x584   : > { %v4887_v3 = vmax.f32 %v4680_v31, 0.0  ;;  %5797 = vmatprep.mubr.bf16.mxu0 %v9899_v0  ;;  %v4976_v39 = vpack.c.bf16 %v4886_v34, %v4884_v36  ;;  %v4684_v42 = vadd.f32 %v4683_v32, %v11024_v50 }
 0x585   : > { %v4685_v62 = vpop.f32.mrf.mxu0 }
 0x586   : > { %v4977_v37 = vpack.c.bf16 %v4887_v3, %v4885_v33  ;;  %v4686_v40 = vadd.f32 %v4685_v62, %v11021_v48  ;;  %v4888_v20 = vmax.f32 %v4684_v42, 0.0  ;;  %v9469_v62 = vld [vmem:[%s10243_s1 + $0x78] sm:$0xff]  }
 0x587   : > { %v4687_v38 = vpop.f32.mrf.mxu0 }
 0x588   : > { %v4688_v41 = vadd.f32 %v4687_v38, %v11024_v50  ;;  %5424 = vmatprep.mubr.bf16.mxu1 %v4977_v37  ;;  %v4889_v45 = vmax.f32 %v4686_v40, 0.0 }
 0x589   : > { %v4689_v21 = vpop.f32.mrf.mxu0  ;;  %5425 = vmatmul.mubr.bf16.gmra.mxu1 %v4976_v39 }
 0x58a   : > { %v4690_v43 = vadd.f32 %v4689_v21, %v11021_v48  ;;  %v4890_v46 = vmax.f32 %v4688_v41, 0.0 }
 0x58b   : > { %v4693_v44 = vpop.f32.mrf.mxu0  ;;  %5798 = vmatmul.mubr.bf16.gmra.mxu0 %v9466_v49 }
 0x58c   : > { %v4891_v47 = vmax.f32 %v4690_v43, 0.0  ;;  %5807 = vmatprep.mubr.bf16.mxu0 %v9899_v0  ;;  %v4978_v54 = vpack.c.bf16 %v4890_v46, %v4888_v20  ;;  %v4694_v55 = vadd.f32 %v4693_v44, %v11024_v50 }
 0x58d   : > { %v4695_v51 = vpop.f32.mrf.mxu0 }
 0x58e   : > { %v4979_v52 = vpack.c.bf16 %v4891_v47, %v4889_v45  ;;  %v4696_v24 = vadd.f32 %v4695_v51, %v11021_v48  ;;  %v4892_v63 = vmax.f32 %v4694_v55, 0.0  ;;  %v9470_v51 = vld [vmem:[%s10243_s1 + $0x80] sm:$0xff]  }
 0x58f   : > { %v4697_v53 = vpop.f32.mrf.mxu0 }
 0x590   : > { %v4698_v30 = vadd.f32 %v4697_v53, %v11024_v50  ;;  %5434 = vmatprep.mubr.bf16.mxu1 %v4979_v52  ;;  %v4893_v58 = vmax.f32 %v4696_v24, 0.0 }
 0x591   : > { %v4699_v22 = vpop.f32.mrf.mxu0  ;;  %5435 = vmatmul.mubr.bf16.gmra.mxu1 %v4978_v54 }
 0x592   : > { %v4700_v56 = vadd.f32 %v4699_v22, %v11021_v48  ;;  %v4894_v59 = vmax.f32 %v4698_v30, 0.0 }
 0x593   : > { %v4703_v57 = vpop.f32.mrf.mxu0  ;;  %5808 = vmatmul.mubr.bf16.gmra.mxu0 %v9467_v60 }
 0x594   : > { %v4895_v28 = vmax.f32 %v4700_v56, 0.0  ;;  %5817 = vmatprep.mubr.bf16.mxu0 %v9899_v0  ;;  %v4980_v4 = vpack.c.bf16 %v4894_v59, %v4892_v63  ;;  %v4704_v8 = vadd.f32 %v4703_v57, %v11024_v50 }
 0x595   : > { %v4705_v61 = vpop.f32.mrf.mxu0 }
 0x596   : > { %v4981_v1 = vpack.c.bf16 %v4895_v28, %v4893_v58  ;;  %v4706_v5 = vadd.f32 %v4705_v61, %v11021_v48  ;;  %v4896_v15 = vmax.f32 %v4704_v8, 0.0  ;;  %v9471_v61 = vld [vmem:[%s10243_s1 + $0x88] sm:$0xff]  }
 0x597   : > { %v4707_v2 = vpop.f32.mrf.mxu0 }
 0x598   : > { %v4708_v6 = vadd.f32 %v4707_v2, %v11024_v50  ;;  %5444 = vmatprep.mubr.bf16.mxu1 %v4981_v1  ;;  %v4897_v19 = vmax.f32 %v4706_v5, 0.0 }
 0x599   : > { %v4709_v7 = vpop.f32.mrf.mxu0  ;;  %5445 = vmatmul.mubr.bf16.gmra.mxu1 %v4980_v4 }
 0x59a   : > { %v4710_v9 = vadd.f32 %v4709_v7, %v11021_v48  ;;  %v4898_v11 = vmax.f32 %v4708_v6, 0.0 }
 0x59b   : > { %v4713_v10 = vpop.f32.mrf.mxu0  ;;  %5818 = vmatmul.mubr.bf16.gmra.mxu0 %v9468_v12 }
 0x59c   : > { %v4899_v13 = vmax.f32 %v4710_v9, 0.0  ;;  %5827 = vmatprep.mubr.bf16.mxu0 %v9899_v0  ;;  %v4982_v25 = vpack.c.bf16 %v4898_v11, %v4896_v15  ;;  %v4714_v31 = vadd.f32 %v4713_v10, %v11024_v50 }
 0x59d   : > { %v4715_v14 = vpop.f32.mrf.mxu0 }
 0x59e   : > { %v4983_v18 = vpack.c.bf16 %v4899_v13, %v4897_v19  ;;  %v4716_v26 = vadd.f32 %v4715_v14, %v11021_v48  ;;  %v4900_v37 = vmax.f32 %v4714_v31, 0.0 }
 0x59f   : > { %v4717_v23 = vpop.f32.mrf.mxu0 }
 0x5a0   : > { %v4718_v27 = vadd.f32 %v4717_v23, %v11024_v50  ;;  %5454 = vmatprep.mubr.bf16.mxu1 %v4983_v18  ;;  %v4901_v34 = vmax.f32 %v4716_v26, 0.0  ;;  %v9472_v18 = vld [vmem:[%s10243_s1 + $0x90] sm:$0xff]  }
 0x5a1   : > { %v4719_v29 = vpop.f32.mrf.mxu0  ;;  %5455 = vmatmul.mubr.bf16.gmra.mxu1 %v4982_v25 }
 0x5a2   : > { %v4720_v32 = vadd.f32 %v4719_v29, %v11021_v48  ;;  %v4902_v3 = vmax.f32 %v4718_v27, 0.0 }
 0x5a3   : > { %v4723_v33 = vpop.f32.mrf.mxu0  ;;  %5828 = vmatmul.mubr.bf16.gmra.mxu0 %v9469_v62 }
 0x5a4   : > { %v4903_v35 = vmax.f32 %v4720_v32, 0.0  ;;  %5837 = vmatprep.mubr.bf16.mxu0 %v9899_v0  ;;  %v4984_v40 = vpack.c.bf16 %v4902_v3, %v4900_v37  ;;  %v4724_v43 = vadd.f32 %v4723_v33, %v11024_v50 }
 0x5a5   : > { %v4725_v36 = vpop.f32.mrf.mxu0 }
 0x5a6   : > { %v4985_v38 = vpack.c.bf16 %v4903_v35, %v4901_v34  ;;  %v4726_v41 = vadd.f32 %v4725_v36, %v11021_v48  ;;  %v4904_v52 = vmax.f32 %v4724_v43, 0.0 }
 0x5a7   : > { %v4727_v39 = vpop.f32.mrf.mxu0 }
 0x5a8   : > { %v4728_v21 = vadd.f32 %v4727_v39, %v11024_v50  ;;  %5464 = vmatprep.mubr.bf16.mxu1 %v4985_v38  ;;  %v4905_v46 = vmax.f32 %v4726_v41, 0.0 }
 0x5a9   : > { %v4729_v42 = vpop.f32.mrf.mxu0  ;;  %5465 = vmatmul.mubr.bf16.gmra.mxu1 %v4984_v40  ;;  %v9473_v40 = vld [vmem:[%s10243_s1 + $0x98] sm:$0xff]  }
 0x5aa   : > { %v4730_v44 = vadd.f32 %v4729_v42, %v11021_v48  ;;  %v4906_v47 = vmax.f32 %v4728_v21, 0.0 }
 0x5ab   : > { %v4733_v45 = vpop.f32.mrf.mxu0  ;;  %5838 = vmatmul.mubr.bf16.gmra.mxu0 %v9470_v51 }
 0x5ac   : > { %v4907_v49 = vmax.f32 %v4730_v44, 0.0  ;;  %5847 = vmatprep.mubr.bf16.mxu0 %v9899_v0  ;;  %v4986_v24 = vpack.c.bf16 %v4906_v47, %v4904_v52  ;;  %v4734_v56 = vadd.f32 %v4733_v45, %v11024_v50 }
 0x5ad   : > { %v4735_v20 = vpop.f32.mrf.mxu0 }
 0x5ae   : > { %v4987_v53 = vpack.c.bf16 %v4907_v49, %v4905_v46  ;;  %v4736_v30 = vadd.f32 %v4735_v20, %v11021_v48  ;;  %v4908_v1 = vmax.f32 %v4734_v56, 0.0  ;;  %v9474_v56 = vld [vmem:[%s10243_s1 + $0xa0] sm:$0xff]  }
 0x5af   : > { %v4737_v54 = vpop.f32.mrf.mxu0 }
 0x5b0   : > { %v4738_v22 = vadd.f32 %v4737_v54, %v11024_v50  ;;  %5474 = vmatprep.mubr.bf16.mxu1 %v4987_v53  ;;  %v4909_v59 = vmax.f32 %v4736_v30, 0.0 }
 0x5b1   : > { %v4739_v55 = vpop.f32.mrf.mxu0  ;;  %5475 = vmatmul.mubr.bf16.gmra.mxu1 %v4986_v24 }
 0x5b2   : > { %v4740_v57 = vadd.f32 %v4739_v55, %v11021_v48  ;;  %v4910_v28 = vmax.f32 %v4738_v22, 0.0 }
 0x5b3   : > { %v4743_v58 = vpop.f32.mrf.mxu0  ;;  %5848 = vmatmul.mubr.bf16.gmra.mxu0 %v9471_v61 }
 0x5b4   : > { %v4911_v60 = vmax.f32 %v4740_v57, 0.0  ;;  %5857 = vmatprep.mubr.bf16.mxu0 %v9899_v0  ;;  %v4988_v5 = vpack.c.bf16 %v4910_v28, %v4908_v1  ;;  %v4744_v9 = vadd.f32 %v4743_v58, %v11024_v50 }
 0x5b5   : > { %v4745_v63 = vpop.f32.mrf.mxu0 }
 0x5b6   : > { %v4989_v2 = vpack.c.bf16 %v4911_v60, %v4909_v59  ;;  %v4746_v6 = vadd.f32 %v4745_v63, %v11021_v48  ;;  %v4912_v23 = vmax.f32 %v4744_v9, 0.0 }
 0x5b7   : > { %v4747_v4 = vpop.f32.mrf.mxu0 }
 0x5b8   : > { %v4748_v7 = vadd.f32 %v4747_v4, %v11024_v50  ;;  %5484 = vmatprep.mubr.bf16.mxu1 %v4989_v2  ;;  %v4913_v11 = vmax.f32 %v4746_v6, 0.0  ;;  %v9369_v6 = vld [vmem:[#allocation19 + $0x70] ss:$8 sps:$4 sm:$0xff]  }
 0x5b9   : > { %v4749_v8 = vpop.f32.mrf.mxu0  ;;  %v11191_v19 = vpop.f32.mrf.mxu1  ;;  %5485 = vmatmul.mubr.bf16.gmra.mxu1 %v4988_v5 }
 0x5ba   : > { %v4750_v10 = vadd.f32 %v4749_v8, %v11021_v48  ;;  %v4914_v13 = vmax.f32 %v4748_v7, 0.0  ;;  %v9371_v7 = vld [vmem:[#allocation19 + $0x74] ss:$8 sps:$4 sm:$0xff]  }
 0x5bb   : > { %v4753_v14 = vpop.f32.mrf.mxu0  ;;  %v11193_v15 = vpop.f32.mrf.mxu1  ;;  %5858 = vmatmul.mubr.bf16.gmra.mxu0 %v9472_v18  ;;  %7423 = vmatprep.subr.bf16.mxu0 %v9371_v7  ;;  %v9475_v18 = vld [vmem:[%s10243_s1 + $0xa8] sm:$0xff]  }
 0x5bc   : > { %v4915_v12 = vmax.f32 %v4750_v10, 0.0  ;;  %5867 = vmatprep.mubr.bf16.mxu0 %v9899_v0  ;;  %v4990_v29 = vpack.c.bf16 %v4914_v13, %v4912_v23  ;;  %v4754_v3 = vadd.f32 %v4753_v14, %v11024_v50  ;;  %7424 = vmatpush1.bf16.msra.mxu0 %v9369_v6 }
 0x5bd   : > { %v4755_v25 = vpop.f32.mrf.mxu0  ;;  %v11197_v26 = vpop.f32.mrf.mxu1 }
 0x5be   : > { %v4991_v27 = vpack.c.bf16 %v4915_v12, %v4913_v11  ;;  %v4756_v33 = vadd.f32 %v4755_v25, %v11021_v48  ;;  %v4916_v42 = vmax.f32 %v4754_v3, 0.0 }
 0x5bf   : > { %v4757_v31 = vpop.f32.mrf.mxu0  ;;  %v11199_v32 = vpop.f32.mrf.mxu1 }
 0x5c0   : > { %5494 = vmatprep.mubr.bf16.mxu1 %v4991_v27  ;;  %v4758_v34 = vadd.f32 %v4757_v31, %v11024_v50  ;;  %v4917_v41 = vmax.f32 %v4756_v33, 0.0 }
 0x5c1   : > { %v4759_v35 = vpop.f32.mrf.mxu0  ;;  %v11204_v62 = vpop.f32.mrf.mxu1  ;;  %5495 = vmatmul.mubr.bf16.gmra.mxu1 %v4990_v29 }
 0x5c2   : > { %v4760_v36 = vadd.f32 %v4759_v35, %v11021_v48  ;;  %v4918_v37 = vmax.f32 %v4758_v34, 0.0 }
 0x5c3   : > { %v4763_v38 = vpop.f32.mrf.mxu0  ;;  %v11207_v39 = vpop.f32.mrf.mxu1  ;;  %5868 = vmatmul.mubr.bf16.gmra.mxu0 %v9473_v40 }
 0x5c4   : > { %v4919_v21 = vmax.f32 %v4760_v36, 0.0  ;;  %5877 = vmatprep.mubr.bf16.mxu0 %v9899_v0  ;;  %v4992_v46 = vpack.c.bf16 %v4918_v37, %v4916_v42  ;;  %v4764_v52 = vadd.f32 %v4763_v38, %v11024_v50 }
 0x5c5   : > { %v4765_v43 = vpop.f32.mrf.mxu0  ;;  %v11211_v44 = vpop.f32.mrf.mxu1 }
 0x5c6   : > { %v4993_v45 = vpack.c.bf16 %v4919_v21, %v4917_v41  ;;  %v4766_v51 = vadd.f32 %v4765_v43, %v11021_v48  ;;  %v4920_v59 = vmax.f32 %v4764_v52, 0.0 }
 0x5c7   : > { %v4767_v47 = vpop.f32.mrf.mxu0  ;;  %v11213_v49 = vpop.f32.mrf.mxu1 }
 0x5c8   : > { %v4768_v20 = vadd.f32 %v4767_v47, %v11024_v50  ;;  %5504 = vmatprep.mubr.bf16.mxu1 %v4993_v45  ;;  %v4921_v57 = vmax.f32 %v4766_v51, 0.0 }
 0x5c9   : > { %v4769_v53 = vpop.f32.mrf.mxu0  ;;  %v11218_v54 = vpop.f32.mrf.mxu1  ;;  %5505 = vmatmul.mubr.bf16.gmra.mxu1 %v4992_v46  ;;  %v9476_v46 = vld [vmem:[%s10243_s1 + $0xb0] sm:$0xff]  }
 0x5ca   : > { %v4770_v24 = vadd.f32 %v4769_v53, %v11021_v48  ;;  %v4922_v30 = vmax.f32 %v4768_v20, 0.0 }
 0x5cb   : > { %v4773_v22 = vpop.f32.mrf.mxu0  ;;  %v11221_v55 = vpop.f32.mrf.mxu1  ;;  %5878 = vmatmul.mubr.bf16.gmra.mxu0 %v9474_v56 }
 0x5cc   : > { %v4923_v58 = vmax.f32 %v4770_v24, 0.0  ;;  %5887 = vmatprep.mubr.bf16.mxu0 %v9899_v0  ;;  %v4994_v63 = vpack.c.bf16 %v4922_v30, %v4920_v59  ;;  %v4774_v8 = vadd.f32 %v4773_v22, %v11024_v50  ;;  %v9372_v59 = vld [vmem:[#allocation19 + $0x60] ss:$8 sps:$4 sm:$0xff]  }
 0x5cd   : > { %v4775_v28 = vpop.f32.mrf.mxu0  ;;  %v11225_v60 = vpop.f32.mrf.mxu1 }
 0x5ce   : > { %v4995_v61 = vpack.c.bf16 %v4923_v58, %v4921_v57  ;;  %v4776_v4 = vadd.f32 %v4775_v28, %v11021_v48  ;;  %v4924_v27 = vmax.f32 %v4774_v8, 0.0  ;;  %v9374_v28 = vld [vmem:[#allocation19 + $0x64] ss:$8 sps:$4 sm:$0xff]   ;;  %v9477_v8 = vld [vmem:[%s10243_s1 + $0xb8] sm:$0xff]  }
 0x5cf   : > { %v4777_v1 = vpop.f32.mrf.mxu0  ;;  %v11227_v2 = vpop.f32.mrf.mxu1  ;;  %7425 = vmatprep.subr.bf16.mxu0 %v9374_v28 }
 0x5d0   : > { %v4778_v5 = vadd.f32 %v4777_v1, %v11024_v50  ;;  %5514 = vmatprep.mubr.bf16.mxu1 %v4995_v61  ;;  %v4925_v23 = vmax.f32 %v4776_v4, 0.0  ;;  %7426 = vmatpush1.bf16.msra.mxu0 %v9372_v59  ;;  %v6138_v59 = vld [vmem:[%s956_s6] sm:$0x3] }
 0x5d1   : > { %v4779_v9 = vpop.f32.mrf.mxu0  ;;  %v11232_v10 = vpop.f32.mrf.mxu1  ;;  %5515 = vmatmul.mubr.bf16.gmra.mxu1 %v4994_v63 }
 0x5d2   : > { %v4780_v11 = vadd.f32 %v4779_v9, %v11021_v48  ;;  %v4926_v13 = vmax.f32 %v4778_v5, 0.0 }
 0x5d3   : > { %v4783_v12 = vpop.f32.mrf.mxu0  ;;  %v11235_v14 = vpop.f32.mrf.mxu1  ;;  %5888 = vmatmul.mubr.bf16.gmra.mxu0 %v9475_v18 }
 0x5d4   : > { %v4927_v25 = vmax.f32 %v4780_v11, 0.0  ;;  %5897 = vmatprep.mubr.bf16.mxu0 %v9899_v0  ;;  %v4996_v34 = vpack.c.bf16 %v4926_v13, %v4924_v27  ;;  %v4784_v38 = vadd.f32 %v4783_v12, %v11024_v50 }
 0x5d5   : > { %v4785_v29 = vpop.f32.mrf.mxu0  ;;  %v11239_v31 = vpop.f32.mrf.mxu1 }
 0x5d6   : > { %v4997_v33 = vpack.c.bf16 %v4927_v25, %v4925_v23  ;;  %v4786_v36 = vadd.f32 %v4785_v29, %v11021_v48  ;;  %v4928_v20 = vmax.f32 %v4784_v38, 0.0 }
 0x5d7   : > { %v4787_v3 = vpop.f32.mrf.mxu0  ;;  %v11241_v35 = vpop.f32.mrf.mxu1 }
 0x5d8   : > { %v4788_v37 = vadd.f32 %v4787_v3, %v11024_v50  ;;  %5524 = vmatprep.mubr.bf16.mxu1 %v4997_v33  ;;  %v4929_v47 = vmax.f32 %v4786_v36, 0.0 }
 0x5d9   : > { %v4789_v40 = vpop.f32.mrf.mxu0  ;;  %v11246_v41 = vpop.f32.mrf.mxu1  ;;  %5525 = vmatmul.mubr.bf16.gmra.mxu1 %v4996_v34 }
 0x5da   : > { %v4790_v21 = vadd.f32 %v4789_v40, %v11021_v48  ;;  %v4930_v42 = vmax.f32 %v4788_v37, 0.0 }
 0x5db   : > { %v4793_v43 = vpop.f32.mrf.mxu0  ;;  %v11249_v45 = vpop.f32.mrf.mxu1  ;;  %5898 = vmatmul.mubr.bf16.gmra.mxu0 %v9476_v46  ;;  %v9478_v46 = vld [vmem:[%s10243_s1 + $0xc0] sm:$0xff]  }
 0x5dc   : > { %v4931_v51 = vmax.f32 %v4790_v21, 0.0  ;;  %5907 = vmatprep.mubr.bf16.mxu0 %v9899_v0  ;;  %v4998_v30 = vpack.c.bf16 %v4930_v42, %v4928_v20  ;;  %v4794_v61 = vadd.f32 %v4793_v43, %v11024_v50  ;;  %v5998_v43 = vld [vmem:[%s12553_s20] sm:$0x3] }
 0x5dd   : > { %v4795_v52 = vpop.f32.mrf.mxu0  ;;  %v11253_v53 = vpop.f32.mrf.mxu1 }
 0x5de   : > { %v4999_v24 = vpack.c.bf16 %v4931_v51, %v4929_v47  ;;  %v4796_v57 = vadd.f32 %v4795_v52, %v11021_v48  ;;  %v4932_v13 = vmax.f32 %v4794_v61, 0.0  ;;  %v11292_v52 = vrot.slane %v5998_v43, %v10335_v16 }
 0x5df   : > { %v4797_v22 = vpop.f32.mrf.mxu0  ;;  %v11255_v56 = vpop.f32.mrf.mxu1 }
 0x5e0   : > { %v4798_v58 = vadd.f32 %v4797_v22, %v11024_v50  ;;  %5534 = vmatprep.mubr.bf16.mxu1 %v4999_v24  ;;  %v4933_v9 = vmax.f32 %v4796_v57, 0.0 }
 0x5e1   : > { %v4799_v63 = vpop.f32.mrf.mxu0  ;;  %v11260_v1 = vpop.f32.mrf.mxu1  ;;  %5535 = vmatmul.mubr.bf16.gmra.mxu1 %v4998_v30  ;;  %v11296_v30 = vrot.slane %v5998_v43, %v10337_v17 }
 0x5e2   : > { %v4800_v4 = vadd.f32 %v4799_v63, %v11021_v48  ;;  %v4934_v5 = vmax.f32 %v4798_v58, 0.0 }
 0x5e3   : > { %v4803_v6 = vpop.f32.mrf.mxu0  ;;  %v11263_v7 = vpop.f32.mrf.mxu1  ;;  %5908 = vmatmul.mubr.bf16.gmra.mxu0 %v9477_v8 }
 0x5e4   : > { %v4935_v11 = vmax.f32 %v4800_v4, 0.0  ;;  %5917 = vmatprep.mubr.bf16.mxu0 %v9899_v0  ;;  %v5000_v25 = vpack.c.bf16 %v4934_v5, %v4932_v13  ;;  %v4804_v3 = vadd.f32 %v4803_v6, %v11024_v50  ;;  %v9375_v4 = vld [vmem:[#allocation19 + $0x50] ss:$8 sps:$4 sm:$0xff]   ;;  %v9377_v5 = vld [vmem:[#allocation19 + $0x54] ss:$8 sps:$4 sm:$0xff]  }
 0x5e5   : > { %v4805_v12 = vpop.f32.mrf.mxu0  ;;  %v11267_v18 = vpop.f32.mrf.mxu1  ;;  %7427 = vmatprep.subr.bf16.mxu0 %v9377_v5 }
 0x5e6   : > { %v5001_v23 = vpack.c.bf16 %v4935_v11, %v4933_v9  ;;  %v4806_v33 = vadd.f32 %v4805_v12, %v11021_v48  ;;  %v11310_v11 = vrot.slane %v6138_v59, %v10337_v17  ;;  %7428 = vmatpush1.bf16.msra.mxu0 %v9375_v4  ;;  %v9480_v4 = vld [vmem:[%s10243_s1 + $0xd0] sm:$0xff]  }
 0x5e7   : > { %v4807_v27 = vpop.f32.mrf.mxu0  ;;  %v11269_v29 = vpop.f32.mrf.mxu1 }
 0x5e8   : > { %v4808_v34 = vadd.f32 %v4807_v27, %v11024_v50  ;;  %5544 = vmatprep.mubr.bf16.mxu1 %v5001_v23  ;;  %v4937_v50 = vmax.f32 %v4806_v33, 0.0 }
 0x5e9   : > { %v4809_v36 = vpop.f32.mrf.mxu0  ;;  %v11274_v37 = vpop.f32.mrf.mxu1  ;;  %5545 = vmatmul.mubr.bf16.gmra.mxu1 %v5000_v25  ;;  %v9479_v25 = vld [vmem:[%s10243_s1 + $0xc8] sm:$0xff]  }
 0x5ea   : > { %v4810_v38 = vadd.f32 %v4809_v36, %v11021_v48  ;;  %v4938_v40 = vmax.f32 %v4808_v34, 0.0  ;;  %v4936_v48 = vmax.f32 %v4804_v3, 0.0 }
 0x5eb   : > { %v11277_v21 = vpop.f32.mrf.mxu1  ;;  %v5679_v42 = vpop.f32.mrf.mxu0  ;;  %5918 = vmatmul.mubr.bf16.gmra.mxu0 %v9478_v46 }
 0x5ec   : > { %v4939_v47 = vmax.f32 %v4810_v38, 0.0  ;;  %5927 = vmatprep.mubr.bf16.mxu0 %v9899_v0  ;;  %v5680_v24 = vadd.f32 %v5679_v42, %v11191_v19  ;;  %v5002_v58 = vpack.c.bf16 %v4938_v40, %v4936_v48  ;;  %v11304_v19 = vrot.slane %v6138_v59, %v10335_v16 }
 0x5ed   : > { %v11289_v51 = vpop.f32.mrf.mxu1  ;;  %v5681_v20 = vpop.f32.mrf.mxu0 }
 0x5ee   : > { %v5682_v22 = vadd.f32 %v5681_v20, %v11193_v15  ;;  %v5003_v57 = vpack.c.bf16 %v4939_v47, %v4937_v50  ;;  %v6010_v9 = vadd.f32 %v11296_v30, %v5680_v24 }
 0x5ef   : > { %v11299_v28 = vpop.f32.mrf.mxu1  ;;  %v5683_v61 = vpop.f32.mrf.mxu0 }
 0x5f0   : > { %v5684_v63 = vadd.f32 %v5683_v61, %v11197_v26  ;;  %5554 = vmatprep.mubr.bf16.mxu1 %v5003_v57  ;;  %v6011_v6 = vadd.f32 %v11292_v52, %v5682_v22 }
 0x5f1   : > { %v11306_v8 = vpop.f32.mrf.mxu1  ;;  %5555 = vmatmul.mubr.bf16.gmra.mxu1 %v5002_v58  ;;  %v5685_v15 = vpop.f32.mrf.mxu0 }
 0x5f2   : > { %v6012_v26 = vadd.f32 %v11296_v30, %v5684_v63  ;;  %v5686_v13 = vadd.f32 %v5685_v15, %v11199_v32  ;;  %v6151_v34 = vadd.f32 %v11304_v19, %v6011_v6  ;;  %v6150_v32 = vadd.f32 %v11310_v11, %v6010_v9 }
 0x5f3   : > { %v11314_v12 = vpop.f32.mrf.mxu1  ;;  %v5689_v23 = vpop.f32.mrf.mxu0  ;;  %5928 = vmatmul.mubr.bf16.gmra.mxu0 %v9479_v25 }
 0x5f4   : > { %v6152_v27 = vadd.f32 %v11310_v11, %v6012_v26  ;;  %v6013_v33 = vadd.f32 %v11292_v52, %v5686_v13  ;;  %5937 = vmatprep.mubr.bf16.mxu0 %v9899_v0  ;;  %v5690_v40 = vadd.f32 %v5689_v23, %v11204_v62  ;;  %v6279_v48 = vmax.f32 %v6151_v34, 0.0 }
 0x5f5   : > { %v11321_v3 = vpop.f32.mrf.mxu1  ;;  %v5691_v36 = vpop.f32.mrf.mxu0  ;;  %v6278_v58 = vmax.f32 %v6150_v32, 0.0 }
 0x5f6   : > { %v6153_v38 = vadd.f32 %v11304_v19, %v6013_v33  ;;  %v5692_v42 = vadd.f32 %v5691_v36, %v11207_v39  ;;  %v6280_v50 = vmax.f32 %v6152_v27, 0.0  ;;  %v6014_v59 = vadd.f32 %v11296_v30, %v5690_v40  ;;  %v9380_v40 = vld [vmem:[#allocation19 + $0x44] ss:$8 sps:$4 sm:$0xff]  }
 0x5f7   : > { %v11327_v43 = vpop.f32.mrf.mxu1  ;;  %v5693_v46 = vpop.f32.mrf.mxu0  ;;  %7429 = vmatprep.subr.bf16.mxu0 %v9380_v40 }
 0x5f8   : > { %v5694_v47 = vadd.f32 %v5693_v46, %v11211_v44  ;;  %v6015_v20 = vadd.f32 %v11292_v52, %v5692_v42  ;;  %v6281_v57 = vmax.f32 %v6153_v38, 0.0  ;;  %v6406_v5 = vpack.c.bf16 %v6280_v50, %v6278_v58  ;;  %v9378_v38 = vld [vmem:[#allocation19 + $0x40] ss:$8 sps:$4 sm:$0xff]   ;;  %v9481_v58 = vld [vmem:[%s10243_s1 + $0xd8] sm:$0xff]  }
 0x5f9   : > { %v11331_v24 = vpop.f32.mrf.mxu1  ;;  %v5695_v22 = vpop.f32.mrf.mxu0  ;;  %7430 = vmatpush1.bf16.msra.mxu0 %v9378_v38 }
 0x5fa   : > { %v6016_v62 = vadd.f32 %v11296_v30, %v5694_v47  ;;  %v5696_v39 = vadd.f32 %v5695_v22, %v11213_v49  ;;  %v6407_v44 = vpack.c.bf16 %v6281_v57, %v6279_v48  ;;  %v6155_v9 = vadd.f32 %v11304_v19, %v6015_v20 }
 0x5fb   : > { %v11336_v61 = vpop.f32.mrf.mxu1  ;;  %v5699_v63 = vpop.f32.mrf.mxu0  ;;  %5938 = vmatmul.mubr.bf16.gmra.mxu0 %v9480_v4  ;;  %v6154_v49 = vadd.f32 %v11310_v11, %v6014_v59 }
 0x5fc   : > { %v6156_v6 = vadd.f32 %v11310_v11, %v6016_v62  ;;  %v6017_v15 = vadd.f32 %v11292_v52, %v5696_v39  ;;  %5947 = vmatprep.mubr.bf16.mxu0 %v9899_v0  ;;  %6706 = vmatprep.mubr.bf16.mxu1 %v6407_v44  ;;  %v5700_v25 = vadd.f32 %v5699_v63, %v11218_v54  ;;  %v6283_v42 = vmax.f32 %v6155_v9, 0.0 }
 0x5fd   : > { %v11343_v26 = vpop.f32.mrf.mxu1  ;;  %v5701_v13 = vpop.f32.mrf.mxu0  ;;  %6707 = vmatmul.mubr.bf16.vlgmr.msra.gmra.mxu1 %v6406_v5  ;;  %v6282_v54 = vmax.f32 %v6154_v49, 0.0 }
 0x5fe   : > { %v6157_v23 = vadd.f32 %v11304_v19, %v6017_v15  ;;  %v5702_v27 = vadd.f32 %v5701_v13, %v11221_v55  ;;  %v6284_v36 = vmax.f32 %v6156_v6, 0.0  ;;  %v6018_v55 = vadd.f32 %v11296_v30, %v5700_v25 }
 0x5ff   : > { %v11349_v33 = vpop.f32.mrf.mxu1  ;;  %v5703_v34 = vpop.f32.mrf.mxu0 }
 0x600   : > { %v5704_v32 = vadd.f32 %v5703_v34, %v11225_v60  ;;  %v6019_v46 = vadd.f32 %v11292_v52, %v5702_v27  ;;  %v6285_v48 = vmax.f32 %v6157_v23, 0.0  ;;  %v6408_v62 = vpack.c.bf16 %v6284_v36, %v6282_v54 }
 0x601   : > { %v11353_v50 = vpop.f32.mrf.mxu1  ;;  %v5705_v47 = vpop.f32.mrf.mxu0  ;;  %v6158_v5 = vadd.f32 %v11310_v11, %v6018_v55 }
 0x602   : > { %v6020_v20 = vadd.f32 %v11296_v30, %v5704_v32  ;;  %v5706_v22 = vadd.f32 %v5705_v47, %v11227_v2  ;;  %v6409_v59 = vpack.c.bf16 %v6285_v48, %v6283_v42  ;;  %v6159_v4 = vadd.f32 %v11304_v19, %v6019_v46  ;;  %v9482_v48 = vld [vmem:[%s10243_s1 + $0xe0] sm:$0xff]  }
 0x603   : > { %v11358_v57 = vpop.f32.mrf.mxu1  ;;  %v5709_v60 = vpop.f32.mrf.mxu0  ;;  %5948 = vmatmul.mubr.bf16.gmra.mxu0 %v9481_v58  ;;  %v6286_v40 = vmax.f32 %v6158_v5, 0.0 }
 0x604   : > { %v6160_v39 = vadd.f32 %v11310_v11, %v6020_v20  ;;  %v6021_v63 = vadd.f32 %v11292_v52, %v5706_v22  ;;  %5957 = vmatprep.mubr.bf16.mxu0 %v9899_v0  ;;  %6716 = vmatprep.mubr.bf16.mxu1 %v6409_v59  ;;  %v5710_v15 = vadd.f32 %v5709_v60, %v11232_v10  ;;  %v6287_v27 = vmax.f32 %v6159_v4, 0.0 }
 0x605   : > { %v11365_v44 = vpop.f32.mrf.mxu1  ;;  %v5711_v2 = vpop.f32.mrf.mxu0  ;;  %6717 = vmatmul.mubr.bf16.gmra.mxu1 %v6408_v62 }
 0x606   : > { %v6161_v6 = vadd.f32 %v11304_v19, %v6021_v63  ;;  %v5712_v9 = vadd.f32 %v5711_v2, %v11235_v14  ;;  %v6288_v23 = vmax.f32 %v6160_v39, 0.0  ;;  %v6022_v10 = vadd.f32 %v11296_v30, %v5710_v15  ;;  %v9383_v15 = vld [vmem:[#allocation19 + $0x34] ss:$8 sps:$4 sm:$0xff]  }
 0x607   : > { %v11371_v13 = vpop.f32.mrf.mxu1  ;;  %v5713_v49 = vpop.f32.mrf.mxu0  ;;  %7431 = vmatprep.subr.bf16.mxu0 %v9383_v15 }
 0x608   : > { %v5714_v25 = vadd.f32 %v5713_v49, %v11239_v31  ;;  %v6023_v34 = vadd.f32 %v11292_v52, %v5712_v9  ;;  %v6289_v38 = vmax.f32 %v6161_v6, 0.0  ;;  %v6410_v54 = vpack.c.bf16 %v6288_v23, %v6286_v40  ;;  %v9381_v6 = vld [vmem:[#allocation19 + $0x30] ss:$8 sps:$4 sm:$0xff]   ;;  %v9483_v40 = vld [vmem:[%s10243_s1 + $0xe8] sm:$0xff]  }
 0x609   : > { %v11375_v36 = vpop.f32.mrf.mxu1  ;;  %v5715_v32 = vpop.f32.mrf.mxu0  ;;  %7432 = vmatpush1.bf16.msra.mxu0 %v9381_v6 }
 0x60a   : > { %v6024_v14 = vadd.f32 %v11296_v30, %v5714_v25  ;;  %v5716_v42 = vadd.f32 %v5715_v32, %v11241_v35  ;;  %v6411_v31 = vpack.c.bf16 %v6289_v38, %v6287_v27  ;;  %v6163_v22 = vadd.f32 %v11304_v19, %v6023_v34 }
 0x60b   : > { %v11380_v46 = vpop.f32.mrf.mxu1  ;;  %v5719_v47 = vpop.f32.mrf.mxu0  ;;  %5958 = vmatmul.mubr.bf16.gmra.mxu0 %v9482_v48  ;;  %v6162_v35 = vadd.f32 %v11310_v11, %v6022_v10 }
 0x60c   : > { %v6164_v55 = vadd.f32 %v11310_v11, %v6024_v14  ;;  %v6025_v20 = vadd.f32 %v11292_v52, %v5716_v42  ;;  %5967 = vmatprep.mubr.bf16.mxu0 %v9899_v0  ;;  %6726 = vmatprep.mubr.bf16.mxu1 %v6411_v31  ;;  %v5720_v62 = vadd.f32 %v5719_v47, %v11246_v41  ;;  %v6291_v9 = vmax.f32 %v6163_v22, 0.0 }
 0x60d   : > { %v11387_v60 = vpop.f32.mrf.mxu1  ;;  %v5721_v58 = vpop.f32.mrf.mxu0  ;;  %6727 = vmatmul.mubr.bf16.gmra.mxu1 %v6410_v54  ;;  %v6290_v41 = vmax.f32 %v6162_v35, 0.0 }
 0x60e   : > { %v6165_v59 = vadd.f32 %v11304_v19, %v6025_v20  ;;  %v5722_v39 = vadd.f32 %v5721_v58, %v11249_v45  ;;  %v6292_v2 = vmax.f32 %v6164_v55, 0.0  ;;  %v6026_v45 = vadd.f32 %v11296_v30, %v5720_v62 }
 0x60f   : > { %v11393_v63 = vpop.f32.mrf.mxu1  ;;  %v5723_v4 = vpop.f32.mrf.mxu0 }
 0x610   : > { %v5724_v5 = vadd.f32 %v5723_v4, %v11253_v53  ;;  %v6027_v49 = vadd.f32 %v11292_v52, %v5722_v39  ;;  %v6293_v27 = vmax.f32 %v6165_v59, 0.0  ;;  %v6412_v14 = vpack.c.bf16 %v6292_v2, %v6290_v41 }
 0x611   : > { %v11397_v23 = vpop.f32.mrf.mxu1  ;;  %v5725_v25 = vpop.f32.mrf.mxu0  ;;  %v6166_v54 = vadd.f32 %v11310_v11, %v6026_v45 }
 0x612   : > { %v6028_v34 = vadd.f32 %v11296_v30, %v5724_v5  ;;  %v5726_v32 = vadd.f32 %v5725_v25, %v11255_v56  ;;  %v6413_v10 = vpack.c.bf16 %v6293_v27, %v6291_v9  ;;  %v6167_v48 = vadd.f32 %v11304_v19, %v6027_v49  ;;  %v9484_v27 = vld [vmem:[%s10243_s1 + $0xf0] sm:$0xff]  }
 0x613   : > { %v11402_v38 = vpop.f32.mrf.mxu1  ;;  %v5729_v53 = vpop.f32.mrf.mxu0  ;;  %5968 = vmatmul.mubr.bf16.gmra.mxu0 %v9483_v40  ;;  %v6294_v15 = vmax.f32 %v6166_v54, 0.0 }
 0x614   : > { %v6168_v42 = vadd.f32 %v11310_v11, %v6028_v34  ;;  %v6029_v47 = vadd.f32 %v11292_v52, %v5726_v32  ;;  %5977 = vmatprep.mubr.bf16.mxu0 %v9899_v0  ;;  %6736 = vmatprep.mubr.bf16.mxu1 %v6413_v10  ;;  %v5730_v20 = vadd.f32 %v5729_v53, %v11260_v1  ;;  %v6295_v39 = vmax.f32 %v6167_v48, 0.0 }
 0x615   : > { %v11409_v31 = vpop.f32.mrf.mxu1  ;;  %v5731_v56 = vpop.f32.mrf.mxu0  ;;  %6737 = vmatmul.mubr.bf16.gmra.mxu1 %v6412_v14 }
 0x616   : > { %v6169_v55 = vadd.f32 %v11304_v19, %v6029_v47  ;;  %v5732_v22 = vadd.f32 %v5731_v56, %v11263_v7  ;;  %v6296_v59 = vmax.f32 %v6168_v42, 0.0  ;;  %v6030_v1 = vadd.f32 %v11296_v30, %v5730_v20  ;;  %v9386_v47 = vld [vmem:[#allocation19 + $0x24] ss:$8 sps:$4 sm:$0xff]  }
 0x617   : > { %v11415_v58 = vpop.f32.mrf.mxu1  ;;  %v5733_v35 = vpop.f32.mrf.mxu0  ;;  %7433 = vmatprep.subr.bf16.mxu0 %v9386_v47 }
 0x618   : > { %v5734_v62 = vadd.f32 %v5733_v35, %v11267_v18  ;;  %v6031_v4 = vadd.f32 %v11292_v52, %v5732_v22  ;;  %v6297_v6 = vmax.f32 %v6169_v55, 0.0  ;;  %v6414_v41 = vpack.c.bf16 %v6296_v59, %v6294_v15  ;;  %v9485_v15 = vld [vmem:[%s10243_s1 + $0xf8] sm:$0xff]   ;;  %s12392_s1 = scalar_lea.vmem [#allocation20], %s8830_s7  ;;  %s8831_s7 = smul.u32 1536, %s9872_s25 }
 0x619   : > { %v11419_v2 = vpop.f32.mrf.mxu1  ;;  %v5735_v5 = vpop.f32.mrf.mxu0  ;;  %s8265_s25 = scalar_lea.sflag [#allocation4], %s10239_s12 }
 0x61a   : > { %v6032_v7 = vadd.f32 %v11296_v30, %v5734_v62  ;;  %v5736_v9 = vadd.f32 %v5735_v5, %v11269_v29  ;;  %v6415_v18 = vpack.c.bf16 %v6297_v6, %v6295_v39  ;;  %v6171_v32 = vadd.f32 %v11304_v19, %v6031_v4  ;;  %v9389_v5 = vld [vmem:[#allocation19 + $0x14] ss:$8 sps:$4 sm:$0xff]   ;;  %s12420_s15 = scalar_lea.hbm %s12559_s8, %s8831_s7 }
 0x61b   : > { %v11424_v49 = vpop.f32.mrf.mxu1  ;;  %v5739_v25 = vpop.f32.mrf.mxu0  ;;  %5978 = vmatmul.mubr.bf16.gmra.mxu0 %v9484_v27  ;;  %v6170_v29 = vadd.f32 %v11310_v11, %v6030_v1 }
 0x61c   : > { %v6172_v45 = vadd.f32 %v11310_v11, %v6032_v7  ;;  %v6033_v34 = vadd.f32 %v11292_v52, %v5736_v9  ;;  %5987 = vmatprep.mubr.bf16.mxu0 %v9899_v0  ;;  %6746 = vmatprep.mubr.bf16.mxu1 %v6415_v18  ;;  %v5740_v14 = vadd.f32 %v5739_v25, %v11274_v37  ;;  %v9384_v0 = vld [vmem:[#allocation19 + $0x20] ss:$8 sps:$4 sm:$0xff]   ;;  %v6299_v20 = vmax.f32 %v6171_v32, 0.0  ;;  %v9387_v7 = vld [vmem:[#allocation19 + $0x10] ss:$8 sps:$4 sm:$0xff]  }
 0x61d   : > { %v11431_v53 = vpop.f32.mrf.mxu1  ;;  %v5741_v40 = vpop.f32.mrf.mxu0  ;;  %6747 = vmatmul.mubr.bf16.gmra.mxu1 %v6414_v41  ;;  %7434 = vmatpush1.bf16.msra.mxu0 %v9384_v0 }
 0x61e   : > { %v6173_v10 = vadd.f32 %v11304_v19, %v6033_v34  ;;  %v5742_v42 = vadd.f32 %v5741_v40, %v11277_v21  ;;  %v6300_v54 = vmax.f32 %v6172_v45, 0.0  ;;  %v6298_v21 = vmax.f32 %v6170_v29, 0.0  ;;  %7435 = vmatprep.subr.bf16.mxu0 %v9389_v5  ;;  %v9392_v29 = vld [vmem:[#allocation19 + $0x4] ss:$8 sps:$4 sm:$0xff]  }
 0x61f   : > { %v11437_v48 = vpop.f32.mrf.mxu1  ;;  %v5743_v56 = vpop.f32.mrf.mxu0  ;;  %v6034_v62 = vadd.f32 %v11296_v30, %v5740_v14 }
 0x620   : > { %v5744_v55 = vadd.f32 %v5743_v56, %v11289_v51  ;;  %v6035_v22 = vadd.f32 %v11292_v52, %v5742_v42  ;;  %v6301_v37 = vmax.f32 %v6173_v10, 0.0  ;;  %v6416_v9 = vpack.c.bf16 %v6300_v54, %v6298_v21  ;;  %v9390_v42 = vld [vmem:[#allocation19] ss:$8 sps:$4 sm:$0xff]   ;;  %v9395_v21 = vld [vmem:[#allocation19 + $0xf4] ss:$8 sps:$4 sm:$0xff]  }
 0x621   : > { %v11441_v35 = vpop.f32.mrf.mxu1  ;;  %v5745_v59 = vpop.f32.mrf.mxu0  ;;  %7436 = vmatpush1.bf16.msra.mxu0 %v9387_v7  ;;  %v6174_v45 = vadd.f32 %v11310_v11, %v6034_v62 }
 0x622   : > { %v6036_v39 = vadd.f32 %v11296_v30, %v5744_v55  ;;  %v5746_v4 = vadd.f32 %v5745_v59, %v11299_v28  ;;  %v6417_v1 = vpack.c.bf16 %v6301_v37, %v6299_v20  ;;  %v6175_v18 = vadd.f32 %v11304_v19, %v6035_v22  ;;  %7437 = vmatprep.subr.bf16.mxu0 %v9392_v29 }
 0x623   : > { %v11446_v6 = vpop.f32.mrf.mxu1  ;;  %v5749_v51 = vpop.f32.mrf.mxu0  ;;  %5988 = vmatmul.mubr.bf16.gmra.mxu0 %v9485_v15 }
 0x624   : > { %v6176_v25 = vadd.f32 %v11310_v11, %v6036_v39  ;;  %v6037_v27 = vadd.f32 %v11292_v52, %v5746_v4  ;;  %6756 = vmatprep.mubr.bf16.mxu1 %v6417_v1  ;;  %v5750_v32 = vadd.f32 %v5749_v51, %v11306_v8  ;;  %v6303_v0 = vmax.f32 %v6175_v18, 0.0  ;;  %v9393_v4 = vld [vmem:[#allocation19 + $0xf0] ss:$8 sps:$4 sm:$0xff]  }
 0x625   : > { %v11452_v41 = vpop.f32.mrf.mxu1  ;;  %v5751_v28 = vpop.f32.mrf.mxu0  ;;  %6757 = vmatmul.mubr.bf16.gmra.mxu1 %v6416_v9  ;;  %7438 = vmatpush1.bf16.msra.mxu0 %v9390_v42  ;;  %v6302_v8 = vmax.f32 %v6174_v45, 0.0 }
 0x626   : > { %v6177_v34 = vadd.f32 %v11304_v19, %v6037_v27  ;;  %v5752_v40 = vadd.f32 %v5751_v28, %v11314_v12  ;;  %v6304_v47 = vmax.f32 %v6176_v25, 0.0  ;;  %v6038_v12 = vadd.f32 %v11296_v30, %v5750_v32  ;;  %7439 = vmatprep.subr.bf16.mxu0 %v9395_v21  ;;  %v9398_v28 = vld [vmem:[#allocation19 + $0xe4] ss:$8 sps:$4 sm:$0xff]   ;;  %v9396_v32 = vld [vmem:[#allocation19 + $0xe0] ss:$8 sps:$4 sm:$0xff]  }
 0x627   : > { %v11458_v10 = vpop.f32.mrf.mxu1  ;;  %v5753_v14 = vpop.f32.mrf.mxu0 }
 0x628   : > { %v5754_v56 = vadd.f32 %v5753_v14, %v11321_v3  ;;  %v6039_v54 = vadd.f32 %v11292_v52, %v5752_v40  ;;  %v6305_v22 = vmax.f32 %v6177_v34, 0.0  ;;  %v6418_v5 = vpack.c.bf16 %v6304_v47, %v6302_v8 }
 0x629   : > { %v11462_v55 = vpop.f32.mrf.mxu1  ;;  %v5755_v20 = vpop.f32.mrf.mxu0  ;;  %7440 = vmatpush2.bf16.msra.mxu0 %v9393_v4 }
 0x62a   : > { %v6040_v59 = vadd.f32 %v11296_v30, %v5754_v56  ;;  %v5756_v37 = vadd.f32 %v5755_v20, %v11327_v43  ;;  %v6419_v39 = vpack.c.bf16 %v6305_v22, %v6303_v0  ;;  %v6179_v1 = vadd.f32 %v11304_v19, %v6039_v54  ;;  %7441 = vmatprep.subr.bf16.mxu0 %v9398_v28  ;;  %v9401_v22 = vld [vmem:[#allocation19 + $0xd4] ss:$8 sps:$4 sm:$0xff]  }
 0x62b   : > { %v11467_v62 = vpop.f32.mrf.mxu1  ;;  %v5759_v3 = vpop.f32.mrf.mxu0  ;;  %v6178_v43 = vadd.f32 %v11310_v11, %v6038_v12 }
 0x62c   : > { %v6180_v51 = vadd.f32 %v11310_v11, %v6040_v59  ;;  %v6041_v15 = vadd.f32 %v11292_v52, %v5756_v37  ;;  %6766 = vmatprep.mubr.bf16.mxu1 %v6419_v39  ;;  %v5760_v27 = vadd.f32 %v5759_v3, %v11331_v24  ;;  %v6307_v14 = vmax.f32 %v6179_v1, 0.0  ;;  %v9399_v59 = vld [vmem:[#allocation19 + $0xd0] ss:$8 sps:$4 sm:$0xff]  }
 0x62d   : > { %v11472_v7 = vpop.f32.mrf.mxu1  ;;  %v5761_v9 = vpop.f32.mrf.mxu0  ;;  %6767 = vmatmul.mubr.bf16.gmra.mxu1 %v6418_v5  ;;  %7442 = vmatpush2.bf16.msra.mxu0 %v9396_v32  ;;  %v6306_v24 = vmax.f32 %v6178_v43, 0.0 }
 0x62e   : > { %v6181_v25 = vadd.f32 %v11304_v19, %v6041_v15  ;;  %v5762_v18 = vadd.f32 %v5761_v9, %v11336_v61  ;;  %v6308_v40 = vmax.f32 %v6180_v51, 0.0  ;;  %v6042_v61 = vadd.f32 %v11296_v30, %v5760_v27  ;;  %7443 = vmatprep.subr.bf16.mxu0 %v9401_v22  ;;  %v9404_v9 = vld [vmem:[#allocation19 + $0xc4] ss:$8 sps:$4 sm:$0xff]   ;;  %v9402_v27 = vld [vmem:[#allocation19 + $0xc0] ss:$8 sps:$4 sm:$0xff]  }
 0x62f   : > { %v11478_v45 = vpop.f32.mrf.mxu1  ;;  %v5763_v34 = vpop.f32.mrf.mxu0 }
 0x630   : > { %v5764_v29 = vadd.f32 %v5763_v34, %v11343_v26  ;;  %v6043_v42 = vadd.f32 %v11292_v52, %v5762_v18  ;;  %v6309_v0 = vmax.f32 %v6181_v25, 0.0  ;;  %v6420_v37 = vpack.c.bf16 %v6308_v40, %v6306_v24 }
 0x631   : > { %v11482_v47 = vpop.f32.mrf.mxu1  ;;  %v5765_v56 = vpop.f32.mrf.mxu0  ;;  %7444 = vmatpush2.bf16.msra.mxu0 %v9399_v59 }
 0x632   : > { %v6044_v54 = vadd.f32 %v11296_v30, %v5764_v29  ;;  %v5766_v20 = vadd.f32 %v5765_v56, %v11349_v33  ;;  %v6421_v12 = vpack.c.bf16 %v6309_v0, %v6307_v14  ;;  %v6183_v39 = vadd.f32 %v11304_v19, %v6043_v42  ;;  %7445 = vmatprep.subr.bf16.mxu0 %v9404_v9  ;;  %v9407_v0 = vld [vmem:[#allocation19 + $0xb4] ss:$8 sps:$4 sm:$0xff]  }
 0x633   : > { %v11487_v8 = vpop.f32.mrf.mxu1  ;;  %v5769_v26 = vpop.f32.mrf.mxu0  ;;  %v6182_v33 = vadd.f32 %v11310_v11, %v6042_v61 }
 0x634   : > { %v6184_v21 = vadd.f32 %v11310_v11, %v6044_v54  ;;  %v6045_v3 = vadd.f32 %v11292_v52, %v5766_v20  ;;  %6776 = vmatprep.mubr.bf16.mxu1 %v6421_v12  ;;  %v5770_v15 = vadd.f32 %v5769_v26, %v11353_v50  ;;  %v6311_v34 = vmax.f32 %v6183_v39, 0.0  ;;  %v9405_v54 = vld [vmem:[#allocation19 + $0xb0] ss:$8 sps:$4 sm:$0xff]  }
 0x635   : > { %v11492_v4 = vpop.f32.mrf.mxu1  ;;  %v5771_v5 = vpop.f32.mrf.mxu0  ;;  %6777 = vmatmul.mubr.bf16.gmra.mxu1 %v6420_v37  ;;  %7446 = vmatpush2.bf16.msra.mxu0 %v9402_v27  ;;  %v6310_v50 = vmax.f32 %v6182_v33, 0.0 }
 0x636   : > { %v6185_v51 = vadd.f32 %v11304_v19, %v6045_v3  ;;  %v5772_v1 = vadd.f32 %v5771_v5, %v11358_v57  ;;  %v6312_v18 = vmax.f32 %v6184_v21, 0.0  ;;  %v6046_v57 = vadd.f32 %v11296_v30, %v5770_v15  ;;  %7447 = vmatprep.subr.bf16.mxu0 %v9407_v0  ;;  %v9410_v5 = vld [vmem:[#allocation19 + $0xa4] ss:$8 sps:$4 sm:$0xff]   ;;  %v9408_v15 = vld [vmem:[#allocation19 + $0xa0] ss:$8 sps:$4 sm:$0xff]  }
 0x637   : > { %v11498_v43 = vpop.f32.mrf.mxu1  ;;  %v5773_v25 = vpop.f32.mrf.mxu0 }
 0x638   : > { %v5774_v28 = vadd.f32 %v5773_v25, %v11365_v44  ;;  %v6047_v32 = vadd.f32 %v11292_v52, %v5772_v1  ;;  %v6313_v14 = vmax.f32 %v6185_v51, 0.0  ;;  %v6422_v20 = vpack.c.bf16 %v6312_v18, %v6310_v50 }
 0x639   : > { %v11502_v40 = vpop.f32.mrf.mxu1  ;;  %v5775_v29 = vpop.f32.mrf.mxu0  ;;  %7448 = vmatpush2.bf16.msra.mxu0 %v9405_v54 }
 0x63a   : > { %v6048_v42 = vadd.f32 %v11296_v30, %v5774_v28  ;;  %v5776_v56 = vadd.f32 %v5775_v29, %v11371_v13  ;;  %v6423_v61 = vpack.c.bf16 %v6313_v14, %v6311_v34  ;;  %v6187_v12 = vadd.f32 %v11304_v19, %v6047_v32  ;;  %7449 = vmatprep.subr.bf16.mxu0 %v9410_v5  ;;  %v9413_v14 = vld [vmem:[#allocation19 + $0x94] ss:$8 sps:$4 sm:$0xff]  }
 0x63b   : > { %v11507_v24 = vpop.f32.mrf.mxu1  ;;  %v5779_v44 = vpop.f32.mrf.mxu0  ;;  %v6186_v13 = vadd.f32 %v11310_v11, %v6046_v57 }
 0x63c   : > { %v6188_v22 = vadd.f32 %v11310_v11, %v6048_v42  ;;  %v6049_v26 = vadd.f32 %v11292_v52, %v5776_v56  ;;  %6786 = vmatprep.mubr.bf16.mxu1 %v6423_v61  ;;  %v5780_v3 = vadd.f32 %v5779_v44, %v11375_v36  ;;  %v6315_v25 = vmax.f32 %v6187_v12, 0.0  ;;  %v9411_v42 = vld [vmem:[#allocation19 + $0x90] ss:$8 sps:$4 sm:$0xff]  }
 0x63d   : > { %v11512_v59 = vpop.f32.mrf.mxu1  ;;  %v5781_v37 = vpop.f32.mrf.mxu0  ;;  %6787 = vmatmul.mubr.bf16.gmra.mxu1 %v6422_v20  ;;  %7450 = vmatpush2.bf16.msra.mxu0 %v9408_v15  ;;  %v6314_v36 = vmax.f32 %v6186_v13, 0.0 }
 0x63e   : > { %v6189_v21 = vadd.f32 %v11304_v19, %v6049_v26  ;;  %v5782_v39 = vadd.f32 %v5781_v37, %v11380_v46  ;;  %v6316_v1 = vmax.f32 %v6188_v22, 0.0  ;;  %v6050_v46 = vadd.f32 %v11296_v30, %v5780_v3  ;;  %7451 = vmatprep.subr.bf16.mxu0 %v9413_v14  ;;  %v9416_v37 = vld [vmem:[#allocation19 + $0x84] ss:$8 sps:$4 sm:$0xff]   ;;  %v9414_v3 = vld [vmem:[#allocation19 + $0x80] ss:$8 sps:$4 sm:$0xff]  }
 0x63f   : > { %v11518_v33 = vpop.f32.mrf.mxu1  ;;  %v5783_v51 = vpop.f32.mrf.mxu0 }
 0x640   : > { %v5784_v9 = vadd.f32 %v5783_v51, %v11387_v60  ;;  %v6051_v27 = vadd.f32 %v11292_v52, %v5782_v39  ;;  %v6317_v34 = vmax.f32 %v6189_v21, 0.0  ;;  %v6424_v56 = vpack.c.bf16 %v6316_v1, %v6314_v36 }
 0x641   : > { %v11522_v18 = vpop.f32.mrf.mxu1  ;;  %v5785_v28 = vpop.f32.mrf.mxu0  ;;  %7452 = vmatpush2.bf16.msra.mxu0 %v9411_v42 }
 0x642   : > { %v6052_v32 = vadd.f32 %v11296_v30, %v5784_v9  ;;  %v5786_v29 = vadd.f32 %v5785_v28, %v11393_v63  ;;  %v6425_v57 = vpack.c.bf16 %v6317_v34, %v6315_v25  ;;  %v6191_v61 = vadd.f32 %v11304_v19, %v6051_v27  ;;  %7453 = vmatprep.subr.bf16.mxu0 %v9416_v37 }
 0x643   : > { %v11527_v50 = vpop.f32.mrf.mxu1  ;;  %v5789_v60 = vpop.f32.mrf.mxu0  ;;  %v6190_v63 = vadd.f32 %v11310_v11, %v6050_v46 }
 0x644   : > { %v6192_v0 = vadd.f32 %v11310_v11, %v6052_v32  ;;  %v6053_v44 = vadd.f32 %v11292_v52, %v5786_v29  ;;  %6796 = vmatprep.mubr.bf16.mxu1 %v6425_v57  ;;  %v5790_v26 = vadd.f32 %v5789_v60, %v11397_v23  ;;  %v6319_v51 = vmax.f32 %v6191_v61, 0.0 }
 0x645   : > { %v11532_v54 = vpop.f32.mrf.mxu1  ;;  %v5791_v20 = vpop.f32.mrf.mxu0  ;;  %6797 = vmatmul.mubr.bf16.gmra.mxu1 %v6424_v56  ;;  %7454 = vmatpush2.bf16.msra.mxu0 %v9414_v3  ;;  %v6318_v23 = vmax.f32 %v6190_v63, 0.0 }
 0x646   : > { %v6193_v22 = vadd.f32 %v11304_v19, %v6053_v44  ;;  %v5792_v12 = vadd.f32 %v5791_v20, %v11402_v38  ;;  %v6320_v39 = vmax.f32 %v6192_v0, 0.0  ;;  %v6054_v38 = vadd.f32 %v11296_v30, %v5790_v26 }
 0x647   : > { %v11538_v13 = vpop.f32.mrf.mxu1  ;;  %v5793_v21 = vpop.f32.mrf.mxu0 }
 0x648   : > { %v5794_v5 = vadd.f32 %v5793_v21, %v11409_v31  ;;  %v6055_v15 = vadd.f32 %v11292_v52, %v5792_v12  ;;  %v6321_v25 = vmax.f32 %v6193_v22, 0.0  ;;  %v6426_v46 = vpack.c.bf16 %v6320_v39, %v6318_v23 }
 0x649   : > { %v11542_v1 = vpop.f32.mrf.mxu1  ;;  %v5795_v9 = vpop.f32.mrf.mxu0  ;;  %v6194_v42 = vadd.f32 %v11310_v11, %v6054_v38 }
 0x64a   : > { %v6056_v27 = vadd.f32 %v11296_v30, %v5794_v5  ;;  %v5796_v28 = vadd.f32 %v5795_v9, %v11415_v58  ;;  %v6427_v31 = vpack.c.bf16 %v6321_v25, %v6319_v51  ;;  %v6195_v14 = vadd.f32 %v11304_v19, %v6055_v15 }
 0x64b   : > { %v11547_v34 = vpop.f32.mrf.mxu1  ;;  %v5799_v36 = vpop.f32.mrf.mxu0  ;;  %v6322_v3 = vmax.f32 %v6194_v42, 0.0 }
 0x64c   : > { %v6196_v32 = vadd.f32 %v11310_v11, %v6056_v27  ;;  %v6057_v29 = vadd.f32 %v11292_v52, %v5796_v28  ;;  %6806 = vmatprep.mubr.bf16.mxu1 %v6427_v31  ;;  %v5800_v58 = vadd.f32 %v5799_v36, %v11419_v2  ;;  %v6323_v22 = vmax.f32 %v6195_v14, 0.0 }
 0x64d   : > { %v11552_v60 = vpop.f32.mrf.mxu1  ;;  %v5801_v57 = vpop.f32.mrf.mxu0  ;;  %6807 = vmatmul.mubr.bf16.gmra.mxu1 %v6426_v46 }
 0x64e   : > { %v6197_v56 = vadd.f32 %v11304_v19, %v6057_v29  ;;  %v5802_v0 = vadd.f32 %v5801_v57, %v11424_v49  ;;  %v6324_v20 = vmax.f32 %v6196_v32, 0.0  ;;  %v6058_v39 = vadd.f32 %v11296_v30, %v5800_v58 }
 0x64f   : > { %v11558_v44 = vpop.f32.mrf.mxu1  ;;  %v5803_v61 = vpop.f32.mrf.mxu0 }
 0x650   : > { %v5804_v63 = vadd.f32 %v5803_v61, %v11431_v53  ;;  %v6059_v26 = vadd.f32 %v11292_v52, %v5802_v0  ;;  %v6325_v21 = vmax.f32 %v6197_v56, 0.0  ;;  %v6428_v9 = vpack.c.bf16 %v6324_v20, %v6322_v3 }
 0x651   : > { %v11562_v12 = vpop.f32.mrf.mxu1  ;;  %v5805_v37 = vpop.f32.mrf.mxu0  ;;  %v6198_v28 = vadd.f32 %v11310_v11, %v6058_v39 }
 0x652   : > { %v6060_v2 = vadd.f32 %v11296_v30, %v5804_v63  ;;  %v5806_v49 = vadd.f32 %v5805_v37, %v11437_v48  ;;  %v6429_v15 = vpack.c.bf16 %v6325_v21, %v6323_v22  ;;  %v6199_v23 = vadd.f32 %v11304_v19, %v6059_v26 }
 0x653   : > { %v11567_v5 = vpop.f32.mrf.mxu1  ;;  %v5809_v51 = vpop.f32.mrf.mxu0  ;;  %v6326_v61 = vmax.f32 %v6198_v28, 0.0 }
 0x654   : > { %v6200_v53 = vadd.f32 %v11310_v11, %v6060_v2  ;;  %v6061_v25 = vadd.f32 %v11292_v52, %v5806_v49  ;;  %6816 = vmatprep.mubr.bf16.mxu1 %v6429_v15  ;;  %v5810_v48 = vadd.f32 %v5809_v51, %v11441_v35  ;;  %v6327_v57 = vmax.f32 %v6199_v23, 0.0 }
 0x655   : > { %v11572_v38 = vpop.f32.mrf.mxu1  ;;  %v5811_v27 = vpop.f32.mrf.mxu0  ;;  %6817 = vmatmul.mubr.bf16.gmra.mxu1 %v6428_v9 }
 0x656   : > { %v6201_v36 = vadd.f32 %v11304_v19, %v6061_v25  ;;  %v5812_v31 = vadd.f32 %v5811_v27, %v11446_v6  ;;  %v6328_v29 = vmax.f32 %v6200_v53, 0.0  ;;  %v6062_v20 = vadd.f32 %v11296_v30, %v5810_v48 }
 0x657   : > { %v11578_v46 = vpop.f32.mrf.mxu1  ;;  %v5813_v32 = vpop.f32.mrf.mxu0 }
 0x658   : > { %v5814_v14 = vadd.f32 %v5813_v32, %v11452_v41  ;;  %v6063_v42 = vadd.f32 %v11292_v52, %v5812_v31  ;;  %v6329_v0 = vmax.f32 %v6201_v36, 0.0  ;;  %v6430_v37 = vpack.c.bf16 %v6328_v29, %v6326_v61 }
 0x659   : > { %v11582_v56 = vpop.f32.mrf.mxu1  ;;  %v5815_v58 = vpop.f32.mrf.mxu0  ;;  %v6202_v49 = vadd.f32 %v11310_v11, %v6062_v20 }
 0x65a   : > { %v6064_v35 = vadd.f32 %v11296_v30, %v5814_v14  ;;  %v5816_v6 = vadd.f32 %v5815_v58, %v11458_v10  ;;  %v6431_v26 = vpack.c.bf16 %v6329_v0, %v6327_v57  ;;  %v6203_v3 = vadd.f32 %v11304_v19, %v6063_v42 }
 0x65b   : > { %v11587_v63 = vpop.f32.mrf.mxu1  ;;  %v5819_v22 = vpop.f32.mrf.mxu0  ;;  %v6330_v32 = vmax.f32 %v6202_v49, 0.0 }
 0x65c   : > { %v6204_v41 = vadd.f32 %v11310_v11, %v6064_v35  ;;  %v6065_v21 = vadd.f32 %v11292_v52, %v5816_v6  ;;  %6826 = vmatprep.mubr.bf16.mxu1 %v6431_v26  ;;  %v5820_v10 = vadd.f32 %v5819_v22, %v11462_v55  ;;  %v6331_v27 = vmax.f32 %v6203_v3, 0.0 }
 0x65d   : > { %v11592_v39 = vpop.f32.mrf.mxu1  ;;  %v5821_v2 = vpop.f32.mrf.mxu0  ;;  %6827 = vmatmul.mubr.bf16.gmra.mxu1 %v6430_v37 }
 0x65e   : > { %v6205_v51 = vadd.f32 %v11304_v19, %v6065_v21  ;;  %v5822_v15 = vadd.f32 %v5821_v2, %v11467_v62  ;;  %v6332_v25 = vmax.f32 %v6204_v41, 0.0  ;;  %v6066_v29 = vadd.f32 %v11296_v30, %v5820_v10 }
 0x65f   : > { %v11598_v9 = vpop.f32.mrf.mxu1  ;;  %v5823_v53 = vpop.f32.mrf.mxu0 }
 0x660   : > { %v5824_v23 = vadd.f32 %v5823_v53, %v11472_v7  ;;  %v6067_v28 = vadd.f32 %v11292_v52, %v5822_v15  ;;  %v6333_v31 = vmax.f32 %v6205_v51, 0.0  ;;  %v6432_v58 = vpack.c.bf16 %v6332_v25, %v6330_v32 }
 0x661   : > { %v11602_v36 = vpop.f32.mrf.mxu1  ;;  %v5825_v48 = vpop.f32.mrf.mxu0  ;;  %v6206_v6 = vadd.f32 %v11310_v11, %v6066_v29 }
 0x662   : > { %v6068_v55 = vadd.f32 %v11296_v30, %v5824_v23  ;;  %v5826_v62 = vadd.f32 %v5825_v48, %v11478_v45  ;;  %v6433_v42 = vpack.c.bf16 %v6333_v31, %v6331_v27  ;;  %v6207_v61 = vadd.f32 %v11304_v19, %v6067_v28 }
 0x663   : > { %v11607_v14 = vpop.f32.mrf.mxu1  ;;  %v5829_v57 = vpop.f32.mrf.mxu0  ;;  %v6334_v53 = vmax.f32 %v6206_v6, 0.0 }
 0x664   : > { %v6208_v7 = vadd.f32 %v11310_v11, %v6068_v55  ;;  %v6069_v0 = vadd.f32 %v11292_v52, %v5826_v62  ;;  %6836 = vmatprep.mubr.bf16.mxu1 %v6433_v42  ;;  %v5830_v45 = vadd.f32 %v5829_v57, %v11482_v47  ;;  %v6335_v2 = vmax.f32 %v6207_v61, 0.0 }
 0x665   : > { %v11612_v20 = vpop.f32.mrf.mxu1  ;;  %v5831_v35 = vpop.f32.mrf.mxu0  ;;  %6837 = vmatmul.mubr.bf16.gmra.mxu1 %v6432_v58 }
 0x666   : > { %v6209_v22 = vadd.f32 %v11304_v19, %v6069_v0  ;;  %v5832_v26 = vadd.f32 %v5831_v35, %v11487_v8  ;;  %v6336_v21 = vmax.f32 %v6208_v7, 0.0  ;;  %v6070_v25 = vadd.f32 %v11296_v30, %v5830_v45 }
 0x667   : > { %v11618_v37 = vpop.f32.mrf.mxu1  ;;  %v5833_v41 = vpop.f32.mrf.mxu0 }
 0x668   : > { %v5834_v3 = vadd.f32 %v5833_v41, %v11492_v4  ;;  %v6071_v49 = vadd.f32 %v11292_v52, %v5832_v26  ;;  %v6337_v15 = vmax.f32 %v6209_v22, 0.0  ;;  %v6434_v48 = vpack.c.bf16 %v6336_v21, %v6334_v53 }
 0x669   : > { %v11622_v51 = vpop.f32.mrf.mxu1  ;;  %v5835_v10 = vpop.f32.mrf.mxu0  ;;  %v6210_v62 = vadd.f32 %v11310_v11, %v6070_v25 }
 0x66a   : > { %v6072_v47 = vadd.f32 %v11296_v30, %v5834_v3  ;;  %v5836_v8 = vadd.f32 %v5835_v10, %v11498_v43  ;;  %v6435_v28 = vpack.c.bf16 %v6337_v15, %v6335_v2  ;;  %v6211_v32 = vadd.f32 %v11304_v19, %v6071_v49 }
 0x66b   : > { %v11627_v23 = vpop.f32.mrf.mxu1  ;;  %v5839_v27 = vpop.f32.mrf.mxu0  ;;  %v6338_v41 = vmax.f32 %v6210_v62, 0.0 }
 0x66c   : > { %v6212_v4 = vadd.f32 %v11310_v11, %v6072_v47  ;;  %v6073_v31 = vadd.f32 %v11292_v52, %v5836_v8  ;;  %6846 = vmatprep.mubr.bf16.mxu1 %v6435_v28  ;;  %v5840_v43 = vadd.f32 %v5839_v27, %v11502_v40  ;;  %v6339_v35 = vmax.f32 %v6211_v32, 0.0 }
 0x66d   : > { %v11632_v29 = vpop.f32.mrf.mxu1  ;;  %v5841_v55 = vpop.f32.mrf.mxu0  ;;  %6847 = vmatmul.mubr.bf16.gmra.mxu1 %v6434_v48 }
 0x66e   : > { %v6213_v57 = vadd.f32 %v11304_v19, %v6073_v31  ;;  %v5842_v42 = vadd.f32 %v5841_v55, %v11507_v24  ;;  %v6340_v0 = vmax.f32 %v6212_v4, 0.0  ;;  %v6074_v21 = vadd.f32 %v11296_v30, %v5840_v43 }
 0x66f   : > { %v11638_v58 = vpop.f32.mrf.mxu1  ;;  %v5843_v7 = vpop.f32.mrf.mxu0 }
 0x670   : > { %v5844_v61 = vadd.f32 %v5843_v7, %v11512_v59  ;;  %v6075_v6 = vadd.f32 %v11292_v52, %v5842_v42  ;;  %v6341_v26 = vmax.f32 %v6213_v57, 0.0  ;;  %v6436_v10 = vpack.c.bf16 %v6340_v0, %v6338_v41 }
 0x671   : > { %v11642_v22 = vpop.f32.mrf.mxu1  ;;  %v5845_v45 = vpop.f32.mrf.mxu0  ;;  %v6214_v8 = vadd.f32 %v11310_v11, %v6074_v21 }
 0x672   : > { %v6076_v40 = vadd.f32 %v11296_v30, %v5844_v61  ;;  %v5846_v24 = vadd.f32 %v5845_v45, %v11518_v33  ;;  %v6437_v49 = vpack.c.bf16 %v6341_v26, %v6339_v35  ;;  %v6215_v53 = vadd.f32 %v11304_v19, %v6075_v6 }
 0x673   : > { %v11647_v3 = vpop.f32.mrf.mxu1  ;;  %v5849_v2 = vpop.f32.mrf.mxu0  ;;  %v6342_v7 = vmax.f32 %v6214_v8, 0.0 }
 0x674   : > { %v6216_v59 = vadd.f32 %v11310_v11, %v6076_v40  ;;  %v6077_v15 = vadd.f32 %v11292_v52, %v5846_v24  ;;  %6856 = vmatprep.mubr.bf16.mxu1 %v6437_v49  ;;  %v5850_v33 = vadd.f32 %v5849_v2, %v11522_v18  ;;  %v6343_v55 = vmax.f32 %v6215_v53, 0.0 }
 0x675   : > { %v11652_v25 = vpop.f32.mrf.mxu1  ;;  %v5851_v47 = vpop.f32.mrf.mxu0  ;;  %6857 = vmatmul.mubr.bf16.gmra.mxu1 %v6436_v10 }
 0x676   : > { %v6217_v27 = vadd.f32 %v11304_v19, %v6077_v15  ;;  %v5852_v28 = vadd.f32 %v5851_v47, %v11527_v50  ;;  %v6344_v31 = vmax.f32 %v6216_v59, 0.0  ;;  %v6078_v0 = vadd.f32 %v11296_v30, %v5850_v33 }
 0x677   : > { %v11658_v48 = vpop.f32.mrf.mxu1  ;;  %v5853_v4 = vpop.f32.mrf.mxu0 }
 0x678   : > { %v5854_v32 = vadd.f32 %v5853_v4, %v11532_v54  ;;  %v6079_v62 = vadd.f32 %v11292_v52, %v5852_v28  ;;  %v6345_v42 = vmax.f32 %v6217_v27, 0.0  ;;  %v6438_v45 = vpack.c.bf16 %v6344_v31, %v6342_v7 }
 0x679   : > { %v11662_v57 = vpop.f32.mrf.mxu1  ;;  %v5855_v43 = vpop.f32.mrf.mxu0  ;;  %v6218_v24 = vadd.f32 %v11310_v11, %v6078_v0 }
 0x67a   : > { %v6080_v18 = vadd.f32 %v11296_v30, %v5854_v32  ;;  %v5856_v50 = vadd.f32 %v5855_v43, %v11538_v13  ;;  %v6439_v6 = vpack.c.bf16 %v6345_v42, %v6343_v55  ;;  %v6219_v41 = vadd.f32 %v11304_v19, %v6079_v62 }
 0x67b   : > { %v11667_v61 = vpop.f32.mrf.mxu1  ;;  %v5859_v35 = vpop.f32.mrf.mxu0  ;;  %v6346_v4 = vmax.f32 %v6218_v24, 0.0 }
 0x67c   : > { %v6220_v54 = vadd.f32 %v11310_v11, %v6080_v18  ;;  %v6081_v26 = vadd.f32 %v11292_v52, %v5856_v50  ;;  %6866 = vmatprep.mubr.bf16.mxu1 %v6439_v6  ;;  %v5860_v13 = vadd.f32 %v5859_v35, %v11542_v1  ;;  %v6347_v47 = vmax.f32 %v6219_v41, 0.0 }
 0x67d   : > { %v11672_v21 = vpop.f32.mrf.mxu1  ;;  %v5861_v40 = vpop.f32.mrf.mxu0  ;;  %6867 = vmatmul.mubr.bf16.gmra.mxu1 %v6438_v45 }
 0x67e   : > { %v6221_v2 = vadd.f32 %v11304_v19, %v6081_v26  ;;  %v5862_v49 = vadd.f32 %v5861_v40, %v11547_v34  ;;  %v6348_v15 = vmax.f32 %v6220_v54, 0.0  ;;  %v6082_v31 = vadd.f32 %v11296_v30, %v5860_v13 }
 0x67f   : > { %v11678_v10 = vpop.f32.mrf.mxu1  ;;  %v5863_v59 = vpop.f32.mrf.mxu0 }
 0x680   : > { %v5864_v53 = vadd.f32 %v5863_v59, %v11552_v60  ;;  %v6083_v8 = vadd.f32 %v11292_v52, %v5862_v49  ;;  %v6349_v28 = vmax.f32 %v6221_v2, 0.0  ;;  %v6440_v43 = vpack.c.bf16 %v6348_v15, %v6346_v4 }
 0x681   : > { %v11682_v27 = vpop.f32.mrf.mxu1  ;;  %v5865_v33 = vpop.f32.mrf.mxu0  ;;  %v6222_v50 = vadd.f32 %v11310_v11, %v6082_v31 }
 0x682   : > { %v6084_v1 = vadd.f32 %v11296_v30, %v5864_v53  ;;  %v5866_v34 = vadd.f32 %v5865_v33, %v11558_v44  ;;  %v6441_v62 = vpack.c.bf16 %v6349_v28, %v6347_v47  ;;  %v6223_v7 = vadd.f32 %v11304_v19, %v6083_v8 }
 0x683   : > { %v11687_v32 = vpop.f32.mrf.mxu1  ;;  %v5869_v55 = vpop.f32.mrf.mxu0  ;;  %v6350_v59 = vmax.f32 %v6222_v50, 0.0 }
 0x684   : > { %v6224_v60 = vadd.f32 %v11310_v11, %v6084_v1  ;;  %v6085_v42 = vadd.f32 %v11292_v52, %v5866_v34  ;;  %6876 = vmatprep.mubr.bf16.mxu1 %v6441_v62  ;;  %v5870_v44 = vadd.f32 %v5869_v55, %v11562_v12  ;;  %v6351_v40 = vmax.f32 %v6223_v7, 0.0 }
 0x685   : > { %v11692_v0 = vpop.f32.mrf.mxu1  ;;  %v5871_v18 = vpop.f32.mrf.mxu0  ;;  %6877 = vmatmul.mubr.bf16.gmra.mxu1 %v6440_v43 }
 0x686   : > { %v6225_v35 = vadd.f32 %v11304_v19, %v6085_v42  ;;  %v5872_v6 = vadd.f32 %v5871_v18, %v11567_v5  ;;  %v6352_v26 = vmax.f32 %v6224_v60, 0.0  ;;  %v6086_v15 = vadd.f32 %v11296_v30, %v5870_v44 }
 0x687   : > { %v11698_v45 = vpop.f32.mrf.mxu1  ;;  %v5873_v54 = vpop.f32.mrf.mxu0 }
 0x688   : > { %v5874_v41 = vadd.f32 %v5873_v54, %v11572_v38  ;;  %v6087_v24 = vadd.f32 %v11292_v52, %v5872_v6  ;;  %v6353_v49 = vmax.f32 %v6225_v35, 0.0  ;;  %v6442_v33 = vpack.c.bf16 %v6352_v26, %v6350_v59 }
 0x689   : > { %v11702_v2 = vpop.f32.mrf.mxu1  ;;  %v5875_v13 = vpop.f32.mrf.mxu0  ;;  %v6226_v34 = vadd.f32 %v11310_v11, %v6086_v15 }
 0x68a   : > { %v6088_v12 = vadd.f32 %v11296_v30, %v5874_v41  ;;  %v5876_v5 = vadd.f32 %v5875_v13, %v11578_v46  ;;  %v6443_v8 = vpack.c.bf16 %v6353_v49, %v6351_v40  ;;  %v6227_v4 = vadd.f32 %v11304_v19, %v6087_v24 }
 0x68b   : > { %v11707_v53 = vpop.f32.mrf.mxu1  ;;  %v5879_v47 = vpop.f32.mrf.mxu0  ;;  %v6354_v54 = vmax.f32 %v6226_v34, 0.0 }
 0x68c   : > { %v6228_v38 = vadd.f32 %v11310_v11, %v6088_v12  ;;  %v6089_v28 = vadd.f32 %v11292_v52, %v5876_v5  ;;  %6886 = vmatprep.mubr.bf16.mxu1 %v6443_v8  ;;  %v5880_v46 = vadd.f32 %v5879_v47, %v11582_v56  ;;  %v6355_v18 = vmax.f32 %v6227_v4, 0.0 }
 0x68d   : > { %v11712_v31 = vpop.f32.mrf.mxu1  ;;  %v5881_v1 = vpop.f32.mrf.mxu0  ;;  %6887 = vmatmul.mubr.bf16.gmra.mxu1 %v6442_v33 }
 0x68e   : > { %v6229_v55 = vadd.f32 %v11304_v19, %v6089_v28  ;;  %v5882_v62 = vadd.f32 %v5881_v1, %v11587_v63  ;;  %v6356_v42 = vmax.f32 %v6228_v38, 0.0  ;;  %v6090_v26 = vadd.f32 %v11296_v30, %v5880_v46 }
 0x68f   : > { %v11718_v43 = vpop.f32.mrf.mxu1  ;;  %v5883_v60 = vpop.f32.mrf.mxu0 }
 0x690   : > { %v5884_v7 = vadd.f32 %v5883_v60, %v11592_v39  ;;  %v6091_v50 = vadd.f32 %v11292_v52, %v5882_v62  ;;  %v6357_v6 = vmax.f32 %v6229_v55, 0.0  ;;  %v6444_v13 = vpack.c.bf16 %v6356_v42, %v6354_v54 }
 0x691   : > { %v11722_v35 = vpop.f32.mrf.mxu1  ;;  %v5885_v44 = vpop.f32.mrf.mxu0  ;;  %v6230_v5 = vadd.f32 %v11310_v11, %v6090_v26 }
 0x692   : > { %v6092_v56 = vadd.f32 %v11296_v30, %v5884_v7  ;;  %v5886_v63 = vadd.f32 %v5885_v44, %v11598_v9  ;;  %v6445_v24 = vpack.c.bf16 %v6357_v6, %v6355_v18  ;;  %v6231_v59 = vadd.f32 %v11304_v19, %v6091_v50 }
 0x693   : > { %v11727_v41 = vpop.f32.mrf.mxu1  ;;  %v5889_v40 = vpop.f32.mrf.mxu0  ;;  %v6358_v60 = vmax.f32 %v6230_v5, 0.0 }
 0x694   : > { %v6232_v39 = vadd.f32 %v11310_v11, %v6092_v56  ;;  %v6093_v49 = vadd.f32 %v11292_v52, %v5886_v63  ;;  %6896 = vmatprep.mubr.bf16.mxu1 %v6445_v24  ;;  %v5890_v9 = vadd.f32 %v5889_v40, %v11602_v36  ;;  %v6359_v1 = vmax.f32 %v6231_v59, 0.0 }
 0x695   : > { %v11732_v15 = vpop.f32.mrf.mxu1  ;;  %v5891_v12 = vpop.f32.mrf.mxu0  ;;  %6897 = vmatmul.mubr.bf16.gmra.mxu1 %v6444_v13 }
 0x696   : > { %v6233_v47 = vadd.f32 %v11304_v19, %v6093_v49  ;;  %v5892_v8 = vadd.f32 %v5891_v12, %v11607_v14  ;;  %v6360_v28 = vmax.f32 %v6232_v39, 0.0  ;;  %v6094_v42 = vadd.f32 %v11296_v30, %v5890_v9 }
 0x697   : > { %v11738_v33 = vpop.f32.mrf.mxu1  ;;  %v5893_v38 = vpop.f32.mrf.mxu0 }
 0x698   : > { %v5894_v4 = vadd.f32 %v5893_v38, %v11612_v20  ;;  %v6095_v34 = vadd.f32 %v11292_v52, %v5892_v8  ;;  %v6361_v62 = vmax.f32 %v6233_v47, 0.0  ;;  %v6446_v44 = vpack.c.bf16 %v6360_v28, %v6358_v60 }
 0x699   : > { %v11742_v55 = vpop.f32.mrf.mxu1  ;;  %v5895_v46 = vpop.f32.mrf.mxu0  ;;  %v6234_v63 = vadd.f32 %v11310_v11, %v6094_v42 }
 0x69a   : > { %v6096_v36 = vadd.f32 %v11296_v30, %v5894_v4  ;;  %v5896_v14 = vadd.f32 %v5895_v46, %v11618_v37  ;;  %v6447_v50 = vpack.c.bf16 %v6361_v62, %v6359_v1  ;;  %v6235_v54 = vadd.f32 %v11304_v19, %v6095_v34 }
 0x69b   : > { %v11747_v7 = vpop.f32.mrf.mxu1  ;;  %v5899_v18 = vpop.f32.mrf.mxu0  ;;  %v6362_v38 = vmax.f32 %v6234_v63, 0.0 }
 0x69c   : > { %v6236_v20 = vadd.f32 %v11310_v11, %v6096_v36  ;;  %v6097_v6 = vadd.f32 %v11292_v52, %v5896_v14  ;;  %6906 = vmatprep.mubr.bf16.mxu1 %v6447_v50  ;;  %v5900_v37 = vadd.f32 %v5899_v18, %v11622_v51  ;;  %v6363_v12 = vmax.f32 %v6235_v54, 0.0 }
 0x69d   : > { %v11752_v26 = vpop.f32.mrf.mxu1  ;;  %v5901_v56 = vpop.f32.mrf.mxu0  ;;  %6907 = vmatmul.mubr.bf16.gmra.mxu1 %v6446_v44 }
 0x69e   : > { %v6237_v40 = vadd.f32 %v11304_v19, %v6097_v6  ;;  %v5902_v24 = vadd.f32 %v5901_v56, %v11627_v23  ;;  %v6364_v49 = vmax.f32 %v6236_v20, 0.0  ;;  %v6098_v28 = vadd.f32 %v11296_v30, %v5900_v37 }
 0x69f   : > { %v11758_v13 = vpop.f32.mrf.mxu1  ;;  %v5903_v39 = vpop.f32.mrf.mxu0 }
 0x6a0   : > { %v5904_v59 = vadd.f32 %v5903_v39, %v11632_v29  ;;  %v6099_v5 = vadd.f32 %v11292_v52, %v5902_v24  ;;  %v6365_v8 = vmax.f32 %v6237_v40, 0.0  ;;  %v6448_v46 = vpack.c.bf16 %v6364_v49, %v6362_v38 }
 0x6a1   : > { %v11762_v47 = vpop.f32.mrf.mxu1  ;;  %v5905_v9 = vpop.f32.mrf.mxu0  ;;  %v6238_v14 = vadd.f32 %v11310_v11, %v6098_v28 }
 0x6a2   : > { %v6100_v51 = vadd.f32 %v11296_v30, %v5904_v59  ;;  %v5906_v23 = vadd.f32 %v5905_v9, %v11638_v58  ;;  %v6449_v34 = vpack.c.bf16 %v6365_v8, %v6363_v12  ;;  %v6239_v60 = vadd.f32 %v11304_v19, %v6099_v5 }
 0x6a3   : > { %v11767_v4 = vpop.f32.mrf.mxu1  ;;  %v5909_v1 = vpop.f32.mrf.mxu0  ;;  %v6366_v39 = vmax.f32 %v6238_v14, 0.0 }
 0x6a4   : > { %v6240_v29 = vadd.f32 %v11310_v11, %v6100_v51  ;;  %v6101_v62 = vadd.f32 %v11292_v52, %v5906_v23  ;;  %6916 = vmatprep.mubr.bf16.mxu1 %v6449_v34  ;;  %v5910_v58 = vadd.f32 %v5909_v1, %v11642_v22  ;;  %v6367_v56 = vmax.f32 %v6239_v60, 0.0 }
 0x6a5   : > { %v11772_v42 = vpop.f32.mrf.mxu1  ;;  %v5911_v36 = vpop.f32.mrf.mxu0  ;;  %6917 = vmatmul.mubr.bf16.gmra.mxu1 %v6448_v46 }
 0x6a6   : > { %v6241_v18 = vadd.f32 %v11304_v19, %v6101_v62  ;;  %v5912_v50 = vadd.f32 %v5911_v36, %v11647_v3  ;;  %v6368_v6 = vmax.f32 %v6240_v29, 0.0  ;;  %v6102_v49 = vadd.f32 %v11296_v30, %v5910_v58 }
 0x6a7   : > { %v11778_v44 = vpop.f32.mrf.mxu1  ;;  %v5913_v20 = vpop.f32.mrf.mxu0 }
 0x6a8   : > { %v5914_v54 = vadd.f32 %v5913_v20, %v11652_v25  ;;  %v6103_v63 = vadd.f32 %v11292_v52, %v5912_v50  ;;  %v6369_v24 = vmax.f32 %v6241_v18, 0.0  ;;  %v6450_v9 = vpack.c.bf16 %v6368_v6, %v6366_v39 }
 0x6a9   : > { %v11782_v40 = vpop.f32.mrf.mxu1  ;;  %v5915_v37 = vpop.f32.mrf.mxu0  ;;  %v6242_v23 = vadd.f32 %v11310_v11, %v6102_v49 }
 0x6aa   : > { %v6104_v22 = vadd.f32 %v11296_v30, %v5914_v54  ;;  %v5916_v3 = vadd.f32 %v5915_v37, %v11658_v48  ;;  %v6451_v5 = vpack.c.bf16 %v6369_v24, %v6367_v56  ;;  %v6243_v38 = vadd.f32 %v11304_v19, %v6103_v63 }
 0x6ab   : > { %v11787_v59 = vpop.f32.mrf.mxu1  ;;  %v5919_v12 = vpop.f32.mrf.mxu0  ;;  %v6370_v20 = vmax.f32 %v6242_v23, 0.0 }
 0x6ac   : > { %v6244_v25 = vadd.f32 %v11310_v11, %v6104_v22  ;;  %v6105_v8 = vadd.f32 %v11292_v52, %v5916_v3  ;;  %6926 = vmatprep.mubr.bf16.mxu1 %v6451_v5  ;;  %v5920_v48 = vadd.f32 %v5919_v12, %v11662_v57  ;;  %v6371_v36 = vmax.f32 %v6243_v38, 0.0 }
 0x6ad   : > { %v11792_v28 = vpop.f32.mrf.mxu1  ;;  %v5921_v51 = vpop.f32.mrf.mxu0  ;;  %6927 = vmatmul.mubr.bf16.gmra.mxu1 %v6450_v9 }
 0x6ae   : > { %v6245_v1 = vadd.f32 %v11304_v19, %v6105_v8  ;;  %v5922_v34 = vadd.f32 %v5921_v51, %v11667_v61  ;;  %v6372_v62 = vmax.f32 %v6244_v25, 0.0  ;;  %v6106_v6 = vadd.f32 %v11296_v30, %v5920_v48 }
 0x6af   : > { %v11798_v46 = vpop.f32.mrf.mxu1  ;;  %v5923_v29 = vpop.f32.mrf.mxu0 }
 0x6b0   : > { %v5924_v60 = vadd.f32 %v5923_v29, %v11672_v21  ;;  %v6107_v14 = vadd.f32 %v11292_v52, %v5922_v34  ;;  %v6373_v50 = vmax.f32 %v6245_v1, 0.0  ;;  %v6452_v63 = vpack.c.bf16 %v6372_v62, %v6370_v20 }
 0x6b1   : > { %v11802_v18 = vpop.f32.mrf.mxu1  ;;  %v5925_v58 = vpop.f32.mrf.mxu0  ;;  %v6246_v22 = vadd.f32 %v11310_v11, %v6106_v6  ;;  %v6502_v6 = vld [vmem:[%s12555_s28] sm:$0x3] }
 0x6b2   : > { %v6108_v57 = vadd.f32 %v11296_v30, %v5924_v60  ;;  %v5926_v61 = vadd.f32 %v5925_v58, %v11678_v10  ;;  %v6453_v56 = vpack.c.bf16 %v6373_v50, %v6371_v36  ;;  %v6247_v39 = vadd.f32 %v11304_v19, %v6107_v14 }
 0x6b3   : > { %v5929_v54 = vpop.f32.mrf.mxu0  ;;  %v11809_v24 = vpop.f32.mrf.mxu1  ;;  %v6374_v48 = vmax.f32 %v6246_v22, 0.0 }
 0x6b4   : > { %v6248_v37 = vadd.f32 %v11310_v11, %v6108_v57  ;;  %v6109_v21 = vadd.f32 %v11292_v52, %v5926_v61  ;;  %6936 = vmatprep.mubr.bf16.mxu1 %v6453_v56  ;;  %v5930_v12 = vadd.f32 %v5929_v54, %v11682_v27  ;;  %v6375_v38 = vmax.f32 %v6247_v39, 0.0 }
 0x6b5   : > { %v5931_v49 = vpop.f32.mrf.mxu0  ;;  %6937 = vmatmul.mubr.bf16.gmra.mxu1 %v6452_v63  ;;  %v11816_v25 = vpop.f32.mrf.mxu1  ;;  %v11836_v63 = vrot.slane %v6502_v6, %v10335_v16 }
 0x6b6   : > { %v6249_v3 = vadd.f32 %v11304_v19, %v6109_v21  ;;  %v5932_v10 = vadd.f32 %v5931_v49, %v11687_v32  ;;  %v6376_v9 = vmax.f32 %v6248_v37, 0.0  ;;  %v6110_v34 = vadd.f32 %v11296_v30, %v5930_v12 }
 0x6b7   : > { %v5933_v5 = vpop.f32.mrf.mxu0  ;;  %v11823_v36 = vpop.f32.mrf.mxu1 }
 0x6b8   : > { %v5934_v8 = vadd.f32 %v5933_v5, %v11692_v0  ;;  %v6111_v51 = vadd.f32 %v11292_v52, %v5932_v10  ;;  %v6377_v1 = vmax.f32 %v6249_v3, 0.0  ;;  %v6454_v60 = vpack.c.bf16 %v6376_v9, %v6374_v48 }
 0x6b9   : > { %v5935_v23 = vpop.f32.mrf.mxu0 }
 0x6ba   : > { %v6112_v29 = vadd.f32 %v11296_v30, %v5934_v8  ;;  %v5936_v27 = vadd.f32 %v5935_v23, %v11698_v45  ;;  %v6455_v62 = vpack.c.bf16 %v6377_v1, %v6375_v38  ;;  %v6251_v58 = vadd.f32 %v11304_v19, %v6111_v51 }
 0x6bb   : > { %v5939_v32 = vpop.f32.mrf.mxu0  ;;  %v6250_v45 = vadd.f32 %v11310_v11, %v6110_v34 }
 0x6bc   : > { %v6252_v14 = vadd.f32 %v11310_v11, %v6112_v29  ;;  %v6113_v0 = vadd.f32 %v11292_v52, %v5936_v27  ;;  %v5940_v50 = vadd.f32 %v5939_v32, %v11702_v2  ;;  %6946 = vmatprep.mubr.bf16.mxu1 %v6455_v62  ;;  %v11839_v2 = vrot.slane %v6502_v6, %v10337_v17 }
 0x6bd   : > { %v5941_v20 = vpop.f32.mrf.mxu0  ;;  %v6708_v54 = vpop.f32.mrf.mxu1  ;;  %6947 = vmatmul.mubr.bf16.gmra.mxu1 %v6454_v60  ;;  %v6379_v49 = vmax.f32 %v6251_v58, 0.0  ;;  %v6378_v10 = vmax.f32 %v6250_v45, 0.0 }
 0x6be   : > { %v6253_v57 = vadd.f32 %v11304_v19, %v6113_v0  ;;  %v5942_v61 = vadd.f32 %v5941_v20, %v11707_v53  ;;  %v6380_v37 = vmax.f32 %v6252_v14, 0.0  ;;  %v6114_v22 = vadd.f32 %v11296_v30, %v5940_v50 }
 0x6bf   : > { %v5943_v56 = vpop.f32.mrf.mxu0  ;;  %v6710_v39 = vpop.f32.mrf.mxu1  ;;  %v6709_v48 = vadd.f32 %v6708_v54, %v11839_v2 }
 0x6c0   : > { %v5944_v21 = vadd.f32 %v5943_v56, %v11712_v31  ;;  %v6115_v3 = vadd.f32 %v11292_v52, %v5942_v61  ;;  %v6381_v53 = vmax.f32 %v6253_v57, 0.0  ;;  %v6711_v38 = vadd.f32 %v6710_v39, %v11836_v63 }
 0x6c1   : > { %v5945_v12 = vpop.f32.mrf.mxu0  ;;  %v6712_v8 = vpop.f32.mrf.mxu1  ;;  %v6456_v1 = vpack.c.bf16 %v6380_v37, %v6378_v10  ;;  %v6254_v32 = vadd.f32 %v11310_v11, %v6114_v22  ;;  %v7027_v61 = vmax.f32 %v6709_v48, 0.0 }
 0x6c2   : > { %v6116_v5 = vadd.f32 %v11296_v30, %v5944_v21  ;;  %v5946_v9 = vadd.f32 %v5945_v12, %v11718_v43  ;;  %v6713_v51 = vadd.f32 %v6712_v8, %v11839_v2  ;;  %v6457_v31 = vpack.c.bf16 %v6381_v53, %v6379_v49 }
 0x6c3   : > { %v5949_v23 = vpop.f32.mrf.mxu0  ;;  %v6714_v27 = vpop.f32.mrf.mxu1  ;;  %v6255_v62 = vadd.f32 %v11304_v19, %v6115_v3  ;;  %v7028_v6 = vmax.f32 %v6711_v38, 0.0  ;;  %v6382_v39 = vmax.f32 %v6254_v32, 0.0 }
 0x6c4   : > { %v6256_v34 = vadd.f32 %v11310_v11, %v6116_v5  ;;  %v6117_v29 = vadd.f32 %v11292_v52, %v5946_v9  ;;  %v6715_v43 = vadd.f32 %v6714_v27, %v11836_v63  ;;  %6956 = vmatprep.mubr.bf16.mxu1 %v6457_v31  ;;  %v7029_v0 = vmax.f32 %v6713_v51, 0.0 }
 0x6c5   : > { %v5951_v60 = vpop.f32.mrf.mxu0  ;;  %v5950_v58 = vadd.f32 %v5949_v23, %v11722_v35  ;;  %v6718_v20 = vpop.f32.mrf.mxu1  ;;  %6957 = vmatmul.mubr.bf16.gmra.mxu1 %v6456_v1  ;;  %v6383_v49 = vmax.f32 %v6255_v62, 0.0 }
 0x6c6   : > { %v6257_v14 = vadd.f32 %v11304_v19, %v6117_v29  ;;  %v5952_v50 = vadd.f32 %v5951_v60, %v11727_v41  ;;  %v7030_v45 = vmax.f32 %v6715_v43, 0.0  ;;  %v6384_v54 = vmax.f32 %v6256_v34, 0.0 }
 0x6c7   : > { %v5953_v57 = vpop.f32.mrf.mxu0  ;;  %v6720_v21 = vpop.f32.mrf.mxu1  ;;  %v7155_v35 = vpack.c.bf16 %v7029_v0, %v7027_v61  ;;  %v6118_v41 = vadd.f32 %v11296_v30, %v5950_v58  ;;  %v6719_v9 = vadd.f32 %v6718_v20, %v11839_v2 }
 0x6c8   : > { %v6119_v56 = vadd.f32 %v11292_v52, %v5952_v50  ;;  %v5954_v37 = vadd.f32 %v5953_v57, %v11732_v15  ;;  %v7156_v3 = vpack.c.bf16 %v7030_v45, %v7028_v6  ;;  %v6385_v12 = vmax.f32 %v6257_v14, 0.0 }
 0x6c9   : > { %v5955_v22 = vpop.f32.mrf.mxu0  ;;  %v6722_v5 = vpop.f32.mrf.mxu1  ;;  %v6721_v8 = vadd.f32 %v6720_v21, %v11836_v63  ;;  %v6458_v23 = vpack.c.bf16 %v6384_v54, %v6382_v39  ;;  %v6258_v32 = vadd.f32 %v11310_v11, %v6118_v41  ;;  %v7031_v6 = vmax.f32 %v6719_v9, 0.0 }
 0x6ca   : > { %v6120_v53 = vadd.f32 %v11296_v30, %v5954_v37  ;;  %v5956_v10 = vadd.f32 %v5955_v22, %v11738_v33  ;;  %v6723_v15 = vadd.f32 %v6722_v5, %v11839_v2  ;;  %7455 = vmatprep.mubr.bf16.mxu0 %v7156_v3  ;;  %v6459_v51 = vpack.c.bf16 %v6385_v12, %v6383_v49 }
 0x6cb   : > { %v5959_v38 = vpop.f32.mrf.mxu0  ;;  %v6259_v31 = vadd.f32 %v11304_v19, %v6119_v56  ;;  %v6724_v34 = vpop.f32.mrf.mxu1  ;;  %7456 = vmatmul.mubr.bf16.vlgmr.msra.gmra.mxu0 %v7155_v35  ;;  %v7032_v0 = vmax.f32 %v6721_v8, 0.0  ;;  %v6386_v39 = vmax.f32 %v6258_v32, 0.0 }
 0x6cc   : > { %v6260_v1 = vadd.f32 %v11310_v11, %v6120_v53  ;;  %v6121_v48 = vadd.f32 %v11292_v52, %v5956_v10  ;;  %v5960_v33 = vadd.f32 %v5959_v38, %v11742_v55  ;;  %v6725_v29 = vadd.f32 %v6724_v34, %v11836_v63  ;;  %6966 = vmatprep.mubr.bf16.mxu1 %v6459_v51 }
 0x6cd   : > { %v5961_v27 = vpop.f32.mrf.mxu0  ;;  %v7033_v43 = vmax.f32 %v6723_v15, 0.0  ;;  %v6728_v14 = vpop.f32.mrf.mxu1  ;;  %6967 = vmatmul.mubr.bf16.gmra.mxu1 %v6458_v23  ;;  %v6387_v20 = vmax.f32 %v6259_v31, 0.0 }
 0x6ce   : > { %v6261_v62 = vadd.f32 %v11304_v19, %v6121_v48  ;;  %v5962_v60 = vadd.f32 %v5961_v27, %v11747_v7  ;;  %v7034_v58 = vmax.f32 %v6725_v29, 0.0  ;;  %v6388_v45 = vmax.f32 %v6260_v1, 0.0 }
 0x6cf   : > { %v5963_v50 = vpop.f32.mrf.mxu0  ;;  %v6730_v57 = vpop.f32.mrf.mxu1  ;;  %v6122_v61 = vadd.f32 %v11296_v30, %v5960_v33  ;;  %v7157_v7 = vpack.c.bf16 %v7033_v43, %v7031_v6  ;;  %v6729_v10 = vadd.f32 %v6728_v14, %v11839_v2 }
 0x6d0   : > { %v5964_v55 = vadd.f32 %v5963_v50, %v11752_v26  ;;  %v6123_v54 = vadd.f32 %v11292_v52, %v5962_v60  ;;  %v7158_v37 = vpack.c.bf16 %v7034_v58, %v7032_v0  ;;  %v6389_v21 = vmax.f32 %v6261_v62, 0.0 }
 0x6d1   : > { %v5965_v56 = vpop.f32.mrf.mxu0  ;;  %v6732_v3 = vpop.f32.mrf.mxu1  ;;  %v6731_v12 = vadd.f32 %v6730_v57, %v11836_v63  ;;  %v6460_v53 = vpack.c.bf16 %v6388_v45, %v6386_v39  ;;  %v6262_v15 = vadd.f32 %v11310_v11, %v6122_v61  ;;  %v7035_v32 = vmax.f32 %v6729_v10, 0.0 }
 0x6d2   : > { %v6124_v49 = vadd.f32 %v11296_v30, %v5964_v55  ;;  %v5966_v22 = vadd.f32 %v5965_v56, %v11758_v13  ;;  %v6733_v35 = vadd.f32 %v6732_v3, %v11839_v2  ;;  %7465 = vmatprep.mubr.bf16.mxu0 %v7158_v37  ;;  %v6461_v41 = vpack.c.bf16 %v6389_v21, %v6387_v20 }
 0x6d3   : > { %v5969_v26 = vpop.f32.mrf.mxu0  ;;  %v6734_v8 = vpop.f32.mrf.mxu1  ;;  %7466 = vmatmul.mubr.bf16.gmra.mxu0 %v7157_v7  ;;  %v6263_v13 = vadd.f32 %v11304_v19, %v6123_v54  ;;  %v7036_v33 = vmax.f32 %v6731_v12, 0.0  ;;  %v6390_v0 = vmax.f32 %v6262_v15, 0.0 }
 0x6d4   : > { %v6264_v5 = vadd.f32 %v11310_v11, %v6124_v49  ;;  %v6125_v9 = vadd.f32 %v11292_v52, %v5966_v22  ;;  %v6735_v38 = vadd.f32 %v6734_v8, %v11836_v63  ;;  %6976 = vmatprep.mubr.bf16.mxu1 %v6461_v41  ;;  %v7037_v31 = vmax.f32 %v6733_v35, 0.0 }
 0x6d5   : > { %v5971_v51 = vpop.f32.mrf.mxu0  ;;  %v5970_v1 = vadd.f32 %v5969_v26, %v11762_v47  ;;  %v6738_v34 = vpop.f32.mrf.mxu1  ;;  %6977 = vmatmul.mubr.bf16.gmra.mxu1 %v6460_v53  ;;  %v6391_v58 = vmax.f32 %v6263_v13, 0.0 }
 0x6d6   : > { %v6265_v23 = vadd.f32 %v11304_v19, %v6125_v9  ;;  %v5972_v48 = vadd.f32 %v5971_v51, %v11767_v4  ;;  %v7038_v29 = vmax.f32 %v6735_v38, 0.0  ;;  %v6392_v62 = vmax.f32 %v6264_v5, 0.0 }
 0x6d7   : > { %v5973_v27 = vpop.f32.mrf.mxu0  ;;  %v6740_v14 = vpop.f32.mrf.mxu1  ;;  %v7159_v47 = vpack.c.bf16 %v7037_v31, %v7035_v32  ;;  %v6126_v4 = vadd.f32 %v11296_v30, %v5970_v1  ;;  %v6739_v61 = vadd.f32 %v6738_v34, %v11839_v2 }
 0x6d8   : > { %v6127_v43 = vadd.f32 %v11292_v52, %v5972_v48  ;;  %v5974_v60 = vadd.f32 %v5973_v27, %v11772_v42  ;;  %v7160_v20 = vpack.c.bf16 %v7038_v29, %v7036_v33  ;;  %v6393_v6 = vmax.f32 %v6265_v23, 0.0 }
 0x6d9   : > { %v5975_v50 = vpop.f32.mrf.mxu0  ;;  %v6742_v57 = vpop.f32.mrf.mxu1  ;;  %v6741_v54 = vadd.f32 %v6740_v14, %v11836_v63  ;;  %v6462_v21 = vpack.c.bf16 %v6392_v62, %v6390_v0  ;;  %v6266_v35 = vadd.f32 %v11310_v11, %v6126_v4  ;;  %v7039_v13 = vmax.f32 %v6739_v61, 0.0 }
 0x6da   : > { %v6128_v45 = vadd.f32 %v11296_v30, %v5974_v60  ;;  %v5976_v55 = vadd.f32 %v5975_v50, %v11778_v44  ;;  %v6743_v42 = vadd.f32 %v6742_v57, %v11839_v2  ;;  %7475 = vmatprep.mubr.bf16.mxu0 %v7160_v20  ;;  %v6463_v37 = vpack.c.bf16 %v6393_v6, %v6391_v58 }
 0x6db   : > { %v5979_v56 = vpop.f32.mrf.mxu0  ;;  %v6267_v39 = vadd.f32 %v11304_v19, %v6127_v43  ;;  %v6744_v22 = vpop.f32.mrf.mxu1  ;;  %7476 = vmatmul.mubr.bf16.gmra.mxu0 %v7159_v47  ;;  %v7040_v5 = vmax.f32 %v6741_v54, 0.0  ;;  %v6394_v33 = vmax.f32 %v6266_v35, 0.0 }
 0x6dc   : > { %v6268_v7 = vadd.f32 %v11310_v11, %v6128_v45  ;;  %v6129_v49 = vadd.f32 %v11292_v52, %v5976_v55  ;;  %v5980_v44 = vadd.f32 %v5979_v56, %v11782_v40  ;;  %v6745_v3 = vadd.f32 %v6744_v22, %v11836_v63  ;;  %6986 = vmatprep.mubr.bf16.mxu1 %v6463_v37 }
 0x6dd   : > { %v5981_v12 = vpop.f32.mrf.mxu0  ;;  %v7041_v41 = vmax.f32 %v6743_v42, 0.0  ;;  %v6748_v10 = vpop.f32.mrf.mxu1  ;;  %6987 = vmatmul.mubr.bf16.gmra.mxu1 %v6462_v21  ;;  %v6395_v15 = vmax.f32 %v6267_v39, 0.0 }
 0x6de   : > { %v6269_v26 = vadd.f32 %v11304_v19, %v6129_v49  ;;  %v5982_v53 = vadd.f32 %v5981_v12, %v11787_v59  ;;  %v7042_v9 = vmax.f32 %v6745_v3, 0.0  ;;  %v6396_v38 = vmax.f32 %v6268_v7, 0.0 }
 0x6df   : > { %v5983_v8 = vpop.f32.mrf.mxu0  ;;  %v6750_v51 = vpop.f32.mrf.mxu1  ;;  %v6130_v23 = vadd.f32 %v11296_v30, %v5980_v44  ;;  %v7161_v59 = vpack.c.bf16 %v7041_v41, %v7039_v13  ;;  %v6749_v0 = vadd.f32 %v6748_v10, %v11839_v2 }
 0x6e0   : > { %v5984_v40 = vadd.f32 %v5983_v8, %v11792_v28  ;;  %v6131_v31 = vadd.f32 %v11292_v52, %v5982_v53  ;;  %v7162_v48 = vpack.c.bf16 %v7042_v9, %v7040_v5  ;;  %v6397_v34 = vmax.f32 %v6269_v26, 0.0 }
 0x6e1   : > { %v5985_v1 = vpop.f32.mrf.mxu0  ;;  %v6752_v32 = vpop.f32.mrf.mxu1  ;;  %v6751_v62 = vadd.f32 %v6750_v51, %v11836_v63  ;;  %v6464_v14 = vpack.c.bf16 %v6396_v38, %v6394_v33  ;;  %v6270_v6 = vadd.f32 %v11310_v11, %v6130_v23  ;;  %v7043_v21 = vmax.f32 %v6749_v0, 0.0 }
 0x6e2   : > { %v6132_v29 = vadd.f32 %v11296_v30, %v5984_v40  ;;  %v5986_v27 = vadd.f32 %v5985_v1, %v11798_v46  ;;  %v6753_v43 = vadd.f32 %v6752_v32, %v11839_v2  ;;  %7485 = vmatprep.mubr.bf16.mxu0 %v7162_v48  ;;  %v6465_v60 = vpack.c.bf16 %v6397_v34, %v6395_v15 }
 0x6e3   : > { %v5989_v28 = vpop.f32.mrf.mxu0  ;;  %v6754_v20 = vpop.f32.mrf.mxu1  ;;  %7486 = vmatmul.mubr.bf16.gmra.mxu0 %v7161_v59  ;;  %v6271_v46 = vadd.f32 %v11304_v19, %v6131_v31  ;;  %v7044_v42 = vmax.f32 %v6751_v62, 0.0  ;;  %v6398_v44 = vmax.f32 %v6270_v6, 0.0 }
 0x6e4   : > { %v6272_v58 = vadd.f32 %v11310_v11, %v6132_v29  ;;  %v6133_v50 = vadd.f32 %v11292_v52, %v5986_v27  ;;  %v6755_v47 = vadd.f32 %v6754_v20, %v11836_v63  ;;  %6996 = vmatprep.mubr.bf16.mxu1 %v6465_v60  ;;  %v7045_v55 = vmax.f32 %v6753_v43, 0.0 }
 0x6e5   : > { %v5991_v4 = vpop.f32.mrf.mxu0  ;;  %v5990_v57 = vadd.f32 %v5989_v28, %v11802_v18  ;;  %v6758_v54 = vpop.f32.mrf.mxu1  ;;  %6997 = vmatmul.mubr.bf16.gmra.mxu1 %v6464_v14  ;;  %v6399_v3 = vmax.f32 %v6271_v46, 0.0 }
 0x6e6   : > { %v6273_v45 = vadd.f32 %v11304_v19, %v6133_v50  ;;  %v5992_v61 = vadd.f32 %v5991_v4, %v11809_v24  ;;  %v7046_v56 = vmax.f32 %v6755_v47, 0.0  ;;  %v6400_v39 = vmax.f32 %v6272_v58, 0.0 }
 0x6e7   : > { %v5993_v37 = vpop.f32.mrf.mxu0  ;;  %v6760_v22 = vpop.f32.mrf.mxu1  ;;  %v7163_v18 = vpack.c.bf16 %v7045_v55, %v7043_v21  ;;  %v6134_v24 = vadd.f32 %v11296_v30, %v5990_v57  ;;  %v6759_v5 = vadd.f32 %v6758_v54, %v11839_v2 }
 0x6e8   : > { %v6135_v7 = vadd.f32 %v11292_v52, %v5992_v61  ;;  %v5994_v49 = vadd.f32 %v5993_v37, %v11816_v25  ;;  %v7164_v35 = vpack.c.bf16 %v7046_v56, %v7044_v42  ;;  %v6401_v26 = vmax.f32 %v6273_v45, 0.0 }
 0x6e9   : > { %v5995_v12 = vpop.f32.mrf.mxu0  ;;  %v6762_v10 = vpop.f32.mrf.mxu1  ;;  %v6761_v9 = vadd.f32 %v6760_v22, %v11836_v63  ;;  %v6466_v15 = vpack.c.bf16 %v6400_v39, %v6398_v44  ;;  %v7047_v59 = vmax.f32 %v6759_v5, 0.0 }
 0x6ea   : > { %v6136_v41 = vadd.f32 %v11296_v30, %v5994_v49  ;;  %v5996_v53 = vadd.f32 %v5995_v12, %v11823_v36  ;;  %v6763_v25 = vadd.f32 %v6762_v10, %v11839_v2  ;;  %7495 = vmatprep.mubr.bf16.mxu0 %v7164_v35  ;;  %v6467_v8 = vpack.c.bf16 %v6401_v26, %v6399_v3 }
 0x6eb   : > { %v6275_v13 = vadd.f32 %v11304_v19, %v6135_v7  ;;  %v6764_v51 = vpop.f32.mrf.mxu1  ;;  %7496 = vmatmul.mubr.bf16.gmra.mxu0 %v7163_v18  ;;  %v6274_v36 = vadd.f32 %v11310_v11, %v6134_v24  ;;  %v7048_v48 = vmax.f32 %v6761_v9, 0.0 }
 0x6ec   : > { %v6276_v38 = vadd.f32 %v11310_v11, %v6136_v41  ;;  %v6137_v40 = vadd.f32 %v11292_v52, %v5996_v53  ;;  %v6765_v30 = vadd.f32 %v6764_v51, %v11836_v63  ;;  %7006 = vmatprep.mubr.bf16.mxu1 %v6467_v8  ;;  %v7049_v31 = vmax.f32 %v6763_v25, 0.0 }
 0x6ed   : > { %v6768_v1 = vpop.f32.mrf.mxu1  ;;  %7007 = vmatmul.mubr.bf16.gmra.mxu1 %v6466_v15  ;;  %v6403_v33 = vmax.f32 %v6275_v13, 0.0  ;;  %v6402_v62 = vmax.f32 %v6274_v36, 0.0 }
 0x6ee   : > { %v6277_v23 = vadd.f32 %v11304_v19, %v6137_v40  ;;  %v7050_v34 = vmax.f32 %v6765_v30, 0.0  ;;  %v6404_v29 = vmax.f32 %v6276_v38, 0.0  ;;  %v7165_v43 = vpack.c.bf16 %v7049_v31, %v7047_v59 }
 0x6ef   : > { %v6770_v27 = vpop.f32.mrf.mxu1  ;;  %v6769_v0 = vadd.f32 %v6768_v1, %v11839_v2 }
 0x6f0   : > { %v6405_v32 = vmax.f32 %v6277_v23, 0.0  ;;  %v7166_v52 = vpack.c.bf16 %v7050_v34, %v7048_v48  ;;  %v6771_v14 = vadd.f32 %v6770_v27, %v11836_v63  ;;  %v6468_v19 = vpack.c.bf16 %v6404_v29, %v6402_v62 }
 0x6f1   : > { %v6772_v28 = vpop.f32.mrf.mxu1  ;;  %v7051_v4 = vmax.f32 %v6769_v0, 0.0 }
 0x6f2   : > { %v6469_v60 = vpack.c.bf16 %v6405_v32, %v6403_v33  ;;  %v6773_v11 = vadd.f32 %v6772_v28, %v11839_v2  ;;  %7505 = vmatprep.mubr.bf16.mxu0 %v7166_v52  ;;  %v7052_v46 = vmax.f32 %v6771_v14, 0.0 }
 0x6f3   : > { %v6774_v58 = vpop.f32.mrf.mxu1  ;;  %7506 = vmatmul.mubr.bf16.gmra.mxu0 %v7165_v43 }
 0x6f4   : > { %7016 = vmatprep.mubr.bf16.mxu1 %v6469_v60  ;;  %v6775_v50 = vadd.f32 %v6774_v58, %v11836_v63  ;;  %v7053_v20 = vmax.f32 %v6773_v11, 0.0 }
 0x6f5   : > { %v6778_v6 = vpop.f32.mrf.mxu1  ;;  %7017 = vmatmul.mubr.bf16.gmra.mxu1 %v6468_v19 }
 0x6f6   : > { %v7054_v47 = vmax.f32 %v6775_v50, 0.0  ;;  %v7167_v57 = vpack.c.bf16 %v7053_v20, %v7051_v4  ;;  %v6779_v56 = vadd.f32 %v6778_v6, %v11839_v2 }
 0x6f7   : > { %v6780_v45 = vpop.f32.mrf.mxu1 }
 0x6f8   : > { %v7168_v55 = vpack.c.bf16 %v7054_v47, %v7052_v46  ;;  %v6781_v54 = vadd.f32 %v6780_v45, %v11836_v63  ;;  %v7055_v44 = vmax.f32 %v6779_v56, 0.0 }
 0x6f9   : > { %v6782_v61 = vpop.f32.mrf.mxu1 }
 0x6fa   : > { %v6783_v42 = vadd.f32 %v6782_v61, %v11839_v2  ;;  %7515 = vmatprep.mubr.bf16.mxu0 %v7168_v55  ;;  %v7056_v49 = vmax.f32 %v6781_v54, 0.0 }
 0x6fb   : > { %v6784_v37 = vpop.f32.mrf.mxu1  ;;  %7516 = vmatmul.mubr.bf16.gmra.mxu0 %v7167_v57 }
 0x6fc   : > { %v6785_v21 = vadd.f32 %v6784_v37, %v11836_v63  ;;  %v7057_v39 = vmax.f32 %v6783_v42, 0.0 }
 0x6fd   : > { %v6788_v7 = vpop.f32.mrf.mxu1 }
 0x6fe   : > { %v7058_v22 = vmax.f32 %v6785_v21, 0.0  ;;  %v7169_v35 = vpack.c.bf16 %v7057_v39, %v7055_v44  ;;  %v6789_v41 = vadd.f32 %v6788_v7, %v11839_v2 }
 0x6ff   : > { %v6790_v3 = vpop.f32.mrf.mxu1 }
 0x700   : > { %v7170_v12 = vpack.c.bf16 %v7058_v22, %v7056_v49  ;;  %v6791_v18 = vadd.f32 %v6790_v3, %v11836_v63  ;;  %v7059_v15 = vmax.f32 %v6789_v41, 0.0 }
 0x701   : > { %v6792_v26 = vpop.f32.mrf.mxu1 }
 0x702   : > { %v6793_v24 = vadd.f32 %v6792_v26, %v11839_v2  ;;  %7525 = vmatprep.mubr.bf16.mxu0 %v7170_v12  ;;  %v7060_v25 = vmax.f32 %v6791_v18, 0.0 }
 0x703   : > { %v6794_v53 = vpop.f32.mrf.mxu1  ;;  %7526 = vmatmul.mubr.bf16.gmra.mxu0 %v7169_v35 }
 0x704   : > { %v6795_v10 = vadd.f32 %v6794_v53, %v11836_v63  ;;  %v7061_v5 = vmax.f32 %v6793_v24, 0.0 }
 0x705   : > { %v6798_v9 = vpop.f32.mrf.mxu1 }
 0x706   : > { %v7062_v8 = vmax.f32 %v6795_v10, 0.0  ;;  %v7171_v40 = vpack.c.bf16 %v7061_v5, %v7059_v15  ;;  %v6799_v23 = vadd.f32 %v6798_v9, %v11839_v2 }
 0x707   : > { %v6800_v13 = vpop.f32.mrf.mxu1 }
 0x708   : > { %v7172_v38 = vpack.c.bf16 %v7062_v8, %v7060_v25  ;;  %v6801_v30 = vadd.f32 %v6800_v13, %v11836_v63  ;;  %v7063_v29 = vmax.f32 %v6799_v23, 0.0 }
 0x709   : > { %v6802_v51 = vpop.f32.mrf.mxu1 }
 0x70a   : > { %v6803_v36 = vadd.f32 %v6802_v51, %v11839_v2  ;;  %7535 = vmatprep.mubr.bf16.mxu0 %v7172_v38  ;;  %v7064_v33 = vmax.f32 %v6801_v30, 0.0 }
 0x70b   : > { %v6804_v31 = vpop.f32.mrf.mxu1  ;;  %7536 = vmatmul.mubr.bf16.gmra.mxu0 %v7171_v40 }
 0x70c   : > { %v6805_v1 = vadd.f32 %v6804_v31, %v11836_v63  ;;  %v7065_v48 = vmax.f32 %v6803_v36, 0.0 }
 0x70d   : > { %v6808_v34 = vpop.f32.mrf.mxu1 }
 0x70e   : > { %v7066_v59 = vmax.f32 %v6805_v1, 0.0  ;;  %v7173_v52 = vpack.c.bf16 %v7065_v48, %v7063_v29  ;;  %v6809_v60 = vadd.f32 %v6808_v34, %v11839_v2 }
 0x70f   : > { %v6810_v27 = vpop.f32.mrf.mxu1 }
 0x710   : > { %v7174_v32 = vpack.c.bf16 %v7066_v59, %v7064_v33  ;;  %v6811_v43 = vadd.f32 %v6810_v27, %v11836_v63  ;;  %v7067_v20 = vmax.f32 %v6809_v60, 0.0 }
 0x711   : > { %v6812_v62 = vpop.f32.mrf.mxu1 }
 0x712   : > { %v6813_v28 = vadd.f32 %v6812_v62, %v11839_v2  ;;  %7545 = vmatprep.mubr.bf16.mxu0 %v7174_v32  ;;  %v7068_v58 = vmax.f32 %v6811_v43, 0.0 }
 0x713   : > { %v6814_v14 = vpop.f32.mrf.mxu1  ;;  %7546 = vmatmul.mubr.bf16.gmra.mxu0 %v7173_v52 }
 0x714   : > { %v6815_v11 = vadd.f32 %v6814_v14, %v11836_v63  ;;  %v7069_v19 = vmax.f32 %v6813_v28, 0.0 }
 0x715   : > { %v6818_v0 = vpop.f32.mrf.mxu1 }
 0x716   : > { %v7070_v50 = vmax.f32 %v6815_v11, 0.0  ;;  %v7175_v47 = vpack.c.bf16 %v7069_v19, %v7067_v20  ;;  %v6819_v57 = vadd.f32 %v6818_v0, %v11839_v2 }
 0x717   : > { %v6820_v6 = vpop.f32.mrf.mxu1 }
 0x718   : > { %v7176_v46 = vpack.c.bf16 %v7070_v50, %v7068_v58  ;;  %v6821_v45 = vadd.f32 %v6820_v6, %v11836_v63  ;;  %v7071_v39 = vmax.f32 %v6819_v57, 0.0 }
 0x719   : > { %v6822_v4 = vpop.f32.mrf.mxu1 }
 0x71a   : > { %v6823_v55 = vadd.f32 %v6822_v4, %v11839_v2  ;;  %7555 = vmatprep.mubr.bf16.mxu0 %v7176_v46  ;;  %v7072_v37 = vmax.f32 %v6821_v45, 0.0 }
 0x71b   : > { %v6824_v61 = vpop.f32.mrf.mxu1  ;;  %7556 = vmatmul.mubr.bf16.gmra.mxu0 %v7175_v47 }
 0x71c   : > { %v6825_v54 = vadd.f32 %v6824_v61, %v11836_v63  ;;  %v7073_v42 = vmax.f32 %v6823_v55, 0.0 }
 0x71d   : > { %v6828_v56 = vpop.f32.mrf.mxu1 }
 0x71e   : > { %v7074_v21 = vmax.f32 %v6825_v54, 0.0  ;;  %v7177_v22 = vpack.c.bf16 %v7073_v42, %v7071_v39  ;;  %v6829_v35 = vadd.f32 %v6828_v56, %v11839_v2 }
 0x71f   : > { %v6830_v7 = vpop.f32.mrf.mxu1 }
 0x720   : > { %v7178_v49 = vpack.c.bf16 %v7074_v21, %v7072_v37  ;;  %v6831_v3 = vadd.f32 %v6830_v7, %v11836_v63  ;;  %v7075_v5 = vmax.f32 %v6829_v35, 0.0 }
 0x721   : > { %v6832_v44 = vpop.f32.mrf.mxu1 }
 0x722   : > { %v6833_v12 = vadd.f32 %v6832_v44, %v11839_v2  ;;  %7565 = vmatprep.mubr.bf16.mxu0 %v7178_v49  ;;  %v7076_v53 = vmax.f32 %v6831_v3, 0.0 }
 0x723   : > { %v6834_v26 = vpop.f32.mrf.mxu1  ;;  %7566 = vmatmul.mubr.bf16.gmra.mxu0 %v7177_v22 }
 0x724   : > { %v6835_v18 = vadd.f32 %v6834_v26, %v11836_v63  ;;  %v7077_v24 = vmax.f32 %v6833_v12, 0.0 }
 0x725   : > { %v6838_v41 = vpop.f32.mrf.mxu1 }
 0x726   : > { %v7078_v10 = vmax.f32 %v6835_v18, 0.0  ;;  %v7179_v8 = vpack.c.bf16 %v7077_v24, %v7075_v5  ;;  %v6839_v40 = vadd.f32 %v6838_v41, %v11839_v2 }
 0x727   : > { %v6840_v9 = vpop.f32.mrf.mxu1 }
 0x728   : > { %v7180_v25 = vpack.c.bf16 %v7078_v10, %v7076_v53  ;;  %v6841_v13 = vadd.f32 %v6840_v9, %v11836_v63  ;;  %v7079_v48 = vmax.f32 %v6839_v40, 0.0 }
 0x729   : > { %v6842_v15 = vpop.f32.mrf.mxu1 }
 0x72a   : > { %v6843_v38 = vadd.f32 %v6842_v15, %v11839_v2  ;;  %7575 = vmatprep.mubr.bf16.mxu0 %v7180_v25  ;;  %v7080_v31 = vmax.f32 %v6841_v13, 0.0 }
 0x72b   : > { %v6844_v51 = vpop.f32.mrf.mxu1  ;;  %7576 = vmatmul.mubr.bf16.gmra.mxu0 %v7179_v8 }
 0x72c   : > { %v6845_v30 = vadd.f32 %v6844_v51, %v11836_v63  ;;  %v7081_v36 = vmax.f32 %v6843_v38, 0.0 }
 0x72d   : > { %v6848_v23 = vpop.f32.mrf.mxu1 }
 0x72e   : > { %v7082_v1 = vmax.f32 %v6845_v30, 0.0  ;;  %v7181_v59 = vpack.c.bf16 %v7081_v36, %v7079_v48  ;;  %v6849_v52 = vadd.f32 %v6848_v23, %v11839_v2 }
 0x72f   : > { %v6850_v34 = vpop.f32.mrf.mxu1 }
 0x730   : > { %v7182_v33 = vpack.c.bf16 %v7082_v1, %v7080_v31  ;;  %v6851_v27 = vadd.f32 %v6850_v34, %v11836_v63  ;;  %v7083_v19 = vmax.f32 %v6849_v52, 0.0 }
 0x731   : > { %v6852_v29 = vpop.f32.mrf.mxu1 }
 0x732   : > { %v6853_v32 = vadd.f32 %v6852_v29, %v11839_v2  ;;  %7585 = vmatprep.mubr.bf16.mxu0 %v7182_v33  ;;  %v7084_v14 = vmax.f32 %v6851_v27, 0.0 }
 0x733   : > { %v6854_v62 = vpop.f32.mrf.mxu1  ;;  %7586 = vmatmul.mubr.bf16.gmra.mxu0 %v7181_v59 }
 0x734   : > { %v6855_v43 = vadd.f32 %v6854_v62, %v11836_v63  ;;  %v7085_v28 = vmax.f32 %v6853_v32, 0.0 }
 0x735   : > { %v6858_v60 = vpop.f32.mrf.mxu1 }
 0x736   : > { %v7086_v11 = vmax.f32 %v6855_v43, 0.0  ;;  %v7183_v50 = vpack.c.bf16 %v7085_v28, %v7083_v19  ;;  %v6859_v47 = vadd.f32 %v6858_v60, %v11839_v2 }
 0x737   : > { %v6860_v0 = vpop.f32.mrf.mxu1 }
 0x738   : > { %v7184_v58 = vpack.c.bf16 %v7086_v11, %v7084_v14  ;;  %v6861_v6 = vadd.f32 %v6860_v0, %v11836_v63  ;;  %v7087_v42 = vmax.f32 %v6859_v47, 0.0 }
 0x739   : > { %v6862_v20 = vpop.f32.mrf.mxu1 }
 0x73a   : > { %v6863_v46 = vadd.f32 %v6862_v20, %v11839_v2  ;;  %7595 = vmatprep.mubr.bf16.mxu0 %v7184_v58  ;;  %v7088_v61 = vmax.f32 %v6861_v6, 0.0 }
 0x73b   : > { %v6864_v4 = vpop.f32.mrf.mxu1  ;;  %7596 = vmatmul.mubr.bf16.gmra.mxu0 %v7183_v50 }
 0x73c   : > { %v6865_v45 = vadd.f32 %v6864_v4, %v11836_v63  ;;  %v7089_v55 = vmax.f32 %v6863_v46, 0.0 }
 0x73d   : > { %v6868_v57 = vpop.f32.mrf.mxu1 }
 0x73e   : > { %v7090_v54 = vmax.f32 %v6865_v45, 0.0  ;;  %v7185_v21 = vpack.c.bf16 %v7089_v55, %v7087_v42  ;;  %v6869_v22 = vadd.f32 %v6868_v57, %v11839_v2 }
 0x73f   : > { %v6870_v56 = vpop.f32.mrf.mxu1 }
 0x740   : > { %v7186_v37 = vpack.c.bf16 %v7090_v54, %v7088_v61  ;;  %v6871_v7 = vadd.f32 %v6870_v56, %v11836_v63  ;;  %v7091_v24 = vmax.f32 %v6869_v22, 0.0 }
 0x741   : > { %v6872_v39 = vpop.f32.mrf.mxu1 }
 0x742   : > { %v6873_v49 = vadd.f32 %v6872_v39, %v11839_v2  ;;  %7605 = vmatprep.mubr.bf16.mxu0 %v7186_v37  ;;  %v7092_v26 = vmax.f32 %v6871_v7, 0.0 }
 0x743   : > { %v6874_v44 = vpop.f32.mrf.mxu1  ;;  %7606 = vmatmul.mubr.bf16.gmra.mxu0 %v7185_v21 }
 0x744   : > { %v6875_v3 = vadd.f32 %v6874_v44, %v11836_v63  ;;  %v7093_v12 = vmax.f32 %v6873_v49, 0.0 }
 0x745   : > { %v6878_v35 = vpop.f32.mrf.mxu1 }
 0x746   : > { %v7094_v18 = vmax.f32 %v6875_v3, 0.0  ;;  %v7187_v10 = vpack.c.bf16 %v7093_v12, %v7091_v24  ;;  %v6879_v8 = vadd.f32 %v6878_v35, %v11839_v2 }
 0x747   : > { %v6880_v41 = vpop.f32.mrf.mxu1 }
 0x748   : > { %v7188_v53 = vpack.c.bf16 %v7094_v18, %v7092_v26  ;;  %v6881_v9 = vadd.f32 %v6880_v41, %v11836_v63  ;;  %v7095_v36 = vmax.f32 %v6879_v8, 0.0 }
 0x749   : > { %v6882_v5 = vpop.f32.mrf.mxu1 }
 0x74a   : > { %v6883_v25 = vadd.f32 %v6882_v5, %v11839_v2  ;;  %7615 = vmatprep.mubr.bf16.mxu0 %v7188_v53  ;;  %v7096_v51 = vmax.f32 %v6881_v9, 0.0 }
 0x74b   : > { %v6884_v15 = vpop.f32.mrf.mxu1  ;;  %7616 = vmatmul.mubr.bf16.gmra.mxu0 %v7187_v10 }
 0x74c   : > { %v6885_v13 = vadd.f32 %v6884_v15, %v11836_v63  ;;  %v7097_v38 = vmax.f32 %v6883_v25, 0.0 }
 0x74d   : > { %v6888_v40 = vpop.f32.mrf.mxu1 }
 0x74e   : > { %v7098_v30 = vmax.f32 %v6885_v13, 0.0  ;;  %v7189_v1 = vpack.c.bf16 %v7097_v38, %v7095_v36  ;;  %v6889_v59 = vadd.f32 %v6888_v40, %v11839_v2 }
 0x74f   : > { %v6890_v23 = vpop.f32.mrf.mxu1 }
 0x750   : > { %v7190_v31 = vpack.c.bf16 %v7098_v30, %v7096_v51  ;;  %v6891_v34 = vadd.f32 %v6890_v23, %v11836_v63  ;;  %v7099_v28 = vmax.f32 %v6889_v59, 0.0 }
 0x751   : > { %v6892_v48 = vpop.f32.mrf.mxu1 }
 0x752   : > { %v6893_v33 = vadd.f32 %v6892_v48, %v11839_v2  ;;  %7625 = vmatprep.mubr.bf16.mxu0 %v7190_v31  ;;  %v7100_v62 = vmax.f32 %v6891_v34, 0.0 }
 0x753   : > { %v6894_v29 = vpop.f32.mrf.mxu1  ;;  %7626 = vmatmul.mubr.bf16.gmra.mxu0 %v7189_v1 }
 0x754   : > { %v6895_v27 = vadd.f32 %v6894_v29, %v11836_v63  ;;  %v7101_v32 = vmax.f32 %v6893_v33, 0.0 }
 0x755   : > { %v6898_v52 = vpop.f32.mrf.mxu1 }
 0x756   : > { %v7102_v43 = vmax.f32 %v6895_v27, 0.0  ;;  %v7191_v11 = vpack.c.bf16 %v7101_v32, %v7099_v28  ;;  %v6899_v50 = vadd.f32 %v6898_v52, %v11839_v2 }
 0x757   : > { %v6900_v60 = vpop.f32.mrf.mxu1 }
 0x758   : > { %v7192_v14 = vpack.c.bf16 %v7102_v43, %v7100_v62  ;;  %v6901_v0 = vadd.f32 %v6900_v60, %v11836_v63  ;;  %v7103_v55 = vmax.f32 %v6899_v50, 0.0 }
 0x759   : > { %v6902_v19 = vpop.f32.mrf.mxu1 }
 0x75a   : > { %v6903_v58 = vadd.f32 %v6902_v19, %v11839_v2  ;;  %7635 = vmatprep.mubr.bf16.mxu0 %v7192_v14  ;;  %v7104_v4 = vmax.f32 %v6901_v0, 0.0 }
 0x75b   : > { %v6904_v20 = vpop.f32.mrf.mxu1  ;;  %7636 = vmatmul.mubr.bf16.gmra.mxu0 %v7191_v11 }
 0x75c   : > { %v6905_v6 = vadd.f32 %v6904_v20, %v11836_v63  ;;  %v7105_v46 = vmax.f32 %v6903_v58, 0.0 }
 0x75d   : > { %v6908_v47 = vpop.f32.mrf.mxu1 }
 0x75e   : > { %v7106_v45 = vmax.f32 %v6905_v6, 0.0  ;;  %v7193_v54 = vpack.c.bf16 %v7105_v46, %v7103_v55  ;;  %v6909_v21 = vadd.f32 %v6908_v47, %v11839_v2 }
 0x75f   : > { %v6910_v57 = vpop.f32.mrf.mxu1 }
 0x760   : > { %v7194_v61 = vpack.c.bf16 %v7106_v45, %v7104_v4  ;;  %v6911_v56 = vadd.f32 %v6910_v57, %v11836_v63  ;;  %v7107_v12 = vmax.f32 %v6909_v21, 0.0 }
 0x761   : > { %v6912_v42 = vpop.f32.mrf.mxu1 }
 0x762   : > { %v6913_v37 = vadd.f32 %v6912_v42, %v11839_v2  ;;  %7645 = vmatprep.mubr.bf16.mxu0 %v7194_v61  ;;  %v7108_v44 = vmax.f32 %v6911_v56, 0.0 }
 0x763   : > { %v6914_v39 = vpop.f32.mrf.mxu1  ;;  %7646 = vmatmul.mubr.bf16.gmra.mxu0 %v7193_v54 }
 0x764   : > { %v6915_v7 = vadd.f32 %v6914_v39, %v11836_v63  ;;  %v7109_v49 = vmax.f32 %v6913_v37, 0.0 }
 0x765   : > { %v6918_v22 = vpop.f32.mrf.mxu1 }
 0x766   : > { %v7110_v3 = vmax.f32 %v6915_v7, 0.0  ;;  %v7195_v18 = vpack.c.bf16 %v7109_v49, %v7107_v12  ;;  %v6919_v10 = vadd.f32 %v6918_v22, %v11839_v2  ;;  %v7251_v49 = vld [vmem:[%s12556_s21] sm:$0x3] }
 0x767   : > { %v6920_v35 = vpop.f32.mrf.mxu1 }
 0x768   : > { %v7196_v26 = vpack.c.bf16 %v7110_v3, %v7108_v44  ;;  %v6921_v41 = vadd.f32 %v6920_v35, %v11836_v63  ;;  %v7111_v38 = vmax.f32 %v6919_v10, 0.0 }
 0x769   : > { %v6922_v24 = vpop.f32.mrf.mxu1 }
 0x76a   : > { %v6923_v53 = vadd.f32 %v6922_v24, %v11839_v2  ;;  %7655 = vmatprep.mubr.bf16.mxu0 %v7196_v26  ;;  %v7112_v15 = vmax.f32 %v6921_v41, 0.0  ;;  %v12015_v26 = vrot.slane %v7251_v49, %v10337_v17 }
 0x76b   : > { %v6924_v5 = vpop.f32.mrf.mxu1  ;;  %7656 = vmatmul.mubr.bf16.gmra.mxu0 %v7195_v18 }
 0x76c   : > { %v6925_v9 = vadd.f32 %v6924_v5, %v11836_v63  ;;  %v7113_v25 = vmax.f32 %v6923_v53, 0.0 }
 0x76d   : > { %v6928_v8 = vpop.f32.mrf.mxu1 }
 0x76e   : > { %v7114_v13 = vmax.f32 %v6925_v9, 0.0  ;;  %v7197_v30 = vpack.c.bf16 %v7113_v25, %v7111_v38  ;;  %v6929_v1 = vadd.f32 %v6928_v8, %v11839_v2 }
 0x76f   : > { %v6930_v40 = vpop.f32.mrf.mxu1 }
 0x770   : > { %v7198_v51 = vpack.c.bf16 %v7114_v13, %v7112_v15  ;;  %v6931_v23 = vadd.f32 %v6930_v40, %v11836_v63  ;;  %v7115_v32 = vmax.f32 %v6929_v1, 0.0  ;;  %v12023_v15 = vrot.slane %v7251_v49, %v10335_v16 }
 0x771   : > { %v6932_v36 = vpop.f32.mrf.mxu1 }
 0x772   : > { %v6933_v31 = vadd.f32 %v6932_v36, %v11839_v2  ;;  %7665 = vmatprep.mubr.bf16.mxu0 %v7198_v51  ;;  %v7116_v29 = vmax.f32 %v6931_v23, 0.0 }
 0x773   : > { %v6934_v48 = vpop.f32.mrf.mxu1  ;;  %7666 = vmatmul.mubr.bf16.gmra.mxu0 %v7197_v30 }
 0x774   : > { %v6935_v34 = vadd.f32 %v6934_v48, %v11836_v63  ;;  %v7117_v33 = vmax.f32 %v6933_v31, 0.0 }
 0x775   : > { %v6938_v59 = vpop.f32.mrf.mxu1 }
 0x776   : > { %v7118_v27 = vmax.f32 %v6935_v34, 0.0  ;;  %v7199_v43 = vpack.c.bf16 %v7117_v33, %v7115_v32  ;;  %v6939_v11 = vadd.f32 %v6938_v59, %v11839_v2 }
 0x777   : > { %v6940_v52 = vpop.f32.mrf.mxu1 }
 0x778   : > { %v7200_v62 = vpack.c.bf16 %v7118_v27, %v7116_v29  ;;  %v6941_v60 = vadd.f32 %v6940_v52, %v11836_v63  ;;  %v7119_v46 = vmax.f32 %v6939_v11, 0.0 }
 0x779   : > { %v6942_v28 = vpop.f32.mrf.mxu1 }
 0x77a   : > { %v6943_v14 = vadd.f32 %v6942_v28, %v11839_v2  ;;  %7675 = vmatprep.mubr.bf16.mxu0 %v7200_v62  ;;  %v7120_v20 = vmax.f32 %v6941_v60, 0.0 }
 0x77b   : > { %v6944_v19 = vpop.f32.mrf.mxu1  ;;  %7676 = vmatmul.mubr.bf16.gmra.mxu0 %v7199_v43 }
 0x77c   : > { %v6945_v0 = vadd.f32 %v6944_v19, %v11836_v63  ;;  %v7121_v58 = vmax.f32 %v6943_v14, 0.0 }
 0x77d   : > { %v6948_v50 = vpop.f32.mrf.mxu1 }
 0x77e   : > { %v7122_v6 = vmax.f32 %v6945_v0, 0.0  ;;  %v7201_v45 = vpack.c.bf16 %v7121_v58, %v7119_v46  ;;  %v6949_v54 = vadd.f32 %v6948_v50, %v11839_v2 }
 0x77f   : > { %v6950_v47 = vpop.f32.mrf.mxu1 }
 0x780   : > { %v7202_v4 = vpack.c.bf16 %v7122_v6, %v7120_v20  ;;  %v6951_v57 = vadd.f32 %v6950_v47, %v11836_v63  ;;  %v7123_v22 = vmax.f32 %v6949_v54, 0.0 }
 0x781   : > { %v6952_v55 = vpop.f32.mrf.mxu1 }
 0x782   : > { %v6953_v61 = vadd.f32 %v6952_v55, %v11839_v2  ;;  %7685 = vmatprep.mubr.bf16.mxu0 %v7202_v4  ;;  %v7124_v39 = vmax.f32 %v6951_v57, 0.0 }
 0x783   : > { %v6954_v42 = vpop.f32.mrf.mxu1  ;;  %7686 = vmatmul.mubr.bf16.gmra.mxu0 %v7201_v45 }
 0x784   : > { %v6955_v56 = vadd.f32 %v6954_v42, %v11836_v63  ;;  %v7125_v37 = vmax.f32 %v6953_v61, 0.0 }
 0x785   : > { %v6958_v21 = vpop.f32.mrf.mxu1 }
 0x786   : > { %v7126_v7 = vmax.f32 %v6955_v56, 0.0  ;;  %v7203_v12 = vpack.c.bf16 %v7125_v37, %v7123_v22  ;;  %v6959_v41 = vadd.f32 %v6958_v21, %v11839_v2 }
 0x787   : > { %v6960_v44 = vpop.f32.mrf.mxu1 }
 0x788   : > { %v7204_v3 = vpack.c.bf16 %v7126_v7, %v7124_v39  ;;  %v6961_v18 = vadd.f32 %v6960_v44, %v11836_v63  ;;  %v7127_v40 = vmax.f32 %v6959_v41, 0.0 }
 0x789   : > { %v6962_v35 = vpop.f32.mrf.mxu1 }
 0x78a   : > { %v6963_v24 = vadd.f32 %v6962_v35, %v11839_v2  ;;  %7695 = vmatprep.mubr.bf16.mxu0 %v7204_v3  ;;  %v7128_v13 = vmax.f32 %v6961_v18, 0.0 }
 0x78b   : > { %v6964_v53 = vpop.f32.mrf.mxu1  ;;  %v7457_v10 = vpop.f32.mrf.mxu0  ;;  %7696 = vmatmul.mubr.bf16.gmra.mxu0 %v7203_v12 }
 0x78c   : > { %v6965_v5 = vadd.f32 %v6964_v53, %v11836_v63  ;;  %v7129_v9 = vmax.f32 %v6963_v24, 0.0  ;;  %v7458_v25 = vadd.f32 %v7457_v10, %v12015_v26 }
 0x78d   : > { %v6968_v8 = vpop.f32.mrf.mxu1  ;;  %v7459_v17 = vpop.f32.mrf.mxu0 }
 0x78e   : > { %v7130_v38 = vmax.f32 %v6965_v5, 0.0  ;;  %v7205_v31 = vpack.c.bf16 %v7129_v9, %v7127_v40  ;;  %v7776_v1 = vmax.f32 %v7458_v25, 0.0  ;;  %v7460_v48 = vadd.f32 %v7459_v17, %v12023_v15 }
 0x78f   : > { %v6970_v51 = vpop.f32.mrf.mxu1  ;;  %v7461_v30 = vpop.f32.mrf.mxu0  ;;  %v6969_v32 = vadd.f32 %v6968_v8, %v11839_v2 }
 0x790   : > { %v7206_v36 = vpack.c.bf16 %v7130_v38, %v7128_v13  ;;  %v7462_v23 = vadd.f32 %v7461_v30, %v12015_v26  ;;  %v6971_v59 = vadd.f32 %v6970_v51, %v11836_v63  ;;  %v7777_v14 = vmax.f32 %v7460_v48, 0.0 }
 0x791   : > { %v6972_v34 = vpop.f32.mrf.mxu1  ;;  %v7463_v33 = vpop.f32.mrf.mxu0  ;;  %v7131_v20 = vmax.f32 %v6969_v32, 0.0 }
 0x792   : > { %v7778_v29 = vmax.f32 %v7462_v23, 0.0  ;;  %v6973_v16 = vadd.f32 %v6972_v34, %v11839_v2  ;;  %v7464_v27 = vadd.f32 %v7463_v33, %v12023_v15  ;;  %7705 = vmatprep.mubr.bf16.mxu0 %v7206_v36  ;;  %v7132_v58 = vmax.f32 %v6971_v59, 0.0 }
 0x793   : > { %v6974_v52 = vpop.f32.mrf.mxu1  ;;  %v7467_v62 = vpop.f32.mrf.mxu0  ;;  %7706 = vmatmul.mubr.bf16.gmra.mxu0 %v7205_v31 }
 0x794   : > { %v12031_v43 = vpack.c.bf16 %v7778_v29, %v7776_v1  ;;  %v7779_v28 = vmax.f32 %v7464_v27, 0.0  ;;  %v6975_v60 = vadd.f32 %v6974_v52, %v11836_v63  ;;  %v7133_v11 = vmax.f32 %v6973_v16, 0.0 }
 0x795   : > { %v6978_v19 = vpop.f32.mrf.mxu1  ;;  %v7469_v0 = vpop.f32.mrf.mxu0  ;;  %v7468_v6 = vadd.f32 %v7467_v62, %v12015_v26 }
 0x796   : > { %v7134_v50 = vmax.f32 %v6975_v60, 0.0  ;;  %v12035_v4 = vpack.c.bf16 %v7779_v28, %v7777_v14  ;;  %v7207_v55 = vpack.c.bf16 %v7133_v11, %v7131_v20  ;;  %v7470_v57 = vadd.f32 %v7469_v0, %v12023_v15 }
 0x797   : > { %v6980_v46 = vpop.f32.mrf.mxu1  ;;  %v7471_v47 = vpop.f32.mrf.mxu0  ;;  %v7780_v39 = vmax.f32 %v7468_v6, 0.0  ;;  %v6979_v7 = vadd.f32 %v6978_v19, %v11839_v2 }
 0x798   : > { %v7208_v45 = vpack.c.bf16 %v7134_v50, %v7132_v58  ;;  %v7472_v61 = vadd.f32 %v7471_v47, %v12015_v26  ;;  %v6981_v56 = vadd.f32 %v6980_v46, %v11836_v63  ;;  %v7781_v35 = vmax.f32 %v7470_v57, 0.0 }
 0x799   : > { %v6982_v54 = vpop.f32.mrf.mxu1  ;;  %v7473_v42 = vpop.f32.mrf.mxu0  ;;  %v7135_v25 = vmax.f32 %v6979_v7, 0.0 }
 0x79a   : > { %v6983_v37 = vadd.f32 %v6982_v54, %v11839_v2  ;;  %v7474_v21 = vadd.f32 %v7473_v42, %v12023_v15  ;;  %7715 = vmatprep.mubr.bf16.mxu0 %v7208_v45  ;;  %v7782_v49 = vmax.f32 %v7472_v61, 0.0  ;;  %v7136_v5 = vmax.f32 %v6981_v56, 0.0 }
 0x79b   : > { %v6984_v22 = vpop.f32.mrf.mxu1  ;;  %v7477_v44 = vpop.f32.mrf.mxu0  ;;  %7716 = vmatmul.mubr.bf16.gmra.mxu0 %v7207_v55 }
 0x79c   : > { %v7783_v3 = vmax.f32 %v7474_v21, 0.0  ;;  %v6985_v12 = vadd.f32 %v6984_v22, %v11836_v63  ;;  %v12044_v18 = vpack.c.bf16 %v7782_v49, %v7780_v39  ;;  %v7137_v24 = vmax.f32 %v6983_v37, 0.0 }
 0x79d   : > { %v7478_v41 = vadd.f32 %v7477_v44, %v12015_v26  ;;  %v6988_v53 = vpop.f32.mrf.mxu1  ;;  %v7479_v10 = vpop.f32.mrf.mxu0 }
 0x79e   : > { %v7138_v9 = vmax.f32 %v6985_v12, 0.0  ;;  %v12047_v13 = vpack.c.bf16 %v7783_v3, %v7781_v35  ;;  %v7209_v51 = vpack.c.bf16 %v7137_v24, %v7135_v25  ;;  %v7480_v36 = vadd.f32 %v7479_v10, %v12023_v15 }
 0x79f   : > { %v6990_v8 = vpop.f32.mrf.mxu1  ;;  %v7481_v17 = vpop.f32.mrf.mxu0  ;;  %v7784_v30 = vmax.f32 %v7478_v41, 0.0  ;;  %v6989_v59 = vadd.f32 %v6988_v53, %v11839_v2 }
 0x7a0   : > { %v7210_v38 = vpack.c.bf16 %v7138_v9, %v7136_v5  ;;  %v7482_v40 = vadd.f32 %v7481_v17, %v12015_v26  ;;  %v6991_v1 = vadd.f32 %v6990_v8, %v11836_v63  ;;  %v7785_v62 = vmax.f32 %v7480_v36, 0.0 }
 0x7a1   : > { %v6992_v23 = vpop.f32.mrf.mxu1  ;;  %v7483_v31 = vpop.f32.mrf.mxu0  ;;  %v7139_v0 = vmax.f32 %v6989_v59, 0.0 }
 0x7a2   : > { %v7786_v48 = vmax.f32 %v7482_v40, 0.0  ;;  %v6993_v34 = vadd.f32 %v6992_v23, %v11839_v2  ;;  %v7484_v33 = vadd.f32 %v7483_v31, %v12023_v15  ;;  %7725 = vmatprep.mubr.bf16.mxu0 %v7210_v38  ;;  %v7140_v11 = vmax.f32 %v6991_v1, 0.0 }
 0x7a3   : > { %v6994_v29 = vpop.f32.mrf.mxu1  ;;  %v7487_v16 = vpop.f32.mrf.mxu0  ;;  %7726 = vmatmul.mubr.bf16.gmra.mxu0 %v7209_v51 }
 0x7a4   : > { %v12055_v27 = vpack.c.bf16 %v7786_v48, %v7784_v30  ;;  %v7787_v32 = vmax.f32 %v7484_v33, 0.0  ;;  %v6995_v52 = vadd.f32 %v6994_v29, %v11836_v63  ;;  %v7141_v28 = vmax.f32 %v6993_v34, 0.0 }
 0x7a5   : > { %v6998_v60 = vpop.f32.mrf.mxu1  ;;  %v12058_v14 = vpop.f32.mrf.mxu0  ;;  %v7488_v58 = vadd.f32 %v7487_v16, %v12015_v26 }
 0x7a6   : > { %v7142_v19 = vmax.f32 %v6995_v52, 0.0  ;;  %v12061_v6 = vpack.c.bf16 %v7787_v32, %v7785_v62  ;;  %v7211_v47 = vpack.c.bf16 %v7141_v28, %v7139_v0  ;;  %v6999_v56 = vadd.f32 %v6998_v60, %v11839_v2 }
 0x7a7   : > { %v7000_v50 = vpop.f32.mrf.mxu1  ;;  %v7491_v20 = vpop.f32.mrf.mxu0  ;;  %v7788_v42 = vmax.f32 %v7488_v58, 0.0 }
 0x7a8   : > { %v7212_v46 = vpack.c.bf16 %v7142_v19, %v7140_v11  ;;  %v7492_v45 = vadd.f32 %v7491_v20, %v12015_v26  ;;  %v7001_v61 = vadd.f32 %v7000_v50, %v11836_v63  ;;  %v7143_v24 = vmax.f32 %v6999_v56, 0.0 }
 0x7a9   : > { %v7002_v55 = vpop.f32.mrf.mxu1  ;;  %v12064_v57 = vpop.f32.mrf.mxu0 }
 0x7aa   : > { %v7003_v54 = vadd.f32 %v7002_v55, %v11839_v2  ;;  %7735 = vmatprep.mubr.bf16.mxu0 %v7212_v46  ;;  %v7790_v37 = vmax.f32 %v7492_v45, 0.0  ;;  %v7144_v12 = vmax.f32 %v7001_v61, 0.0 }
 0x7ab   : > { %v7004_v21 = vpop.f32.mrf.mxu1  ;;  %v12069_v39 = vpop.f32.mrf.mxu0  ;;  %7736 = vmatmul.mubr.bf16.gmra.mxu0 %v7211_v47 }
 0x7ac   : > { %v7005_v7 = vadd.f32 %v7004_v21, %v11836_v63  ;;  %v12072_v49 = vpack.c.bf16 %v7790_v37, %v7788_v42  ;;  %v7145_v22 = vmax.f32 %v7003_v54, 0.0 }
 0x7ad   : > { %v7008_v44 = vpop.f32.mrf.mxu1  ;;  %v12074_v3 = vpop.f32.mrf.mxu0 }
 0x7ae   : > { %v7146_v35 = vmax.f32 %v7005_v7, 0.0  ;;  %v7213_v5 = vpack.c.bf16 %v7145_v22, %v7143_v24  ;;  %v7009_v38 = vadd.f32 %v7008_v44, %v11839_v2 }
 0x7af   : > { %v7010_v41 = vpop.f32.mrf.mxu1  ;;  %v12076_v53 = vpop.f32.mrf.mxu0 }
 0x7b0   : > { %v7214_v10 = vpack.c.bf16 %v7146_v35, %v7144_v12  ;;  %v7011_v8 = vadd.f32 %v7010_v41, %v11836_v63  ;;  %v7147_v34 = vmax.f32 %v7009_v38, 0.0 }
 0x7b1   : > { %v7012_v9 = vpop.f32.mrf.mxu1  ;;  %v12078_v25 = vpop.f32.mrf.mxu0 }
 0x7b2   : > { %v7013_v17 = vadd.f32 %v7012_v9, %v11839_v2  ;;  %7745 = vmatprep.mubr.bf16.mxu0 %v7214_v10  ;;  %v7148_v1 = vmax.f32 %v7011_v8, 0.0 }
 0x7b3   : > { %v7014_v40 = vpop.f32.mrf.mxu1  ;;  %v12083_v51 = vpop.f32.mrf.mxu0  ;;  %7746 = vmatmul.mubr.bf16.gmra.mxu0 %v7213_v5 }
 0x7b4   : > { %v7015_v30 = vadd.f32 %v7014_v40, %v11836_v63  ;;  %v7149_v36 = vmax.f32 %v7013_v17, 0.0 }
 0x7b5   : > { %v7018_v23 = vpop.f32.mrf.mxu1  ;;  %v7509_v31 = vpop.f32.mrf.mxu0 }
 0x7b6   : > { %v7150_v48 = vmax.f32 %v7015_v30, 0.0  ;;  %v7215_v16 = vpack.c.bf16 %v7149_v36, %v7147_v34  ;;  %v7019_v60 = vadd.f32 %v7018_v23, %v11839_v2  ;;  %v12102_v30 = vld [vmem:[%s12557_s17 + $0x4] ss:$8 sps:$4 sm:$0xff]  }
 0x7b7   : > { %v7020_v33 = vpop.f32.mrf.mxu1  ;;  %v12086_v59 = vpop.f32.mrf.mxu0  ;;  %8038 = vmatprep.mubr.bf16.mxu1 %v12102_v30 }
 0x7b8   : > { %v7216_v29 = vpack.c.bf16 %v7150_v48, %v7148_v1  ;;  %v7021_v62 = vadd.f32 %v7020_v33, %v11836_v63  ;;  %v7151_v47 = vmax.f32 %v7019_v60, 0.0 }
 0x7b9   : > { %v7022_v32 = vpop.f32.mrf.mxu1  ;;  %v7513_v52 = vpop.f32.mrf.mxu0 }
 0x7ba   : > { %v7023_v28 = vadd.f32 %v7022_v32, %v11839_v2  ;;  %7755 = vmatprep.mubr.bf16.mxu0 %v7216_v29  ;;  %v7152_v20 = vmax.f32 %v7021_v62, 0.0  ;;  %v7514_v36 = vadd.f32 %v7513_v52, %v12023_v15  ;;  %v7510_v62 = vadd.f32 %v7509_v31, %v12023_v15 }
 0x7bb   : > { %v7024_v11 = vpop.f32.mrf.mxu1  ;;  %v7517_v19 = vpop.f32.mrf.mxu0  ;;  %7756 = vmatmul.mubr.bf16.gmra.mxu0 %v7215_v16  ;;  %v7512_v31 = vadd.f32 %v12086_v59, %v12015_v26 }
 0x7bc   : > { %v7025_v0 = vadd.f32 %v7024_v11, %v11836_v63  ;;  %v7153_v58 = vmax.f32 %v7023_v28, 0.0  ;;  %v7518_v16 = vadd.f32 %v7517_v19, %v12015_v26 }
 0x7bd   : > { %v7519_v50 = vpop.f32.mrf.mxu0 }
 0x7be   : > { %v7154_v46 = vmax.f32 %v7025_v0, 0.0  ;;  %v7217_v61 = vpack.c.bf16 %v7153_v58, %v7151_v47  ;;  %v7520_v44 = vadd.f32 %v7519_v50, %v12023_v15  ;;  %v7799_v58 = vmax.f32 %v7514_v36, 0.0 }
 0x7bf   : > { %v7521_v45 = vpop.f32.mrf.mxu0  ;;  %v7800_v47 = vmax.f32 %v7518_v16, 0.0  ;;  %v7490_v16 = vadd.f32 %v12058_v14, %v12023_v15 }
 0x7c0   : > { %v7218_v55 = vpack.c.bf16 %v7154_v46, %v7152_v20  ;;  %v7801_v17 = vmax.f32 %v7520_v44, 0.0  ;;  %v7522_v23 = vadd.f32 %v7521_v45, %v12015_v26 }
 0x7c1   : > { %v7523_v54 = vpop.f32.mrf.mxu0 }
 0x7c2   : > { %7765 = vmatprep.mubr.bf16.mxu0 %v7218_v55  ;;  %v7524_v2 = vadd.f32 %v7523_v54, %v12023_v15  ;;  %v7802_v11 = vmax.f32 %v7522_v23, 0.0  ;;  %v7797_v55 = vmax.f32 %v7510_v62, 0.0  ;;  %v7494_v23 = vadd.f32 %v12064_v57, %v12023_v15 }
 0x7c3   : > { %v7527_v42 = vpop.f32.mrf.mxu0  ;;  %7766 = vmatmul.mubr.bf16.gmra.mxu0 %v7217_v61 }
 0x7c4   : > { %v7528_v7 = vadd.f32 %v7527_v42, %v12015_v26  ;;  %v7803_v41 = vmax.f32 %v7524_v2, 0.0  ;;  %v7916_v54 = vpack.c.bf16 %v7802_v11, %v7800_v47 }
 0x7c5   : > { %v7529_v56 = vpop.f32.mrf.mxu0 }
 0x7c6   : > { %v7530_v21 = vadd.f32 %v7529_v56, %v12023_v15  ;;  %v7804_v9 = vmax.f32 %v7528_v7, 0.0  ;;  %v7917_v34 = vpack.c.bf16 %v7803_v41, %v7801_v17  ;;  %v7504_v56 = vadd.f32 %v12078_v25, %v12023_v15 }
 0x7c7   : > { %v7531_v37 = vpop.f32.mrf.mxu0 }
 0x7c8   : > { %v7532_v63 = vadd.f32 %v7531_v37, %v12015_v26  ;;  %v7805_v10 = vmax.f32 %v7530_v21, 0.0  ;;  %v7915_v37 = vpack.c.bf16 %v7799_v58, %v7797_v55 }
 0x7c9   : > { %v7533_v22 = vpop.f32.mrf.mxu0 }
 0x7ca   : > { %v7534_v12 = vadd.f32 %v7533_v22, %v12023_v15  ;;  %v7806_v35 = vmax.f32 %v7532_v63, 0.0  ;;  %v7508_v63 = vadd.f32 %v12083_v51, %v12015_v26  ;;  %v7500_v22 = vadd.f32 %v12074_v3, %v12023_v15 }
 0x7cb   : > { %v7537_v24 = vpop.f32.mrf.mxu0  ;;  %v7502_v3 = vadd.f32 %v12076_v53, %v12015_v26 }
 0x7cc   : > { %v7807_v5 = vmax.f32 %v7534_v12, 0.0  ;;  %v7538_v40 = vadd.f32 %v7537_v24, %v12015_v26  ;;  %v7918_v1 = vpack.c.bf16 %v7806_v35, %v7804_v9  ;;  %v7798_v35 = vmax.f32 %v7512_v31, 0.0 }
 0x7cd   : > { %v7539_v8 = vpop.f32.mrf.mxu0  ;;  %v7795_v24 = vmax.f32 %v7504_v56, 0.0  ;;  %v7796_v9 = vmax.f32 %v7508_v63, 0.0  ;;  %v7793_v51 = vmax.f32 %v7500_v22, 0.0 }
 0x7ce   : > { %v7919_v38 = vpack.c.bf16 %v7807_v5, %v7805_v10  ;;  %v7540_v33 = vadd.f32 %v7539_v8, %v12023_v15  ;;  %v7808_v28 = vmax.f32 %v7538_v40, 0.0 }
 0x7cf   : > { %v7541_v48 = vpop.f32.mrf.mxu0  ;;  %v7914_v40 = vpack.c.bf16 %v7798_v35, %v7796_v9 }
 0x7d0   : > { %v7542_v29 = vadd.f32 %v7541_v48, %v12015_v26  ;;  %8006 = vmatprep.subr.bf16.mxu1 %v7919_v38  ;;  %v7809_v50 = vmax.f32 %v7540_v33, 0.0  ;;  %v7498_v33 = vadd.f32 %v12069_v39, %v12015_v26  ;;  %v7789_v39 = vmax.f32 %v7490_v16, 0.0 }
 0x7d1   : > { %v7543_v32 = vpop.f32.mrf.mxu0  ;;  %8007 = vmatpush1.bf16.xpose.msra.mxu1 %v7918_v1  ;;  %v7913_v1 = vpack.c.bf16 %v7795_v24, %v7793_v51 }
 0x7d2   : > { %v7810_v52 = vmax.f32 %v7542_v29, 0.0  ;;  %v7544_v60 = vadd.f32 %v7543_v32, %v12023_v15  ;;  %8008 = vmatprep.subr.bf16.mxu1 %v7917_v34  ;;  %v7792_v58 = vmax.f32 %v7498_v33, 0.0 }
 0x7d3   : > { %v7547_v0 = vpop.f32.mrf.mxu0 }
 0x7d4   : > { %v12112_v20 = vpack.c.bf16 %v7810_v52, %v7808_v28  ;;  %v7811_v46 = vmax.f32 %v7544_v60, 0.0  ;;  %v7548_v61 = vadd.f32 %v7547_v0, %v12015_v26  ;;  %v7794_v28 = vmax.f32 %v7502_v3, 0.0 }
 0x7d5   : > { %v7549_v45 = vpop.f32.mrf.mxu0  ;;  %v7791_v52 = vmax.f32 %v7494_v23, 0.0 }
 0x7d6   : > { %v12114_v19 = vpack.c.bf16 %v7811_v46, %v7809_v50  ;;  %v7550_v2 = vadd.f32 %v7549_v45, %v12023_v15  ;;  %v7812_v44 = vmax.f32 %v7548_v61, 0.0  ;;  %v7912_v47 = vpack.c.bf16 %v7794_v28, %v7792_v58 }
 0x7d7   : > { %v7551_v42 = vpop.f32.mrf.mxu0  ;;  %v7911_v61 = vpack.c.bf16 %v7791_v52, %v7789_v39 }
 0x7d8   : > { %v7552_v21 = vadd.f32 %v7551_v42, %v12015_v26  ;;  %v7813_v41 = vmax.f32 %v7550_v2, 0.0 }
 0x7d9   : > { %v7553_v7 = vpop.f32.mrf.mxu0  ;;  %8009 = vmatpush1.bf16.xpose.msra.mxu1 %v7916_v54 }
 0x7da   : > { %v7814_v59 = vmax.f32 %v7552_v21, 0.0  ;;  %v7554_v12 = vadd.f32 %v7553_v7, %v12023_v15  ;;  %8010 = vmatprep.subr.bf16.mxu1 %v7915_v37 }
 0x7db   : > { %v7557_v25 = vpop.f32.mrf.mxu0 }
 0x7dc   : > { %v12128_v10 = vpack.c.bf16 %v7814_v59, %v7812_v44  ;;  %v7815_v5 = vmax.f32 %v7554_v12, 0.0  ;;  %v7558_v38 = vadd.f32 %v7557_v25, %v12015_v26 }
 0x7dd   : > { %v7559_v8 = vpop.f32.mrf.mxu0 }
 0x7de   : > { %v12130_v17 = vpack.c.bf16 %v7815_v5, %v7813_v41  ;;  %v7560_v48 = vadd.f32 %v7559_v8, %v12023_v15  ;;  %v7816_v32 = vmax.f32 %v7558_v38, 0.0 }
 0x7df   : > { %v7561_v36 = vpop.f32.mrf.mxu0 }
 0x7e0   : > { %v7562_v34 = vadd.f32 %v7561_v36, %v12015_v26  ;;  %v7817_v60 = vmax.f32 %v7560_v48, 0.0 }
 0x7e1   : > { %v7563_v29 = vpop.f32.mrf.mxu0  ;;  %8011 = vmatpush1.bf16.xpose.msra.mxu1 %v7914_v40 }
 0x7e2   : > { %v7818_v53 = vmax.f32 %v7562_v34, 0.0  ;;  %v7564_v62 = vadd.f32 %v7563_v29, %v12023_v15  ;;  %8012 = vmatprep.subr.bf16.mxu1 %v7913_v1 }
 0x7e3   : > { %v7567_v57 = vpop.f32.mrf.mxu0 }
 0x7e4   : > { %v12144_v11 = vpack.c.bf16 %v7818_v53, %v7816_v32  ;;  %v7819_v0 = vmax.f32 %v7564_v62, 0.0  ;;  %v7568_v14 = vadd.f32 %v7567_v57, %v12015_v26 }
 0x7e5   : > { %v12146_v50 = vpop.f32.mrf.mxu0 }
 0x7e6   : > { %v12148_v46 = vpack.c.bf16 %v7819_v0, %v7817_v60  ;;  %v7820_v54 = vmax.f32 %v7568_v14, 0.0 }
 0x7e7   : > { %v7571_v45 = vpop.f32.mrf.mxu0 }
 0x7e8   : > { %v7572_v55 = vadd.f32 %v7571_v45, %v12015_v26 }
 0x7e9   : > { %v12152_v31 = vpop.f32.mrf.mxu0  ;;  %8013 = vmatpush1.bf16.xpose.msra.mxu1 %v7912_v47 }
 0x7ea   : > { %v7822_v42 = vmax.f32 %v7572_v55, 0.0  ;;  %8014 = vmatprep.subr.bf16.mxu1 %v7911_v61 }
 0x7eb   : > { %v12154_v56 = vpop.f32.mrf.mxu0 }
 0x7ec   : > { %v12156_v37 = vpack.c.bf16 %v7822_v42, %v7820_v54 }
 0x7ed   : > { %v12158_v2 = vpop.f32.mrf.mxu0 }
 0x7ef   : > { %v12160_v21 = vpop.f32.mrf.mxu0 }
 0x7f1   : > { %v12162_v63 = vpop.f32.mrf.mxu0  ;;  %8015 = vmatpush1.bf16.xpose.msra.mxu1 %v12072_v49 }
 0x7f2   : > { %8016 = vmatprep.subr.bf16.mxu1 %v12061_v6 }
 0x7f3   : > { %v12166_v7 = vpop.f32.mrf.mxu0 }
 0x7f5   : > { %v7589_v22 = vpop.f32.mrf.mxu0 }
 0x7f6   : > { %v7590_v60 = vadd.f32 %v7589_v22, %v12023_v15 }
 0x7f7   : > { %v7591_v44 = vpop.f32.mrf.mxu0 }
 0x7f9   : > { %v7593_v59 = vpop.f32.mrf.mxu0  ;;  %8017 = vmatpush1.bf16.xpose.msra.mxu1 %v12055_v27 }
 0x7fa   : > { %8018 = vmatprep.subr.bf16.mxu1 %v12047_v13 }
 0x7fb   : > { %v7597_v12 = vpop.f32.mrf.mxu0 }
 0x7fc   : > { %v7598_v57 = vadd.f32 %v7597_v12, %v12015_v26  ;;  %v7971_v12 = vld [vmem:[%s12558_s2] sm:$0xff] }
 0x7fd   : > { %v7599_v35 = vpop.f32.mrf.mxu0  ;;  %7976 = vperm.xlu0 %8999, %v7971_v12  }
 0x7fe   : > { %v7600_v51 = vadd.f32 %v7599_v35, %v12023_v15  ;;  %v7832_v42 = vmax.f32 %v7598_v57, 0.0  ;;  %v7829_v35 = vmax.f32 %v7590_v60, 0.0 }
 0x7ff   : > { %v7601_v25 = vpop.f32.mrf.mxu0 }
 0x800   : > { %v7833_v48 = vmax.f32 %v7600_v51, 0.0  ;;  %v7602_v29 = vadd.f32 %v7601_v25, %v12015_v26  ;;  %v7972_v51 = vld [vmem:[%s12558_s2 + $0x8] sm:$0xff] }
 0x801   : > { %v7603_v24 = vpop.f32.mrf.mxu0  ;;  %8019 = vmatpush1.bf16.xpose.msra.mxu1 %v12044_v18  ;;  %7981 = vperm.xlu0 %8999, %v7972_v51  }
 0x802   : > { %8020 = vmatprep.subr.bf16.mxu1 %v12035_v4  ;;  %v7604_v5 = vadd.f32 %v7603_v24, %v12023_v15  ;;  %v7834_v14 = vmax.f32 %v7602_v29, 0.0  ;;  %v7592_v24 = vadd.f32 %v7591_v44, %v12015_v26  ;;  %v7580_v44 = vadd.f32 %v12158_v2, %v12023_v15 }
 0x803   : > { %v7607_v49 = vpop.f32.mrf.mxu0 }
 0x804   : > { %v7608_v27 = vadd.f32 %v7607_v49, %v12015_v26  ;;  %v7835_v3 = vmax.f32 %v7604_v5, 0.0  ;;  %v7932_v49 = vpack.c.bf16 %v7834_v14, %v7832_v42  ;;  %v7825_v2 = vmax.f32 %v7580_v44, 0.0 }
 0x805   : > { %v7609_v41 = vpop.f32.mrf.mxu0 }
 0x806   : > { %v7610_v9 = vadd.f32 %v7609_v41, %v12023_v15  ;;  %v7836_v23 = vmax.f32 %v7608_v27, 0.0  ;;  %v7933_v53 = vpack.c.bf16 %v7835_v3, %v7833_v48  ;;  %v7588_v27 = vadd.f32 %v12166_v7, %v12015_v26 }
 0x807   : > { %v7611_v6 = vpop.f32.mrf.mxu0 }
 0x808   : > { %v7612_v8 = vadd.f32 %v7611_v6, %v12015_v26  ;;  %v7837_v40 = vmax.f32 %v7610_v9, 0.0  ;;  %v7584_v6 = vadd.f32 %v12162_v63, %v12023_v15 }
 0x809   : > { %v7613_v13 = vpop.f32.mrf.mxu0  ;;  %8021 = vmatpush1.bf16.xpose.msra.mxu1 %v12031_v43  ;;  %v7594_v43 = vadd.f32 %v7593_v59, %v12023_v15 }
 0x80a   : > { %v7614_v18 = vadd.f32 %v7613_v13, %v12023_v15  ;;  %v7838_v38 = vmax.f32 %v7612_v8, 0.0 }
 0x80b   : > { %v7617_v4 = vpop.f32.mrf.mxu0  ;;  %v7831_v45 = vmax.f32 %v7594_v43, 0.0 }
 0x80c   : > { %v7839_v36 = vmax.f32 %v7614_v18, 0.0  ;;  %v7618_v33 = vadd.f32 %v7617_v4, %v12015_v26  ;;  %v7934_v16 = vpack.c.bf16 %v7838_v38, %v7836_v23  ;;  %v7830_v4 = vmax.f32 %v7592_v24, 0.0 }
 0x80d   : > { %v7619_v1 = vpop.f32.mrf.mxu0  ;;  %v7931_v5 = vpack.c.bf16 %v7831_v45, %v7829_v35 }
 0x80e   : > { %v7935_v34 = vpack.c.bf16 %v7839_v36, %v7837_v40  ;;  %v7620_v62 = vadd.f32 %v7619_v1, %v12023_v15  ;;  %v7840_v0 = vmax.f32 %v7618_v33, 0.0  ;;  %v7827_v40 = vmax.f32 %v7584_v6, 0.0 }
 0x80f   : > { %v7621_v32 = vpop.f32.mrf.mxu0  ;;  %v7828_v1 = vmax.f32 %v7588_v27, 0.0 }
 0x810   : > { %v7622_v28 = vadd.f32 %v7621_v32, %v12015_v26  ;;  %8022 = vmatprep.subr.bf16.mxu1 %v7935_v34  ;;  %v7841_v55 = vmax.f32 %v7620_v62, 0.0  ;;  %v7973_v34 = vld [vmem:[%s12558_s2 + $0x10] sm:$0xff]  ;;  %v7929_v62 = vpack.c.bf16 %v7827_v40, %v7825_v2 }
 0x811   : > { %v7623_v52 = vpop.f32.mrf.mxu0  ;;  %8023 = vmatpush2.bf16.xpose.msra.mxu1 %v7934_v16  ;;  %7986 = vperm.xlu1 %9000, %v7973_v34   ;;  %v7582_v16 = vadd.f32 %v12160_v21, %v12015_v26  ;;  %v7930_v32 = vpack.c.bf16 %v7830_v4, %v7828_v1 }
 0x812   : > { %v7842_v58 = vmax.f32 %v7622_v28, 0.0  ;;  %v7624_v39 = vadd.f32 %v7623_v52, %v12023_v15  ;;  %8024 = vmatprep.subr.bf16.mxu1 %v7933_v53  ;;  %v7574_v53 = vadd.f32 %v12152_v31, %v12023_v15  ;;  %v7578_v52 = vadd.f32 %v12154_v56, %v12015_v26 }
 0x813   : > { %v7627_v47 = vpop.f32.mrf.mxu0  ;;  %v7826_v14 = vmax.f32 %v7582_v16, 0.0 }
 0x814   : > { %v12187_v61 = vpack.c.bf16 %v7842_v58, %v7840_v0  ;;  %v7843_v54 = vmax.f32 %v7624_v39, 0.0  ;;  %v7628_v25 = vadd.f32 %v7627_v47, %v12015_v26  ;;  %v7570_v0 = vadd.f32 %v12146_v50, %v12023_v15 }
 0x815   : > { %v7629_v59 = vpop.f32.mrf.mxu0  ;;  %v7823_v47 = vmax.f32 %v7574_v53, 0.0  ;;  %v7824_v42 = vmax.f32 %v7578_v52, 0.0 }
 0x816   : > { %v12192_v22 = vpack.c.bf16 %v7843_v54, %v7841_v55  ;;  %v7630_v9 = vadd.f32 %v7629_v59, %v12023_v15  ;;  %v7844_v18 = vmax.f32 %v7628_v25, 0.0  ;;  %v7821_v56 = vmax.f32 %v7570_v0, 0.0 }
 0x817   : > { %v7631_v41 = vpop.f32.mrf.mxu0  ;;  %v7928_v35 = vpack.c.bf16 %v7826_v14, %v7824_v42 }
 0x818   : > { %v7632_v8 = vadd.f32 %v7631_v41, %v12015_v26  ;;  %v7845_v36 = vmax.f32 %v7630_v9, 0.0  ;;  %v7927_v24 = vpack.c.bf16 %v7823_v47, %v7821_v56 }
 0x819   : > { %v7633_v13 = vpop.f32.mrf.mxu0  ;;  %8025 = vmatpush2.bf16.xpose.msra.mxu1 %v7932_v49 }
 0x81a   : > { %v7846_v38 = vmax.f32 %v7632_v8, 0.0  ;;  %v7634_v63 = vadd.f32 %v7633_v13, %v12023_v15  ;;  %8026 = vmatprep.subr.bf16.mxu1 %v7931_v5 }
 0x81b   : > { %v7637_v3 = vpop.f32.mrf.mxu0 }
 0x81c   : > { %v12208_v7 = vpack.c.bf16 %v7846_v38, %v7844_v18  ;;  %v7847_v23 = vmax.f32 %v7634_v63, 0.0  ;;  %v7638_v29 = vadd.f32 %v7637_v3, %v12015_v26 }
 0x81d   : > { %v7639_v48 = vpop.f32.mrf.mxu0 }
 0x81e   : > { %v12213_v33 = vpack.c.bf16 %v7847_v23, %v7845_v36  ;;  %v7640_v28 = vadd.f32 %v7639_v48, %v12023_v15  ;;  %v7848_v58 = vmax.f32 %v7638_v29, 0.0 }
 0x81f   : > { %v7641_v43 = vpop.f32.mrf.mxu0 }
 0x820   : > { %v7642_v57 = vadd.f32 %v7641_v43, %v12015_v26  ;;  %v7849_v45 = vmax.f32 %v7640_v28, 0.0 }
 0x821   : > { %v7643_v60 = vpop.f32.mrf.mxu0  ;;  %8027 = vmatpush2.bf16.xpose.msra.mxu1 %v7930_v32 }
 0x822   : > { %v7850_v21 = vmax.f32 %v7642_v57, 0.0  ;;  %v7644_v39 = vadd.f32 %v7643_v60, %v12023_v15  ;;  %8028 = vmatprep.subr.bf16.mxu1 %v7929_v62  ;;  %v12270_v62 = vld [vmem:[%s12557_s17] ss:$8 sps:$4 sm:$0xff]  }
 0x823   : > { %v7647_v31 = vpop.f32.mrf.mxu0 }
 0x824   : > { %v12227_v55 = vpack.c.bf16 %v7850_v21, %v7848_v58  ;;  %v7851_v54 = vmax.f32 %v7644_v39, 0.0  ;;  %v7648_v50 = vadd.f32 %v7647_v31, %v12015_v26 }
 0x825   : > { %v12229_v59 = vpop.f32.mrf.mxu0 }
 0x826   : > { %v12231_v12 = vpack.c.bf16 %v7851_v54, %v7849_v45  ;;  %v7852_v6 = vmax.f32 %v7648_v50, 0.0 }
 0x827   : > { %v7651_v25 = vpop.f32.mrf.mxu0 }
 0x828   : > { %v7652_v49 = vadd.f32 %v7651_v25, %v12015_v26 }
 0x829   : > { %v12235_v41 = vpop.f32.mrf.mxu0  ;;  %8029 = vmatpush2.bf16.xpose.msra.mxu1 %v7928_v35 }
 0x82a   : > { %v7854_v5 = vmax.f32 %v7652_v49, 0.0  ;;  %8030 = vmatprep.subr.bf16.mxu1 %v7927_v24 }
 0x82b   : > { %v12237_v9 = vpop.f32.mrf.mxu0 }
 0x82c   : > { %v12239_v8 = vpack.c.bf16 %v7854_v5, %v7852_v6 }
 0x82d   : > { %v12241_v27 = vpop.f32.mrf.mxu0 }
 0x82f   : > { %v12243_v13 = vpop.f32.mrf.mxu0 }
 0x831   : > { %v12245_v51 = vpop.f32.mrf.mxu0  ;;  %8031 = vmatpush2.bf16.xpose.msra.mxu1 %v12156_v37 }
 0x832   : > { %8032 = vmatprep.subr.bf16.mxu1 %v12148_v46 }
 0x833   : > { %v12249_v44 = vpop.f32.mrf.mxu0 }
 0x835   : > { %v7669_v18 = vpop.f32.mrf.mxu0 }
 0x836   : > { %v7670_v56 = vadd.f32 %v7669_v18, %v12023_v15 }
 0x837   : > { %v12251_v38 = vpop.f32.mrf.mxu0 }
 0x839   : > { %v7673_v63 = vpop.f32.mrf.mxu0  ;;  %8033 = vmatpush2.bf16.xpose.msra.mxu1 %v12144_v11 }
 0x83a   : > { %8034 = vmatprep.subr.bf16.mxu1 %v12130_v17  ;;  %v7674_v58 = vadd.f32 %v7673_v63, %v12023_v15 }
 0x83b   : > { %v7677_v4 = vpop.f32.mrf.mxu0 }
 0x83c   : > { %v7678_v54 = vadd.f32 %v7677_v4, %v12015_v26  ;;  %v7863_v5 = vmax.f32 %v7674_v58, 0.0 }
 0x83d   : > { %v7679_v3 = vpop.f32.mrf.mxu0 }
 0x83e   : > { %v7680_v2 = vadd.f32 %v7679_v3, %v12023_v15 }
 0x83f   : > { %v7681_v40 = vpop.f32.mrf.mxu0 }
 0x840   : > { %v7865_v52 = vmax.f32 %v7680_v2, 0.0  ;;  %v7682_v21 = vadd.f32 %v7681_v40, %v12015_v26  ;;  %v7864_v40 = vmax.f32 %v7678_v54, 0.0  ;;  %v7658_v54 = vadd.f32 %v12237_v9, %v12015_v26 }
 0x841   : > { %v7683_v36 = vpop.f32.mrf.mxu0  ;;  %8035 = vmatpush2.bf16.xpose.msra.mxu1 %v12128_v10 }
 0x842   : > { %8036 = vmatprep.subr.bf16.mxu1 %v12114_v19  ;;  %v7684_v1 = vadd.f32 %v7683_v36, %v12023_v15  ;;  %v7970_v19 = vld [vmem:[%s12557_s17 + $0x10] sm:$0xff]  ;;  %v7866_v24 = vmax.f32 %v7682_v21, 0.0 }
 0x843   : > { %v7687_v37 = vpop.f32.mrf.mxu0  ;;  %v12272_v57 = vcombine.high %v7970_v19, %v7970_v19  ;;  %v12284_v6 = vcombine.low %v7970_v19, %v7970_v19 }
 0x844   : > { %v7688_v11 = vadd.f32 %v7687_v37, %v12015_v26  ;;  %v7867_v32 = vmax.f32 %v7684_v1, 0.0  ;;  %v7861_v37 = vmax.f32 %v7670_v56, 0.0  ;;  %v7948_v1 = vpack.c.bf16 %v7866_v24, %v7864_v40 }
 0x845   : > { %v7689_v46 = vpop.f32.mrf.mxu0  ;;  %v7650_v56 = vadd.f32 %v12229_v59, %v12023_v15 }
 0x846   : > { %v7690_v48 = vadd.f32 %v7689_v46, %v12023_v15  ;;  %v7868_v28 = vmax.f32 %v7688_v11, 0.0  ;;  %v7949_v31 = vpack.c.bf16 %v7867_v32, %v7865_v52  ;;  %v7947_v11 = vpack.c.bf16 %v7863_v5, %v7861_v37 }
 0x847   : > { %v7691_v23 = vpop.f32.mrf.mxu0  ;;  %v7853_v9 = vmax.f32 %v7650_v56, 0.0 }
 0x848   : > { %v7692_v34 = vadd.f32 %v7691_v23, %v12015_v26  ;;  %v7869_v43 = vmax.f32 %v7690_v48, 0.0  ;;  %v7672_v23 = vadd.f32 %v12251_v38, %v12015_v26  ;;  %v7660_v38 = vadd.f32 %v12241_v27, %v12023_v15 }
 0x849   : > { %v7693_v17 = vpop.f32.mrf.mxu0  ;;  %8037 = vmatpush2.bf16.xpose.msra.mxu1 %v12112_v20  ;;  %v7662_v27 = vadd.f32 %v12243_v13, %v12015_v26 }
 0x84a   : > { %v7694_v10 = vadd.f32 %v7693_v17, %v12023_v15  ;;  %v7870_v29 = vmax.f32 %v7692_v34, 0.0  ;;  %v7664_v34 = vadd.f32 %v12245_v51, %v12023_v15  ;;  %v7862_v32 = vmax.f32 %v7672_v23, 0.0 }
 0x84b   : > { %v7697_v16 = vpop.f32.mrf.mxu0 }
 0x84c   : > { %v7871_v53 = vmax.f32 %v7694_v10, 0.0  ;;  %v7698_v0 = vadd.f32 %v7697_v16, %v12015_v26  ;;  %v7950_v39 = vpack.c.bf16 %v7870_v29, %v7868_v28  ;;  %v7668_v10 = vadd.f32 %v12249_v44, %v12015_v26 }
 0x84d   : > { %v7699_v20 = vpop.f32.mrf.mxu0 }
 0x84e   : > { %v7951_v60 = vpack.c.bf16 %v7871_v53, %v7869_v43  ;;  %v7700_v47 = vadd.f32 %v7699_v20, %v12023_v15  ;;  %v7872_v50 = vmax.f32 %v7698_v0, 0.0  ;;  %v7859_v53 = vmax.f32 %v7664_v34, 0.0 }
 0x84f   : > { %v7701_v14 = vpop.f32.mrf.mxu0  ;;  %v7860_v44 = vmax.f32 %v7668_v10, 0.0  ;;  %v7857_v0 = vmax.f32 %v7660_v38, 0.0 }
 0x850   : > { %v7702_v45 = vadd.f32 %v7701_v14, %v12015_v26  ;;  %8057 = vmatprep.subr.bf16.mxu1 %v7951_v60  ;;  %8039 = vmatmul.mubr.bf16.vlgmr.msra.gmra.mxu1 %v12270_v62  ;;  %v7873_v63 = vmax.f32 %v7700_v47, 0.0  ;;  %v7654_v14 = vadd.f32 %v12235_v41, %v12023_v15 }
 0x851   : > { %v7703_v42 = vpop.f32.mrf.mxu0  ;;  %8058 = vmatpush1.bf16.xpose.msra.mxu1 %v7950_v39  ;;  %8048 = vmatprep.mubr.bf16.mxu1 %v12272_v57  ;;  %v7946_v21 = vpack.c.bf16 %v7862_v32, %v7860_v44 }
 0x852   : > { %v7874_v35 = vmax.f32 %v7702_v45, 0.0  ;;  %v7704_v25 = vadd.f32 %v7703_v42, %v12023_v15  ;;  %8059 = vmatprep.subr.bf16.mxu1 %v7949_v31  ;;  %v7945_v31 = vpack.c.bf16 %v7859_v53, %v7857_v0  ;;  %v7855_v24 = vmax.f32 %v7654_v14, 0.0 }
 0x853   : > { %v7707_v49 = vpop.f32.mrf.mxu0 }
 0x854   : > { %v12286_v3 = vpack.c.bf16 %v7874_v35, %v7872_v50  ;;  %v7875_v4 = vmax.f32 %v7704_v25, 0.0  ;;  %v7708_v18 = vadd.f32 %v7707_v49, %v12015_v26  ;;  %v7858_v25 = vmax.f32 %v7662_v27, 0.0 }
 0x855   : > { %v7709_v36 = vpop.f32.mrf.mxu0  ;;  %v7943_v23 = vpack.c.bf16 %v7855_v24, %v7853_v9 }
 0x856   : > { %v12288_v46 = vpack.c.bf16 %v7875_v4, %v7873_v63  ;;  %v7710_v17 = vadd.f32 %v7709_v36, %v12023_v15  ;;  %v7876_v29 = vmax.f32 %v7708_v18, 0.0  ;;  %v7856_v4 = vmax.f32 %v7658_v54, 0.0 }
 0x857   : > { %v7711_v48 = vpop.f32.mrf.mxu0 }
 0x858   : > { %v7712_v2 = vadd.f32 %v7711_v48, %v12015_v26  ;;  %8049 = vmatmul.mubr.bf16.gmra.mxu1 %v12284_v6  ;;  %v7877_v28 = vmax.f32 %v7710_v17, 0.0  ;;  %v7944_v37 = vpack.c.bf16 %v7858_v25, %v7856_v4 }
 0x859   : > { %v7713_v19 = vpop.f32.mrf.mxu0  ;;  %8060 = vmatpush1.bf16.xpose.msra.mxu1 %v7948_v1  ;;  %8089 = vmatprep.mubr.bf16.mxu1 %v12102_v30 }
 0x85a   : > { %v7878_v16 = vmax.f32 %v7712_v2, 0.0  ;;  %v7714_v51 = vadd.f32 %v7713_v19, %v12023_v15  ;;  %8061 = vmatprep.subr.bf16.mxu1 %v7947_v11 }
 0x85b   : > { %v7717_v43 = vpop.f32.mrf.mxu0 }
 0x85c   : > { %v12304_v20 = vpack.c.bf16 %v7878_v16, %v7876_v29  ;;  %v7879_v52 = vmax.f32 %v7714_v51, 0.0  ;;  %v7718_v30 = vadd.f32 %v7717_v43, %v12015_v26 }
 0x85d   : > { %v7719_v60 = vpop.f32.mrf.mxu0 }
 0x85e   : > { %v12306_v58 = vpack.c.bf16 %v7879_v52, %v7877_v28  ;;  %v7720_v47 = vadd.f32 %v7719_v60, %v12023_v15  ;;  %v7880_v50 = vmax.f32 %v7718_v30, 0.0 }
 0x85f   : > { %v7721_v39 = vpop.f32.mrf.mxu0 }
 0x860   : > { %v7722_v45 = vadd.f32 %v7721_v39, %v12015_v26  ;;  %v7881_v49 = vmax.f32 %v7720_v47, 0.0 }
 0x861   : > { %v7723_v42 = vpop.f32.mrf.mxu0  ;;  %8062 = vmatpush1.bf16.xpose.msra.mxu1 %v7946_v21 }
 0x862   : > { %v7882_v13 = vmax.f32 %v7722_v45, 0.0  ;;  %v7724_v35 = vadd.f32 %v7723_v42, %v12023_v15  ;;  %8063 = vmatprep.subr.bf16.mxu1 %v7945_v31 }
 0x863   : > { %v7727_v41 = vpop.f32.mrf.mxu0 }
 0x864   : > { %v12320_v5 = vpack.c.bf16 %v7882_v13, %v7880_v50  ;;  %v7883_v63 = vmax.f32 %v7724_v35, 0.0  ;;  %v7728_v59 = vadd.f32 %v7727_v41, %v12015_v26 }
 0x865   : > { %v12322_v40 = vpop.f32.mrf.mxu0 }
 0x866   : > { %v12324_v36 = vpack.c.bf16 %v7883_v63, %v7881_v49  ;;  %v7884_v34 = vmax.f32 %v7728_v59, 0.0 }
 0x867   : > { %v7731_v18 = vpop.f32.mrf.mxu0 }
 0x868   : > { %v7732_v1 = vadd.f32 %v7731_v18, %v12015_v26 }
 0x869   : > { %v12328_v48 = vpop.f32.mrf.mxu0  ;;  %8064 = vmatpush1.bf16.xpose.msra.mxu1 %v7944_v37 }
 0x86a   : > { %v7886_v11 = vmax.f32 %v7732_v1, 0.0  ;;  %8065 = vmatprep.subr.bf16.mxu1 %v7943_v23 }
 0x86b   : > { %v12330_v17 = vpop.f32.mrf.mxu0 }
 0x86c   : > { %v12332_v2 = vpack.c.bf16 %v7886_v11, %v7884_v34 }
 0x86d   : > { %v7739_v10 = vpop.f32.mrf.mxu0 }
 0x86e   : > { %v7740_v37 = vadd.f32 %v7739_v10, %v12023_v15 }
 0x86f   : > { %v7741_v19 = vpop.f32.mrf.mxu0 }
 0x870   : > { %v7889_v34 = vmax.f32 %v7740_v37, 0.0  ;;  %v7742_v11 = vadd.f32 %v7741_v19, %v12015_v26  ;;  %v8109_v19 = vld [vmem:[%s10253_s29 + $0x8] sm:$0xff] }
 0x871   : > { %v7743_v38 = vpop.f32.mrf.mxu0  ;;  %8066 = vmatpush1.bf16.xpose.msra.mxu1 %v12239_v8 }
 0x872   : > { %8067 = vmatprep.subr.bf16.mxu1 %v12231_v12  ;;  %v7744_v4 = vadd.f32 %v7743_v38, %v12023_v15  ;;  %v7738_v38 = vadd.f32 %v12330_v17, %v12015_v26  ;;  %v7890_v10 = vmax.f32 %v7742_v11, 0.0 }
 0x873   : > { %v7747_v29 = vpop.f32.mrf.mxu0 }
 0x874   : > { %v7748_v59 = vadd.f32 %v7747_v29, %v12015_v26  ;;  %v7891_v23 = vmax.f32 %v7744_v4, 0.0  ;;  %v7730_v29 = vadd.f32 %v12322_v40, %v12023_v15  ;;  %v8112_v40 = vld [vmem:[%s10253_s29 + $0x20] sm:$0xff] }
 0x875   : > { %v7749_v16 = vpop.f32.mrf.mxu0 }
 0x876   : > { %v7750_v13 = vadd.f32 %v7749_v16, %v12023_v15  ;;  %v7892_v1 = vmax.f32 %v7748_v59, 0.0 }
 0x877   : > { %v7751_v51 = vpop.f32.mrf.mxu0 }
 0x878   : > { %v7893_v24 = vmax.f32 %v7750_v13, 0.0  ;;  %v7752_v49 = vadd.f32 %v7751_v51, %v12015_v26  ;;  %v7734_v51 = vadd.f32 %v12328_v48, %v12023_v15 }
 0x879   : > { %v7753_v32 = vpop.f32.mrf.mxu0  ;;  %8068 = vmatpush1.bf16.xpose.msra.mxu1 %v12227_v55 }
 0x87a   : > { %8069 = vmatprep.subr.bf16.mxu1 %v12213_v33  ;;  %v7754_v56 = vadd.f32 %v7753_v32, %v12023_v15  ;;  %v7894_v18 = vmax.f32 %v7752_v49, 0.0  ;;  %v7961_v32 = vpack.c.bf16 %v7891_v23, %v7889_v34 }
 0x87b   : > { %v7757_v43 = vpop.f32.mrf.mxu0 }
 0x87c   : > { %v7895_v25 = vmax.f32 %v7754_v56, 0.0  ;;  %v7962_v16 = vpack.c.bf16 %v7894_v18, %v7892_v1 }
 0x87d   : > { %v7759_v53 = vpop.f32.mrf.mxu0 }
 0x87e   : > { %v7760_v27 = vadd.f32 %v7759_v53, %v12023_v15  ;;  %v7963_v9 = vpack.c.bf16 %v7895_v25, %v7893_v24  ;;  %v7888_v53 = vmax.f32 %v7738_v38, 0.0 }
 0x87f   : > { %v7761_v28 = vpop.f32.mrf.mxu0 }
 0x880   : > { %v7897_v47 = vmax.f32 %v7760_v27, 0.0  ;;  %v7762_v54 = vadd.f32 %v7761_v28, %v12015_v26  ;;  %v7885_v28 = vmax.f32 %v7730_v29, 0.0 }
 0x881   : > { %v7763_v52 = vpop.f32.mrf.mxu0  ;;  %8070 = vmatpush1.bf16.xpose.msra.mxu1 %v12208_v7 }
 0x882   : > { %8071 = vmatprep.subr.bf16.mxu1 %v12192_v22  ;;  %v7764_v12 = vadd.f32 %v7763_v52, %v12023_v15  ;;  %v7898_v35 = vmax.f32 %v7762_v54, 0.0  ;;  %v7960_v52 = vpack.c.bf16 %v7890_v10, %v7888_v53 }
 0x883   : > { %v7767_v44 = vpop.f32.mrf.mxu0 }
 0x884   : > { %v7768_v55 = vadd.f32 %v7767_v44, %v12015_v26  ;;  %v7899_v22 = vmax.f32 %v7764_v12, 0.0 }
 0x885   : > { %v7769_v8 = vpop.f32.mrf.mxu0 }
 0x886   : > { %v7770_v0 = vadd.f32 %v7769_v8, %v12023_v15  ;;  %v7900_v31 = vmax.f32 %v7768_v55, 0.0  ;;  %v7965_v50 = vpack.c.bf16 %v7899_v22, %v7897_v47 }
 0x887   : > { %v7771_v60 = vpop.f32.mrf.mxu0 }
 0x888   : > { %v7772_v30 = vadd.f32 %v7771_v60, %v12015_v26  ;;  %v7901_v39 = vmax.f32 %v7770_v0, 0.0  ;;  %v8116_v60 = vld [vmem:[%s10253_s29 + $0x40] sm:$0xff] }
 0x889   : > { %v7773_v33 = vpop.f32.mrf.mxu0  ;;  %8072 = vmatpush1.bf16.xpose.msra.mxu1 %v12187_v61  ;;  %v7758_v61 = vadd.f32 %v7757_v43, %v12015_v26  ;;  %v7887_v43 = vmax.f32 %v7734_v51, 0.0  ;;  %v12372_v26 = vpop.permute.xlu0 %7976 }
 0x88a   : > { %v7774_v7 = vadd.f32 %v7773_v33, %v12023_v15  ;;  %v7902_v21 = vmax.f32 %v7772_v30, 0.0  ;;  %v8117_v33 = vld [vmem:[%s10253_s29 + $0x48] sm:$0xff] }
 0x88b   : > { %v7896_v41 = vmax.f32 %v7758_v61, 0.0  ;;  %v7959_v44 = vpack.c.bf16 %v7887_v43, %v7885_v28 }
 0x88c   : > { %v7903_v14 = vmax.f32 %v7774_v7, 0.0  ;;  %v7966_v42 = vpack.c.bf16 %v7902_v21, %v7900_v31  ;;  %v12381_v48 = vpop.permute.xlu1 %7986 }
 0x88d   : > { %v7964_v63 = vpack.c.bf16 %v7898_v35, %v7896_v41 }
 0x88e   : > { %v7967_v45 = vpack.c.bf16 %v7903_v14, %v7901_v39 }
 0x890   : > { %8073 = vmatprep.subr.bf16.mxu1 %v7967_v45 }
 0x891   : > { %8074 = vmatpush2.bf16.xpose.msra.mxu1 %v7966_v42 }
 0x892   : > { %8075 = vmatprep.subr.bf16.mxu1 %v7965_v50 }
 0x899   : > { %8076 = vmatpush2.bf16.xpose.msra.mxu1 %v7964_v63 }
 0x89a   : > { %8077 = vmatprep.subr.bf16.mxu1 %v7963_v9 }
 0x8a1   : > { %8078 = vmatpush2.bf16.xpose.msra.mxu1 %v7962_v16 }
 0x8a2   : > { %8079 = vmatprep.subr.bf16.mxu1 %v7961_v32 }
 0x8a9   : > { %8080 = vmatpush2.bf16.xpose.msra.mxu1 %v7960_v52 }
 0x8aa   : > { %8081 = vmatprep.subr.bf16.mxu1 %v7959_v44 }
 0x8b1   : > { %8082 = vmatpush2.bf16.xpose.msra.mxu1 %v12332_v2 }
 0x8b2   : > { %8083 = vmatprep.subr.bf16.mxu1 %v12324_v36 }
 0x8b9   : > { %8084 = vmatpush2.bf16.xpose.msra.mxu1 %v12320_v5 }
 0x8ba   : > { %8085 = vmatprep.subr.bf16.mxu1 %v12306_v58  ;;  %v12374_v58 = vpop.permute.xlu0 %7981 }
 0x8c1   : > { %8086 = vmatpush2.bf16.xpose.msra.mxu1 %v12304_v20 }
 0x8c2   : > { %8087 = vmatprep.subr.bf16.mxu1 %v12288_v46 }
 0x8c9   : > { %8088 = vmatpush2.bf16.xpose.msra.mxu1 %v12286_v3 }
 0x8d0   : > { %8090 = vmatmul.mubr.bf16.vlgmr.msra.gmra.mxu1 %v12270_v62  ;;  %v8108_v62 = vld [vmem:[%s10253_s29] sm:$0xff] }
 0x8d1   : > { %8099 = vmatprep.mubr.bf16.mxu1 %v12272_v57  ;;  %v8113_v57 = vld [vmem:[%s10253_s29 + $0x28] sm:$0xff] }
 0x8d8   : > { %8100 = vmatmul.mubr.bf16.gmra.mxu1 %v12284_v6 }
 0x910   : > { %v8040_v15 = vpop.f32.mrf.mxu1 }
 0x911   : > { %v8041_v46 = vadd.f32 %v8040_v15, %v12372_v26 }
 0x912   : > { %v8042_v5 = vpop.f32.mrf.mxu1 }
 0x913   : > { %v8043_v6 = vadd.f32 %v8042_v5, %v12372_v26  ;;  %v8120_v12 = vadd.f32 %v8108_v62, %v8041_v46 }
 0x914   : > { %v8044_v20 = vpop.f32.mrf.mxu1 }
 0x915   : > { %v8045_v3 = vadd.f32 %v8044_v20, %v12374_v58  ;;  %v8121_v27 = vadd.f32 %v8109_v19, %v8043_v6 }
 0x916   : > { %v8046_v36 = vpop.f32.mrf.mxu1 }
 0x917   : > { %v8047_v17 = vadd.f32 %v8046_v36, %v12374_v58  ;;  %v8124_v2 = vadd.f32 %v8112_v40, %v8045_v3 }
 0x918   : > { %v8050_v8 = vpop.f32.mrf.mxu1 }
 0x919   : > { %v8125_v0 = vadd.f32 %v8113_v57, %v8047_v17  ;;  %v8051_v30 = vadd.f32 %v8050_v8, %v12381_v48  ;;  %v8132_v7 = vmax.f32 %v8120_v12, %v8124_v2 }
 0x91a   : > { %v8052_v55 = vpop.f32.mrf.mxu1 }
 0x91b   : > { %v8128_v21 = vadd.f32 %v8116_v60, %v8051_v30  ;;  %v8053_v22 = vadd.f32 %v8052_v55, %v12381_v48  ;;  %v8140_v47 = vmax.f32 %v8121_v27, %v8125_v0 }
 0x91c   : > { %v8054_v39 = vpop.f32.mrf.mxu1 }
 0x91d   : > { %v8133_v14 = vmax.f32 %v8132_v7, %v8128_v21  ;;  %v8129_v31 = vadd.f32 %v8117_v33, %v8053_v22 }
 0x91e   : > { %v8055_v45 = vpop.f32.mrf.mxu1 }
 0x91f   : > { %v8134_v54 = vrot.slane %v8133_v14, 4  ;;  %v8141_v42 = vmax.f32 %v8140_v47, %v8129_v31 }
 0x921   : > { %v8135_v56 = vmax.f32 %v8133_v14, %v8134_v54  ;;  %v8142_v50 = vrot.slane %v8141_v42, 4  ;;  %v8110_v54 = vld [vmem:[%s10253_s29 + $0x10] sm:$0xff] }
 0x923   : > { %v8136_v61 = vrot.slane %v8135_v56, 2  ;;  %v8143_v13 = vmax.f32 %v8141_v42, %v8142_v50 }
 0x925   : > { %v8137_v35 = vmax.f32 %v8135_v56, %v8136_v61  ;;  %v8144_v25 = vrot.slane %v8143_v13, 2  ;;  %v8115_v56 = vld [vmem:[%s10253_s29 + $0x38] sm:$0xff] }
 0x927   : > { %v8138_v41 = vrot.slane %v8137_v35, 1  ;;  %v8145_v24 = vmax.f32 %v8143_v13, %v8144_v25 }
 0x929   : > { %v8139_v49 = vmax.f32 %v8137_v35, %v8138_v41  ;;  %v8146_v63 = vrot.slane %v8145_v24, 1  ;;  %v8111_v35 = vld [vmem:[%s10253_s29 + $0x18] sm:$0xff]  ;;  %v8118_v41 = vld [vmem:[%s10253_s29 + $0x50] sm:$0xff] }
 0x92b   : > { %v8164_v4 = vsub.f32 %v8120_v12, %v8139_v49  ;;  %v8168_v9 = vsub.f32 %v8124_v2, %v8139_v49  ;;  %v8172_v59 = vsub.f32 %v8128_v21, %v8139_v49  ;;  %v8147_v37 = vmax.f32 %v8145_v24, %v8146_v63 }
 0x92d   : > { %v8176_v18 = vmul.f32 1.442695, %v8164_v4  ;;  %v8184_v23 = vmul.f32 1.442695, %v8168_v9  ;;  %v8192_v1 = vmul.f32 1.442695, %v8172_v59  ;;  %v8165_v34 = vsub.f32 %v8121_v27, %v8147_v37 }
 0x92e   : > { %v8169_v11 = vsub.f32 %v8125_v0, %v8147_v37  ;;  %v8173_v16 = vsub.f32 %v8129_v31, %v8147_v37  ;;  %v8114_v31 = vld [vmem:[%s10253_s29 + $0x30] sm:$0xff]  ;;  %v8119_v9 = vld [vmem:[%s10253_s29 + $0x58] sm:$0xff]  ;;  %s8280_s29 = sshll.u32 %s12392_s1, 4  ;;  %s12422_s29 = int_to_ptr.vmem [resolvable:$true] %s8280_s29 }
 0x92f   : > { %9422 = vpow2.f32 %v8176_v18  ;;  %v8178_v51 = vmul.f32 1.442695, %v8165_v34  ;;  %s9776_s21 = scalar_lea.vmem %s12422_s29, 1536  ;;  %p9783_p10 = scmp.lt.s32.totalorder %s12422_s29, %s9781_s14 }
 0x930   : > { %9424 = vpow2.f32 %v8184_v23  ;;  %v8186_v32 = vmul.f32 1.442695, %v8169_v11  ;;  %v8194_v38 = vmul.f32 1.442695, %v8173_v16  ;;  %p9777_p3 = scmp.ne.s32.totalorder %s12422_s29, %s9776_s21  ;;  %p9784_p5 = scmp.lt.s32.totalorder %s9782_s19, %s9776_s21 }
 0x931   : > { %9426 = vpow2.f32 %v8192_v1 }
 0x932   : > { %9428 = vpow2.f32 %v8178_v51  ;;  %p9778_p6 = pnand %p9777_p3, %p10191_p13  ;;  %p9785_p8 = por %p9784_p5, %p9783_p10 }
 0x933   : > { %9430 = vpow2.f32 %v8186_v32 }
 0x934   : > { %9432 = vpow2.f32 %v8194_v38  ;;  %p9779_p9 = pneg %p9778_p6 }
 0x936   : > { %p9786_p12 = pnand %p9785_p8, %p9779_p9 }
 0x93c   : > { %v9423_v29 = vpop.eup %9422 }
 0x93d   : > { %v9425_v10 = vpop.eup %9424 }
 0x93e   : > { %v9427_v43 = vpop.eup %9426  ;;  %v8200_v53 = vadd.f32 %v9425_v10, %v9423_v29 }
 0x93f   : > { %v9429_v28 = vpop.eup %9428 }
 0x940   : > { %v9431_v52 = vpop.eup %9430  ;;  %v8201_v44 = vadd.f32 %v9427_v43, %v8200_v53 }
 0x941   : > { %v8208_v15 = vadd.f32 %v9431_v52, %v9429_v28  ;;  %v9433_v5 = vpop.eup %9432 }
 0x942   : > { %v8202_v20 = vrot.slane %v8201_v44, 4 }
 0x943   : > { %v8209_v40 = vadd.f32 %v9433_v5, %v8208_v15 }
 0x944   : > { %v8203_v46 = vadd.f32 %v8202_v20, %v8201_v44 }
 0x945   : > { %v8210_v3 = vrot.slane %v8209_v40, 4 }
 0x946   : > { %v8204_v62 = vrot.slane %v8203_v46, 2 }
 0x947   : > { %v8211_v36 = vadd.f32 %v8210_v3, %v8209_v40 }
 0x948   : > { %v8205_v57 = vadd.f32 %v8204_v62, %v8203_v46 }
 0x949   : > { %v8212_v6 = vrot.slane %v8211_v36, 2 }
 0x94a   : > { %v8206_v17 = vrot.slane %v8205_v57, 1 }
 0x94b   : > { %v8213_v2 = vadd.f32 %v8212_v6, %v8211_v36 }
 0x94c   : > { %v8207_v19 = vadd.f32 %v8206_v17, %v8205_v57 }
 0x94d   : > { %v8214_v8 = vrot.slane %v8213_v2, 1 }
 0x94e   : > { %9434 = vrcp.f32 %v8207_v19 }
 0x94f   : > { %v8215_v60 = vadd.f32 %v8214_v8, %v8213_v2 }
 0x951   : > { %9436 = vrcp.f32 %v8215_v60 }
 0x95b   : > { %v9435_v12 = vpop.eup %9434 }
 0x95c   : > { %v8240_v0 = vmul.f32 %v9435_v12, %v9423_v29  ;;  %v8244_v30 = vmul.f32 %v9435_v12, %v9425_v10  ;;  %v8248_v55 = vmul.f32 %v9435_v12, %v9427_v43 }
 0x95e   : > { %v9437_v33 = vpop.eup %9436  ;;  %8252 = vst [vmem:[%s12392_s1] sm:$0xff] %v8240_v0  ;;  %8256 = vst [vmem:[%s12392_s1 + $0x20] sm:$0xff] %v8244_v30 }
 0x95f   : > { %8260 = vst [vmem:[%s12392_s1 + $0x40] sm:$0xff] %v8248_v55  ;;  %v8241_v27 = vmul.f32 %v9437_v33, %v9429_v28  ;;  %v8245_v7 = vmul.f32 %v9437_v33, %v9431_v52  ;;  %v8249_v21 = vmul.f32 %v9437_v33, %v9433_v5 }
 0x961   : > { %8253 = vst [vmem:[%s12392_s1 + $0x8] sm:$0xff] %v8241_v27  ;;  %8257 = vst [vmem:[%s12392_s1 + $0x28] sm:$0xff] %v8245_v7 }
 0x962   : > { %8261 = vst [vmem:[%s12392_s1 + $0x48] sm:$0xff] %v8249_v21 }
 0x990   : > { %v8091_v22 = vpop.f32.mrf.mxu1 }
 0x991   : > { %v8092_v47 = vadd.f32 %v8091_v22, %v12372_v26 }
 0x992   : > { %v8093_v39 = vpop.f32.mrf.mxu1 }
 0x993   : > { %v8094_v50 = vadd.f32 %v8093_v39, %v12372_v26  ;;  %v8122_v24 = vadd.f32 %v8110_v54, %v8092_v47 }
 0x994   : > { %v8095_v14 = vpop.f32.mrf.mxu1 }
 0x995   : > { %v8096_v45 = vadd.f32 %v8095_v14, %v12374_v58  ;;  %v8123_v59 = vadd.f32 %v8111_v35, %v8094_v50 }
 0x996   : > { %v8097_v42 = vpop.f32.mrf.mxu1 }
 0x997   : > { %v8126_v61 = vadd.f32 %v8114_v31, %v8096_v45  ;;  %v8098_v13 = vadd.f32 %v8097_v42, %v12374_v58 }
 0x998   : > { %v8101_v25 = vpop.f32.mrf.mxu1 }
 0x999   : > { %v8127_v49 = vadd.f32 %v8115_v56, %v8098_v13  ;;  %v8102_v63 = vadd.f32 %v8101_v25, %v12381_v48  ;;  %v8148_v37 = vmax.f32 %v8122_v24, %v8126_v61 }
 0x99a   : > { %v8103_v4 = vpop.f32.mrf.mxu1 }
 0x99b   : > { %v8130_v18 = vadd.f32 %v8118_v41, %v8102_v63  ;;  %v8104_v23 = vadd.f32 %v8103_v4, %v12381_v48  ;;  %v8156_v34 = vmax.f32 %v8123_v59, %v8127_v49 }
 0x99c   : > { %v8105_v1 = vpop.f32.mrf.mxu1 }
 0x99d   : > { %v8149_v26 = vmax.f32 %v8148_v37, %v8130_v18  ;;  %v8131_v11 = vadd.f32 %v8119_v9, %v8104_v23 }
 0x99e   : > { %v8106_v16 = vpop.f32.mrf.mxu1 }
 0x99f   : > { %v8150_v58 = vrot.slane %v8149_v26, 4  ;;  %v8157_v51 = vmax.f32 %v8156_v34, %v8131_v11 }
 0x9a1   : > { %v8151_v32 = vmax.f32 %v8149_v26, %v8150_v58  ;;  %v8158_v38 = vrot.slane %v8157_v51, 4 }
 0x9a3   : > { %v8152_v29 = vrot.slane %v8151_v32, 2  ;;  %v8159_v10 = vmax.f32 %v8157_v51, %v8158_v38 }
 0x9a5   : > { %v8153_v43 = vmax.f32 %v8151_v32, %v8152_v29  ;;  %v8160_v53 = vrot.slane %v8159_v10, 2 }
 0x9a7   : > { %v8154_v28 = vrot.slane %v8153_v43, 1  ;;  %v8161_v52 = vmax.f32 %v8159_v10, %v8160_v53 }
 0x9a9   : > { %v8155_v44 = vmax.f32 %v8153_v43, %v8154_v28  ;;  %v8162_v15 = vrot.slane %v8161_v52, 1 }
 0x9ab   : > { %v8166_v5 = vsub.f32 %v8122_v24, %v8155_v44  ;;  %v8170_v20 = vsub.f32 %v8126_v61, %v8155_v44  ;;  %v8174_v48 = vsub.f32 %v8130_v18, %v8155_v44  ;;  %v8163_v40 = vmax.f32 %v8161_v52, %v8162_v15 }
 0x9ad   : > { %v8180_v46 = vmul.f32 1.442695, %v8166_v5  ;;  %v8188_v3 = vmul.f32 1.442695, %v8170_v20  ;;  %v8196_v62 = vmul.f32 1.442695, %v8174_v48  ;;  %v8167_v36 = vsub.f32 %v8123_v59, %v8163_v40 }
 0x9ae   : > { %v8171_v57 = vsub.f32 %v8127_v49, %v8163_v40  ;;  %v8175_v6 = vsub.f32 %v8131_v11, %v8163_v40 }
 0x9af   : > { %9438 = vpow2.f32 %v8180_v46  ;;  %v8182_v17 = vmul.f32 1.442695, %v8167_v36 }
 0x9b0   : > { %9440 = vpow2.f32 %v8188_v3  ;;  %v8190_v2 = vmul.f32 1.442695, %v8171_v57  ;;  %v8198_v19 = vmul.f32 1.442695, %v8175_v6 }
 0x9b1   : > { %9442 = vpow2.f32 %v8196_v62 }
 0x9b2   : > { %9444 = vpow2.f32 %v8182_v17 }
 0x9b3   : > { %9446 = vpow2.f32 %v8190_v2 }
 0x9b4   : > { %9448 = vpow2.f32 %v8198_v19 }
 0x9bc   : > { %v9439_v8 = vpop.eup %9438 }
 0x9bd   : > { %v9441_v60 = vpop.eup %9440 }
 0x9be   : > { %v9443_v12 = vpop.eup %9442  ;;  %v8216_v0 = vadd.f32 %v9441_v60, %v9439_v8 }
 0x9bf   : > { %v9445_v30 = vpop.eup %9444 }
 0x9c0   : > { %v9447_v55 = vpop.eup %9446  ;;  %v8217_v33 = vadd.f32 %v9443_v12, %v8216_v0 }
 0x9c1   : > { %v8224_v27 = vadd.f32 %v9447_v55, %v9445_v30  ;;  %v9449_v7 = vpop.eup %9448 }
 0x9c2   : > { %v8218_v21 = vrot.slane %v8217_v33, 4 }
 0x9c3   : > { %v8225_v22 = vadd.f32 %v9449_v7, %v8224_v27 }
 0x9c4   : > { %v8219_v39 = vadd.f32 %v8218_v21, %v8217_v33 }
 0x9c5   : > { %v8226_v14 = vrot.slane %v8225_v22, 4 }
 0x9c6   : > { %v8220_v31 = vrot.slane %v8219_v39, 2 }
 0x9c7   : > { %v8227_v47 = vadd.f32 %v8226_v14, %v8225_v22 }
 0x9c8   : > { %v8221_v45 = vadd.f32 %v8220_v31, %v8219_v39 }
 0x9c9   : > { %v8228_v54 = vrot.slane %v8227_v47, 2 }
 0x9ca   : > { %v8222_v42 = vrot.slane %v8221_v45, 1 }
 0x9cb   : > { %v8229_v56 = vadd.f32 %v8228_v54, %v8227_v47 }
 0x9cc   : > { %v8223_v50 = vadd.f32 %v8222_v42, %v8221_v45 }
 0x9cd   : > { %v8230_v61 = vrot.slane %v8229_v56, 1 }
 0x9ce   : > { %9450 = vrcp.f32 %v8223_v50 }
 0x9cf   : > { %v8231_v13 = vadd.f32 %v8230_v61, %v8229_v56 }
 0x9d1   : > { %9452 = vrcp.f32 %v8231_v13 }
 0x9db   : > { %v9451_v35 = vpop.eup %9450 }
 0x9dc   : > { %v8242_v25 = vmul.f32 %v9451_v35, %v9439_v8  ;;  %v8246_v41 = vmul.f32 %v9451_v35, %v9441_v60  ;;  %v8250_v24 = vmul.f32 %v9451_v35, %v9443_v12 }
 0x9de   : > { %v9453_v49 = vpop.eup %9452  ;;  %8254 = vst [vmem:[%s12392_s1 + $0x10] sm:$0xff] %v8242_v25  ;;  %8258 = vst [vmem:[%s12392_s1 + $0x30] sm:$0xff] %v8246_v41 }
 0x9df   : > { %8262 = vst [vmem:[%s12392_s1 + $0x50] sm:$0xff] %v8250_v24  ;;  %v8243_v63 = vmul.f32 %v9453_v49, %v9445_v30  ;;  %v8247_v4 = vmul.f32 %v9453_v49, %v9447_v55  ;;  %v8251_v9 = vmul.f32 %v9453_v49, %v9449_v7 }
 0x9e1   : > { %8255 = vst [vmem:[%s12392_s1 + $0x18] sm:$0xff] %v8243_v63  ;;  %8259 = vst [vmem:[%s12392_s1 + $0x38] sm:$0xff] %v8247_v4 }
 0x9e2   : > { %8263 = vst [vmem:[%s12392_s1 + $0x58] sm:$0xff] %v8251_v9 }
 0x9e3   : > { %9789 = shalt.err (!%p9786_p12)
}
 0x9e4   : > { %s9790_s24 = scalar_lea.hbm %s12420_s15, 1536  ;;  %s9794_s13 = scalar_lea.hbm %s12559_s8, 3072 }
 0x9e5   : > { %p9791_p0 = scmp.ne.s32.totalorder %s12420_s15, %s9790_s24  ;;  %p9795_p4 = scmp.lt.s32.totalorder %s12420_s15, %s12559_s8 }
 0x9e6   : > { %p9796_p1 = scmp.lt.s32.totalorder %s9794_s13, %s9790_s24 }
 0x9e7   : > { %p9792_p11 = pnand %p9791_p0, %p10191_p13 }
 0x9e8   : > { %p9797_p3 = por %p9796_p1, %p9795_p4 }
 0x9e9   : > { %p9793_p2 = pneg %p9792_p11 }
 0x9eb   : > { %p9798_p6 = pnand %p9797_p3, %p9793_p2 }
 0x9ed   : > { %9801 = shalt.err (!%p9798_p6)
}
 0x9ee   : > { %s9901_s16 = smov 512   ;;  %s9902_s23 = smov 32  }
 0x9ef   : > { %8872 = dma.vmem_to_hbm [thread:$0]  (%p10191_p13), %s12422_s29, 1536, %s12420_s15, %s8265_s25, %s9901_s16, %s9901_s16, %s9902_s23  }
 0x9f0 PF: > { %s12560_s6 = sld [smem:[#allocation30_spill]]  ;;  %s8295_s1 = sand.u32 1, %s9860_s4  }
 0x9f1   : > { %s8296_s7 = scalar_lea.sflag [#allocation4], %s8295_s1 }
 0x9f6   : > { %p12561_p9 = scmp.ge.s32.totalorder %s12560_s6, 2 }
 0x9f8   : > { %p8910_p10 = pnand %p12561_p9, %p10199_p7 }
 0x9fa   : > { %p8911_p5 = pneg %p8910_p10 }
 0x9fc   : > { %9855 = dma.done.wait (%p8911_p5), %s8296_s7, 1536  }
 0x9fd   : > { %9857 = vsyncadd (%p8911_p5), %s8296_s7, 4294965760  ;;  %s46_s1 = sadd.s32 1, %s12560_s6   ;;  %s12562_s26 = sld [smem:[#allocation29_spill]] }
 0x9fe   : > { %p43_p8 = scmp.ge.s32.totalorder %s46_s1, 4   ;;  %s12563_s24 = sld [smem:[#allocation32_spill]] }
 0x9ff   : > { %s12564_s22 = sld [smem:[#allocation31_spill]]  ;;  %s12565_s4 = smov %s9864_s30 }
 0xa00   : > { %s12567_s25 = smov %s9876_s5 }
 0xa01   :  { %45 = sbr.rel (!%p43_p8) target bundleno = 35 (0x23), region = 212 }
 0xa03   : > { %s12566_s30 = smov %s12562_s26 }
 0xa05   : > { %s12568_s5 = smov %s12564_s22 }
 0xa06   :  { %8301 = vsyncpa [#allocation3], 1 }
 0xa07   :  { %8303 = vsyncpa [#allocation3 + $0x1], 1 }
 0xa08   :  { %8304 = vsyncpa [#allocation6], 1 }
 0xa09   :  { %8306 = vsyncpa [#allocation6 + $0x1], 1 }
 0xa0a   :  { %8307 = vsyncpa [#allocation9], 1 }
 0xa0b   :  { %8308 = vsyncpa [#allocation12], 1 }
 0xa0c   :  { %8309 = vsyncpa [#allocation15], 1 }
 0xa0d   :  { %8310 = vsyncpa [#allocation18], 1 }
 0xa0e   :  { %8311 = vsyncpa [#allocation4], 1 }
 0xa0f   :  { %8313 = vsyncpa [#allocation4 + $0x1], 1 }

</bundles_post_ra>
